<compile_context>
chip_gen: v5e
topology: v5e:2x2
jax: 0.10.0
libtpu: 0.0.40
codegen_flags: <defaults>
</compile_context>

<pallas_src>
import functools

import jax
import jax.numpy as jnp
from jax.experimental import pallas as pl
from jax.experimental.pallas import tpu as pltpu

EPS = 1e-5  # PyTorch BatchNorm1d default eps.


# ---------------------------------------------------------------------------
# Fused ConvBlock kernel: conv(k3,p1) -> BN -> ReLU -> conv(k3,p1) -> BN -> ReLU
# ---------------------------------------------------------------------------
def conv_block_kernel(x_ref, w1_ref, w2_ref, g_ref, be_ref, o_ref,
                      tap_a_ref, tap_b_ref, *, seq_len):
    """x_ref: (N*L, Cin) bf16; w*_ref: (3, Cin|Cout, Cout) bf16;
    g_ref/be_ref: (1, Cout) f32; o_ref: (N*L, Cout) bf16;
    tap_*_ref: (N*L + 1, Cout) f32 staging buffers for the +/-1 tap shifts."""
    nl, _ = x_ref.shape

    # Per-row position within a sequence (rows are batch-major, length-minor).
    is_first = is_last = None
    if seq_len > 1:
        row_l = jax.lax.broadcasted_iota(jnp.int32, (nl, 1), 0) % seq_len
        is_first = row_l == 0              # l == 0   : x[l-1] tap is zero padding
        is_last = row_l == seq_len - 1     # l == L-1 : x[l+1] tap is zero padding

    # gamma/beta loaded once; the same affine is used after both convs, exactly
    # like the module (one shared BatchNorm1d per ConvBlock).
    gamma = g_ref[...]
    beta = be_ref[...]

    def conv3(x, w_ref):
        # 'same' conv, kernel=3: one MXU matmul per tap on the UNSHIFTED input.
        # Tap results are shifted by +/-1 row through a staging buffer (store
        # at a 1-row offset, read back at offset 0, or vice versa).  Rows whose
        # shifted source would cross the zero padding or a batch boundary are
        # discarded with jnp.where (select, so stale buffer rows never leak).
        y = jnp.dot(x, w_ref[1], preferred_element_type=jnp.float32)
        if seq_len > 1:
            # x[l-1] tap: out[i] += (x @ W0)[i-1]
            tap_a_ref[pl.ds(1, nl), :] = jnp.dot(
                x, w_ref[0], preferred_element_type=jnp.float32)
            y = y + jnp.where(is_first, 0.0, tap_a_ref[pl.ds(0, nl), :])
            # x[l+1] tap: out[i] += (x @ W2)[i+1]
            tap_b_ref[pl.ds(0, nl), :] = jnp.dot(
                x, w_ref[2], preferred_element_type=jnp.float32)
            y = y + jnp.where(is_last, 0.0, tap_b_ref[pl.ds(1, nl), :])
        return y  # (N*L, Cout) f32

    def bn_relu(y):
        # Training-mode BatchNorm1d: biased batch stats over (N, L), computed
        # in one pass (sum / sum of squares) and folded into a single
        # per-channel scale & shift so the big tensor is touched once.
        inv_nl = 1.0 / nl
        mean = jnp.sum(y, axis=0, keepdims=True) * inv_nl
        var = jnp.sum(y * y, axis=0, keepdims=True) * inv_nl - mean * mean
        scale = gamma * jax.lax.rsqrt(var + EPS)
        shift = beta - mean * scale
        return jnp.maximum(y * scale + shift, 0.0)

    # Conv biases are intentionally absent: train-mode BN cancels them exactly.
    h = bn_relu(conv3(x_ref[...], w1_ref))
    h = bn_relu(conv3(h.astype(jnp.bfloat16), w2_ref))
    o_ref[...] = h.astype(o_ref.dtype)
    # TODO(synk): BatchNorm running_mean/running_var buffer updates (PyTorch
    # training-mode side state) are not part of the returned tensor and are
    # not reproduced here.


def conv_block(x_nlc, blk):
    """Apply one fused ConvBlock. x_nlc: (N, L, Cin) bf16 -> (N, L, Cout) bf16."""
    n, l, cin = x_nlc.shape
    cout = blk['w1'].shape[0]
    nl = n * l

    # PyTorch Conv1d weight (Cout, Cin, K) -> (K, Cin, Cout), bf16 for the MXU.
    w1_k = jnp.transpose(blk['w1'], (2, 1, 0)).astype(jnp.bfloat16)
    w2_k = jnp.transpose(blk['w2'], (2, 1, 0)).astype(jnp.bfloat16)
    gamma = blk['gamma'].reshape(1, cout).astype(jnp.float32)
    beta = blk['beta'].reshape(1, cout).astype(jnp.float32)

    vmem = pl.BlockSpec(memory_space=pltpu.MemorySpace.VMEM)
    out = pl.pallas_call(
        functools.partial(conv_block_kernel, seq_len=l),
        out_shape=jax.ShapeDtypeStruct((nl, cout), jnp.bfloat16),
        in_specs=[vmem] * 5,
        out_specs=vmem,
        scratch_shapes=[pltpu.VMEM((nl + 1, cout), jnp.float32),
                        pltpu.VMEM((nl + 1, cout), jnp.float32)],
        compiler_params=pltpu.CompilerParams(vmem_limit_bytes=32 * 1024 * 1024),
    )(x_nlc.reshape(nl, cin).astype(jnp.bfloat16), w1_k, w2_k, gamma, beta)
    return out.reshape(n, l, cout)


# ---------------------------------------------------------------------------
# Final 1x1 conv (pointwise matmul + bias; no BN follows, so the bias stays).
# ---------------------------------------------------------------------------
def pointwise_conv_kernel(x_ref, w_ref, b_ref, o_ref):
    y = jnp.dot(x_ref[...], w_ref[...], preferred_element_type=jnp.float32)
    o_ref[...] = (y + b_ref[...]).astype(o_ref.dtype)


def pointwise_conv(x_nlc, w_oik, b):
    n, l, cin = x_nlc.shape
    cout = w_oik.shape[0]
    nl = n * l
    w_io = jnp.transpose(w_oik[:, :, 0], (1, 0)).astype(jnp.bfloat16)
    vmem = pl.BlockSpec(memory_space=pltpu.MemorySpace.VMEM)
    out = pl.pallas_call(
        pointwise_conv_kernel,
        out_shape=jax.ShapeDtypeStruct((nl, cout), jnp.float32),
        in_specs=[vmem] * 3,
        out_specs=vmem,
        compiler_params=pltpu.CompilerParams(vmem_limit_bytes=32 * 1024 * 1024),
    )(x_nlc.reshape(nl, cin).astype(jnp.bfloat16), w_io,
      b.reshape(1, cout).astype(jnp.float32))
    return out.reshape(n, l, cout)


# ---------------------------------------------------------------------------
# DebugNet forward (NLC inside; NCL at the boundary, matching PyTorch).
# ---------------------------------------------------------------------------
def _pool_nlc(x):            # MaxPool1d(2, 2) along L
    n, l, c = x.shape
    return jnp.max(x.reshape(n, l // 2, 2, c), axis=2)


def _upsample_nlc(x):        # Upsample(scale_factor=2, mode='nearest') along L
    return jnp.repeat(x, 2, axis=1)


def debugnet_forward(x_ncl, params):
    x = jnp.transpose(x_ncl, (0, 2, 1)).astype(jnp.bfloat16)   # NCL -> NLC once
    e1 = conv_block(x, params['enc1'])
    x = _pool_nlc(e1)
    e2 = conv_block(x, params['enc2'])
    x = _pool_nlc(e2)
    e3 = conv_block(x, params['enc3'])
    x = _pool_nlc(e3)
    x = conv_block(x, params['enc4'])
    x = conv_block(jnp.concatenate([_upsample_nlc(x), e3], axis=-1), params['dec1'])
    x = conv_block(jnp.concatenate([_upsample_nlc(x), e2], axis=-1), params['dec2'])
    x = conv_block(jnp.concatenate([_upsample_nlc(x), e1], axis=-1), params['dec3'])
    y = pointwise_conv(x, params['final_w'], params['final_b'])
    return jnp.transpose(y, (0, 2, 1))                          # NLC -> NCL once


# ---------------------------------------------------------------------------
# Pure-JAX reference (faithful to the PyTorch module: conv biases kept, BN as
# two-pass mean/var).  Conv matmul operands mirror the kernel's bf16-in /
# f32-accumulate MXU convention so the comparison isolates structural bugs.
# ---------------------------------------------------------------------------
def _ref_conv_block(x_nlc, blk):
    gamma, beta = blk['gamma'], blk['beta']

    def conv(x, w_oik, b):
        n, l, _ = x.shape
        w_kio = jnp.transpose(w_oik, (2, 1, 0)).astype(jnp.bfloat16)
        xp = jnp.pad(x.astype(jnp.bfloat16), ((0, 0), (1, 1), (0, 0)))
        y = sum(jnp.einsum('nlc,co->nlo', xp[:, k:k + l, :], w_kio[k],
                           preferred_element_type=jnp.float32)
                for k in range(3))
        return y + b[None, None, :]

    def bn_relu(y):
        mean = jnp.mean(y, axis=(0, 1), keepdims=True)
        var = jnp.mean((y - mean) ** 2, axis=(0, 1), keepdims=True)
        yh = (y - mean) / jnp.sqrt(var + EPS)
        yh = yh * gamma[None, None, :] + beta[None, None, :]
        return jnp.maximum(yh, 0.0)

    h = bn_relu(conv(x_nlc, blk['w1'], blk['b1']))
    h = bn_relu(conv(h, blk['w2'], blk['b2']))
    return h


def ref_forward(x_ncl, params):
    x = jnp.transpose(x_ncl, (0, 2, 1)).astype(jnp.float32)
    e1 = _ref_conv_block(x, params['enc1'])
    x = _pool_nlc(e1)
    e2 = _ref_conv_block(x, params['enc2'])
    x = _pool_nlc(e2)
    e3 = _ref_conv_block(x, params['enc3'])
    x = _pool_nlc(e3)
    x = _ref_conv_block(x, params['enc4'])
    x = _ref_conv_block(jnp.concatenate([_upsample_nlc(x), e3], -1), params['dec1'])
    x = _ref_conv_block(jnp.concatenate([_upsample_nlc(x), e2], -1), params['dec2'])
    x = _ref_conv_block(jnp.concatenate([_upsample_nlc(x), e1], -1), params['dec3'])
    w, b = params['final_w'], params['final_b']
    y = jnp.einsum('nlc,co->nlo', x.astype(jnp.bfloat16),
                   jnp.transpose(w[:, :, 0], (1, 0)).astype(jnp.bfloat16),
                   preferred_element_type=jnp.float32) + b[None, None, :]
    return jnp.transpose(y, (0, 2, 1))


# ---------------------------------------------------------------------------
# Parameter construction (PyTorch-style init, PyTorch layouts).
# ---------------------------------------------------------------------------
def init_params(key, in_ch, out_ch):
    block_io = {
        'enc1': (in_ch, 64), 'enc2': (64, 128), 'enc3': (128, 256),
        'enc4': (256, 512), 'dec1': (512 + 256, 256),
        'dec2': (256 + 128, 128), 'dec3': (128 + 64, 64),
    }
    params = {}
    for name, (ci, co) in block_io.items():
        key, k1, k2, k3, k4, k5, k6 = jax.random.split(key, 7)
        bnd1 = 1.0 / (ci * 3) ** 0.5
        bnd2 = 1.0 / (co * 3) ** 0.5
        params[name] = {
            'w1': jax.random.uniform(k1, (co, ci, 3), jnp.float32, -bnd1, bnd1),
            'b1': jax.random.uniform(k2, (co,), jnp.float32, -bnd1, bnd1),
            'w2': jax.random.uniform(k3, (co, co, 3), jnp.float32, -bnd2, bnd2),
            'b2': jax.random.uniform(k4, (co,), jnp.float32, -bnd2, bnd2),
            # BatchNorm1d default init is gamma=1, beta=0; perturb them so the
            # shared-affine path is actually exercised by the check.
            'gamma': jax.random.uniform(k5, (co,), jnp.float32, 0.7, 1.3),
            'beta': jax.random.uniform(k6, (co,), jnp.float32, -0.1, 0.1),
        }
    key, kw, kb = jax.random.split(key, 3)
    bnd = 1.0 / 64 ** 0.5
    params['final_w'] = jax.random.uniform(kw, (out_ch, 64, 1), jnp.float32, -bnd, bnd)
    params['final_b'] = jax.random.uniform(kb, (out_ch,), jnp.float32, -bnd, bnd)
    return params


if __name__ == "__main__":
    # DebugNet.forward asserts C_in == 2 and L == 8.
    N, IN_CH, OUT_CH, L = 2, 2, 4, 8

    key = jax.random.PRNGKey(0)
    key, kx = jax.random.split(key)
    x = jax.random.normal(kx, (N, IN_CH, L), dtype=jnp.float32)
    params = init_params(key, IN_CH, OUT_CH)

    fwd = jax.jit(debugnet_forward)
    out = jax.block_until_ready(fwd(x, params))
    ref = ref_forward(x, params)

    assert out.shape == (N, OUT_CH, L)
    assert out.dtype == jnp.float32
    # Kernel and reference share the bf16-operand / f32-accumulate convention;
    # residual divergence comes from independent bf16 re-rounding of
    # nearly-equal intermediates across 15 convolutions (amplified slightly by
    # the tiny-batch BN stats), hence the 1e-2 tolerance.
    err = jnp.max(jnp.abs(out - ref))
    assert jnp.allclose(out, ref, atol=1e-2, rtol=1e-2), f"max abs err {err}"

    print("KERNEL_OK")
</pallas_src>

<mosaic_0001>
module attributes {stable_mosaic.version = 11 : i64} {
  func.func @conv_block_kernel(%arg0: memref<8x64xbf16, #tpu.memory_space<vmem>>, %arg1: memref<3x64x128xbf16, #tpu.memory_space<vmem>>, %arg2: memref<3x128x128xbf16, #tpu.memory_space<vmem>>, %arg3: memref<1x128xf32, #tpu.memory_space<vmem>>, %arg4: memref<1x128xf32, #tpu.memory_space<vmem>>, %arg5: memref<8x128xbf16, #tpu.memory_space<vmem>>, %arg6: memref<9x128xf32, #tpu.memory_space<vmem>>, %arg7: memref<9x128xf32, #tpu.memory_space<vmem>>) attributes {dimension_semantics = [], scalar_prefetch = 0 : i64, scratch_operands = 2 : i64, tpu.core_type = #tpu.core_type<tc>} {
    %0 = tpu.iota {dimensions = array<i32: 0>} : vector<8x1xi32>
    %c4_i32 = arith.constant 4 : i32
    %c0_i32 = arith.constant 0 : i32
    %1 = arith.cmpi eq, %c4_i32, %c0_i32 : i32
    %c1_i32 = arith.constant 1 : i32
    %2 = arith.select %1, %c1_i32, %c4_i32 : i32
    %3 = vector.broadcast %2 : i32 to vector<8x1xi32>
    %4 = arith.remsi %0, %3 : vector<8x1xi32>
    %c0_i32_0 = arith.constant 0 : i32
    %5 = vector.broadcast %c0_i32_0 : i32 to vector<8x1xi32>
    %6 = arith.cmpi ne, %4, %5 : vector<8x1xi32>
    %c0_i32_1 = arith.constant 0 : i32
    %7 = vector.broadcast %c0_i32_1 : i32 to vector<8x1xi32>
    %8 = arith.cmpi slt, %4, %7 : vector<8x1xi32>
    %c0_i32_2 = arith.constant 0 : i32
    %9 = arith.cmpi slt, %2, %c0_i32_2 : i32
    %10 = vector.broadcast %9 : i1 to vector<8x1xi1>
    %11 = vector.broadcast %10 : vector<8x1xi1> to vector<8x1xi1>
    %12 = arith.xori %8, %11 : vector<8x1xi1>
    %13 = arith.andi %12, %6 : vector<8x1xi1>
    %14 = vector.broadcast %2 : i32 to vector<8x1xi32>
    %15 = arith.addi %4, %14 : vector<8x1xi32>
    %16 = arith.select %13, %15, %4 : vector<8x1xi1>, vector<8x1xi32>
    %c0_i32_3 = arith.constant 0 : i32
    %17 = vector.broadcast %c0_i32_3 : i32 to vector<8x1xi32>
    %18 = arith.cmpi eq, %16, %17 : vector<8x1xi32>
    %c3_i32 = arith.constant 3 : i32
    %19 = vector.broadcast %c3_i32 : i32 to vector<8x1xi32>
    %20 = arith.cmpi eq, %16, %19 : vector<8x1xi32>
    %c0 = arith.constant 0 : index
    %c0_4 = arith.constant 0 : index
    %21 = vector.load %arg3[%c0, %c0_4] : memref<1x128xf32, #tpu.memory_space<vmem>>, vector<1x128xf32>
    %c0_5 = arith.constant 0 : index
    %c0_6 = arith.constant 0 : index
    %22 = vector.load %arg4[%c0_5, %c0_6] : memref<1x128xf32, #tpu.memory_space<vmem>>, vector<1x128xf32>
    %c0_7 = arith.constant 0 : index
    %c0_8 = arith.constant 0 : index
    %23 = vector.load %arg0[%c0_7, %c0_8] : memref<8x64xbf16, #tpu.memory_space<vmem>>, vector<8x64xbf16>
    %c1 = arith.constant 1 : index
    %c0_9 = arith.constant 0 : index
    %c0_10 = arith.constant 0 : index
    %24 = vector.load %arg1[%c1, %c0_9, %c0_10] : memref<3x64x128xbf16, #tpu.memory_space<vmem>>, vector<1x64x128xbf16>
    %25 = vector.shape_cast %24 : vector<1x64x128xbf16> to vector<64x128xbf16>
    %cst = arith.constant dense<0.000000e+00> : vector<8x128xf32>
    %26 = tpu.matmul %23, %25, %cst {dimension_numbers = #tpu.dot_dimension_numbers<[1], [0], [0], [1], [0, 0, 1, 1], [], []>} : vector<8x64xbf16>, vector<64x128xbf16>, vector<8x128xf32> -> vector<8x128xf32>
    %c0_11 = arith.constant 0 : index
    %c0_12 = arith.constant 0 : index
    %c0_13 = arith.constant 0 : index
    %27 = vector.load %arg1[%c0_11, %c0_12, %c0_13] : memref<3x64x128xbf16, #tpu.memory_space<vmem>>, vector<1x64x128xbf16>
    %28 = vector.shape_cast %27 : vector<1x64x128xbf16> to vector<64x128xbf16>
    %cst_14 = arith.constant dense<0.000000e+00> : vector<8x128xf32>
    %29 = tpu.matmul %23, %28, %cst_14 {dimension_numbers = #tpu.dot_dimension_numbers<[1], [0], [0], [1], [0, 0, 1, 1], [], []>} : vector<8x64xbf16>, vector<64x128xbf16>, vector<8x128xf32> -> vector<8x128xf32>
    %c1_15 = arith.constant 1 : index
    %c0_16 = arith.constant 0 : index
    %30 = vector.load %arg6[%c1_15, %c0_16] : memref<9x128xf32, #tpu.memory_space<vmem>>, vector<8x128xf32>
    tpu.vector_store %arg6[%c1_15, %c0_16], %29 {strides = array<i32>} : memref<9x128xf32, #tpu.memory_space<vmem>>, vector<8x128xf32>,
    %c0_17 = arith.constant 0 : index
    %c0_18 = arith.constant 0 : index
    %31 = vector.load %arg6[%c0_17, %c0_18] : memref<9x128xf32, #tpu.memory_space<vmem>>, vector<8x128xf32>
    %cst_19 = arith.constant 0.000000e+00 : f32
    %32 = vector.shape_cast %18 : vector<8x1xi1> to vector<8x1xi1>
    %33 = vector.broadcast %32 : vector<8x1xi1> to vector<8x128xi1>
    %34 = vector.broadcast %cst_19 : f32 to vector<8x128xf32>
    %35 = arith.select %33, %34, %31 : vector<8x128xi1>, vector<8x128xf32>
    %36 = arith.addf %26, %35 : vector<8x128xf32>
    %c2 = arith.constant 2 : index
    %c0_20 = arith.constant 0 : index
    %c0_21 = arith.constant 0 : index
    %37 = vector.load %arg1[%c2, %c0_20, %c0_21] : memref<3x64x128xbf16, #tpu.memory_space<vmem>>, vector<1x64x128xbf16>
    %38 = vector.shape_cast %37 : vector<1x64x128xbf16> to vector<64x128xbf16>
    %cst_22 = arith.constant dense<0.000000e+00> : vector<8x128xf32>
    %39 = tpu.matmul %23, %38, %cst_22 {dimension_numbers = #tpu.dot_dimension_numbers<[1], [0], [0], [1], [0, 0, 1, 1], [], []>} : vector<8x64xbf16>, vector<64x128xbf16>, vector<8x128xf32> -> vector<8x128xf32>
    %c0_23 = arith.constant 0 : index
    %c0_24 = arith.constant 0 : index
    %40 = vector.load %arg7[%c0_23, %c0_24] : memref<9x128xf32, #tpu.memory_space<vmem>>, vector<8x128xf32>
    tpu.vector_store %arg7[%c0_23, %c0_24], %39 {strides = array<i32>} : memref<9x128xf32, #tpu.memory_space<vmem>>, vector<8x128xf32>,
    %c1_25 = arith.constant 1 : index
    %c0_26 = arith.constant 0 : index
    %41 = vector.load %arg7[%c1_25, %c0_26] : memref<9x128xf32, #tpu.memory_space<vmem>>, vector<8x128xf32>
    %cst_27 = arith.constant 0.000000e+00 : f32
    %42 = vector.shape_cast %20 : vector<8x1xi1> to vector<8x1xi1>
    %43 = vector.broadcast %42 : vector<8x1xi1> to vector<8x128xi1>
    %44 = vector.broadcast %cst_27 : f32 to vector<8x128xf32>
    %45 = arith.select %43, %44, %41 : vector<8x128xi1>, vector<8x128xf32>
    %46 = arith.addf %36, %45 : vector<8x128xf32>
    %cst_28 = arith.constant dense<0.000000e+00> : vector<128xf32>
    %47 = vector.multi_reduction <add>, %46, %cst_28 [0] : vector<8x128xf32> to vector<128xf32>
    %48 = vector.shape_cast %47 : vector<128xf32> to vector<1x128xf32>
    %cst_29 = arith.constant 1.250000e-01 : f32
    %49 = vector.broadcast %cst_29 : f32 to vector<1x128xf32>
    %50 = arith.mulf %48, %49 : vector<1x128xf32>
    %51 = arith.mulf %46, %46 : vector<8x128xf32>
    %cst_30 = arith.constant dense<0.000000e+00> : vector<128xf32>
    %52 = vector.multi_reduction <add>, %51, %cst_30 [0] : vector<8x128xf32> to vector<128xf32>
    %53 = vector.shape_cast %52 : vector<128xf32> to vector<1x128xf32>
    %cst_31 = arith.constant 1.250000e-01 : f32
    %54 = vector.broadcast %cst_31 : f32 to vector<1x128xf32>
    %55 = arith.mulf %53, %54 : vector<1x128xf32>
    %56 = arith.mulf %50, %50 : vector<1x128xf32>
    %57 = arith.subf %55, %56 : vector<1x128xf32>
    %cst_32 = arith.constant 9.99999974E-6 : f32
    %58 = vector.broadcast %cst_32 : f32 to vector<1x128xf32>
    %59 = arith.addf %57, %58 : vector<1x128xf32>
    %60 = math.rsqrt %59 : vector<1x128xf32>
    %61 = arith.mulf %21, %60 : vector<1x128xf32>
    %62 = arith.mulf %50, %61 : vector<1x128xf32>
    %63 = arith.subf %22, %62 : vector<1x128xf32>
    %64 = vector.broadcast %61 : vector<1x128xf32> to vector<8x128xf32>
    %65 = arith.mulf %46, %64 : vector<8x128xf32>
    %66 = vector.broadcast %63 : vector<1x128xf32> to vector<8x128xf32>
    %67 = arith.addf %65, %66 : vector<8x128xf32>
    %cst_33 = arith.constant 0.000000e+00 : f32
    %68 = vector.broadcast %cst_33 : f32 to vector<8x128xf32>
    %69 = arith.maximumf %67, %68 : vector<8x128xf32>
    %70 = arith.truncf %69 : vector<8x128xf32> to vector<8x128xbf16>
    %c1_34 = arith.constant 1 : index
    %c0_35 = arith.constant 0 : index
    %c0_36 = arith.constant 0 : index
    %71 = vector.load %arg2[%c1_34, %c0_35, %c0_36] : memref<3x128x128xbf16, #tpu.memory_space<vmem>>, vector<1x128x128xbf16>
    %72 = vector.shape_cast %71 : vector<1x128x128xbf16> to vector<128x128xbf16>
    %cst_37 = arith.constant dense<0.000000e+00> : vector<8x128xf32>
    %73 = tpu.matmul %70, %72, %cst_37 {dimension_numbers = #tpu.dot_dimension_numbers<[1], [0], [0], [1], [0, 0, 1, 1], [], []>} : vector<8x128xbf16>, vector<128x128xbf16>, vector<8x128xf32> -> vector<8x128xf32>
    %c0_38 = arith.constant 0 : index
    %c0_39 = arith.constant 0 : index
    %c0_40 = arith.constant 0 : index
    %74 = vector.load %arg2[%c0_38, %c0_39, %c0_40] : memref<3x128x128xbf16, #tpu.memory_space<vmem>>, vector<1x128x128xbf16>
    %75 = vector.shape_cast %74 : vector<1x128x128xbf16> to vector<128x128xbf16>
    %cst_41 = arith.constant dense<0.000000e+00> : vector<8x128xf32>
    %76 = tpu.matmul %70, %75, %cst_41 {dimension_numbers = #tpu.dot_dimension_numbers<[1], [0], [0], [1], [0, 0, 1, 1], [], []>} : vector<8x128xbf16>, vector<128x128xbf16>, vector<8x128xf32> -> vector<8x128xf32>
    %c1_42 = arith.constant 1 : index
    %c0_43 = arith.constant 0 : index
    %77 = vector.load %arg6[%c1_42, %c0_43] : memref<9x128xf32, #tpu.memory_space<vmem>>, vector<8x128xf32>
    tpu.vector_store %arg6[%c1_42, %c0_43], %76 {strides = array<i32>} : memref<9x128xf32, #tpu.memory_space<vmem>>, vector<8x128xf32>,
    %c0_44 = arith.constant 0 : index
    %c0_45 = arith.constant 0 : index
    %78 = vector.load %arg6[%c0_44, %c0_45] : memref<9x128xf32, #tpu.memory_space<vmem>>, vector<8x128xf32>
    %cst_46 = arith.constant 0.000000e+00 : f32
    %79 = vector.shape_cast %18 : vector<8x1xi1> to vector<8x1xi1>
    %80 = vector.broadcast %79 : vector<8x1xi1> to vector<8x128xi1>
    %81 = vector.broadcast %cst_46 : f32 to vector<8x128xf32>
    %82 = arith.select %80, %81, %78 : vector<8x128xi1>, vector<8x128xf32>
    %83 = arith.addf %73, %82 : vector<8x128xf32>
    %c2_47 = arith.constant 2 : index
    %c0_48 = arith.constant 0 : index
    %c0_49 = arith.constant 0 : index
    %84 = vector.load %arg2[%c2_47, %c0_48, %c0_49] : memref<3x128x128xbf16, #tpu.memory_space<vmem>>, vector<1x128x128xbf16>
    %85 = vector.shape_cast %84 : vector<1x128x128xbf16> to vector<128x128xbf16>
    %cst_50 = arith.constant dense<0.000000e+00> : vector<8x128xf32>
    %86 = tpu.matmul %70, %85, %cst_50 {dimension_numbers = #tpu.dot_dimension_numbers<[1], [0], [0], [1], [0, 0, 1, 1], [], []>} : vector<8x128xbf16>, vector<128x128xbf16>, vector<8x128xf32> -> vector<8x128xf32>
    %c0_51 = arith.constant 0 : index
    %c0_52 = arith.constant 0 : index
    %87 = vector.load %arg7[%c0_51, %c0_52] : memref<9x128xf32, #tpu.memory_space<vmem>>, vector<8x128xf32>
    tpu.vector_store %arg7[%c0_51, %c0_52], %86 {strides = array<i32>} : memref<9x128xf32, #tpu.memory_space<vmem>>, vector<8x128xf32>,
    %c1_53 = arith.constant 1 : index
    %c0_54 = arith.constant 0 : index
    %88 = vector.load %arg7[%c1_53, %c0_54] : memref<9x128xf32, #tpu.memory_space<vmem>>, vector<8x128xf32>
    %cst_55 = arith.constant 0.000000e+00 : f32
    %89 = vector.shape_cast %20 : vector<8x1xi1> to vector<8x1xi1>
    %90 = vector.broadcast %89 : vector<8x1xi1> to vector<8x128xi1>
    %91 = vector.broadcast %cst_55 : f32 to vector<8x128xf32>
    %92 = arith.select %90, %91, %88 : vector<8x128xi1>, vector<8x128xf32>
    %93 = arith.addf %83, %92 : vector<8x128xf32>
    %cst_56 = arith.constant dense<0.000000e+00> : vector<128xf32>
    %94 = vector.multi_reduction <add>, %93, %cst_56 [0] : vector<8x128xf32> to vector<128xf32>
    %95 = vector.shape_cast %94 : vector<128xf32> to vector<1x128xf32>
    %cst_57 = arith.constant 1.250000e-01 : f32
    %96 = vector.broadcast %cst_57 : f32 to vector<1x128xf32>
    %97 = arith.mulf %95, %96 : vector<1x128xf32>
    %98 = arith.mulf %93, %93 : vector<8x128xf32>
    %cst_58 = arith.constant dense<0.000000e+00> : vector<128xf32>
    %99 = vector.multi_reduction <add>, %98, %cst_58 [0] : vector<8x128xf32> to vector<128xf32>
    %100 = vector.shape_cast %99 : vector<128xf32> to vector<1x128xf32>
    %cst_59 = arith.constant 1.250000e-01 : f32
    %101 = vector.broadcast %cst_59 : f32 to vector<1x128xf32>
    %102 = arith.mulf %100, %101 : vector<1x128xf32>
    %103 = arith.mulf %97, %97 : vector<1x128xf32>
    %104 = arith.subf %102, %103 : vector<1x128xf32>
    %cst_60 = arith.constant 9.99999974E-6 : f32
    %105 = vector.broadcast %cst_60 : f32 to vector<1x128xf32>
    %106 = arith.addf %104, %105 : vector<1x128xf32>
    %107 = math.rsqrt %106 : vector<1x128xf32>
    %108 = arith.mulf %21, %107 : vector<1x128xf32>
    %109 = arith.mulf %97, %108 : vector<1x128xf32>
    %110 = arith.subf %22, %109 : vector<1x128xf32>
    %111 = vector.broadcast %108 : vector<1x128xf32> to vector<8x128xf32>
    %112 = arith.mulf %93, %111 : vector<8x128xf32>
    %113 = vector.broadcast %110 : vector<1x128xf32> to vector<8x128xf32>
    %114 = arith.addf %112, %113 : vector<8x128xf32>
    %cst_61 = arith.constant 0.000000e+00 : f32
    %115 = vector.broadcast %cst_61 : f32 to vector<8x128xf32>
    %116 = arith.maximumf %114, %115 : vector<8x128xf32>
    %117 = arith.truncf %116 : vector<8x128xf32> to vector<8x128xbf16>
    %c0_62 = arith.constant 0 : index
    %c0_63 = arith.constant 0 : index
    %118 = vector.load %arg5[%c0_62, %c0_63] : memref<8x128xbf16, #tpu.memory_space<vmem>>, vector<8x128xbf16>
    tpu.vector_store %arg5[%c0_62, %c0_63], %117 {strides = array<i32>} : memref<8x128xbf16, #tpu.memory_space<vmem>>, vector<8x128xbf16>,
    return
  }
}

module attributes {stable_mosaic.version = 11 : i64} {
  func.func @conv_block_kernel(%arg0: memref<16x2xbf16, #tpu.memory_space<vmem>>, %arg1: memref<3x2x64xbf16, #tpu.memory_space<vmem>>, %arg2: memref<3x64x64xbf16, #tpu.memory_space<vmem>>, %arg3: memref<1x64xf32, #tpu.memory_space<vmem>>, %arg4: memref<1x64xf32, #tpu.memory_space<vmem>>, %arg5: memref<16x64xbf16, #tpu.memory_space<vmem>>, %arg6: memref<17x64xf32, #tpu.memory_space<vmem>>, %arg7: memref<17x64xf32, #tpu.memory_space<vmem>>) attributes {dimension_semantics = [], scalar_prefetch = 0 : i64, scratch_operands = 2 : i64, tpu.core_type = #tpu.core_type<tc>} {
    %0 = tpu.iota {dimensions = array<i32: 0>} : vector<16x1xi32>
    %c8_i32 = arith.constant 8 : i32
    %c0_i32 = arith.constant 0 : i32
    %1 = arith.cmpi eq, %c8_i32, %c0_i32 : i32
    %c1_i32 = arith.constant 1 : i32
    %2 = arith.select %1, %c1_i32, %c8_i32 : i32
    %3 = vector.broadcast %2 : i32 to vector<16x1xi32>
    %4 = arith.remsi %0, %3 : vector<16x1xi32>
    %c0_i32_0 = arith.constant 0 : i32
    %5 = vector.broadcast %c0_i32_0 : i32 to vector<16x1xi32>
    %6 = arith.cmpi ne, %4, %5 : vector<16x1xi32>
    %c0_i32_1 = arith.constant 0 : i32
    %7 = vector.broadcast %c0_i32_1 : i32 to vector<16x1xi32>
    %8 = arith.cmpi slt, %4, %7 : vector<16x1xi32>
    %c0_i32_2 = arith.constant 0 : i32
    %9 = arith.cmpi slt, %2, %c0_i32_2 : i32
    %10 = vector.broadcast %9 : i1 to vector<16x1xi1>
    %11 = vector.broadcast %10 : vector<16x1xi1> to vector<16x1xi1>
    %12 = arith.xori %8, %11 : vector<16x1xi1>
    %13 = arith.andi %12, %6 : vector<16x1xi1>
    %14 = vector.broadcast %2 : i32 to vector<16x1xi32>
    %15 = arith.addi %4, %14 : vector<16x1xi32>
    %16 = arith.select %13, %15, %4 : vector<16x1xi1>, vector<16x1xi32>
    %c0_i32_3 = arith.constant 0 : i32
    %17 = vector.broadcast %c0_i32_3 : i32 to vector<16x1xi32>
    %18 = arith.cmpi eq, %16, %17 : vector<16x1xi32>
    %c7_i32 = arith.constant 7 : i32
    %19 = vector.broadcast %c7_i32 : i32 to vector<16x1xi32>
    %20 = arith.cmpi eq, %16, %19 : vector<16x1xi32>
    %c0 = arith.constant 0 : index
    %c0_4 = arith.constant 0 : index
    %21 = vector.load %arg3[%c0, %c0_4] : memref<1x64xf32, #tpu.memory_space<vmem>>, vector<1x64xf32>
    %c0_5 = arith.constant 0 : index
    %c0_6 = arith.constant 0 : index
    %22 = vector.load %arg4[%c0_5, %c0_6] : memref<1x64xf32, #tpu.memory_space<vmem>>, vector<1x64xf32>
    %c0_7 = arith.constant 0 : index
    %c0_8 = arith.constant 0 : index
    %23 = vector.load %arg0[%c0_7, %c0_8] : memref<16x2xbf16, #tpu.memory_space<vmem>>, vector<16x2xbf16>
    %c1 = arith.constant 1 : index
    %c0_9 = arith.constant 0 : index
    %c0_10 = arith.constant 0 : index
    %24 = vector.load %arg1[%c1, %c0_9, %c0_10] : memref<3x2x64xbf16, #tpu.memory_space<vmem>>, vector<1x2x64xbf16>
    %25 = vector.shape_cast %24 : vector<1x2x64xbf16> to vector<2x64xbf16>
    %cst = arith.constant dense<0.000000e+00> : vector<16x64xf32>
    %26 = tpu.matmul %23, %25, %cst {dimension_numbers = #tpu.dot_dimension_numbers<[1], [0], [0], [1], [0, 0, 1, 1], [], []>} : vector<16x2xbf16>, vector<2x64xbf16>, vector<16x64xf32> -> vector<16x64xf32>
    %c0_11 = arith.constant 0 : index
    %c0_12 = arith.constant 0 : index
    %c0_13 = arith.constant 0 : index
    %27 = vector.load %arg1[%c0_11, %c0_12, %c0_13] : memref<3x2x64xbf16, #tpu.memory_space<vmem>>, vector<1x2x64xbf16>
    %28 = vector.shape_cast %27 : vector<1x2x64xbf16> to vector<2x64xbf16>
    %cst_14 = arith.constant dense<0.000000e+00> : vector<16x64xf32>
    %29 = tpu.matmul %23, %28, %cst_14 {dimension_numbers = #tpu.dot_dimension_numbers<[1], [0], [0], [1], [0, 0, 1, 1], [], []>} : vector<16x2xbf16>, vector<2x64xbf16>, vector<16x64xf32> -> vector<16x64xf32>
    %c1_15 = arith.constant 1 : index
    %c0_16 = arith.constant 0 : index
    %30 = vector.load %arg6[%c1_15, %c0_16] : memref<17x64xf32, #tpu.memory_space<vmem>>, vector<16x64xf32>
    tpu.vector_store %arg6[%c1_15, %c0_16], %29 {strides = array<i32>} : memref<17x64xf32, #tpu.memory_space<vmem>>, vector<16x64xf32>,
    %c0_17 = arith.constant 0 : index
    %c0_18 = arith.constant 0 : index
    %31 = vector.load %arg6[%c0_17, %c0_18] : memref<17x64xf32, #tpu.memory_space<vmem>>, vector<16x64xf32>
    %cst_19 = arith.constant 0.000000e+00 : f32
    %32 = vector.shape_cast %18 : vector<16x1xi1> to vector<16x1xi1>
    %33 = vector.broadcast %32 : vector<16x1xi1> to vector<16x64xi1>
    %34 = vector.broadcast %cst_19 : f32 to vector<16x64xf32>
    %35 = arith.select %33, %34, %31 : vector<16x64xi1>, vector<16x64xf32>
    %36 = arith.addf %26, %35 : vector<16x64xf32>
    %c2 = arith.constant 2 : index
    %c0_20 = arith.constant 0 : index
    %c0_21 = arith.constant 0 : index
    %37 = vector.load %arg1[%c2, %c0_20, %c0_21] : memref<3x2x64xbf16, #tpu.memory_space<vmem>>, vector<1x2x64xbf16>
    %38 = vector.shape_cast %37 : vector<1x2x64xbf16> to vector<2x64xbf16>
    %cst_22 = arith.constant dense<0.000000e+00> : vector<16x64xf32>
    %39 = tpu.matmul %23, %38, %cst_22 {dimension_numbers = #tpu.dot_dimension_numbers<[1], [0], [0], [1], [0, 0, 1, 1], [], []>} : vector<16x2xbf16>, vector<2x64xbf16>, vector<16x64xf32> -> vector<16x64xf32>
    %c0_23 = arith.constant 0 : index
    %c0_24 = arith.constant 0 : index
    %40 = vector.load %arg7[%c0_23, %c0_24] : memref<17x64xf32, #tpu.memory_space<vmem>>, vector<16x64xf32>
    tpu.vector_store %arg7[%c0_23, %c0_24], %39 {strides = array<i32>} : memref<17x64xf32, #tpu.memory_space<vmem>>, vector<16x64xf32>,
    %c1_25 = arith.constant 1 : index
    %c0_26 = arith.constant 0 : index
    %41 = vector.load %arg7[%c1_25, %c0_26] : memref<17x64xf32, #tpu.memory_space<vmem>>, vector<16x64xf32>
    %cst_27 = arith.constant 0.000000e+00 : f32
    %42 = vector.shape_cast %20 : vector<16x1xi1> to vector<16x1xi1>
    %43 = vector.broadcast %42 : vector<16x1xi1> to vector<16x64xi1>
    %44 = vector.broadcast %cst_27 : f32 to vector<16x64xf32>
    %45 = arith.select %43, %44, %41 : vector<16x64xi1>, vector<16x64xf32>
    %46 = arith.addf %36, %45 : vector<16x64xf32>
    %cst_28 = arith.constant dense<0.000000e+00> : vector<64xf32>
    %47 = vector.multi_reduction <add>, %46, %cst_28 [0] : vector<16x64xf32> to vector<64xf32>
    %48 = vector.shape_cast %47 : vector<64xf32> to vector<1x64xf32>
    %cst_29 = arith.constant 6.250000e-02 : f32
    %49 = vector.broadcast %cst_29 : f32 to vector<1x64xf32>
    %50 = arith.mulf %48, %49 : vector<1x64xf32>
    %51 = arith.mulf %46, %46 : vector<16x64xf32>
    %cst_30 = arith.constant dense<0.000000e+00> : vector<64xf32>
    %52 = vector.multi_reduction <add>, %51, %cst_30 [0] : vector<16x64xf32> to vector<64xf32>
    %53 = vector.shape_cast %52 : vector<64xf32> to vector<1x64xf32>
    %cst_31 = arith.constant 6.250000e-02 : f32
    %54 = vector.broadcast %cst_31 : f32 to vector<1x64xf32>
    %55 = arith.mulf %53, %54 : vector<1x64xf32>
    %56 = arith.mulf %50, %50 : vector<1x64xf32>
    %57 = arith.subf %55, %56 : vector<1x64xf32>
    %cst_32 = arith.constant 9.99999974E-6 : f32
    %58 = vector.broadcast %cst_32 : f32 to vector<1x64xf32>
    %59 = arith.addf %57, %58 : vector<1x64xf32>
    %60 = math.rsqrt %59 : vector<1x64xf32>
    %61 = arith.mulf %21, %60 : vector<1x64xf32>
    %62 = arith.mulf %50, %61 : vector<1x64xf32>
    %63 = arith.subf %22, %62 : vector<1x64xf32>
    %64 = vector.broadcast %61 : vector<1x64xf32> to vector<16x64xf32>
    %65 = arith.mulf %46, %64 : vector<16x64xf32>
    %66 = vector.broadcast %63 : vector<1x64xf32> to vector<16x64xf32>
    %67 = arith.addf %65, %66 : vector<16x64xf32>
    %cst_33 = arith.constant 0.000000e+00 : f32
    %68 = vector.broadcast %cst_33 : f32 to vector<16x64xf32>
    %69 = arith.maximumf %67, %68 : vector<16x64xf32>
    %70 = arith.truncf %69 : vector<16x64xf32> to vector<16x64xbf16>
    %c1_34 = arith.constant 1 : index
    %c0_35 = arith.constant 0 : index
    %c0_36 = arith.constant 0 : index
    %71 = vector.load %arg2[%c1_34, %c0_35, %c0_36] : memref<3x64x64xbf16, #tpu.memory_space<vmem>>, vector<1x64x64xbf16>
    %72 = vector.shape_cast %71 : vector<1x64x64xbf16> to vector<64x64xbf16>
    %cst_37 = arith.constant dense<0.000000e+00> : vector<16x64xf32>
    %73 = tpu.matmul %70, %72, %cst_37 {dimension_numbers = #tpu.dot_dimension_numbers<[1], [0], [0], [1], [0, 0, 1, 1], [], []>} : vector<16x64xbf16>, vector<64x64xbf16>, vector<16x64xf32> -> vector<16x64xf32>
    %c0_38 = arith.constant 0 : index
    %c0_39 = arith.constant 0 : index
    %c0_40 = arith.constant 0 : index
    %74 = vector.load %arg2[%c0_38, %c0_39, %c0_40] : memref<3x64x64xbf16, #tpu.memory_space<vmem>>, vector<1x64x64xbf16>
    %75 = vector.shape_cast %74 : vector<1x64x64xbf16> to vector<64x64xbf16>
    %cst_41 = arith.constant dense<0.000000e+00> : vector<16x64xf32>
    %76 = tpu.matmul %70, %75, %cst_41 {dimension_numbers = #tpu.dot_dimension_numbers<[1], [0], [0], [1], [0, 0, 1, 1], [], []>} : vector<16x64xbf16>, vector<64x64xbf16>, vector<16x64xf32> -> vector<16x64xf32>
    %c1_42 = arith.constant 1 : index
    %c0_43 = arith.constant 0 : index
    %77 = vector.load %arg6[%c1_42, %c0_43] : memref<17x64xf32, #tpu.memory_space<vmem>>, vector<16x64xf32>
    tpu.vector_store %arg6[%c1_42, %c0_43], %76 {strides = array<i32>} : memref<17x64xf32, #tpu.memory_space<vmem>>, vector<16x64xf32>,
    %c0_44 = arith.constant 0 : index
    %c0_45 = arith.constant 0 : index
    %78 = vector.load %arg6[%c0_44, %c0_45] : memref<17x64xf32, #tpu.memory_space<vmem>>, vector<16x64xf32>
    %cst_46 = arith.constant 0.000000e+00 : f32
    %79 = vector.shape_cast %18 : vector<16x1xi1> to vector<16x1xi1>
    %80 = vector.broadcast %79 : vector<16x1xi1> to vector<16x64xi1>
    %81 = vector.broadcast %cst_46 : f32 to vector<16x64xf32>
    %82 = arith.select %80, %81, %78 : vector<16x64xi1>, vector<16x64xf32>
    %83 = arith.addf %73, %82 : vector<16x64xf32>
    %c2_47 = arith.constant 2 : index
    %c0_48 = arith.constant 0 : index
    %c0_49 = arith.constant 0 : index
    %84 = vector.load %arg2[%c2_47, %c0_48, %c0_49] : memref<3x64x64xbf16, #tpu.memory_space<vmem>>, vector<1x64x64xbf16>
    %85 = vector.shape_cast %84 : vector<1x64x64xbf16> to vector<64x64xbf16>
    %cst_50 = arith.constant dense<0.000000e+00> : vector<16x64xf32>
    %86 = tpu.matmul %70, %85, %cst_50 {dimension_numbers = #tpu.dot_dimension_numbers<[1], [0], [0], [1], [0, 0, 1, 1], [], []>} : vector<16x64xbf16>, vector<64x64xbf16>, vector<16x64xf32> -> vector<16x64xf32>
    %c0_51 = arith.constant 0 : index
    %c0_52 = arith.constant 0 : index
    %87 = vector.load %arg7[%c0_51, %c0_52] : memref<17x64xf32, #tpu.memory_space<vmem>>, vector<16x64xf32>
    tpu.vector_store %arg7[%c0_51, %c0_52], %86 {strides = array<i32>} : memref<17x64xf32, #tpu.memory_space<vmem>>, vector<16x64xf32>,
    %c1_53 = arith.constant 1 : index
    %c0_54 = arith.constant 0 : index
    %88 = vector.load %arg7[%c1_53, %c0_54] : memref<17x64xf32, #tpu.memory_space<vmem>>, vector<16x64xf32>
    %cst_55 = arith.constant 0.000000e+00 : f32
    %89 = vector.shape_cast %20 : vector<16x1xi1> to vector<16x1xi1>
    %90 = vector.broadcast %89 : vector<16x1xi1> to vector<16x64xi1>
    %91 = vector.broadcast %cst_55 : f32 to vector<16x64xf32>
    %92 = arith.select %90, %91, %88 : vector<16x64xi1>, vector<16x64xf32>
    %93 = arith.addf %83, %92 : vector<16x64xf32>
    %cst_56 = arith.constant dense<0.000000e+00> : vector<64xf32>
    %94 = vector.multi_reduction <add>, %93, %cst_56 [0] : vector<16x64xf32> to vector<64xf32>
    %95 = vector.shape_cast %94 : vector<64xf32> to vector<1x64xf32>
    %cst_57 = arith.constant 6.250000e-02 : f32
    %96 = vector.broadcast %cst_57 : f32 to vector<1x64xf32>
    %97 = arith.mulf %95, %96 : vector<1x64xf32>
    %98 = arith.mulf %93, %93 : vector<16x64xf32>
    %cst_58 = arith.constant dense<0.000000e+00> : vector<64xf32>
    %99 = vector.multi_reduction <add>, %98, %cst_58 [0] : vector<16x64xf32> to vector<64xf32>
    %100 = vector.shape_cast %99 : vector<64xf32> to vector<1x64xf32>
    %cst_59 = arith.constant 6.250000e-02 : f32
    %101 = vector.broadcast %cst_59 : f32 to vector<1x64xf32>
    %102 = arith.mulf %100, %101 : vector<1x64xf32>
    %103 = arith.mulf %97, %97 : vector<1x64xf32>
    %104 = arith.subf %102, %103 : vector<1x64xf32>
    %cst_60 = arith.constant 9.99999974E-6 : f32
    %105 = vector.broadcast %cst_60 : f32 to vector<1x64xf32>
    %106 = arith.addf %104, %105 : vector<1x64xf32>
    %107 = math.rsqrt %106 : vector<1x64xf32>
    %108 = arith.mulf %21, %107 : vector<1x64xf32>
    %109 = arith.mulf %97, %108 : vector<1x64xf32>
    %110 = arith.subf %22, %109 : vector<1x64xf32>
    %111 = vector.broadcast %108 : vector<1x64xf32> to vector<16x64xf32>
    %112 = arith.mulf %93, %111 : vector<16x64xf32>
    %113 = vector.broadcast %110 : vector<1x64xf32> to vector<16x64xf32>
    %114 = arith.addf %112, %113 : vector<16x64xf32>
    %cst_61 = arith.constant 0.000000e+00 : f32
    %115 = vector.broadcast %cst_61 : f32 to vector<16x64xf32>
    %116 = arith.maximumf %114, %115 : vector<16x64xf32>
    %117 = arith.truncf %116 : vector<16x64xf32> to vector<16x64xbf16>
    %c0_62 = arith.constant 0 : index
    %c0_63 = arith.constant 0 : index
    %118 = vector.load %arg5[%c0_62, %c0_63] : memref<16x64xbf16, #tpu.memory_space<vmem>>, vector<16x64xbf16>
    tpu.vector_store %arg5[%c0_62, %c0_63], %117 {strides = array<i32>} : memref<16x64xbf16, #tpu.memory_space<vmem>>, vector<16x64xbf16>,
    return
  }
}

module attributes {stable_mosaic.version = 11 : i64} {
  func.func @conv_block_kernel(%arg0: memref<4x128xbf16, #tpu.memory_space<vmem>>, %arg1: memref<3x128x256xbf16, #tpu.memory_space<vmem>>, %arg2: memref<3x256x256xbf16, #tpu.memory_space<vmem>>, %arg3: memref<1x256xf32, #tpu.memory_space<vmem>>, %arg4: memref<1x256xf32, #tpu.memory_space<vmem>>, %arg5: memref<4x256xbf16, #tpu.memory_space<vmem>>, %arg6: memref<5x256xf32, #tpu.memory_space<vmem>>, %arg7: memref<5x256xf32, #tpu.memory_space<vmem>>) attributes {dimension_semantics = [], scalar_prefetch = 0 : i64, scratch_operands = 2 : i64, tpu.core_type = #tpu.core_type<tc>} {
    %0 = tpu.iota {dimensions = array<i32: 0>} : vector<4x1xi32>
    %c2_i32 = arith.constant 2 : i32
    %c0_i32 = arith.constant 0 : i32
    %1 = arith.cmpi eq, %c2_i32, %c0_i32 : i32
    %c1_i32 = arith.constant 1 : i32
    %2 = arith.select %1, %c1_i32, %c2_i32 : i32
    %3 = vector.broadcast %2 : i32 to vector<4x1xi32>
    %4 = arith.remsi %0, %3 : vector<4x1xi32>
    %c0_i32_0 = arith.constant 0 : i32
    %5 = vector.broadcast %c0_i32_0 : i32 to vector<4x1xi32>
    %6 = arith.cmpi ne, %4, %5 : vector<4x1xi32>
    %c0_i32_1 = arith.constant 0 : i32
    %7 = vector.broadcast %c0_i32_1 : i32 to vector<4x1xi32>
    %8 = arith.cmpi slt, %4, %7 : vector<4x1xi32>
    %c0_i32_2 = arith.constant 0 : i32
    %9 = arith.cmpi slt, %2, %c0_i32_2 : i32
    %10 = vector.broadcast %9 : i1 to vector<4x1xi1>
    %11 = vector.broadcast %10 : vector<4x1xi1> to vector<4x1xi1>
    %12 = arith.xori %8, %11 : vector<4x1xi1>
    %13 = arith.andi %12, %6 : vector<4x1xi1>
    %14 = vector.broadcast %2 : i32 to vector<4x1xi32>
    %15 = arith.addi %4, %14 : vector<4x1xi32>
    %16 = arith.select %13, %15, %4 : vector<4x1xi1>, vector<4x1xi32>
    %c0_i32_3 = arith.constant 0 : i32
    %17 = vector.broadcast %c0_i32_3 : i32 to vector<4x1xi32>
    %18 = arith.cmpi eq, %16, %17 : vector<4x1xi32>
    %c1_i32_4 = arith.constant 1 : i32
    %19 = vector.broadcast %c1_i32_4 : i32 to vector<4x1xi32>
    %20 = arith.cmpi eq, %16, %19 : vector<4x1xi32>
    %c0 = arith.constant 0 : index
    %c0_5 = arith.constant 0 : index
    %21 = vector.load %arg3[%c0, %c0_5] : memref<1x256xf32, #tpu.memory_space<vmem>>, vector<1x256xf32>
    %c0_6 = arith.constant 0 : index
    %c0_7 = arith.constant 0 : index
    %22 = vector.load %arg4[%c0_6, %c0_7] : memref<1x256xf32, #tpu.memory_space<vmem>>, vector<1x256xf32>
    %c0_8 = arith.constant 0 : index
    %c0_9 = arith.constant 0 : index
    %23 = vector.load %arg0[%c0_8, %c0_9] : memref<4x128xbf16, #tpu.memory_space<vmem>>, vector<4x128xbf16>
    %c1 = arith.constant 1 : index
    %c0_10 = arith.constant 0 : index
    %c0_11 = arith.constant 0 : index
    %24 = vector.load %arg1[%c1, %c0_10, %c0_11] : memref<3x128x256xbf16, #tpu.memory_space<vmem>>, vector<1x128x256xbf16>
    %25 = vector.shape_cast %24 : vector<1x128x256xbf16> to vector<128x256xbf16>
    %cst = arith.constant dense<0.000000e+00> : vector<4x256xf32>
    %26 = tpu.matmul %23, %25, %cst {dimension_numbers = #tpu.dot_dimension_numbers<[1], [0], [0], [1], [0, 0, 1, 1], [], []>} : vector<4x128xbf16>, vector<128x256xbf16>, vector<4x256xf32> -> vector<4x256xf32>
    %c0_12 = arith.constant 0 : index
    %c0_13 = arith.constant 0 : index
    %c0_14 = arith.constant 0 : index
    %27 = vector.load %arg1[%c0_12, %c0_13, %c0_14] : memref<3x128x256xbf16, #tpu.memory_space<vmem>>, vector<1x128x256xbf16>
    %28 = vector.shape_cast %27 : vector<1x128x256xbf16> to vector<128x256xbf16>
    %cst_15 = arith.constant dense<0.000000e+00> : vector<4x256xf32>
    %29 = tpu.matmul %23, %28, %cst_15 {dimension_numbers = #tpu.dot_dimension_numbers<[1], [0], [0], [1], [0, 0, 1, 1], [], []>} : vector<4x128xbf16>, vector<128x256xbf16>, vector<4x256xf32> -> vector<4x256xf32>
    %c1_16 = arith.constant 1 : index
    %c0_17 = arith.constant 0 : index
    %30 = vector.load %arg6[%c1_16, %c0_17] : memref<5x256xf32, #tpu.memory_space<vmem>>, vector<4x256xf32>
    tpu.vector_store %arg6[%c1_16, %c0_17], %29 {strides = array<i32>} : memref<5x256xf32, #tpu.memory_space<vmem>>, vector<4x256xf32>,
    %c0_18 = arith.constant 0 : index
    %c0_19 = arith.constant 0 : index
    %31 = vector.load %arg6[%c0_18, %c0_19] : memref<5x256xf32, #tpu.memory_space<vmem>>, vector<4x256xf32>
    %cst_20 = arith.constant 0.000000e+00 : f32
    %32 = vector.shape_cast %18 : vector<4x1xi1> to vector<4x1xi1>
    %33 = vector.broadcast %32 : vector<4x1xi1> to vector<4x256xi1>
    %34 = vector.broadcast %cst_20 : f32 to vector<4x256xf32>
    %35 = arith.select %33, %34, %31 : vector<4x256xi1>, vector<4x256xf32>
    %36 = arith.addf %26, %35 : vector<4x256xf32>
    %c2 = arith.constant 2 : index
    %c0_21 = arith.constant 0 : index
    %c0_22 = arith.constant 0 : index
    %37 = vector.load %arg1[%c2, %c0_21, %c0_22] : memref<3x128x256xbf16, #tpu.memory_space<vmem>>, vector<1x128x256xbf16>
    %38 = vector.shape_cast %37 : vector<1x128x256xbf16> to vector<128x256xbf16>
    %cst_23 = arith.constant dense<0.000000e+00> : vector<4x256xf32>
    %39 = tpu.matmul %23, %38, %cst_23 {dimension_numbers = #tpu.dot_dimension_numbers<[1], [0], [0], [1], [0, 0, 1, 1], [], []>} : vector<4x128xbf16>, vector<128x256xbf16>, vector<4x256xf32> -> vector<4x256xf32>
    %c0_24 = arith.constant 0 : index
    %c0_25 = arith.constant 0 : index
    %40 = vector.load %arg7[%c0_24, %c0_25] : memref<5x256xf32, #tpu.memory_space<vmem>>, vector<4x256xf32>
    tpu.vector_store %arg7[%c0_24, %c0_25], %39 {strides = array<i32>} : memref<5x256xf32, #tpu.memory_space<vmem>>, vector<4x256xf32>,
    %c1_26 = arith.constant 1 : index
    %c0_27 = arith.constant 0 : index
    %41 = vector.load %arg7[%c1_26, %c0_27] : memref<5x256xf32, #tpu.memory_space<vmem>>, vector<4x256xf32>
    %cst_28 = arith.constant 0.000000e+00 : f32
    %42 = vector.shape_cast %20 : vector<4x1xi1> to vector<4x1xi1>
    %43 = vector.broadcast %42 : vector<4x1xi1> to vector<4x256xi1>
    %44 = vector.broadcast %cst_28 : f32 to vector<4x256xf32>
    %45 = arith.select %43, %44, %41 : vector<4x256xi1>, vector<4x256xf32>
    %46 = arith.addf %36, %45 : vector<4x256xf32>
    %cst_29 = arith.constant dense<0.000000e+00> : vector<256xf32>
    %47 = vector.multi_reduction <add>, %46, %cst_29 [0] : vector<4x256xf32> to vector<256xf32>
    %48 = vector.shape_cast %47 : vector<256xf32> to vector<1x256xf32>
    %cst_30 = arith.constant 2.500000e-01 : f32
    %49 = vector.broadcast %cst_30 : f32 to vector<1x256xf32>
    %50 = arith.mulf %48, %49 : vector<1x256xf32>
    %51 = arith.mulf %46, %46 : vector<4x256xf32>
    %cst_31 = arith.constant dense<0.000000e+00> : vector<256xf32>
    %52 = vector.multi_reduction <add>, %51, %cst_31 [0] : vector<4x256xf32> to vector<256xf32>
    %53 = vector.shape_cast %52 : vector<256xf32> to vector<1x256xf32>
    %cst_32 = arith.constant 2.500000e-01 : f32
    %54 = vector.broadcast %cst_32 : f32 to vector<1x256xf32>
    %55 = arith.mulf %53, %54 : vector<1x256xf32>
    %56 = arith.mulf %50, %50 : vector<1x256xf32>
    %57 = arith.subf %55, %56 : vector<1x256xf32>
    %cst_33 = arith.constant 9.99999974E-6 : f32
    %58 = vector.broadcast %cst_33 : f32 to vector<1x256xf32>
    %59 = arith.addf %57, %58 : vector<1x256xf32>
    %60 = math.rsqrt %59 : vector<1x256xf32>
    %61 = arith.mulf %21, %60 : vector<1x256xf32>
    %62 = arith.mulf %50, %61 : vector<1x256xf32>
    %63 = arith.subf %22, %62 : vector<1x256xf32>
    %64 = vector.broadcast %61 : vector<1x256xf32> to vector<4x256xf32>
    %65 = arith.mulf %46, %64 : vector<4x256xf32>
    %66 = vector.broadcast %63 : vector<1x256xf32> to vector<4x256xf32>
    %67 = arith.addf %65, %66 : vector<4x256xf32>
    %cst_34 = arith.constant 0.000000e+00 : f32
    %68 = vector.broadcast %cst_34 : f32 to vector<4x256xf32>
    %69 = arith.maximumf %67, %68 : vector<4x256xf32>
    %70 = arith.truncf %69 : vector<4x256xf32> to vector<4x256xbf16>
    %c1_35 = arith.constant 1 : index
    %c0_36 = arith.constant 0 : index
    %c0_37 = arith.constant 0 : index
    %71 = vector.load %arg2[%c1_35, %c0_36, %c0_37] : memref<3x256x256xbf16, #tpu.memory_space<vmem>>, vector<1x256x256xbf16>
    %72 = vector.shape_cast %71 : vector<1x256x256xbf16> to vector<256x256xbf16>
    %cst_38 = arith.constant dense<0.000000e+00> : vector<4x256xf32>
    %73 = tpu.matmul %70, %72, %cst_38 {dimension_numbers = #tpu.dot_dimension_numbers<[1], [0], [0], [1], [0, 0, 1, 1], [], []>} : vector<4x256xbf16>, vector<256x256xbf16>, vector<4x256xf32> -> vector<4x256xf32>
    %c0_39 = arith.constant 0 : index
    %c0_40 = arith.constant 0 : index
    %c0_41 = arith.constant 0 : index
    %74 = vector.load %arg2[%c0_39, %c0_40, %c0_41] : memref<3x256x256xbf16, #tpu.memory_space<vmem>>, vector<1x256x256xbf16>
    %75 = vector.shape_cast %74 : vector<1x256x256xbf16> to vector<256x256xbf16>
    %cst_42 = arith.constant dense<0.000000e+00> : vector<4x256xf32>
    %76 = tpu.matmul %70, %75, %cst_42 {dimension_numbers = #tpu.dot_dimension_numbers<[1], [0], [0], [1], [0, 0, 1, 1], [], []>} : vector<4x256xbf16>, vector<256x256xbf16>, vector<4x256xf32> -> vector<4x256xf32>
    %c1_43 = arith.constant 1 : index
    %c0_44 = arith.constant 0 : index
    %77 = vector.load %arg6[%c1_43, %c0_44] : memref<5x256xf32, #tpu.memory_space<vmem>>, vector<4x256xf32>
    tpu.vector_store %arg6[%c1_43, %c0_44], %76 {strides = array<i32>} : memref<5x256xf32, #tpu.memory_space<vmem>>, vector<4x256xf32>,
    %c0_45 = arith.constant 0 : index
    %c0_46 = arith.constant 0 : index
    %78 = vector.load %arg6[%c0_45, %c0_46] : memref<5x256xf32, #tpu.memory_space<vmem>>, vector<4x256xf32>
    %cst_47 = arith.constant 0.000000e+00 : f32
    %79 = vector.shape_cast %18 : vector<4x1xi1> to vector<4x1xi1>
    %80 = vector.broadcast %79 : vector<4x1xi1> to vector<4x256xi1>
    %81 = vector.broadcast %cst_47 : f32 to vector<4x256xf32>
    %82 = arith.select %80, %81, %78 : vector<4x256xi1>, vector<4x256xf32>
    %83 = arith.addf %73, %82 : vector<4x256xf32>
    %c2_48 = arith.constant 2 : index
    %c0_49 = arith.constant 0 : index
    %c0_50 = arith.constant 0 : index
    %84 = vector.load %arg2[%c2_48, %c0_49, %c0_50] : memref<3x256x256xbf16, #tpu.memory_space<vmem>>, vector<1x256x256xbf16>
    %85 = vector.shape_cast %84 : vector<1x256x256xbf16> to vector<256x256xbf16>
    %cst_51 = arith.constant dense<0.000000e+00> : vector<4x256xf32>
    %86 = tpu.matmul %70, %85, %cst_51 {dimension_numbers = #tpu.dot_dimension_numbers<[1], [0], [0], [1], [0, 0, 1, 1], [], []>} : vector<4x256xbf16>, vector<256x256xbf16>, vector<4x256xf32> -> vector<4x256xf32>
    %c0_52 = arith.constant 0 : index
    %c0_53 = arith.constant 0 : index
    %87 = vector.load %arg7[%c0_52, %c0_53] : memref<5x256xf32, #tpu.memory_space<vmem>>, vector<4x256xf32>
    tpu.vector_store %arg7[%c0_52, %c0_53], %86 {strides = array<i32>} : memref<5x256xf32, #tpu.memory_space<vmem>>, vector<4x256xf32>,
    %c1_54 = arith.constant 1 : index
    %c0_55 = arith.constant 0 : index
    %88 = vector.load %arg7[%c1_54, %c0_55] : memref<5x256xf32, #tpu.memory_space<vmem>>, vector<4x256xf32>
    %cst_56 = arith.constant 0.000000e+00 : f32
    %89 = vector.shape_cast %20 : vector<4x1xi1> to vector<4x1xi1>
    %90 = vector.broadcast %89 : vector<4x1xi1> to vector<4x256xi1>
    %91 = vector.broadcast %cst_56 : f32 to vector<4x256xf32>
    %92 = arith.select %90, %91, %88 : vector<4x256xi1>, vector<4x256xf32>
    %93 = arith.addf %83, %92 : vector<4x256xf32>
    %cst_57 = arith.constant dense<0.000000e+00> : vector<256xf32>
    %94 = vector.multi_reduction <add>, %93, %cst_57 [0] : vector<4x256xf32> to vector<256xf32>
    %95 = vector.shape_cast %94 : vector<256xf32> to vector<1x256xf32>
    %cst_58 = arith.constant 2.500000e-01 : f32
    %96 = vector.broadcast %cst_58 : f32 to vector<1x256xf32>
    %97 = arith.mulf %95, %96 : vector<1x256xf32>
    %98 = arith.mulf %93, %93 : vector<4x256xf32>
    %cst_59 = arith.constant dense<0.000000e+00> : vector<256xf32>
    %99 = vector.multi_reduction <add>, %98, %cst_59 [0] : vector<4x256xf32> to vector<256xf32>
    %100 = vector.shape_cast %99 : vector<256xf32> to vector<1x256xf32>
    %cst_60 = arith.constant 2.500000e-01 : f32
    %101 = vector.broadcast %cst_60 : f32 to vector<1x256xf32>
    %102 = arith.mulf %100, %101 : vector<1x256xf32>
    %103 = arith.mulf %97, %97 : vector<1x256xf32>
    %104 = arith.subf %102, %103 : vector<1x256xf32>
    %cst_61 = arith.constant 9.99999974E-6 : f32
    %105 = vector.broadcast %cst_61 : f32 to vector<1x256xf32>
    %106 = arith.addf %104, %105 : vector<1x256xf32>
    %107 = math.rsqrt %106 : vector<1x256xf32>
    %108 = arith.mulf %21, %107 : vector<1x256xf32>
    %109 = arith.mulf %97, %108 : vector<1x256xf32>
    %110 = arith.subf %22, %109 : vector<1x256xf32>
    %111 = vector.broadcast %108 : vector<1x256xf32> to vector<4x256xf32>
    %112 = arith.mulf %93, %111 : vector<4x256xf32>
    %113 = vector.broadcast %110 : vector<1x256xf32> to vector<4x256xf32>
    %114 = arith.addf %112, %113 : vector<4x256xf32>
    %cst_62 = arith.constant 0.000000e+00 : f32
    %115 = vector.broadcast %cst_62 : f32 to vector<4x256xf32>
    %116 = arith.maximumf %114, %115 : vector<4x256xf32>
    %117 = arith.truncf %116 : vector<4x256xf32> to vector<4x256xbf16>
    %c0_63 = arith.constant 0 : index
    %c0_64 = arith.constant 0 : index
    %118 = vector.load %arg5[%c0_63, %c0_64] : memref<4x256xbf16, #tpu.memory_space<vmem>>, vector<4x256xbf16>
    tpu.vector_store %arg5[%c0_63, %c0_64], %117 {strides = array<i32>} : memref<4x256xbf16, #tpu.memory_space<vmem>>, vector<4x256xbf16>,
    return
  }
}

module attributes {stable_mosaic.version = 11 : i64} {
  func.func @conv_block_kernel(%arg0: memref<2x256xbf16, #tpu.memory_space<vmem>>, %arg1: memref<3x256x512xbf16, #tpu.memory_space<vmem>>, %arg2: memref<3x512x512xbf16, #tpu.memory_space<vmem>>, %arg3: memref<1x512xf32, #tpu.memory_space<vmem>>, %arg4: memref<1x512xf32, #tpu.memory_space<vmem>>, %arg5: memref<2x512xbf16, #tpu.memory_space<vmem>>, %arg6: memref<3x512xf32, #tpu.memory_space<vmem>>, %arg7: memref<3x512xf32, #tpu.memory_space<vmem>>) attributes {dimension_semantics = [], scalar_prefetch = 0 : i64, scratch_operands = 2 : i64, tpu.core_type = #tpu.core_type<tc>} {
    %c0 = arith.constant 0 : index
    %c0_0 = arith.constant 0 : index
    %0 = vector.load %arg3[%c0, %c0_0] : memref<1x512xf32, #tpu.memory_space<vmem>>, vector<1x512xf32>
    %c0_1 = arith.constant 0 : index
    %c0_2 = arith.constant 0 : index
    %1 = vector.load %arg4[%c0_1, %c0_2] : memref<1x512xf32, #tpu.memory_space<vmem>>, vector<1x512xf32>
    %c0_3 = arith.constant 0 : index
    %c0_4 = arith.constant 0 : index
    %2 = vector.load %arg0[%c0_3, %c0_4] : memref<2x256xbf16, #tpu.memory_space<vmem>>, vector<2x256xbf16>
    %c1 = arith.constant 1 : index
    %c0_5 = arith.constant 0 : index
    %c0_6 = arith.constant 0 : index
    %3 = vector.load %arg1[%c1, %c0_5, %c0_6] : memref<3x256x512xbf16, #tpu.memory_space<vmem>>, vector<1x256x512xbf16>
    %4 = vector.shape_cast %3 : vector<1x256x512xbf16> to vector<256x512xbf16>
    %cst = arith.constant dense<0.000000e+00> : vector<2x512xf32>
    %5 = tpu.matmul %2, %4, %cst {dimension_numbers = #tpu.dot_dimension_numbers<[1], [0], [0], [1], [0, 0, 1, 1], [], []>} : vector<2x256xbf16>, vector<256x512xbf16>, vector<2x512xf32> -> vector<2x512xf32>
    %cst_7 = arith.constant dense<0.000000e+00> : vector<512xf32>
    %6 = vector.multi_reduction <add>, %5, %cst_7 [0] : vector<2x512xf32> to vector<512xf32>
    %7 = vector.shape_cast %6 : vector<512xf32> to vector<1x512xf32>
    %cst_8 = arith.constant 5.000000e-01 : f32
    %8 = vector.broadcast %cst_8 : f32 to vector<1x512xf32>
    %9 = arith.mulf %7, %8 : vector<1x512xf32>
    %10 = arith.mulf %5, %5 : vector<2x512xf32>
    %cst_9 = arith.constant dense<0.000000e+00> : vector<512xf32>
    %11 = vector.multi_reduction <add>, %10, %cst_9 [0] : vector<2x512xf32> to vector<512xf32>
    %12 = vector.shape_cast %11 : vector<512xf32> to vector<1x512xf32>
    %cst_10 = arith.constant 5.000000e-01 : f32
    %13 = vector.broadcast %cst_10 : f32 to vector<1x512xf32>
    %14 = arith.mulf %12, %13 : vector<1x512xf32>
    %15 = arith.mulf %9, %9 : vector<1x512xf32>
    %16 = arith.subf %14, %15 : vector<1x512xf32>
    %cst_11 = arith.constant 9.99999974E-6 : f32
    %17 = vector.broadcast %cst_11 : f32 to vector<1x512xf32>
    %18 = arith.addf %16, %17 : vector<1x512xf32>
    %19 = math.rsqrt %18 : vector<1x512xf32>
    %20 = arith.mulf %0, %19 : vector<1x512xf32>
    %21 = arith.mulf %9, %20 : vector<1x512xf32>
    %22 = arith.subf %1, %21 : vector<1x512xf32>
    %23 = vector.broadcast %20 : vector<1x512xf32> to vector<2x512xf32>
    %24 = arith.mulf %5, %23 : vector<2x512xf32>
    %25 = vector.broadcast %22 : vector<1x512xf32> to vector<2x512xf32>
    %26 = arith.addf %24, %25 : vector<2x512xf32>
    %cst_12 = arith.constant 0.000000e+00 : f32
    %27 = vector.broadcast %cst_12 : f32 to vector<2x512xf32>
    %28 = arith.maximumf %26, %27 : vector<2x512xf32>
    %29 = arith.truncf %28 : vector<2x512xf32> to vector<2x512xbf16>
    %c1_13 = arith.constant 1 : index
    %c0_14 = arith.constant 0 : index
    %c0_15 = arith.constant 0 : index
    %30 = vector.load %arg2[%c1_13, %c0_14, %c0_15] : memref<3x512x512xbf16, #tpu.memory_space<vmem>>, vector<1x512x512xbf16>
    %31 = vector.shape_cast %30 : vector<1x512x512xbf16> to vector<512x512xbf16>
    %cst_16 = arith.constant dense<0.000000e+00> : vector<2x512xf32>
    %32 = tpu.matmul %29, %31, %cst_16 {dimension_numbers = #tpu.dot_dimension_numbers<[1], [0], [0], [1], [0, 0, 1, 1], [], []>} : vector<2x512xbf16>, vector<512x512xbf16>, vector<2x512xf32> -> vector<2x512xf32>
    %cst_17 = arith.constant dense<0.000000e+00> : vector<512xf32>
    %33 = vector.multi_reduction <add>, %32, %cst_17 [0] : vector<2x512xf32> to vector<512xf32>
    %34 = vector.shape_cast %33 : vector<512xf32> to vector<1x512xf32>
    %cst_18 = arith.constant 5.000000e-01 : f32
    %35 = vector.broadcast %cst_18 : f32 to vector<1x512xf32>
    %36 = arith.mulf %34, %35 : vector<1x512xf32>
    %37 = arith.mulf %32, %32 : vector<2x512xf32>
    %cst_19 = arith.constant dense<0.000000e+00> : vector<512xf32>
    %38 = vector.multi_reduction <add>, %37, %cst_19 [0] : vector<2x512xf32> to vector<512xf32>
    %39 = vector.shape_cast %38 : vector<512xf32> to vector<1x512xf32>
    %cst_20 = arith.constant 5.000000e-01 : f32
    %40 = vector.broadcast %cst_20 : f32 to vector<1x512xf32>
    %41 = arith.mulf %39, %40 : vector<1x512xf32>
    %42 = arith.mulf %36, %36 : vector<1x512xf32>
    %43 = arith.subf %41, %42 : vector<1x512xf32>
    %cst_21 = arith.constant 9.99999974E-6 : f32
    %44 = vector.broadcast %cst_21 : f32 to vector<1x512xf32>
    %45 = arith.addf %43, %44 : vector<1x512xf32>
    %46 = math.rsqrt %45 : vector<1x512xf32>
    %47 = arith.mulf %0, %46 : vector<1x512xf32>
    %48 = arith.mulf %36, %47 : vector<1x512xf32>
    %49 = arith.subf %1, %48 : vector<1x512xf32>
    %50 = vector.broadcast %47 : vector<1x512xf32> to vector<2x512xf32>
    %51 = arith.mulf %32, %50 : vector<2x512xf32>
    %52 = vector.broadcast %49 : vector<1x512xf32> to vector<2x512xf32>
    %53 = arith.addf %51, %52 : vector<2x512xf32>
    %cst_22 = arith.constant 0.000000e+00 : f32
    %54 = vector.broadcast %cst_22 : f32 to vector<2x512xf32>
    %55 = arith.maximumf %53, %54 : vector<2x512xf32>
    %56 = arith.truncf %55 : vector<2x512xf32> to vector<2x512xbf16>
    %c0_23 = arith.constant 0 : index
    %c0_24 = arith.constant 0 : index
    %57 = vector.load %arg5[%c0_23, %c0_24] : memref<2x512xbf16, #tpu.memory_space<vmem>>, vector<2x512xbf16>
    tpu.vector_store %arg5[%c0_23, %c0_24], %56 {strides = array<i32>} : memref<2x512xbf16, #tpu.memory_space<vmem>>, vector<2x512xbf16>,
    return
  }
}

module attributes {stable_mosaic.version = 11 : i64} {
  func.func @conv_block_kernel(%arg0: memref<4x768xbf16, #tpu.memory_space<vmem>>, %arg1: memref<3x768x256xbf16, #tpu.memory_space<vmem>>, %arg2: memref<3x256x256xbf16, #tpu.memory_space<vmem>>, %arg3: memref<1x256xf32, #tpu.memory_space<vmem>>, %arg4: memref<1x256xf32, #tpu.memory_space<vmem>>, %arg5: memref<4x256xbf16, #tpu.memory_space<vmem>>, %arg6: memref<5x256xf32, #tpu.memory_space<vmem>>, %arg7: memref<5x256xf32, #tpu.memory_space<vmem>>) attributes {dimension_semantics = [], scalar_prefetch = 0 : i64, scratch_operands = 2 : i64, tpu.core_type = #tpu.core_type<tc>} {
    %0 = tpu.iota {dimensions = array<i32: 0>} : vector<4x1xi32>
    %c2_i32 = arith.constant 2 : i32
    %c0_i32 = arith.constant 0 : i32
    %1 = arith.cmpi eq, %c2_i32, %c0_i32 : i32
    %c1_i32 = arith.constant 1 : i32
    %2 = arith.select %1, %c1_i32, %c2_i32 : i32
    %3 = vector.broadcast %2 : i32 to vector<4x1xi32>
    %4 = arith.remsi %0, %3 : vector<4x1xi32>
    %c0_i32_0 = arith.constant 0 : i32
    %5 = vector.broadcast %c0_i32_0 : i32 to vector<4x1xi32>
    %6 = arith.cmpi ne, %4, %5 : vector<4x1xi32>
    %c0_i32_1 = arith.constant 0 : i32
    %7 = vector.broadcast %c0_i32_1 : i32 to vector<4x1xi32>
    %8 = arith.cmpi slt, %4, %7 : vector<4x1xi32>
    %c0_i32_2 = arith.constant 0 : i32
    %9 = arith.cmpi slt, %2, %c0_i32_2 : i32
    %10 = vector.broadcast %9 : i1 to vector<4x1xi1>
    %11 = vector.broadcast %10 : vector<4x1xi1> to vector<4x1xi1>
    %12 = arith.xori %8, %11 : vector<4x1xi1>
    %13 = arith.andi %12, %6 : vector<4x1xi1>
    %14 = vector.broadcast %2 : i32 to vector<4x1xi32>
    %15 = arith.addi %4, %14 : vector<4x1xi32>
    %16 = arith.select %13, %15, %4 : vector<4x1xi1>, vector<4x1xi32>
    %c0_i32_3 = arith.constant 0 : i32
    %17 = vector.broadcast %c0_i32_3 : i32 to vector<4x1xi32>
    %18 = arith.cmpi eq, %16, %17 : vector<4x1xi32>
    %c1_i32_4 = arith.constant 1 : i32
    %19 = vector.broadcast %c1_i32_4 : i32 to vector<4x1xi32>
    %20 = arith.cmpi eq, %16, %19 : vector<4x1xi32>
    %c0 = arith.constant 0 : index
    %c0_5 = arith.constant 0 : index
    %21 = vector.load %arg3[%c0, %c0_5] : memref<1x256xf32, #tpu.memory_space<vmem>>, vector<1x256xf32>
    %c0_6 = arith.constant 0 : index
    %c0_7 = arith.constant 0 : index
    %22 = vector.load %arg4[%c0_6, %c0_7] : memref<1x256xf32, #tpu.memory_space<vmem>>, vector<1x256xf32>
    %c0_8 = arith.constant 0 : index
    %c0_9 = arith.constant 0 : index
    %23 = vector.load %arg0[%c0_8, %c0_9] : memref<4x768xbf16, #tpu.memory_space<vmem>>, vector<4x768xbf16>
    %c1 = arith.constant 1 : index
    %c0_10 = arith.constant 0 : index
    %c0_11 = arith.constant 0 : index
    %24 = vector.load %arg1[%c1, %c0_10, %c0_11] : memref<3x768x256xbf16, #tpu.memory_space<vmem>>, vector<1x768x256xbf16>
    %25 = vector.shape_cast %24 : vector<1x768x256xbf16> to vector<768x256xbf16>
    %cst = arith.constant dense<0.000000e+00> : vector<4x256xf32>
    %26 = tpu.matmul %23, %25, %cst {dimension_numbers = #tpu.dot_dimension_numbers<[1], [0], [0], [1], [0, 0, 1, 1], [], []>} : vector<4x768xbf16>, vector<768x256xbf16>, vector<4x256xf32> -> vector<4x256xf32>
    %c0_12 = arith.constant 0 : index
    %c0_13 = arith.constant 0 : index
    %c0_14 = arith.constant 0 : index
    %27 = vector.load %arg1[%c0_12, %c0_13, %c0_14] : memref<3x768x256xbf16, #tpu.memory_space<vmem>>, vector<1x768x256xbf16>
    %28 = vector.shape_cast %27 : vector<1x768x256xbf16> to vector<768x256xbf16>
    %cst_15 = arith.constant dense<0.000000e+00> : vector<4x256xf32>
    %29 = tpu.matmul %23, %28, %cst_15 {dimension_numbers = #tpu.dot_dimension_numbers<[1], [0], [0], [1], [0, 0, 1, 1], [], []>} : vector<4x768xbf16>, vector<768x256xbf16>, vector<4x256xf32> -> vector<4x256xf32>
    %c1_16 = arith.constant 1 : index
    %c0_17 = arith.constant 0 : index
    %30 = vector.load %arg6[%c1_16, %c0_17] : memref<5x256xf32, #tpu.memory_space<vmem>>, vector<4x256xf32>
    tpu.vector_store %arg6[%c1_16, %c0_17], %29 {strides = array<i32>} : memref<5x256xf32, #tpu.memory_space<vmem>>, vector<4x256xf32>,
    %c0_18 = arith.constant 0 : index
    %c0_19 = arith.constant 0 : index
    %31 = vector.load %arg6[%c0_18, %c0_19] : memref<5x256xf32, #tpu.memory_space<vmem>>, vector<4x256xf32>
    %cst_20 = arith.constant 0.000000e+00 : f32
    %32 = vector.shape_cast %18 : vector<4x1xi1> to vector<4x1xi1>
    %33 = vector.broadcast %32 : vector<4x1xi1> to vector<4x256xi1>
    %34 = vector.broadcast %cst_20 : f32 to vector<4x256xf32>
    %35 = arith.select %33, %34, %31 : vector<4x256xi1>, vector<4x256xf32>
    %36 = arith.addf %26, %35 : vector<4x256xf32>
    %c2 = arith.constant 2 : index
    %c0_21 = arith.constant 0 : index
    %c0_22 = arith.constant 0 : index
    %37 = vector.load %arg1[%c2, %c0_21, %c0_22] : memref<3x768x256xbf16, #tpu.memory_space<vmem>>, vector<1x768x256xbf16>
    %38 = vector.shape_cast %37 : vector<1x768x256xbf16> to vector<768x256xbf16>
    %cst_23 = arith.constant dense<0.000000e+00> : vector<4x256xf32>
    %39 = tpu.matmul %23, %38, %cst_23 {dimension_numbers = #tpu.dot_dimension_numbers<[1], [0], [0], [1], [0, 0, 1, 1], [], []>} : vector<4x768xbf16>, vector<768x256xbf16>, vector<4x256xf32> -> vector<4x256xf32>
    %c0_24 = arith.constant 0 : index
    %c0_25 = arith.constant 0 : index
    %40 = vector.load %arg7[%c0_24, %c0_25] : memref<5x256xf32, #tpu.memory_space<vmem>>, vector<4x256xf32>
    tpu.vector_store %arg7[%c0_24, %c0_25], %39 {strides = array<i32>} : memref<5x256xf32, #tpu.memory_space<vmem>>, vector<4x256xf32>,
    %c1_26 = arith.constant 1 : index
    %c0_27 = arith.constant 0 : index
    %41 = vector.load %arg7[%c1_26, %c0_27] : memref<5x256xf32, #tpu.memory_space<vmem>>, vector<4x256xf32>
    %cst_28 = arith.constant 0.000000e+00 : f32
    %42 = vector.shape_cast %20 : vector<4x1xi1> to vector<4x1xi1>
    %43 = vector.broadcast %42 : vector<4x1xi1> to vector<4x256xi1>
    %44 = vector.broadcast %cst_28 : f32 to vector<4x256xf32>
    %45 = arith.select %43, %44, %41 : vector<4x256xi1>, vector<4x256xf32>
    %46 = arith.addf %36, %45 : vector<4x256xf32>
    %cst_29 = arith.constant dense<0.000000e+00> : vector<256xf32>
    %47 = vector.multi_reduction <add>, %46, %cst_29 [0] : vector<4x256xf32> to vector<256xf32>
    %48 = vector.shape_cast %47 : vector<256xf32> to vector<1x256xf32>
    %cst_30 = arith.constant 2.500000e-01 : f32
    %49 = vector.broadcast %cst_30 : f32 to vector<1x256xf32>
    %50 = arith.mulf %48, %49 : vector<1x256xf32>
    %51 = arith.mulf %46, %46 : vector<4x256xf32>
    %cst_31 = arith.constant dense<0.000000e+00> : vector<256xf32>
    %52 = vector.multi_reduction <add>, %51, %cst_31 [0] : vector<4x256xf32> to vector<256xf32>
    %53 = vector.shape_cast %52 : vector<256xf32> to vector<1x256xf32>
    %cst_32 = arith.constant 2.500000e-01 : f32
    %54 = vector.broadcast %cst_32 : f32 to vector<1x256xf32>
    %55 = arith.mulf %53, %54 : vector<1x256xf32>
    %56 = arith.mulf %50, %50 : vector<1x256xf32>
    %57 = arith.subf %55, %56 : vector<1x256xf32>
    %cst_33 = arith.constant 9.99999974E-6 : f32
    %58 = vector.broadcast %cst_33 : f32 to vector<1x256xf32>
    %59 = arith.addf %57, %58 : vector<1x256xf32>
    %60 = math.rsqrt %59 : vector<1x256xf32>
    %61 = arith.mulf %21, %60 : vector<1x256xf32>
    %62 = arith.mulf %50, %61 : vector<1x256xf32>
    %63 = arith.subf %22, %62 : vector<1x256xf32>
    %64 = vector.broadcast %61 : vector<1x256xf32> to vector<4x256xf32>
    %65 = arith.mulf %46, %64 : vector<4x256xf32>
    %66 = vector.broadcast %63 : vector<1x256xf32> to vector<4x256xf32>
    %67 = arith.addf %65, %66 : vector<4x256xf32>
    %cst_34 = arith.constant 0.000000e+00 : f32
    %68 = vector.broadcast %cst_34 : f32 to vector<4x256xf32>
    %69 = arith.maximumf %67, %68 : vector<4x256xf32>
    %70 = arith.truncf %69 : vector<4x256xf32> to vector<4x256xbf16>
    %c1_35 = arith.constant 1 : index
    %c0_36 = arith.constant 0 : index
    %c0_37 = arith.constant 0 : index
    %71 = vector.load %arg2[%c1_35, %c0_36, %c0_37] : memref<3x256x256xbf16, #tpu.memory_space<vmem>>, vector<1x256x256xbf16>
    %72 = vector.shape_cast %71 : vector<1x256x256xbf16> to vector<256x256xbf16>
    %cst_38 = arith.constant dense<0.000000e+00> : vector<4x256xf32>
    %73 = tpu.matmul %70, %72, %cst_38 {dimension_numbers = #tpu.dot_dimension_numbers<[1], [0], [0], [1], [0, 0, 1, 1], [], []>} : vector<4x256xbf16>, vector<256x256xbf16>, vector<4x256xf32> -> vector<4x256xf32>
    %c0_39 = arith.constant 0 : index
    %c0_40 = arith.constant 0 : index
    %c0_41 = arith.constant 0 : index
    %74 = vector.load %arg2[%c0_39, %c0_40, %c0_41] : memref<3x256x256xbf16, #tpu.memory_space<vmem>>, vector<1x256x256xbf16>
    %75 = vector.shape_cast %74 : vector<1x256x256xbf16> to vector<256x256xbf16>
    %cst_42 = arith.constant dense<0.000000e+00> : vector<4x256xf32>
    %76 = tpu.matmul %70, %75, %cst_42 {dimension_numbers = #tpu.dot_dimension_numbers<[1], [0], [0], [1], [0, 0, 1, 1], [], []>} : vector<4x256xbf16>, vector<256x256xbf16>, vector<4x256xf32> -> vector<4x256xf32>
    %c1_43 = arith.constant 1 : index
    %c0_44 = arith.constant 0 : index
    %77 = vector.load %arg6[%c1_43, %c0_44] : memref<5x256xf32, #tpu.memory_space<vmem>>, vector<4x256xf32>
    tpu.vector_store %arg6[%c1_43, %c0_44], %76 {strides = array<i32>} : memref<5x256xf32, #tpu.memory_space<vmem>>, vector<4x256xf32>,
    %c0_45 = arith.constant 0 : index
    %c0_46 = arith.constant 0 : index
    %78 = vector.load %arg6[%c0_45, %c0_46] : memref<5x256xf32, #tpu.memory_space<vmem>>, vector<4x256xf32>
    %cst_47 = arith.constant 0.000000e+00 : f32
    %79 = vector.shape_cast %18 : vector<4x1xi1> to vector<4x1xi1>
    %80 = vector.broadcast %79 : vector<4x1xi1> to vector<4x256xi1>
    %81 = vector.broadcast %cst_47 : f32 to vector<4x256xf32>
    %82 = arith.select %80, %81, %78 : vector<4x256xi1>, vector<4x256xf32>
    %83 = arith.addf %73, %82 : vector<4x256xf32>
    %c2_48 = arith.constant 2 : index
    %c0_49 = arith.constant 0 : index
    %c0_50 = arith.constant 0 : index
    %84 = vector.load %arg2[%c2_48, %c0_49, %c0_50] : memref<3x256x256xbf16, #tpu.memory_space<vmem>>, vector<1x256x256xbf16>
    %85 = vector.shape_cast %84 : vector<1x256x256xbf16> to vector<256x256xbf16>
    %cst_51 = arith.constant dense<0.000000e+00> : vector<4x256xf32>
    %86 = tpu.matmul %70, %85, %cst_51 {dimension_numbers = #tpu.dot_dimension_numbers<[1], [0], [0], [1], [0, 0, 1, 1], [], []>} : vector<4x256xbf16>, vector<256x256xbf16>, vector<4x256xf32> -> vector<4x256xf32>
    %c0_52 = arith.constant 0 : index
    %c0_53 = arith.constant 0 : index
    %87 = vector.load %arg7[%c0_52, %c0_53] : memref<5x256xf32, #tpu.memory_space<vmem>>, vector<4x256xf32>
    tpu.vector_store %arg7[%c0_52, %c0_53], %86 {strides = array<i32>} : memref<5x256xf32, #tpu.memory_space<vmem>>, vector<4x256xf32>,
    %c1_54 = arith.constant 1 : index
    %c0_55 = arith.constant 0 : index
    %88 = vector.load %arg7[%c1_54, %c0_55] : memref<5x256xf32, #tpu.memory_space<vmem>>, vector<4x256xf32>
    %cst_56 = arith.constant 0.000000e+00 : f32
    %89 = vector.shape_cast %20 : vector<4x1xi1> to vector<4x1xi1>
    %90 = vector.broadcast %89 : vector<4x1xi1> to vector<4x256xi1>
    %91 = vector.broadcast %cst_56 : f32 to vector<4x256xf32>
    %92 = arith.select %90, %91, %88 : vector<4x256xi1>, vector<4x256xf32>
    %93 = arith.addf %83, %92 : vector<4x256xf32>
    %cst_57 = arith.constant dense<0.000000e+00> : vector<256xf32>
    %94 = vector.multi_reduction <add>, %93, %cst_57 [0] : vector<4x256xf32> to vector<256xf32>
    %95 = vector.shape_cast %94 : vector<256xf32> to vector<1x256xf32>
    %cst_58 = arith.constant 2.500000e-01 : f32
    %96 = vector.broadcast %cst_58 : f32 to vector<1x256xf32>
    %97 = arith.mulf %95, %96 : vector<1x256xf32>
    %98 = arith.mulf %93, %93 : vector<4x256xf32>
    %cst_59 = arith.constant dense<0.000000e+00> : vector<256xf32>
    %99 = vector.multi_reduction <add>, %98, %cst_59 [0] : vector<4x256xf32> to vector<256xf32>
    %100 = vector.shape_cast %99 : vector<256xf32> to vector<1x256xf32>
    %cst_60 = arith.constant 2.500000e-01 : f32
    %101 = vector.broadcast %cst_60 : f32 to vector<1x256xf32>
    %102 = arith.mulf %100, %101 : vector<1x256xf32>
    %103 = arith.mulf %97, %97 : vector<1x256xf32>
    %104 = arith.subf %102, %103 : vector<1x256xf32>
    %cst_61 = arith.constant 9.99999974E-6 : f32
    %105 = vector.broadcast %cst_61 : f32 to vector<1x256xf32>
    %106 = arith.addf %104, %105 : vector<1x256xf32>
    %107 = math.rsqrt %106 : vector<1x256xf32>
    %108 = arith.mulf %21, %107 : vector<1x256xf32>
    %109 = arith.mulf %97, %108 : vector<1x256xf32>
    %110 = arith.subf %22, %109 : vector<1x256xf32>
    %111 = vector.broadcast %108 : vector<1x256xf32> to vector<4x256xf32>
    %112 = arith.mulf %93, %111 : vector<4x256xf32>
    %113 = vector.broadcast %110 : vector<1x256xf32> to vector<4x256xf32>
    %114 = arith.addf %112, %113 : vector<4x256xf32>
    %cst_62 = arith.constant 0.000000e+00 : f32
    %115 = vector.broadcast %cst_62 : f32 to vector<4x256xf32>
    %116 = arith.maximumf %114, %115 : vector<4x256xf32>
    %117 = arith.truncf %116 : vector<4x256xf32> to vector<4x256xbf16>
    %c0_63 = arith.constant 0 : index
    %c0_64 = arith.constant 0 : index
    %118 = vector.load %arg5[%c0_63, %c0_64] : memref<4x256xbf16, #tpu.memory_space<vmem>>, vector<4x256xbf16>
    tpu.vector_store %arg5[%c0_63, %c0_64], %117 {strides = array<i32>} : memref<4x256xbf16, #tpu.memory_space<vmem>>, vector<4x256xbf16>,
    return
  }
}

module attributes {stable_mosaic.version = 11 : i64} {
  func.func @conv_block_kernel(%arg0: memref<8x384xbf16, #tpu.memory_space<vmem>>, %arg1: memref<3x384x128xbf16, #tpu.memory_space<vmem>>, %arg2: memref<3x128x128xbf16, #tpu.memory_space<vmem>>, %arg3: memref<1x128xf32, #tpu.memory_space<vmem>>, %arg4: memref<1x128xf32, #tpu.memory_space<vmem>>, %arg5: memref<8x128xbf16, #tpu.memory_space<vmem>>, %arg6: memref<9x128xf32, #tpu.memory_space<vmem>>, %arg7: memref<9x128xf32, #tpu.memory_space<vmem>>) attributes {dimension_semantics = [], scalar_prefetch = 0 : i64, scratch_operands = 2 : i64, tpu.core_type = #tpu.core_type<tc>} {
    %0 = tpu.iota {dimensions = array<i32: 0>} : vector<8x1xi32>
    %c4_i32 = arith.constant 4 : i32
    %c0_i32 = arith.constant 0 : i32
    %1 = arith.cmpi eq, %c4_i32, %c0_i32 : i32
    %c1_i32 = arith.constant 1 : i32
    %2 = arith.select %1, %c1_i32, %c4_i32 : i32
    %3 = vector.broadcast %2 : i32 to vector<8x1xi32>
    %4 = arith.remsi %0, %3 : vector<8x1xi32>
    %c0_i32_0 = arith.constant 0 : i32
    %5 = vector.broadcast %c0_i32_0 : i32 to vector<8x1xi32>
    %6 = arith.cmpi ne, %4, %5 : vector<8x1xi32>
    %c0_i32_1 = arith.constant 0 : i32
    %7 = vector.broadcast %c0_i32_1 : i32 to vector<8x1xi32>
    %8 = arith.cmpi slt, %4, %7 : vector<8x1xi32>
    %c0_i32_2 = arith.constant 0 : i32
    %9 = arith.cmpi slt, %2, %c0_i32_2 : i32
    %10 = vector.broadcast %9 : i1 to vector<8x1xi1>
    %11 = vector.broadcast %10 : vector<8x1xi1> to vector<8x1xi1>
    %12 = arith.xori %8, %11 : vector<8x1xi1>
    %13 = arith.andi %12, %6 : vector<8x1xi1>
    %14 = vector.broadcast %2 : i32 to vector<8x1xi32>
    %15 = arith.addi %4, %14 : vector<8x1xi32>
    %16 = arith.select %13, %15, %4 : vector<8x1xi1>, vector<8x1xi32>
    %c0_i32_3 = arith.constant 0 : i32
    %17 = vector.broadcast %c0_i32_3 : i32 to vector<8x1xi32>
    %18 = arith.cmpi eq, %16, %17 : vector<8x1xi32>
    %c3_i32 = arith.constant 3 : i32
    %19 = vector.broadcast %c3_i32 : i32 to vector<8x1xi32>
    %20 = arith.cmpi eq, %16, %19 : vector<8x1xi32>
    %c0 = arith.constant 0 : index
    %c0_4 = arith.constant 0 : index
    %21 = vector.load %arg3[%c0, %c0_4] : memref<1x128xf32, #tpu.memory_space<vmem>>, vector<1x128xf32>
    %c0_5 = arith.constant 0 : index
    %c0_6 = arith.constant 0 : index
    %22 = vector.load %arg4[%c0_5, %c0_6] : memref<1x128xf32, #tpu.memory_space<vmem>>, vector<1x128xf32>
    %c0_7 = arith.constant 0 : index
    %c0_8 = arith.constant 0 : index
    %23 = vector.load %arg0[%c0_7, %c0_8] : memref<8x384xbf16, #tpu.memory_space<vmem>>, vector<8x384xbf16>
    %c1 = arith.constant 1 : index
    %c0_9 = arith.constant 0 : index
    %c0_10 = arith.constant 0 : index
    %24 = vector.load %arg1[%c1, %c0_9, %c0_10] : memref<3x384x128xbf16, #tpu.memory_space<vmem>>, vector<1x384x128xbf16>
    %25 = vector.shape_cast %24 : vector<1x384x128xbf16> to vector<384x128xbf16>
    %cst = arith.constant dense<0.000000e+00> : vector<8x128xf32>
    %26 = tpu.matmul %23, %25, %cst {dimension_numbers = #tpu.dot_dimension_numbers<[1], [0], [0], [1], [0, 0, 1, 1], [], []>} : vector<8x384xbf16>, vector<384x128xbf16>, vector<8x128xf32> -> vector<8x128xf32>
    %c0_11 = arith.constant 0 : index
    %c0_12 = arith.constant 0 : index
    %c0_13 = arith.constant 0 : index
    %27 = vector.load %arg1[%c0_11, %c0_12, %c0_13] : memref<3x384x128xbf16, #tpu.memory_space<vmem>>, vector<1x384x128xbf16>
    %28 = vector.shape_cast %27 : vector<1x384x128xbf16> to vector<384x128xbf16>
    %cst_14 = arith.constant dense<0.000000e+00> : vector<8x128xf32>
    %29 = tpu.matmul %23, %28, %cst_14 {dimension_numbers = #tpu.dot_dimension_numbers<[1], [0], [0], [1], [0, 0, 1, 1], [], []>} : vector<8x384xbf16>, vector<384x128xbf16>, vector<8x128xf32> -> vector<8x128xf32>
    %c1_15 = arith.constant 1 : index
    %c0_16 = arith.constant 0 : index
    %30 = vector.load %arg6[%c1_15, %c0_16] : memref<9x128xf32, #tpu.memory_space<vmem>>, vector<8x128xf32>
    tpu.vector_store %arg6[%c1_15, %c0_16], %29 {strides = array<i32>} : memref<9x128xf32, #tpu.memory_space<vmem>>, vector<8x128xf32>,
    %c0_17 = arith.constant 0 : index
    %c0_18 = arith.constant 0 : index
    %31 = vector.load %arg6[%c0_17, %c0_18] : memref<9x128xf32, #tpu.memory_space<vmem>>, vector<8x128xf32>
    %cst_19 = arith.constant 0.000000e+00 : f32
    %32 = vector.shape_cast %18 : vector<8x1xi1> to vector<8x1xi1>
    %33 = vector.broadcast %32 : vector<8x1xi1> to vector<8x128xi1>
    %34 = vector.broadcast %cst_19 : f32 to vector<8x128xf32>
    %35 = arith.select %33, %34, %31 : vector<8x128xi1>, vector<8x128xf32>
    %36 = arith.addf %26, %35 : vector<8x128xf32>
    %c2 = arith.constant 2 : index
    %c0_20 = arith.constant 0 : index
    %c0_21 = arith.constant 0 : index
    %37 = vector.load %arg1[%c2, %c0_20, %c0_21] : memref<3x384x128xbf16, #tpu.memory_space<vmem>>, vector<1x384x128xbf16>
    %38 = vector.shape_cast %37 : vector<1x384x128xbf16> to vector<384x128xbf16>
    %cst_22 = arith.constant dense<0.000000e+00> : vector<8x128xf32>
    %39 = tpu.matmul %23, %38, %cst_22 {dimension_numbers = #tpu.dot_dimension_numbers<[1], [0], [0], [1], [0, 0, 1, 1], [], []>} : vector<8x384xbf16>, vector<384x128xbf16>, vector<8x128xf32> -> vector<8x128xf32>
    %c0_23 = arith.constant 0 : index
    %c0_24 = arith.constant 0 : index
    %40 = vector.load %arg7[%c0_23, %c0_24] : memref<9x128xf32, #tpu.memory_space<vmem>>, vector<8x128xf32>
    tpu.vector_store %arg7[%c0_23, %c0_24], %39 {strides = array<i32>} : memref<9x128xf32, #tpu.memory_space<vmem>>, vector<8x128xf32>,
    %c1_25 = arith.constant 1 : index
    %c0_26 = arith.constant 0 : index
    %41 = vector.load %arg7[%c1_25, %c0_26] : memref<9x128xf32, #tpu.memory_space<vmem>>, vector<8x128xf32>
    %cst_27 = arith.constant 0.000000e+00 : f32
    %42 = vector.shape_cast %20 : vector<8x1xi1> to vector<8x1xi1>
    %43 = vector.broadcast %42 : vector<8x1xi1> to vector<8x128xi1>
    %44 = vector.broadcast %cst_27 : f32 to vector<8x128xf32>
    %45 = arith.select %43, %44, %41 : vector<8x128xi1>, vector<8x128xf32>
    %46 = arith.addf %36, %45 : vector<8x128xf32>
    %cst_28 = arith.constant dense<0.000000e+00> : vector<128xf32>
    %47 = vector.multi_reduction <add>, %46, %cst_28 [0] : vector<8x128xf32> to vector<128xf32>
    %48 = vector.shape_cast %47 : vector<128xf32> to vector<1x128xf32>
    %cst_29 = arith.constant 1.250000e-01 : f32
    %49 = vector.broadcast %cst_29 : f32 to vector<1x128xf32>
    %50 = arith.mulf %48, %49 : vector<1x128xf32>
    %51 = arith.mulf %46, %46 : vector<8x128xf32>
    %cst_30 = arith.constant dense<0.000000e+00> : vector<128xf32>
    %52 = vector.multi_reduction <add>, %51, %cst_30 [0] : vector<8x128xf32> to vector<128xf32>
    %53 = vector.shape_cast %52 : vector<128xf32> to vector<1x128xf32>
    %cst_31 = arith.constant 1.250000e-01 : f32
    %54 = vector.broadcast %cst_31 : f32 to vector<1x128xf32>
    %55 = arith.mulf %53, %54 : vector<1x128xf32>
    %56 = arith.mulf %50, %50 : vector<1x128xf32>
    %57 = arith.subf %55, %56 : vector<1x128xf32>
    %cst_32 = arith.constant 9.99999974E-6 : f32
    %58 = vector.broadcast %cst_32 : f32 to vector<1x128xf32>
    %59 = arith.addf %57, %58 : vector<1x128xf32>
    %60 = math.rsqrt %59 : vector<1x128xf32>
    %61 = arith.mulf %21, %60 : vector<1x128xf32>
    %62 = arith.mulf %50, %61 : vector<1x128xf32>
    %63 = arith.subf %22, %62 : vector<1x128xf32>
    %64 = vector.broadcast %61 : vector<1x128xf32> to vector<8x128xf32>
    %65 = arith.mulf %46, %64 : vector<8x128xf32>
    %66 = vector.broadcast %63 : vector<1x128xf32> to vector<8x128xf32>
    %67 = arith.addf %65, %66 : vector<8x128xf32>
    %cst_33 = arith.constant 0.000000e+00 : f32
    %68 = vector.broadcast %cst_33 : f32 to vector<8x128xf32>
    %69 = arith.maximumf %67, %68 : vector<8x128xf32>
    %70 = arith.truncf %69 : vector<8x128xf32> to vector<8x128xbf16>
    %c1_34 = arith.constant 1 : index
    %c0_35 = arith.constant 0 : index
    %c0_36 = arith.constant 0 : index
    %71 = vector.load %arg2[%c1_34, %c0_35, %c0_36] : memref<3x128x128xbf16, #tpu.memory_space<vmem>>, vector<1x128x128xbf16>
    %72 = vector.shape_cast %71 : vector<1x128x128xbf16> to vector<128x128xbf16>
    %cst_37 = arith.constant dense<0.000000e+00> : vector<8x128xf32>
    %73 = tpu.matmul %70, %72, %cst_37 {dimension_numbers = #tpu.dot_dimension_numbers<[1], [0], [0], [1], [0, 0, 1, 1], [], []>} : vector<8x128xbf16>, vector<128x128xbf16>, vector<8x128xf32> -> vector<8x128xf32>
    %c0_38 = arith.constant 0 : index
    %c0_39 = arith.constant 0 : index
    %c0_40 = arith.constant 0 : index
    %74 = vector.load %arg2[%c0_38, %c0_39, %c0_40] : memref<3x128x128xbf16, #tpu.memory_space<vmem>>, vector<1x128x128xbf16>
    %75 = vector.shape_cast %74 : vector<1x128x128xbf16> to vector<128x128xbf16>
    %cst_41 = arith.constant dense<0.000000e+00> : vector<8x128xf32>
    %76 = tpu.matmul %70, %75, %cst_41 {dimension_numbers = #tpu.dot_dimension_numbers<[1], [0], [0], [1], [0, 0, 1, 1], [], []>} : vector<8x128xbf16>, vector<128x128xbf16>, vector<8x128xf32> -> vector<8x128xf32>
    %c1_42 = arith.constant 1 : index
    %c0_43 = arith.constant 0 : index
    %77 = vector.load %arg6[%c1_42, %c0_43] : memref<9x128xf32, #tpu.memory_space<vmem>>, vector<8x128xf32>
    tpu.vector_store %arg6[%c1_42, %c0_43], %76 {strides = array<i32>} : memref<9x128xf32, #tpu.memory_space<vmem>>, vector<8x128xf32>,
    %c0_44 = arith.constant 0 : index
    %c0_45 = arith.constant 0 : index
    %78 = vector.load %arg6[%c0_44, %c0_45] : memref<9x128xf32, #tpu.memory_space<vmem>>, vector<8x128xf32>
    %cst_46 = arith.constant 0.000000e+00 : f32
    %79 = vector.shape_cast %18 : vector<8x1xi1> to vector<8x1xi1>
    %80 = vector.broadcast %79 : vector<8x1xi1> to vector<8x128xi1>
    %81 = vector.broadcast %cst_46 : f32 to vector<8x128xf32>
    %82 = arith.select %80, %81, %78 : vector<8x128xi1>, vector<8x128xf32>
    %83 = arith.addf %73, %82 : vector<8x128xf32>
    %c2_47 = arith.constant 2 : index
    %c0_48 = arith.constant 0 : index
    %c0_49 = arith.constant 0 : index
    %84 = vector.load %arg2[%c2_47, %c0_48, %c0_49] : memref<3x128x128xbf16, #tpu.memory_space<vmem>>, vector<1x128x128xbf16>
    %85 = vector.shape_cast %84 : vector<1x128x128xbf16> to vector<128x128xbf16>
    %cst_50 = arith.constant dense<0.000000e+00> : vector<8x128xf32>
    %86 = tpu.matmul %70, %85, %cst_50 {dimension_numbers = #tpu.dot_dimension_numbers<[1], [0], [0], [1], [0, 0, 1, 1], [], []>} : vector<8x128xbf16>, vector<128x128xbf16>, vector<8x128xf32> -> vector<8x128xf32>
    %c0_51 = arith.constant 0 : index
    %c0_52 = arith.constant 0 : index
    %87 = vector.load %arg7[%c0_51, %c0_52] : memref<9x128xf32, #tpu.memory_space<vmem>>, vector<8x128xf32>
    tpu.vector_store %arg7[%c0_51, %c0_52], %86 {strides = array<i32>} : memref<9x128xf32, #tpu.memory_space<vmem>>, vector<8x128xf32>,
    %c1_53 = arith.constant 1 : index
    %c0_54 = arith.constant 0 : index
    %88 = vector.load %arg7[%c1_53, %c0_54] : memref<9x128xf32, #tpu.memory_space<vmem>>, vector<8x128xf32>
    %cst_55 = arith.constant 0.000000e+00 : f32
    %89 = vector.shape_cast %20 : vector<8x1xi1> to vector<8x1xi1>
    %90 = vector.broadcast %89 : vector<8x1xi1> to vector<8x128xi1>
    %91 = vector.broadcast %cst_55 : f32 to vector<8x128xf32>
    %92 = arith.select %90, %91, %88 : vector<8x128xi1>, vector<8x128xf32>
    %93 = arith.addf %83, %92 : vector<8x128xf32>
    %cst_56 = arith.constant dense<0.000000e+00> : vector<128xf32>
    %94 = vector.multi_reduction <add>, %93, %cst_56 [0] : vector<8x128xf32> to vector<128xf32>
    %95 = vector.shape_cast %94 : vector<128xf32> to vector<1x128xf32>
    %cst_57 = arith.constant 1.250000e-01 : f32
    %96 = vector.broadcast %cst_57 : f32 to vector<1x128xf32>
    %97 = arith.mulf %95, %96 : vector<1x128xf32>
    %98 = arith.mulf %93, %93 : vector<8x128xf32>
    %cst_58 = arith.constant dense<0.000000e+00> : vector<128xf32>
    %99 = vector.multi_reduction <add>, %98, %cst_58 [0] : vector<8x128xf32> to vector<128xf32>
    %100 = vector.shape_cast %99 : vector<128xf32> to vector<1x128xf32>
    %cst_59 = arith.constant 1.250000e-01 : f32
    %101 = vector.broadcast %cst_59 : f32 to vector<1x128xf32>
    %102 = arith.mulf %100, %101 : vector<1x128xf32>
    %103 = arith.mulf %97, %97 : vector<1x128xf32>
    %104 = arith.subf %102, %103 : vector<1x128xf32>
    %cst_60 = arith.constant 9.99999974E-6 : f32
    %105 = vector.broadcast %cst_60 : f32 to vector<1x128xf32>
    %106 = arith.addf %104, %105 : vector<1x128xf32>
    %107 = math.rsqrt %106 : vector<1x128xf32>
    %108 = arith.mulf %21, %107 : vector<1x128xf32>
    %109 = arith.mulf %97, %108 : vector<1x128xf32>
    %110 = arith.subf %22, %109 : vector<1x128xf32>
    %111 = vector.broadcast %108 : vector<1x128xf32> to vector<8x128xf32>
    %112 = arith.mulf %93, %111 : vector<8x128xf32>
    %113 = vector.broadcast %110 : vector<1x128xf32> to vector<8x128xf32>
    %114 = arith.addf %112, %113 : vector<8x128xf32>
    %cst_61 = arith.constant 0.000000e+00 : f32
    %115 = vector.broadcast %cst_61 : f32 to vector<8x128xf32>
    %116 = arith.maximumf %114, %115 : vector<8x128xf32>
    %117 = arith.truncf %116 : vector<8x128xf32> to vector<8x128xbf16>
    %c0_62 = arith.constant 0 : index
    %c0_63 = arith.constant 0 : index
    %118 = vector.load %arg5[%c0_62, %c0_63] : memref<8x128xbf16, #tpu.memory_space<vmem>>, vector<8x128xbf16>
    tpu.vector_store %arg5[%c0_62, %c0_63], %117 {strides = array<i32>} : memref<8x128xbf16, #tpu.memory_space<vmem>>, vector<8x128xbf16>,
    return
  }
}

module attributes {stable_mosaic.version = 11 : i64} {
  func.func @pointwise_conv_kernel(%arg0: memref<16x64xbf16, #tpu.memory_space<vmem>>, %arg1: memref<64x4xbf16, #tpu.memory_space<vmem>>, %arg2: memref<1x4xf32, #tpu.memory_space<vmem>>, %arg3: memref<16x4xf32, #tpu.memory_space<vmem>>) attributes {dimension_semantics = [], scalar_prefetch = 0 : i64, scratch_operands = 0 : i64, tpu.core_type = #tpu.core_type<tc>} {
    %c0 = arith.constant 0 : index
    %c0_0 = arith.constant 0 : index
    %0 = vector.load %arg0[%c0, %c0_0] : memref<16x64xbf16, #tpu.memory_space<vmem>>, vector<16x64xbf16>
    %c0_1 = arith.constant 0 : index
    %c0_2 = arith.constant 0 : index
    %1 = vector.load %arg1[%c0_1, %c0_2] : memref<64x4xbf16, #tpu.memory_space<vmem>>, vector<64x4xbf16>
    %cst = arith.constant dense<0.000000e+00> : vector<16x4xf32>
    %2 = tpu.matmul %0, %1, %cst {dimension_numbers = #tpu.dot_dimension_numbers<[1], [0], [0], [1], [0, 0, 1, 1], [], []>} : vector<16x64xbf16>, vector<64x4xbf16>, vector<16x4xf32> -> vector<16x4xf32>
    %c0_3 = arith.constant 0 : index
    %c0_4 = arith.constant 0 : index
    %3 = vector.load %arg2[%c0_3, %c0_4] : memref<1x4xf32, #tpu.memory_space<vmem>>, vector<1x4xf32>
    %4 = vector.broadcast %3 : vector<1x4xf32> to vector<16x4xf32>
    %5 = arith.addf %2, %4 : vector<16x4xf32>
    %c0_5 = arith.constant 0 : index
    %c0_6 = arith.constant 0 : index
    %6 = vector.load %arg3[%c0_5, %c0_6] : memref<16x4xf32, #tpu.memory_space<vmem>>, vector<16x4xf32>
    tpu.vector_store %arg3[%c0_5, %c0_6], %5 {strides = array<i32>} : memref<16x4xf32, #tpu.memory_space<vmem>>, vector<16x4xf32>,
    return
  }
}

module attributes {stable_mosaic.version = 11 : i64} {
  func.func @conv_block_kernel(%arg0: memref<16x192xbf16, #tpu.memory_space<vmem>>, %arg1: memref<3x192x64xbf16, #tpu.memory_space<vmem>>, %arg2: memref<3x64x64xbf16, #tpu.memory_space<vmem>>, %arg3: memref<1x64xf32, #tpu.memory_space<vmem>>, %arg4: memref<1x64xf32, #tpu.memory_space<vmem>>, %arg5: memref<16x64xbf16, #tpu.memory_space<vmem>>, %arg6: memref<17x64xf32, #tpu.memory_space<vmem>>, %arg7: memref<17x64xf32, #tpu.memory_space<vmem>>) attributes {dimension_semantics = [], scalar_prefetch = 0 : i64, scratch_operands = 2 : i64, tpu.core_type = #tpu.core_type<tc>} {
    %0 = tpu.iota {dimensions = array<i32: 0>} : vector<16x1xi32>
    %c8_i32 = arith.constant 8 : i32
    %c0_i32 = arith.constant 0 : i32
    %1 = arith.cmpi eq, %c8_i32, %c0_i32 : i32
    %c1_i32 = arith.constant 1 : i32
    %2 = arith.select %1, %c1_i32, %c8_i32 : i32
    %3 = vector.broadcast %2 : i32 to vector<16x1xi32>
    %4 = arith.remsi %0, %3 : vector<16x1xi32>
    %c0_i32_0 = arith.constant 0 : i32
    %5 = vector.broadcast %c0_i32_0 : i32 to vector<16x1xi32>
    %6 = arith.cmpi ne, %4, %5 : vector<16x1xi32>
    %c0_i32_1 = arith.constant 0 : i32
    %7 = vector.broadcast %c0_i32_1 : i32 to vector<16x1xi32>
    %8 = arith.cmpi slt, %4, %7 : vector<16x1xi32>
    %c0_i32_2 = arith.constant 0 : i32
    %9 = arith.cmpi slt, %2, %c0_i32_2 : i32
    %10 = vector.broadcast %9 : i1 to vector<16x1xi1>
    %11 = vector.broadcast %10 : vector<16x1xi1> to vector<16x1xi1>
    %12 = arith.xori %8, %11 : vector<16x1xi1>
    %13 = arith.andi %12, %6 : vector<16x1xi1>
    %14 = vector.broadcast %2 : i32 to vector<16x1xi32>
    %15 = arith.addi %4, %14 : vector<16x1xi32>
    %16 = arith.select %13, %15, %4 : vector<16x1xi1>, vector<16x1xi32>
    %c0_i32_3 = arith.constant 0 : i32
    %17 = vector.broadcast %c0_i32_3 : i32 to vector<16x1xi32>
    %18 = arith.cmpi eq, %16, %17 : vector<16x1xi32>
    %c7_i32 = arith.constant 7 : i32
    %19 = vector.broadcast %c7_i32 : i32 to vector<16x1xi32>
    %20 = arith.cmpi eq, %16, %19 : vector<16x1xi32>
    %c0 = arith.constant 0 : index
    %c0_4 = arith.constant 0 : index
    %21 = vector.load %arg3[%c0, %c0_4] : memref<1x64xf32, #tpu.memory_space<vmem>>, vector<1x64xf32>
    %c0_5 = arith.constant 0 : index
    %c0_6 = arith.constant 0 : index
    %22 = vector.load %arg4[%c0_5, %c0_6] : memref<1x64xf32, #tpu.memory_space<vmem>>, vector<1x64xf32>
    %c0_7 = arith.constant 0 : index
    %c0_8 = arith.constant 0 : index
    %23 = vector.load %arg0[%c0_7, %c0_8] : memref<16x192xbf16, #tpu.memory_space<vmem>>, vector<16x192xbf16>
    %c1 = arith.constant 1 : index
    %c0_9 = arith.constant 0 : index
    %c0_10 = arith.constant 0 : index
    %24 = vector.load %arg1[%c1, %c0_9, %c0_10] : memref<3x192x64xbf16, #tpu.memory_space<vmem>>, vector<1x192x64xbf16>
    %25 = vector.shape_cast %24 : vector<1x192x64xbf16> to vector<192x64xbf16>
    %cst = arith.constant dense<0.000000e+00> : vector<16x64xf32>
    %26 = tpu.matmul %23, %25, %cst {dimension_numbers = #tpu.dot_dimension_numbers<[1], [0], [0], [1], [0, 0, 1, 1], [], []>} : vector<16x192xbf16>, vector<192x64xbf16>, vector<16x64xf32> -> vector<16x64xf32>
    %c0_11 = arith.constant 0 : index
    %c0_12 = arith.constant 0 : index
    %c0_13 = arith.constant 0 : index
    %27 = vector.load %arg1[%c0_11, %c0_12, %c0_13] : memref<3x192x64xbf16, #tpu.memory_space<vmem>>, vector<1x192x64xbf16>
    %28 = vector.shape_cast %27 : vector<1x192x64xbf16> to vector<192x64xbf16>
    %cst_14 = arith.constant dense<0.000000e+00> : vector<16x64xf32>
    %29 = tpu.matmul %23, %28, %cst_14 {dimension_numbers = #tpu.dot_dimension_numbers<[1], [0], [0], [1], [0, 0, 1, 1], [], []>} : vector<16x192xbf16>, vector<192x64xbf16>, vector<16x64xf32> -> vector<16x64xf32>
    %c1_15 = arith.constant 1 : index
    %c0_16 = arith.constant 0 : index
    %30 = vector.load %arg6[%c1_15, %c0_16] : memref<17x64xf32, #tpu.memory_space<vmem>>, vector<16x64xf32>
    tpu.vector_store %arg6[%c1_15, %c0_16], %29 {strides = array<i32>} : memref<17x64xf32, #tpu.memory_space<vmem>>, vector<16x64xf32>,
    %c0_17 = arith.constant 0 : index
    %c0_18 = arith.constant 0 : index
    %31 = vector.load %arg6[%c0_17, %c0_18] : memref<17x64xf32, #tpu.memory_space<vmem>>, vector<16x64xf32>
    %cst_19 = arith.constant 0.000000e+00 : f32
    %32 = vector.shape_cast %18 : vector<16x1xi1> to vector<16x1xi1>
    %33 = vector.broadcast %32 : vector<16x1xi1> to vector<16x64xi1>
    %34 = vector.broadcast %cst_19 : f32 to vector<16x64xf32>
    %35 = arith.select %33, %34, %31 : vector<16x64xi1>, vector<16x64xf32>
    %36 = arith.addf %26, %35 : vector<16x64xf32>
    %c2 = arith.constant 2 : index
    %c0_20 = arith.constant 0 : index
    %c0_21 = arith.constant 0 : index
    %37 = vector.load %arg1[%c2, %c0_20, %c0_21] : memref<3x192x64xbf16, #tpu.memory_space<vmem>>, vector<1x192x64xbf16>
    %38 = vector.shape_cast %37 : vector<1x192x64xbf16> to vector<192x64xbf16>
    %cst_22 = arith.constant dense<0.000000e+00> : vector<16x64xf32>
    %39 = tpu.matmul %23, %38, %cst_22 {dimension_numbers = #tpu.dot_dimension_numbers<[1], [0], [0], [1], [0, 0, 1, 1], [], []>} : vector<16x192xbf16>, vector<192x64xbf16>, vector<16x64xf32> -> vector<16x64xf32>
    %c0_23 = arith.constant 0 : index
    %c0_24 = arith.constant 0 : index
    %40 = vector.load %arg7[%c0_23, %c0_24] : memref<17x64xf32, #tpu.memory_space<vmem>>, vector<16x64xf32>
    tpu.vector_store %arg7[%c0_23, %c0_24], %39 {strides = array<i32>} : memref<17x64xf32, #tpu.memory_space<vmem>>, vector<16x64xf32>,
    %c1_25 = arith.constant 1 : index
    %c0_26 = arith.constant 0 : index
    %41 = vector.load %arg7[%c1_25, %c0_26] : memref<17x64xf32, #tpu.memory_space<vmem>>, vector<16x64xf32>
    %cst_27 = arith.constant 0.000000e+00 : f32
    %42 = vector.shape_cast %20 : vector<16x1xi1> to vector<16x1xi1>
    %43 = vector.broadcast %42 : vector<16x1xi1> to vector<16x64xi1>
    %44 = vector.broadcast %cst_27 : f32 to vector<16x64xf32>
    %45 = arith.select %43, %44, %41 : vector<16x64xi1>, vector<16x64xf32>
    %46 = arith.addf %36, %45 : vector<16x64xf32>
    %cst_28 = arith.constant dense<0.000000e+00> : vector<64xf32>
    %47 = vector.multi_reduction <add>, %46, %cst_28 [0] : vector<16x64xf32> to vector<64xf32>
    %48 = vector.shape_cast %47 : vector<64xf32> to vector<1x64xf32>
    %cst_29 = arith.constant 6.250000e-02 : f32
    %49 = vector.broadcast %cst_29 : f32 to vector<1x64xf32>
    %50 = arith.mulf %48, %49 : vector<1x64xf32>
    %51 = arith.mulf %46, %46 : vector<16x64xf32>
    %cst_30 = arith.constant dense<0.000000e+00> : vector<64xf32>
    %52 = vector.multi_reduction <add>, %51, %cst_30 [0] : vector<16x64xf32> to vector<64xf32>
    %53 = vector.shape_cast %52 : vector<64xf32> to vector<1x64xf32>
    %cst_31 = arith.constant 6.250000e-02 : f32
    %54 = vector.broadcast %cst_31 : f32 to vector<1x64xf32>
    %55 = arith.mulf %53, %54 : vector<1x64xf32>
    %56 = arith.mulf %50, %50 : vector<1x64xf32>
    %57 = arith.subf %55, %56 : vector<1x64xf32>
    %cst_32 = arith.constant 9.99999974E-6 : f32
    %58 = vector.broadcast %cst_32 : f32 to vector<1x64xf32>
    %59 = arith.addf %57, %58 : vector<1x64xf32>
    %60 = math.rsqrt %59 : vector<1x64xf32>
    %61 = arith.mulf %21, %60 : vector<1x64xf32>
    %62 = arith.mulf %50, %61 : vector<1x64xf32>
    %63 = arith.subf %22, %62 : vector<1x64xf32>
    %64 = vector.broadcast %61 : vector<1x64xf32> to vector<16x64xf32>
    %65 = arith.mulf %46, %64 : vector<16x64xf32>
    %66 = vector.broadcast %63 : vector<1x64xf32> to vector<16x64xf32>
    %67 = arith.addf %65, %66 : vector<16x64xf32>
    %cst_33 = arith.constant 0.000000e+00 : f32
    %68 = vector.broadcast %cst_33 : f32 to vector<16x64xf32>
    %69 = arith.maximumf %67, %68 : vector<16x64xf32>
    %70 = arith.truncf %69 : vector<16x64xf32> to vector<16x64xbf16>
    %c1_34 = arith.constant 1 : index
    %c0_35 = arith.constant 0 : index
    %c0_36 = arith.constant 0 : index
    %71 = vector.load %arg2[%c1_34, %c0_35, %c0_36] : memref<3x64x64xbf16, #tpu.memory_space<vmem>>, vector<1x64x64xbf16>
    %72 = vector.shape_cast %71 : vector<1x64x64xbf16> to vector<64x64xbf16>
    %cst_37 = arith.constant dense<0.000000e+00> : vector<16x64xf32>
    %73 = tpu.matmul %70, %72, %cst_37 {dimension_numbers = #tpu.dot_dimension_numbers<[1], [0], [0], [1], [0, 0, 1, 1], [], []>} : vector<16x64xbf16>, vector<64x64xbf16>, vector<16x64xf32> -> vector<16x64xf32>
    %c0_38 = arith.constant 0 : index
    %c0_39 = arith.constant 0 : index
    %c0_40 = arith.constant 0 : index
    %74 = vector.load %arg2[%c0_38, %c0_39, %c0_40] : memref<3x64x64xbf16, #tpu.memory_space<vmem>>, vector<1x64x64xbf16>
    %75 = vector.shape_cast %74 : vector<1x64x64xbf16> to vector<64x64xbf16>
    %cst_41 = arith.constant dense<0.000000e+00> : vector<16x64xf32>
    %76 = tpu.matmul %70, %75, %cst_41 {dimension_numbers = #tpu.dot_dimension_numbers<[1], [0], [0], [1], [0, 0, 1, 1], [], []>} : vector<16x64xbf16>, vector<64x64xbf16>, vector<16x64xf32> -> vector<16x64xf32>
    %c1_42 = arith.constant 1 : index
    %c0_43 = arith.constant 0 : index
    %77 = vector.load %arg6[%c1_42, %c0_43] : memref<17x64xf32, #tpu.memory_space<vmem>>, vector<16x64xf32>
    tpu.vector_store %arg6[%c1_42, %c0_43], %76 {strides = array<i32>} : memref<17x64xf32, #tpu.memory_space<vmem>>, vector<16x64xf32>,
    %c0_44 = arith.constant 0 : index
    %c0_45 = arith.constant 0 : index
    %78 = vector.load %arg6[%c0_44, %c0_45] : memref<17x64xf32, #tpu.memory_space<vmem>>, vector<16x64xf32>
    %cst_46 = arith.constant 0.000000e+00 : f32
    %79 = vector.shape_cast %18 : vector<16x1xi1> to vector<16x1xi1>
    %80 = vector.broadcast %79 : vector<16x1xi1> to vector<16x64xi1>
    %81 = vector.broadcast %cst_46 : f32 to vector<16x64xf32>
    %82 = arith.select %80, %81, %78 : vector<16x64xi1>, vector<16x64xf32>
    %83 = arith.addf %73, %82 : vector<16x64xf32>
    %c2_47 = arith.constant 2 : index
    %c0_48 = arith.constant 0 : index
    %c0_49 = arith.constant 0 : index
    %84 = vector.load %arg2[%c2_47, %c0_48, %c0_49] : memref<3x64x64xbf16, #tpu.memory_space<vmem>>, vector<1x64x64xbf16>
    %85 = vector.shape_cast %84 : vector<1x64x64xbf16> to vector<64x64xbf16>
    %cst_50 = arith.constant dense<0.000000e+00> : vector<16x64xf32>
    %86 = tpu.matmul %70, %85, %cst_50 {dimension_numbers = #tpu.dot_dimension_numbers<[1], [0], [0], [1], [0, 0, 1, 1], [], []>} : vector<16x64xbf16>, vector<64x64xbf16>, vector<16x64xf32> -> vector<16x64xf32>
    %c0_51 = arith.constant 0 : index
    %c0_52 = arith.constant 0 : index
    %87 = vector.load %arg7[%c0_51, %c0_52] : memref<17x64xf32, #tpu.memory_space<vmem>>, vector<16x64xf32>
    tpu.vector_store %arg7[%c0_51, %c0_52], %86 {strides = array<i32>} : memref<17x64xf32, #tpu.memory_space<vmem>>, vector<16x64xf32>,
    %c1_53 = arith.constant 1 : index
    %c0_54 = arith.constant 0 : index
    %88 = vector.load %arg7[%c1_53, %c0_54] : memref<17x64xf32, #tpu.memory_space<vmem>>, vector<16x64xf32>
    %cst_55 = arith.constant 0.000000e+00 : f32
    %89 = vector.shape_cast %20 : vector<16x1xi1> to vector<16x1xi1>
    %90 = vector.broadcast %89 : vector<16x1xi1> to vector<16x64xi1>
    %91 = vector.broadcast %cst_55 : f32 to vector<16x64xf32>
    %92 = arith.select %90, %91, %88 : vector<16x64xi1>, vector<16x64xf32>
    %93 = arith.addf %83, %92 : vector<16x64xf32>
    %cst_56 = arith.constant dense<0.000000e+00> : vector<64xf32>
    %94 = vector.multi_reduction <add>, %93, %cst_56 [0] : vector<16x64xf32> to vector<64xf32>
    %95 = vector.shape_cast %94 : vector<64xf32> to vector<1x64xf32>
    %cst_57 = arith.constant 6.250000e-02 : f32
    %96 = vector.broadcast %cst_57 : f32 to vector<1x64xf32>
    %97 = arith.mulf %95, %96 : vector<1x64xf32>
    %98 = arith.mulf %93, %93 : vector<16x64xf32>
    %cst_58 = arith.constant dense<0.000000e+00> : vector<64xf32>
    %99 = vector.multi_reduction <add>, %98, %cst_58 [0] : vector<16x64xf32> to vector<64xf32>
    %100 = vector.shape_cast %99 : vector<64xf32> to vector<1x64xf32>
    %cst_59 = arith.constant 6.250000e-02 : f32
    %101 = vector.broadcast %cst_59 : f32 to vector<1x64xf32>
    %102 = arith.mulf %100, %101 : vector<1x64xf32>
    %103 = arith.mulf %97, %97 : vector<1x64xf32>
    %104 = arith.subf %102, %103 : vector<1x64xf32>
    %cst_60 = arith.constant 9.99999974E-6 : f32
    %105 = vector.broadcast %cst_60 : f32 to vector<1x64xf32>
    %106 = arith.addf %104, %105 : vector<1x64xf32>
    %107 = math.rsqrt %106 : vector<1x64xf32>
    %108 = arith.mulf %21, %107 : vector<1x64xf32>
    %109 = arith.mulf %97, %108 : vector<1x64xf32>
    %110 = arith.subf %22, %109 : vector<1x64xf32>
    %111 = vector.broadcast %108 : vector<1x64xf32> to vector<16x64xf32>
    %112 = arith.mulf %93, %111 : vector<16x64xf32>
    %113 = vector.broadcast %110 : vector<1x64xf32> to vector<16x64xf32>
    %114 = arith.addf %112, %113 : vector<16x64xf32>
    %cst_61 = arith.constant 0.000000e+00 : f32
    %115 = vector.broadcast %cst_61 : f32 to vector<16x64xf32>
    %116 = arith.maximumf %114, %115 : vector<16x64xf32>
    %117 = arith.truncf %116 : vector<16x64xf32> to vector<16x64xbf16>
    %c0_62 = arith.constant 0 : index
    %c0_63 = arith.constant 0 : index
    %118 = vector.load %arg5[%c0_62, %c0_63] : memref<16x64xbf16, #tpu.memory_space<vmem>>, vector<16x64xbf16>
    tpu.vector_store %arg5[%c0_62, %c0_63], %117 {strides = array<i32>} : memref<16x64xbf16, #tpu.memory_space<vmem>>, vector<16x64xbf16>,
    return
  }
}

</mosaic_0001>

<bundles_post_ra>
// kernel: debugnet_forward.8
= control target key start
LH: loop header
LB: loop body
LE: loop exit
PB: predicated region body
PF: predicated region fallthrough
CT: control target
= control target key end

     0   :  { %10 = vsyncpa [#allocation5], 0  ;;  %s740_s0 = inlined_call_operand.vmem [shape: bf16[16,2], index: 0, kind: input, shape index: {}]   ;;  %s741_s1 = inlined_call_operand.vmem [shape: bf16[3,2,64], index: 1, kind: input, shape index: {}]   ;;  %s742_s2 = inlined_call_operand.vmem [shape: bf16[3,64,64], index: 2, kind: input, shape index: {}]   ;;  %s743_s3 = inlined_call_operand.hbm [shape: f32[1,64], index: 3, kind: input, shape index: {}]   ;;  %s744_s4 = inlined_call_operand.hbm [shape: f32[1,64], index: 4, kind: input, shape index: {}]   ;;  %s745_s5 = inlined_call_operand.vmem [shape: bf16[16,64], index: 5, kind: output, shape index: {}]  }
   0x1   :  { %s23_s20 = sshll.u32 %s743_s3, 4  ;;  %s24_s20 = int_to_ptr.hbm [resolvable:$true] %s23_s20 }
   0x2   :  { %11 = vsyncpa [#allocation7], 0  ;;  %s589_s21 = smov [#allocation4]   ;;  %s34_s25 = sshll.u32 %s744_s4, 4  ;;  %s35_s25 = int_to_ptr.hbm [resolvable:$true] %s34_s25 }
   0x3   :  { %s25_s22 = sshll.u32 %s589_s21, 4  ;;  %s590_s26 = smov [#allocation6]   ;;  %s26_s22 = int_to_ptr.vmem [resolvable:$true] %s25_s22 }
   0x4   :  { %28 = dma.hbm_to_vmem [thread:$0]  %s24_s20, 16, %s26_s22, [#allocation5]  }
   0x5   :  { %s36_s27 = sshll.u32 %s590_s26, 4  ;;  %s37_s27 = int_to_ptr.vmem [resolvable:$true] %s36_s27 }
   0x6   :  { %39 = dma.hbm_to_vmem [thread:$0]  %s35_s25, 16, %s37_s27, [#allocation7]  }
   0x7   :  { %585 = dma.done.wait [#allocation5], 16  }
   0x8   :  { %586 = vsyncadd [#allocation5], 4294967280 }
   0x9   :  { %587 = dma.done.wait [#allocation7], 16  }
   0xa   :  { %588 = vsyncadd [#allocation7], 4294967280  ;;  %vm96_vm0 = vcmask 1040384   ;;  %v86_v0 = vld [vmem:[%s741_s1] sm:$0x1]  ;;  %vm92_vm1 = vcmask 15360   ;;  %v49_v20 = vlaneseq }
   0xb   :  { %v449_v1 = vld [vmem:[%s741_s1 + $0x2] sm:$0x1]  ;;  %v98_v2 = vsel %vm96_vm0, %v86_v0, 0  ;;  %v442_v5 = vld [vmem:[%s741_s1 + $0x1] sm:$0x1]  ;;  %v526_v7 = vld [vmem:[%s742_s2 + $0x18] sm:$0xff] }
   0xc   :  { %v145_v3 = vsel %vm96_vm0, %v449_v1, 0  ;;  %v518_v4 = vld [vmem:[%s740_s0] sm:$0xff]  ;;  %107 = vmatpush.bf16.msra.mxu0 %v98_v2  ;;  %v126_v6 = vsel %vm96_vm0, %v442_v5, 0  ;;  %v522_v8 = vld [vmem:[%s742_s2 + $0x38] sm:$0xff]  ;;  %272 = vmatpush.bf16.msra.mxu3 %v526_v7  ;;  %v525_v10 = vld [vmem:[%s742_s2 + $0x10] sm:$0xff]  ;;  %vm114_vm2 = vcmask 523264  }
   0xd   :  { %154 = vmatpush.bf16.msra.mxu2 %v145_v3  ;;  %135 = vmatpush.bf16.msra.mxu1 %v126_v6  ;;  %v530_v9 = vld [vmem:[%s742_s2 + $0x58] sm:$0xff]  ;;  %v521_v11 = vld [vmem:[%s742_s2 + $0x30] sm:$0xff]  ;;  %v524_v13 = vld [vmem:[%s742_s2 + $0x8] sm:$0xff]  ;;  %v50_v21 = vshrl.u32 %v49_v20, 7  ;;  %vm433_vm13 = vcmask 519168  }
   0xe   :  { %v529_v12 = vld [vmem:[%s742_s2 + $0x50] sm:$0xff]  ;;  %v520_v14 = vld [vmem:[%s742_s2 + $0x28] sm:$0xff]  ;;  %v523_v16 = vld [vmem:[%s742_s2] sm:$0xff] }
   0xf   :  { %447 = vmatmul.msk.bf16.vlgmr.msra.gmra.mxu0 %vm92_vm1, %v518_v4  ;;  %v528_v15 = vld [vmem:[%s742_s2 + $0x48] sm:$0xff]  ;;  %v519_v17 = vld [vmem:[%s742_s2 + $0x20] sm:$0xff]  ;;  %v51_v24 = vadd.s32 8, %v50_v21  ;;  %v56_v26 = vand.u32 7, %v50_v21 }
  0x10   :  { %450 = vmatmul.msk.bf16.vlgmr.msra.gmra.mxu2 %vm92_vm1, %v518_v4  ;;  %448 = vmatmul.msk.bf16.vlgmr.msra.gmra.mxu1 %vm92_vm1, %v518_v4  ;;  %v527_v18 = vld [vmem:[%s742_s2 + $0x40] sm:$0xff] }
  0x11   :  { %316 = vmatpush.bf16.msrb.mxu0 %v522_v8  ;;  %363 = vmatpush.bf16.msrb.mxu1 %v530_v9  ;;  %v63_v27 = vand.u32 7, %v51_v24  ;;  %vm679_vm3 = vcmp.eq.s32.totalorder %v56_v26, 0  ;;  %vm691_vm5 = vcmp.eq.s32.totalorder %v56_v26, 7 }
  0x12   :  { %273 = vmatpush.bf16.msra.mxu3 %v525_v10 }
  0x13   :  { %vm683_vm4 = vcmp.eq.s32.totalorder %v63_v27, 0  ;;  %vm695_vm6 = vcmp.eq.s32.totalorder %v63_v27, 7 }
  0x15   :  { %317 = vmatpush.bf16.msrb.mxu0 %v521_v11  ;;  %364 = vmatpush.bf16.msrb.mxu1 %v529_v12  ;;  %v707_v12 = vld [vmem:[#allocation4] sm:$0x1] }
  0x16   :  { %274 = vmatpush.bf16.msra.mxu3 %v524_v13 }
  0x19   :  { %318 = vmatpush.bf16.msrb.mxu0 %v520_v14  ;;  %365 = vmatpush.bf16.msrb.mxu1 %v528_v15 }
  0x1a   :  { %275 = vmatpush.bf16.msra.mxu3 %v523_v16  ;;  %v710_v16 = vld [vmem:[#allocation6] sm:$0x1] }
  0x1d   :  { %319 = vmatpush.bf16.msrb.mxu0 %v519_v17  ;;  %366 = vmatpush.bf16.msrb.mxu1 %v527_v18 }
  0x8c   :  { %v109_v19 = vpop.f32.mrf.mxu0 }
  0x8d   :  { %115 = vst.msk [vmem:[#allocation2 + $0x1] sm:$0xff] %vm114_vm2, %v109_v19  ;;  %v137_v25 = vpop.f32.mrf.mxu1 }
  0x93   :  { %v156_v22 = vpop.f32.mrf.mxu2 }
  0x94   :  { %161 = vst.msk [vmem:[#allocation3] sm:$0xff] %vm114_vm2, %v156_v22  ;;  %v111_v23 = vpop.f32.mrf.mxu0  ;;  %v117_v30 = vld [vmem:[#allocation2] sm:$0xff] }
  0x95   :  { %116 = vst.msk [vmem:[#allocation2 + $0x9] sm:$0xff] %vm114_vm2, %v111_v23  ;;  %v123_v33 = vsel %vm679_vm3, 0.0, %v117_v30  ;;  %v139_v37 = vpop.f32.mrf.mxu1 }
  0x96   :  { %v138_v38 = vadd.f32 %v137_v25, %v123_v33 }
  0x9b   :  { %v158_v28 = vpop.f32.mrf.mxu2 }
  0x9c   :  { %162 = vst.msk [vmem:[#allocation3 + $0x8] sm:$0xff] %vm114_vm2, %v158_v28  ;;  %v118_v32 = vld [vmem:[#allocation2 + $0x8] sm:$0xff] }
  0x9d   :  { %v124_v34 = vsel %vm683_vm4, 0.0, %v118_v32 }
  0x9e   :  { %v140_v39 = vadd.f32 %v139_v37, %v124_v34 }
  0xa3   :  { %v163_v40 = vld [vmem:[#allocation3 + $0x1] sm:$0xff]  ;;  %v164_v41 = vld [vmem:[#allocation3 + $0x9] sm:$0xff] }
  0xa4   :  { %v169_v42 = vsel %vm691_vm5, 0.0, %v163_v40  ;;  %v170_v43 = vsel %vm695_vm6, 0.0, %v164_v41 }
  0xa5   :  { %v171_v44 = vadd.f32 %v169_v42, %v138_v38  ;;  %v172_v45 = vadd.f32 %v170_v43, %v140_v39 }
  0xa7   :  { %v173_v46 = vsel %vm114_vm2, %v171_v44, 0.0  ;;  %v174_v47 = vsel %vm114_vm2, %v172_v45, 0.0  ;;  %v183_v48 = vmul.f32 %v171_v44, %v171_v44  ;;  %v184_v49 = vmul.f32 %v172_v45, %v172_v45 }
  0xa8   :  { %v175_v50 = vadd.f32 %v174_v47, %v173_v46 }
  0xa9   :  { %v185_v51 = vsel %vm114_vm2, %v183_v48, 0.0  ;;  %v186_v52 = vsel %vm114_vm2, %v184_v49, 0.0 }
  0xaa   :  { %v176_v53 = vrot.slane %v175_v50, 4  ;;  %v187_v54 = vadd.f32 %v186_v52, %v185_v51 }
  0xac   :  { %v177_v55 = vadd.f32 %v176_v53, %v175_v50  ;;  %v188_v56 = vrot.slane %v187_v54, 4 }
  0xae   :  { %v178_v57 = vrot.slane %v177_v55, 2  ;;  %v189_v58 = vadd.f32 %v188_v56, %v187_v54 }
  0xb0   :  { %v179_v59 = vadd.f32 %v178_v57, %v177_v55  ;;  %v190_v60 = vrot.slane %v189_v58, 2 }
  0xb2   :  { %v180_v61 = vrot.slane %v179_v59, 1  ;;  %v191_v62 = vadd.f32 %v190_v60, %v189_v58 }
  0xb4   :  { %v181_v63 = vadd.f32 %v180_v61, %v179_v59  ;;  %v192_v0 = vrot.slane %v191_v62, 1 }
  0xb6   :  { %v182_v1 = vmul.f32 0.0625, %v181_v63  ;;  %v193_v2 = vadd.f32 %v192_v0, %v191_v62 }
  0xb8   :  { %v194_v3 = vmul.f32 0.0625, %v193_v2  ;;  %v195_v4 = vmul.f32 %v182_v1, %v182_v1 }
  0xba   :  { %v196_v5 = vsub.f32 %v194_v3, %v195_v4 }
  0xbc   :  { %v197_v6 = vadd.f32 1e-05, %v196_v5 }
  0xbe   :  { %533 = vrsqrt.f32 %v197_v6  ;;  %vm204_vm8 = vweird.f32 %v197_v6 }
  0xc4   :  { %v534_v7 = vpop.eup %533 }
  0xc5   :  { %v199_v8 = vmul.f32 %v534_v7, %v197_v6  ;;  %vm205_vm7 = vweird.f32 %v534_v7 }
  0xc6   :  { %vm206_vm9 = vmor %vm204_vm8, %vm205_vm7 }
  0xc7   :  { %v200_v9 = vmul.f32 %v534_v7, %v199_v8 }
  0xc9   :  { %v201_v10 = vmul.f32 0.5, %v200_v9 }
  0xcb   :  { %v202_v11 = vsub.f32 1.5, %v201_v10 }
  0xcd   :  { %v203_v13 = vmul.f32 %v534_v7, %v202_v11 }
  0xcf   :  { %v207_v14 = vsel %vm206_vm9, %v534_v7, %v203_v13 }
  0xd0   :  { %v208_v15 = vmul.f32 %v207_v14, %v707_v12 }
  0xd2   :  { %v209_v17 = vmul.f32 %v208_v15, %v182_v1  ;;  %v212_v18 = vperm.slane %v208_v15, 0 }
  0xd4   :  { %v210_v19 = vsub.f32 %v710_v16, %v209_v17  ;;  %v214_v20 = vmul.f32 %v212_v18, %v171_v44  ;;  %v215_v21 = vmul.f32 %v212_v18, %v172_v45 }
  0xd6   :  { %v217_v22 = vperm.slane %v210_v19, 0 }
  0xd8   :  { %v219_v23 = vadd.f32 %v217_v22, %v214_v20  ;;  %v220_v24 = vadd.f32 %v217_v22, %v215_v21 }
  0xda   :  { %v221_v25 = vmax.f32 %v219_v23, 0.0  ;;  %v222_v26 = vmax.f32 %v220_v24, 0.0 }
  0xdc   :  { %v223_v27 = vpack.c.bf16 %v222_v26, %v221_v25 }
  0xde   :  { %475 = vmatmul.msk.bf16.vlgmr.msra.gmra.mxu3 %vm114_vm2, %v223_v27  ;;  %492 = vmatmul.msk.bf16.vlgmr.msrb.gmra.mxu0 %vm114_vm2, %v223_v27 }
  0xdf   :  { %517 = vmatmul.msk.bf16.vlgmr.msrb.gmra.mxu1 %vm114_vm2, %v223_v27 }
 0x15b   :  { %v321_v33 = vpop.f32.mrf.mxu0 }
 0x15c   :  { %v368_v28 = vpop.f32.mrf.mxu1 }
 0x15d   :  { %373 = vst.msk [vmem:[#allocation3] sm:$0xff] %vm114_vm2, %v368_v28 }
 0x161   :  { %v277_v30 = vpop.f32.mrf.mxu3 }
 0x162   :  { %282 = vst.msk [vmem:[#allocation2 + $0x1] sm:$0xff] %vm114_vm2, %v277_v30 }
 0x163   :  { %v323_v45 = vpop.f32.mrf.mxu0 }
 0x164   :  { %v370_v32 = vpop.f32.mrf.mxu1 }
 0x165   :  { %374 = vst.msk [vmem:[#allocation3 + $0x8] sm:$0xff] %vm114_vm2, %v370_v32 }
 0x169   :  { %v284_v34 = vld [vmem:[#allocation2] sm:$0xff]  ;;  %v279_v37 = vpop.f32.mrf.mxu3 }
 0x16a   :  { %v286_v38 = vsel %vm679_vm3, 0.0, %v284_v34  ;;  %283 = vst.msk [vmem:[#allocation2 + $0x9] sm:$0xff] %vm114_vm2, %v279_v37 }
 0x16b   :  { %v322_v40 = vadd.f32 %v321_v33, %v286_v38 }
 0x16c   :  { %v375_v39 = vld [vmem:[#allocation3 + $0x1] sm:$0xff]  ;;  %v376_v42 = vld [vmem:[#allocation3 + $0x9] sm:$0xff] }
 0x16d   :  { %v377_v41 = vsel %vm691_vm5, 0.0, %v375_v39  ;;  %v378_v48 = vsel %vm695_vm6, 0.0, %v376_v42 }
 0x16e   :  { %v379_v43 = vadd.f32 %v377_v41, %v322_v40 }
 0x170   :  { %v391_v29 = vmul.f32 %v379_v43, %v379_v43  ;;  %v381_v50 = vsel %vm114_vm2, %v379_v43, 0.0 }
 0x171   :  { %v285_v44 = vld [vmem:[#allocation2 + $0x8] sm:$0xff] }
 0x172   :  { %v287_v46 = vsel %vm683_vm4, 0.0, %v285_v44  ;;  %v393_v53 = vsel %vm114_vm2, %v391_v29, 0.0 }
 0x173   :  { %v324_v47 = vadd.f32 %v323_v45, %v287_v46 }
 0x175   :  { %v380_v49 = vadd.f32 %v378_v48, %v324_v47 }
 0x177   :  { %v382_v51 = vsel %vm114_vm2, %v380_v49, 0.0  ;;  %v392_v52 = vmul.f32 %v380_v49, %v380_v49 }
 0x178   :  { %v383_v35 = vadd.f32 %v382_v51, %v381_v50 }
 0x179   :  { %v394_v54 = vsel %vm114_vm2, %v392_v52, 0.0 }
 0x17a   :  { %v384_v55 = vrot.slane %v383_v35, 4  ;;  %v395_v56 = vadd.f32 %v394_v54, %v393_v53 }
 0x17c   :  { %v385_v31 = vadd.f32 %v384_v55, %v383_v35  ;;  %v396_v57 = vrot.slane %v395_v56, 4 }
 0x17e   :  { %v386_v58 = vrot.slane %v385_v31, 2  ;;  %v397_v59 = vadd.f32 %v396_v57, %v395_v56 }
 0x180   :  { %v387_v36 = vadd.f32 %v386_v58, %v385_v31  ;;  %v398_v60 = vrot.slane %v397_v59, 2 }
 0x182   :  { %v388_v61 = vrot.slane %v387_v36, 1  ;;  %v399_v62 = vadd.f32 %v398_v60, %v397_v59 }
 0x184   :  { %v389_v63 = vadd.f32 %v388_v61, %v387_v36  ;;  %v400_v0 = vrot.slane %v399_v62, 1 }
 0x186   :  { %v390_v1 = vmul.f32 0.0625, %v389_v63  ;;  %v401_v2 = vadd.f32 %v400_v0, %v399_v62 }
 0x188   :  { %v402_v3 = vmul.f32 0.0625, %v401_v2  ;;  %v403_v4 = vmul.f32 %v390_v1, %v390_v1 }
 0x18a   :  { %v404_v5 = vsub.f32 %v402_v3, %v403_v4 }
 0x18c   :  { %v405_v6 = vadd.f32 1e-05, %v404_v5 }
 0x18e   :  { %535 = vrsqrt.f32 %v405_v6  ;;  %vm412_vm11 = vweird.f32 %v405_v6 }
 0x194   :  { %v536_v7 = vpop.eup %535 }
 0x195   :  { %v407_v8 = vmul.f32 %v536_v7, %v405_v6  ;;  %vm413_vm10 = vweird.f32 %v536_v7 }
 0x196   :  { %vm414_vm12 = vmor %vm412_vm11, %vm413_vm10 }
 0x197   :  { %v408_v9 = vmul.f32 %v536_v7, %v407_v8 }
 0x199   :  { %v409_v10 = vmul.f32 0.5, %v408_v9 }
 0x19b   :  { %v410_v11 = vsub.f32 1.5, %v409_v10 }
 0x19d   :  { %v411_v13 = vmul.f32 %v536_v7, %v410_v11 }
 0x19f   :  { %v415_v14 = vsel %vm414_vm12, %v536_v7, %v411_v13 }
 0x1a0   :  { %v416_v15 = vmul.f32 %v415_v14, %v707_v12 }
 0x1a2   :  { %v417_v17 = vmul.f32 %v416_v15, %v390_v1  ;;  %v420_v18 = vperm.slane %v416_v15, 0 }
 0x1a4   :  { %v418_v19 = vsub.f32 %v710_v16, %v417_v17  ;;  %v422_v20 = vmul.f32 %v420_v18, %v379_v43  ;;  %v423_v21 = vmul.f32 %v420_v18, %v380_v49 }
 0x1a6   :  { %v425_v22 = vperm.slane %v418_v19, 0 }
 0x1a8   :  { %v427_v23 = vadd.f32 %v425_v22, %v422_v20  ;;  %v428_v24 = vadd.f32 %v425_v22, %v423_v21 }
 0x1aa   :  { %v429_v25 = vmax.f32 %v427_v23, 0.0  ;;  %v430_v26 = vmax.f32 %v428_v24, 0.0 }
 0x1ac   :  { %v431_v27 = vpack.c.bf16 %v429_v25, %v429_v25  ;;  %v432_v28 = vpack.c.bf16 %v430_v26, %v430_v26 }
 0x1ae   :  { %434 = vst.msk [vmem:[%s745_s5] sm:$0xf] %vm433_vm13, %v431_v27 }
 0x1af   :  { %435 = vst.msk [vmem:[%s745_s5 + $0x4] sm:$0xf] %vm433_vm13, %v432_v28 }
 0x1b0   :  { %440 = vsyncpa [#allocation5], 1 }
 0x1b1   :  { %441 = vsyncpa [#allocation7], 1 }

// kernel: debugnet_forward.9
= control target key start
LH: loop header
LB: loop body
LE: loop exit
PB: predicated region body
PF: predicated region fallthrough
CT: control target
= control target key end

     0   :  { %10 = vsyncpa [#allocation5], 0  ;;  %s1006_s0 = inlined_call_operand.vmem [shape: bf16[8,64], index: 0, kind: input, shape index: {}]   ;;  %s1007_s1 = inlined_call_operand.vmem [shape: bf16[3,64,128], index: 1, kind: input, shape index: {}]   ;;  %s1008_s2 = inlined_call_operand.vmem [shape: bf16[3,128,128], index: 2, kind: input, shape index: {}]   ;;  %s1009_s3 = inlined_call_operand.hbm [shape: f32[1,128], index: 3, kind: input, shape index: {}]   ;;  %s1010_s4 = inlined_call_operand.hbm [shape: f32[1,128], index: 4, kind: input, shape index: {}]   ;;  %s1011_s5 = inlined_call_operand.vmem [shape: bf16[8,128], index: 5, kind: output, shape index: {}]  }
   0x1   :  { %s23_s20 = sshll.u32 %s1009_s3, 4  ;;  %s24_s20 = int_to_ptr.hbm [resolvable:$true] %s23_s20 }
   0x2   :  { %11 = vsyncpa [#allocation7], 0  ;;  %s838_s21 = smov [#allocation4]   ;;  %s34_s25 = sshll.u32 %s1010_s4, 4  ;;  %s35_s25 = int_to_ptr.hbm [resolvable:$true] %s34_s25 }
   0x3   :  { %s25_s22 = sshll.u32 %s838_s21, 4  ;;  %s839_s26 = smov [#allocation6]   ;;  %s26_s22 = int_to_ptr.vmem [resolvable:$true] %s25_s22 }
   0x4   :  { %28 = dma.hbm_to_vmem [thread:$0]  %s24_s20, 16, %s26_s22, [#allocation5]  }
   0x5   :  { %s36_s27 = sshll.u32 %s839_s26, 4  ;;  %s37_s27 = int_to_ptr.vmem [resolvable:$true] %s36_s27 }
   0x6   :  { %39 = dma.hbm_to_vmem [thread:$0]  %s35_s25, 16, %s37_s27, [#allocation7]  }
   0x7   :  { %834 = dma.done.wait [#allocation5], 16  }
   0x8   :  { %835 = vsyncadd [#allocation5], 4294967280 }
   0x9   :  { %836 = dma.done.wait [#allocation7], 16  }
   0xa   :  { %837 = vsyncadd [#allocation7], 4294967280  ;;  %v751_v0 = vld [vmem:[%s1007_s1 + $0x18] sm:$0xff]  ;;  %v750_v2 = vld [vmem:[%s1007_s1 + $0x10] sm:$0xff]  ;;  %vm109_vm0 = vcmask 523264   ;;  %v49_v28 = vlaneseq }
   0xb   :  { %v747_v1 = vld [vmem:[%s1007_s1 + $0x38] sm:$0xff]  ;;  %117 = vmatpush.bf16.msra.mxu2 %v751_v0  ;;  %v746_v3 = vld [vmem:[%s1007_s1 + $0x30] sm:$0xff]  ;;  %v749_v4 = vld [vmem:[%s1007_s1 + $0x8] sm:$0xff] }
   0xc   :  { %159 = vmatpush.bf16.msra.mxu1 %v747_v1  ;;  %v745_v5 = vld [vmem:[%s1007_s1 + $0x28] sm:$0xff]  ;;  %v748_v6 = vld [vmem:[%s1007_s1] sm:$0xff]  ;;  %v755_v7 = vld [vmem:[%s1007_s1 + $0x58] sm:$0xff]  ;;  %v50_v33 = vshrl.u32 %v49_v28, 7 }
   0xd   :  { %v744_v8 = vld [vmem:[%s1007_s1 + $0x20] sm:$0xff]  ;;  %v754_v10 = vld [vmem:[%s1007_s1 + $0x50] sm:$0xff]  ;;  %v753_v11 = vld [vmem:[%s1007_s1 + $0x48] sm:$0xff] }
   0xe   :  { %v67_v9 = vld [vmem:[%s1006_s0] sm:$0xf]  ;;  %v771_v13 = vld [vmem:[%s1008_s2 + $0x38] sm:$0xff]  ;;  %v770_v16 = vld [vmem:[%s1008_s2 + $0x30] sm:$0xff]  ;;  %v55_v37 = vand.u32 3, %v50_v33 }
   0xf   :  { %118 = vmatpush.bf16.msra.mxu2 %v750_v2  ;;  %v752_v12 = vld [vmem:[%s1007_s1 + $0x40] sm:$0xff]  ;;  %v763_v14 = vld [vmem:[%s1008_s2 + $0x78] sm:$0xff]  ;;  %342 = vmatpush.bf16.msra.mxu3 %v771_v13  ;;  %v762_v17 = vld [vmem:[%s1008_s2 + $0x70] sm:$0xff] }
  0x10   :  { %160 = vmatpush.bf16.msra.mxu1 %v746_v3  ;;  %v779_v15 = vld [vmem:[%s1008_s2 + $0xb8] sm:$0xff]  ;;  %406 = vmatpush.bf16.msra.mxu0 %v763_v14  ;;  %v778_v19 = vld [vmem:[%s1008_s2 + $0xb0] sm:$0xff]  ;;  %v769_v20 = vld [vmem:[%s1008_s2 + $0x28] sm:$0xff]  ;;  %vm978_vm1 = vcmp.eq.s32.totalorder %v55_v37, 0  ;;  %vm993_vm2 = vcmp.eq.s32.totalorder %v55_v37, 3 }
  0x11   :  { %v761_v21 = vld [vmem:[%s1008_s2 + $0x68] sm:$0xff]  ;;  %v768_v24 = vld [vmem:[%s1008_s2 + $0x20] sm:$0xff]  ;;  %v767_v29 = vld [vmem:[%s1008_s2 + $0x18] sm:$0xff] }
  0x12   :  { %v777_v22 = vld [vmem:[%s1008_s2 + $0xa8] sm:$0xff]  ;;  %v760_v25 = vld [vmem:[%s1008_s2 + $0x60] sm:$0xff]  ;;  %v759_v30 = vld [vmem:[%s1008_s2 + $0x58] sm:$0xff] }
  0x13   :  { %119 = vmatpush.bf16.msra.mxu2 %v749_v4  ;;  %343 = vmatpush.bf16.msra.mxu3 %v770_v16  ;;  %v776_v27 = vld [vmem:[%s1008_s2 + $0xa0] sm:$0xff]  ;;  %v775_v31 = vld [vmem:[%s1008_s2 + $0x98] sm:$0xff]  ;;  %v766_v34 = vld [vmem:[%s1008_s2 + $0x10] sm:$0xff] }
  0x14   :  { %161 = vmatpush.bf16.msra.mxu1 %v745_v5  ;;  %407 = vmatpush.bf16.msra.mxu0 %v762_v17  ;;  %v758_v35 = vld [vmem:[%s1008_s2 + $0x50] sm:$0xff]  ;;  %v765_v38 = vld [vmem:[%s1008_s2 + $0x8] sm:$0xff]  ;;  %v764_v44 = vld [vmem:[%s1008_s2] sm:$0xff] }
  0x15   :  { %v774_v36 = vld [vmem:[%s1008_s2 + $0x90] sm:$0xff]  ;;  %v757_v39 = vld [vmem:[%s1008_s2 + $0x48] sm:$0xff]  ;;  %v756_v45 = vld [vmem:[%s1008_s2 + $0x40] sm:$0xff] }
  0x16   :  { %v773_v40 = vld [vmem:[%s1008_s2 + $0x88] sm:$0xff]  ;;  %v772_v46 = vld [vmem:[%s1008_s2 + $0x80] sm:$0xff] }
  0x17   :  { %120 = vmatpush.bf16.msra.mxu2 %v748_v6  ;;  %344 = vmatpush.bf16.msra.mxu3 %v769_v20  ;;  %v65_v13 = vld [vmem:[#allocation4] sm:$0x1]  ;;  %v66_v17 = vld [vmem:[#allocation6] sm:$0x1] }
  0x18   :  { %162 = vmatpush.bf16.msra.mxu1 %v744_v8  ;;  %408 = vmatpush.bf16.msra.mxu0 %v761_v21 }
  0x1a   :  { %573 = vmatmul.msk.bf16.vlgmr.msra.gmra.mxu2 %vm109_vm0, %v67_v9 }
  0x1b   :  { %205 = vmatpush.bf16.msrb.mxu2 %v755_v7  ;;  %590 = vmatmul.msk.bf16.vlgmr.msra.gmra.mxu1 %vm109_vm0, %v67_v9 }
  0x1c   :  { %484 = vmatpush.bf16.msrb.mxu1 %v779_v15  ;;  %345 = vmatpush.bf16.msra.mxu3 %v768_v24 }
  0x1d   :  { %409 = vmatpush.bf16.msra.mxu0 %v760_v25 }
  0x1f   :  { %206 = vmatpush.bf16.msrb.mxu2 %v754_v10 }
  0x20   :  { %485 = vmatpush.bf16.msrb.mxu1 %v778_v19  ;;  %346 = vmatpush.bf16.msra.mxu3 %v767_v29 }
  0x21   :  { %410 = vmatpush.bf16.msra.mxu0 %v759_v30 }
  0x23   :  { %207 = vmatpush.bf16.msrb.mxu2 %v753_v11 }
  0x24   :  { %486 = vmatpush.bf16.msrb.mxu1 %v777_v22  ;;  %347 = vmatpush.bf16.msra.mxu3 %v766_v34 }
  0x25   :  { %411 = vmatpush.bf16.msra.mxu0 %v758_v35 }
  0x27   :  { %208 = vmatpush.bf16.msrb.mxu2 %v752_v12 }
  0x28   :  { %487 = vmatpush.bf16.msrb.mxu1 %v776_v27  ;;  %348 = vmatpush.bf16.msra.mxu3 %v765_v38 }
  0x29   :  { %412 = vmatpush.bf16.msra.mxu0 %v757_v39 }
  0x2a   :  { %615 = vmatmul.msk.bf16.vlgmr.msrb.gmra.mxu2 %vm109_vm0, %v67_v9 }
  0x2c   :  { %488 = vmatpush.bf16.msrb.mxu1 %v775_v31  ;;  %349 = vmatpush.bf16.msra.mxu3 %v764_v44 }
  0x2d   :  { %413 = vmatpush.bf16.msra.mxu0 %v756_v45 }
  0x30   :  { %489 = vmatpush.bf16.msrb.mxu1 %v774_v36 }
  0x34   :  { %490 = vmatpush.bf16.msrb.mxu1 %v773_v40 }
  0x38   :  { %491 = vmatpush.bf16.msrb.mxu1 %v772_v46 }
  0x98   :  { %v164_v18 = vpop.f32.mrf.mxu1 }
  0x9d   :  { %v122_v23 = vpop.f32.mrf.mxu2 }
  0x9e   :  { %126 = vst [vmem:[#allocation2 + $0x1] sm:$0xff] %v122_v23 }
  0xa0   :  { %v166_v26 = vpop.f32.mrf.mxu1 }
  0xa5   :  { %v124_v32 = vpop.f32.mrf.mxu2  ;;  %v127_v43 = vld [vmem:[#allocation2] sm:$0xff] }
  0xa6   :  { %v130_v47 = vsel %vm978_vm1, 0.0, %v127_v43 }
  0xa7   :  { %v165_v49 = vadd.f32 %v164_v18, %v130_v47 }
  0xad   :  { %v210_v41 = vpop.f32.mrf.mxu2 }
  0xae   :  { %214 = vst [vmem:[#allocation3] sm:$0xff] %v210_v41 }
  0xb5   :  { %v212_v50 = vpop.f32.mrf.mxu2  ;;  %v215_v51 = vld [vmem:[#allocation3 + $0x1] sm:$0xff] }
  0xb6   :  { %v218_v52 = vsel %vm993_vm2, 0.0, %v215_v51 }
  0xb7   :  { %v219_v53 = vadd.f32 %v218_v52, %v165_v49 }
  0xb9   :  { %v220_v54 = vrot.slane %v219_v53, 4  ;;  %v227_v55 = vmul.f32 %v219_v53, %v219_v53 }
  0xbb   :  { %v221_v56 = vadd.f32 %v220_v54, %v219_v53  ;;  %v228_v57 = vrot.slane %v227_v55, 4 }
  0xbd   :  { %v222_v58 = vrot.slane %v221_v56, 2  ;;  %v229_v59 = vadd.f32 %v228_v57, %v227_v55 }
  0xbf   :  { %v223_v60 = vadd.f32 %v222_v58, %v221_v56  ;;  %v230_v61 = vrot.slane %v229_v59, 2 }
  0xc1   :  { %v224_v62 = vrot.slane %v223_v60, 1  ;;  %v231_v63 = vadd.f32 %v230_v61, %v229_v59 }
  0xc3   :  { %v225_v0 = vadd.f32 %v224_v62, %v223_v60  ;;  %v232_v1 = vrot.slane %v231_v63, 1 }
  0xc5   :  { %v226_v2 = vmul.f32 0.125, %v225_v0  ;;  %v233_v3 = vadd.f32 %v232_v1, %v231_v63 }
  0xc7   :  { %v234_v4 = vmul.f32 0.125, %v233_v3  ;;  %v235_v5 = vmul.f32 %v226_v2, %v226_v2 }
  0xc9   :  { %v236_v6 = vsub.f32 %v234_v4, %v235_v5 }
  0xcb   :  { %v237_v7 = vadd.f32 1e-05, %v236_v6 }
  0xcd   :  { %782 = vrsqrt.f32 %v237_v7  ;;  %vm244_vm4 = vweird.f32 %v237_v7 }
  0xd3   :  { %v783_v8 = vpop.eup %782 }
  0xd4   :  { %v239_v9 = vmul.f32 %v783_v8, %v237_v7  ;;  %vm245_vm3 = vweird.f32 %v783_v8 }
  0xd5   :  { %vm246_vm5 = vmor %vm244_vm4, %vm245_vm3 }
  0xd6   :  { %v240_v10 = vmul.f32 %v783_v8, %v239_v9 }
  0xd8   :  { %v241_v11 = vmul.f32 0.5, %v240_v10 }
  0xda   :  { %v242_v12 = vsub.f32 1.5, %v241_v11 }
  0xdc   :  { %v243_v14 = vmul.f32 %v783_v8, %v242_v12 }
  0xde   :  { %v247_v15 = vsel %vm246_vm5, %v783_v8, %v243_v14 }
  0xdf   :  { %v248_v16 = vmul.f32 %v247_v15, %v65_v13 }
  0xe1   :  { %v249_v18 = vmul.f32 %v248_v16, %v226_v2  ;;  %v252_v19 = vperm.slane %v248_v16, 0 }
  0xe3   :  { %v250_v20 = vsub.f32 %v66_v17, %v249_v18  ;;  %v254_v21 = vmul.f32 %v252_v19, %v219_v53 }
  0xe5   :  { %v256_v22 = vperm.slane %v250_v20, 0 }
  0xe7   :  { %v258_v23 = vadd.f32 %v256_v22, %v254_v21 }
  0xe9   :  { %v259_v24 = vmax.f32 %v258_v23, 0.0 }
  0xeb   :  { %v260_v25 = vpack.c.bf16 %v259_v24, %v259_v24 }
  0xed   :  { %350 = vmatmul.bf16.vlgmr.msra.gmra.mxu3 %v260_v25  ;;  %414 = vmatmul.bf16.vlgmr.msra.gmra.mxu0 %v260_v25 }
  0xee   :  { %492 = vmatmul.bf16.vlgmr.msrb.gmra.mxu1 %v260_v25 }
 0x16a   :  { %v415_v26 = vpop.f32.mrf.mxu0 }
 0x16b   :  { %v493_v27 = vpop.f32.mrf.mxu1 }
 0x16c   :  { %497 = vst [vmem:[#allocation3] sm:$0xff] %v493_v27 }
 0x170   :  { %v351_v28 = vpop.f32.mrf.mxu3 }
 0x171   :  { %355 = vst [vmem:[#allocation2 + $0x1] sm:$0xff] %v351_v28 }
 0x172   :  { %v417_v29 = vpop.f32.mrf.mxu0 }
 0x173   :  { %v495_v30 = vpop.f32.mrf.mxu1  ;;  %v498_v31 = vld [vmem:[#allocation3 + $0x1] sm:$0xff] }
 0x174   :  { %v499_v36 = vsel %vm993_vm2, 0.0, %v498_v31 }
 0x178   :  { %v356_v32 = vld [vmem:[#allocation2] sm:$0xff]  ;;  %v353_v33 = vpop.f32.mrf.mxu3 }
 0x179   :  { %v357_v34 = vsel %vm978_vm1, 0.0, %v356_v32 }
 0x17a   :  { %v416_v35 = vadd.f32 %v415_v26, %v357_v34 }
 0x17c   :  { %v500_v37 = vadd.f32 %v499_v36, %v416_v35 }
 0x17e   :  { %v501_v38 = vrot.slane %v500_v37, 4  ;;  %v508_v39 = vmul.f32 %v500_v37, %v500_v37 }
 0x180   :  { %v502_v40 = vadd.f32 %v501_v38, %v500_v37  ;;  %v509_v41 = vrot.slane %v508_v39, 4 }
 0x182   :  { %v503_v43 = vrot.slane %v502_v40, 2  ;;  %v510_v44 = vadd.f32 %v509_v41, %v508_v39 }
 0x184   :  { %v504_v45 = vadd.f32 %v503_v43, %v502_v40  ;;  %v511_v46 = vrot.slane %v510_v44, 2 }
 0x186   :  { %v505_v47 = vrot.slane %v504_v45, 1  ;;  %v512_v49 = vadd.f32 %v511_v46, %v510_v44 }
 0x188   :  { %v506_v50 = vadd.f32 %v505_v47, %v504_v45  ;;  %v513_v51 = vrot.slane %v512_v49, 1 }
 0x18a   :  { %v507_v52 = vmul.f32 0.125, %v506_v50  ;;  %v514_v42 = vadd.f32 %v513_v51, %v512_v49 }
 0x18c   :  { %v515_v53 = vmul.f32 0.125, %v514_v42  ;;  %v516_v54 = vmul.f32 %v507_v52, %v507_v52 }
 0x18e   :  { %v517_v55 = vsub.f32 %v515_v53, %v516_v54 }
 0x190   :  { %v518_v48 = vadd.f32 1e-05, %v517_v55 }
 0x192   :  { %784 = vrsqrt.f32 %v518_v48  ;;  %vm525_vm7 = vweird.f32 %v518_v48 }
 0x198   :  { %v785_v56 = vpop.eup %784 }
 0x199   :  { %v520_v57 = vmul.f32 %v785_v56, %v518_v48  ;;  %vm526_vm6 = vweird.f32 %v785_v56 }
 0x19a   :  { %vm527_vm8 = vmor %vm525_vm7, %vm526_vm6 }
 0x19b   :  { %v521_v58 = vmul.f32 %v785_v56, %v520_v57 }
 0x19d   :  { %v522_v59 = vmul.f32 0.5, %v521_v58 }
 0x19f   :  { %v523_v60 = vsub.f32 1.5, %v522_v59 }
 0x1a1   :  { %v524_v61 = vmul.f32 %v785_v56, %v523_v60 }
 0x1a3   :  { %v528_v62 = vsel %vm527_vm8, %v785_v56, %v524_v61 }
 0x1a4   :  { %v529_v63 = vmul.f32 %v528_v62, %v65_v13 }
 0x1a6   :  { %v530_v0 = vmul.f32 %v529_v63, %v507_v52  ;;  %v533_v1 = vperm.slane %v529_v63, 0 }
 0x1a8   :  { %v531_v2 = vsub.f32 %v66_v17, %v530_v0  ;;  %v535_v3 = vmul.f32 %v533_v1, %v500_v37 }
 0x1aa   :  { %v537_v4 = vperm.slane %v531_v2, 0 }
 0x1ac   :  { %v539_v5 = vadd.f32 %v537_v4, %v535_v3 }
 0x1ae   :  { %v540_v6 = vmax.f32 %v539_v5, 0.0 }
 0x1b0   :  { %v541_v7 = vpack.c.bf16 %v540_v6, %v540_v6 }
 0x1b2   :  { %542 = vst [vmem:[%s1011_s5] sm:$0xf] %v541_v7 }
 0x1b3   :  { %547 = vsyncpa [#allocation5], 1 }
 0x1b4   :  { %548 = vsyncpa [#allocation7], 1 }

// kernel: debugnet_forward.10
= control target key start
LH: loop header
LB: loop body
LE: loop exit
PB: predicated region body
PF: predicated region fallthrough
CT: control target
= control target key end

     0   :  { %vm437_vm2 = vcmask 1043456   ;;  %vm501_vm8 = vcmask 1040384   ;;  %s3234_s1 = inlined_call_operand.vmem [shape: bf16[3,128,256], index: 1, kind: input, shape index: {}]   ;;  %s3235_s0 = inlined_call_operand.vmem [shape: bf16[4,128], index: 0, kind: input, shape index: {}]   ;;  %s3236_s2 = inlined_call_operand.vmem [shape: bf16[3,256,256], index: 2, kind: input, shape index: {}]   ;;  %s3237_s3 = inlined_call_operand.vmem [shape: f32[1,256], index: 3, kind: input, shape index: {}]   ;;  %s3238_s4 = inlined_call_operand.vmem [shape: f32[1,256], index: 4, kind: input, shape index: {}]   ;;  %s3239_s5 = inlined_call_operand.vmem [shape: bf16[4,256], index: 5, kind: output, shape index: {}]  }
   0x1   :  { %v1468_v0 = vld [vmem:[%s3234_s1 + $0x70] sm:$0xf]  ;;  %v2097_v1 = vld [vmem:[%s3234_s1 + $0x74] sm:$0xf0]  ;;  %v2096_v2 = vld [vmem:[%s3234_s1 + $0x74] sm:$0xf] }
   0x2   :  { %v1469_v3 = vor.u32 %v2097_v1, %v1468_v0  ;;  %v1470_v4 = vld [vmem:[%s3234_s1 + $0x78] sm:$0xf0]  ;;  %v1460_v5 = vld [vmem:[%s3234_s1 + $0x60] sm:$0xf]  ;;  %v2095_v6 = vld [vmem:[%s3234_s1 + $0x64] sm:$0xf0] }
   0x3   :  { %v1473_v7 = vor.u32 %v2096_v2, %v1470_v4  ;;  %v2094_v8 = vld [vmem:[%s3234_s1 + $0x64] sm:$0xf]  ;;  %v1462_v9 = vld [vmem:[%s3234_s1 + $0x68] sm:$0xf0]  ;;  %v1461_v10 = vor.u32 %v2095_v6, %v1460_v5  ;;  %v1452_v12 = vld [vmem:[%s3234_s1 + $0x50] sm:$0xf] }
   0x4   :  { %152 = vmatpush.bf16.msra.mxu0 %v1469_v3  ;;  %v1465_v11 = vor.u32 %v2094_v8, %v1462_v9  ;;  %v2093_v13 = vld [vmem:[%s3234_s1 + $0x54] sm:$0xf0]  ;;  %v2092_v14 = vld [vmem:[%s3234_s1 + $0x54] sm:$0xf]  ;;  %v1454_v15 = vld [vmem:[%s3234_s1 + $0x58] sm:$0xf0] }
   0x5   :  { %165 = vmatpush.bf16.msra.mxu1 %v1473_v7  ;;  %v2080_v16 = vld [vmem:[%s3234_s1 + $0xf4] sm:$0xf]  ;;  %v1453_v17 = vor.u32 %v2093_v13, %v1452_v12  ;;  %v1444_v18 = vld [vmem:[%s3234_s1 + $0x40] sm:$0xf]  ;;  %v2091_v19 = vld [vmem:[%s3234_s1 + $0x44] sm:$0xf0]  ;;  %v1457_v21 = vor.u32 %v2092_v14, %v1454_v15 }
   0x6   :  { %v1534_v20 = vld [vmem:[%s3234_s1 + $0xf8] sm:$0xf0]  ;;  %v2090_v22 = vld [vmem:[%s3234_s1 + $0x44] sm:$0xf]  ;;  %v1446_v23 = vld [vmem:[%s3234_s1 + $0x48] sm:$0xf0]  ;;  %v1445_v31 = vor.u32 %v2091_v19, %v1444_v18 }
   0x7   :  { %v1537_v24 = vor.u32 %v2080_v16, %v1534_v20  ;;  %v1532_v25 = vld [vmem:[%s3234_s1 + $0xf0] sm:$0xf]  ;;  %v2081_v26 = vld [vmem:[%s3234_s1 + $0xf4] sm:$0xf0]  ;;  %v2078_v27 = vld [vmem:[%s3234_s1 + $0xe4] sm:$0xf]  ;;  %v1449_v35 = vor.u32 %v2090_v22, %v1446_v23 }
   0x8   :  { %153 = vmatpush.bf16.msra.mxu0 %v1461_v10  ;;  %v1526_v28 = vld [vmem:[%s3234_s1 + $0xe8] sm:$0xf0]  ;;  %v1533_v29 = vor.u32 %v2081_v26, %v1532_v25  ;;  %v1436_v32 = vld [vmem:[%s3234_s1 + $0x30] sm:$0xf]  ;;  %v1524_v33 = vld [vmem:[%s3234_s1 + $0xe0] sm:$0xf] }
   0x9   :  { %166 = vmatpush.bf16.msra.mxu1 %v1465_v11  ;;  %285 = vmatpush.bf16.msra.mxu3 %v1537_v24  ;;  %v1529_v30 = vor.u32 %v2078_v27, %v1526_v28  ;;  %v2079_v34 = vld [vmem:[%s3234_s1 + $0xe4] sm:$0xf0]  ;;  %v2089_v36 = vld [vmem:[%s3234_s1 + $0x34] sm:$0xf0]  ;;  %v2076_v38 = vld [vmem:[%s3234_s1 + $0xd4] sm:$0xf] }
   0xa   :  { %272 = vmatpush.bf16.msra.mxu2 %v1533_v29  ;;  %v1525_v37 = vor.u32 %v2079_v34, %v1524_v33  ;;  %v1518_v39 = vld [vmem:[%s3234_s1 + $0xd8] sm:$0xf0]  ;;  %v2088_v40 = vld [vmem:[%s3234_s1 + $0x34] sm:$0xf]  ;;  %v1516_v43 = vld [vmem:[%s3234_s1 + $0xd0] sm:$0xf]  ;;  %v1437_v45 = vor.u32 %v2089_v36, %v1436_v32 }
   0xb   :  { %v1438_v41 = vld [vmem:[%s3234_s1 + $0x38] sm:$0xf0]  ;;  %v1521_v42 = vor.u32 %v2076_v38, %v1518_v39  ;;  %v2077_v44 = vld [vmem:[%s3234_s1 + $0xd4] sm:$0xf0]  ;;  %v1428_v46 = vld [vmem:[%s3234_s1 + $0x20] sm:$0xf] }
   0xc   :  { %154 = vmatpush.bf16.msra.mxu0 %v1453_v17  ;;  %v2087_v47 = vld [vmem:[%s3234_s1 + $0x24] sm:$0xf0]  ;;  %v1441_v48 = vor.u32 %v2088_v40, %v1438_v41  ;;  %v2086_v49 = vld [vmem:[%s3234_s1 + $0x24] sm:$0xf]  ;;  %v1517_v50 = vor.u32 %v2077_v44, %v1516_v43  ;;  %v1510_v52 = vld [vmem:[%s3234_s1 + $0xc8] sm:$0xf0] }
   0xd   :  { %167 = vmatpush.bf16.msra.mxu1 %v1457_v21  ;;  %286 = vmatpush.bf16.msra.mxu3 %v1529_v30  ;;  %v2074_v51 = vld [vmem:[%s3234_s1 + $0xc4] sm:$0xf]  ;;  %v1430_v53 = vld [vmem:[%s3234_s1 + $0x28] sm:$0xf0]  ;;  %v1508_v54 = vld [vmem:[%s3234_s1 + $0xc0] sm:$0xf]  ;;  %v1429_v57 = vor.u32 %v2087_v47, %v1428_v46 }
   0xe   :  { %273 = vmatpush.bf16.msra.mxu2 %v1525_v37  ;;  %v2075_v55 = vld [vmem:[%s3234_s1 + $0xc4] sm:$0xf0]  ;;  %v1513_v56 = vor.u32 %v2074_v51, %v1510_v52  ;;  %v2072_v58 = vld [vmem:[%s3234_s1 + $0xb4] sm:$0xf]  ;;  %v1502_v59 = vld [vmem:[%s3234_s1 + $0xb8] sm:$0xf0]  ;;  %v1433_v60 = vor.u32 %v2086_v49, %v1430_v53 }
   0xf   :  { %v1420_v61 = vld [vmem:[%s3234_s1 + $0x10] sm:$0xf]  ;;  %v2085_v62 = vld [vmem:[%s3234_s1 + $0x14] sm:$0xf0]  ;;  %v2084_v63 = vld [vmem:[%s3234_s1 + $0x14] sm:$0xf]  ;;  %v1509_v0 = vor.u32 %v2075_v55, %v1508_v54  ;;  %v1505_v4 = vor.u32 %v2072_v58, %v1502_v59 }
  0x10   :  { %155 = vmatpush.bf16.msra.mxu0 %v1445_v31  ;;  %v1422_v1 = vld [vmem:[%s3234_s1 + $0x18] sm:$0xf0]  ;;  %v1500_v2 = vld [vmem:[%s3234_s1 + $0xb0] sm:$0xf]  ;;  %v2073_v3 = vld [vmem:[%s3234_s1 + $0xb4] sm:$0xf0]  ;;  %v1421_v5 = vor.u32 %v2085_v62, %v1420_v61 }
  0x11   :  { %168 = vmatpush.bf16.msra.mxu1 %v1449_v35  ;;  %287 = vmatpush.bf16.msra.mxu3 %v1521_v42  ;;  %v1412_v6 = vld [vmem:[%s3234_s1] sm:$0xf]  ;;  %v2070_v7 = vld [vmem:[%s3234_s1 + $0xa4] sm:$0xf]  ;;  %v1494_v8 = vld [vmem:[%s3234_s1 + $0xa8] sm:$0xf0]  ;;  %v1425_v9 = vor.u32 %v2084_v63, %v1422_v1  ;;  %v1501_v13 = vor.u32 %v2073_v3, %v1500_v2 }
  0x12   :  { %274 = vmatpush.bf16.msra.mxu2 %v1517_v50  ;;  %v2083_v10 = vld [vmem:[%s3234_s1 + $0x4] sm:$0xf0]  ;;  %v2082_v11 = vld [vmem:[%s3234_s1 + $0x4] sm:$0xf]  ;;  %v1414_v12 = vld [vmem:[%s3234_s1 + $0x8] sm:$0xf0]  ;;  %v1497_v18 = vor.u32 %v2070_v7, %v1494_v8 }
  0x13   :  { %v1612_v14 = vld [vmem:[%s3234_s1 + $0x170] sm:$0xf]  ;;  %v2113_v15 = vld [vmem:[%s3234_s1 + $0x174] sm:$0xf0]  ;;  %v2112_v16 = vld [vmem:[%s3234_s1 + $0x174] sm:$0xf]  ;;  %v1413_v21 = vor.u32 %v2083_v10, %v1412_v6  ;;  %v1417_v24 = vor.u32 %v2082_v11, %v1414_v12 }
  0x14   :  { %156 = vmatpush.bf16.msra.mxu0 %v1437_v45  ;;  %v1614_v17 = vld [vmem:[%s3234_s1 + $0x178] sm:$0xf0]  ;;  %v1492_v19 = vld [vmem:[%s3234_s1 + $0xa0] sm:$0xf]  ;;  %v2071_v20 = vld [vmem:[%s3234_s1 + $0xa4] sm:$0xf0]  ;;  %v1613_v25 = vor.u32 %v2113_v15, %v1612_v14 }
  0x15   :  { %169 = vmatpush.bf16.msra.mxu1 %v1441_v48  ;;  %288 = vmatpush.bf16.msra.mxu3 %v1513_v56  ;;  %v2068_v22 = vld [vmem:[%s3234_s1 + $0x94] sm:$0xf]  ;;  %v1486_v23 = vld [vmem:[%s3234_s1 + $0x98] sm:$0xf0]  ;;  %v1617_v26 = vor.u32 %v2112_v16, %v1614_v17  ;;  %v1604_v27 = vld [vmem:[%s3234_s1 + $0x160] sm:$0xf]  ;;  %v1493_v30 = vor.u32 %v2071_v20, %v1492_v19 }
  0x16   :  { %275 = vmatpush.bf16.msra.mxu2 %v1509_v0  ;;  %v2111_v28 = vld [vmem:[%s3234_s1 + $0x164] sm:$0xf0]  ;;  %v2110_v29 = vld [vmem:[%s3234_s1 + $0x164] sm:$0xf]  ;;  %v1606_v31 = vld [vmem:[%s3234_s1 + $0x168] sm:$0xf0]  ;;  %v1489_v32 = vor.u32 %v2068_v22, %v1486_v23 }
  0x17   :  { %v1484_v33 = vld [vmem:[%s3234_s1 + $0x90] sm:$0xf]  ;;  %v2069_v34 = vld [vmem:[%s3234_s1 + $0x94] sm:$0xf0]  ;;  %v2066_v35 = vld [vmem:[%s3234_s1 + $0x84] sm:$0xf]  ;;  %v1605_v37 = vor.u32 %v2111_v28, %v1604_v27  ;;  %v1609_v39 = vor.u32 %v2110_v29, %v1606_v31 }
  0x18   :  { %157 = vmatpush.bf16.msra.mxu0 %v1429_v57  ;;  %v1478_v36 = vld [vmem:[%s3234_s1 + $0x88] sm:$0xf0]  ;;  %v2461_v38 = vld [vmem:[%s3235_s0] sm:$0x3]  ;;  %v1596_v40 = vld [vmem:[%s3234_s1 + $0x150] sm:$0xf]  ;;  %v1485_v43 = vor.u32 %v2069_v34, %v1484_v33 }
  0x19   :  { %170 = vmatpush.bf16.msra.mxu1 %v1433_v60  ;;  %289 = vmatpush.bf16.msra.mxu3 %v1505_v4  ;;  %v2109_v41 = vld [vmem:[%s3234_s1 + $0x154] sm:$0xf0]  ;;  %v2108_v42 = vld [vmem:[%s3234_s1 + $0x154] sm:$0xf]  ;;  %v1598_v44 = vld [vmem:[%s3234_s1 + $0x158] sm:$0xf0]  ;;  %v1481_v45 = vor.u32 %v2066_v35, %v1478_v36 }
  0x1a   :  { %276 = vmatpush.bf16.msra.mxu2 %v1501_v13  ;;  %v1476_v46 = vld [vmem:[%s3234_s1 + $0x80] sm:$0xf]  ;;  %v2067_v47 = vld [vmem:[%s3234_s1 + $0x84] sm:$0xf0]  ;;  %v1597_v48 = vor.u32 %v2109_v41, %v1596_v40  ;;  %v1601_v49 = vor.u32 %v2108_v42, %v1598_v44  ;;  %v2106_v53 = vld [vmem:[%s3234_s1 + $0x144] sm:$0xf] }
  0x1b   :  { %v1588_v50 = vld [vmem:[%s3234_s1 + $0x140] sm:$0xf]  ;;  %v2107_v51 = vld [vmem:[%s3234_s1 + $0x144] sm:$0xf0]  ;;  %v1477_v52 = vor.u32 %v2067_v47, %v1476_v46  ;;  %v1590_v54 = vld [vmem:[%s3234_s1 + $0x148] sm:$0xf0] }
  0x1c   :  { %158 = vmatpush.bf16.msra.mxu0 %v1421_v5  ;;  %v1589_v55 = vor.u32 %v2107_v51, %v1588_v50  ;;  %v1593_v56 = vor.u32 %v2106_v53, %v1590_v54  ;;  %v1580_v57 = vld [vmem:[%s3234_s1 + $0x130] sm:$0xf]  ;;  %v2105_v58 = vld [vmem:[%s3234_s1 + $0x134] sm:$0xf0]  ;;  %v2104_v59 = vld [vmem:[%s3234_s1 + $0x134] sm:$0xf]  ;;  %v20_v53 = vlaneseq }
  0x1d   :  { %171 = vmatpush.bf16.msra.mxu1 %v1425_v9  ;;  %290 = vmatpush.bf16.msra.mxu3 %v1497_v18  ;;  %v1582_v60 = vld [vmem:[%s3234_s1 + $0x138] sm:$0xf0]  ;;  %v1581_v61 = vor.u32 %v2105_v58, %v1580_v57  ;;  %v1572_v63 = vld [vmem:[%s3234_s1 + $0x120] sm:$0xf]  ;;  %v2103_v0 = vld [vmem:[%s3234_s1 + $0x124] sm:$0xf0] }
  0x1e   :  { %277 = vmatpush.bf16.msra.mxu2 %v1493_v30  ;;  %v1585_v62 = vor.u32 %v2104_v59, %v1582_v60  ;;  %v2102_v1 = vld [vmem:[%s3234_s1 + $0x124] sm:$0xf]  ;;  %v1574_v2 = vld [vmem:[%s3234_s1 + $0x128] sm:$0xf0]  ;;  %v1573_v3 = vor.u32 %v2103_v0, %v1572_v63  ;;  %v1564_v5 = vld [vmem:[%s3234_s1 + $0x110] sm:$0xf] }
  0x1f   :  { %v1577_v4 = vor.u32 %v2102_v1, %v1574_v2  ;;  %v2101_v6 = vld [vmem:[%s3234_s1 + $0x114] sm:$0xf0]  ;;  %v2100_v7 = vld [vmem:[%s3234_s1 + $0x114] sm:$0xf]  ;;  %v1566_v8 = vld [vmem:[%s3234_s1 + $0x118] sm:$0xf0] }
  0x20   :  { %159 = vmatpush.bf16.msra.mxu0 %v1413_v21  ;;  %v1565_v9 = vor.u32 %v2101_v6, %v1564_v5  ;;  %v1569_v10 = vor.u32 %v2100_v7, %v1566_v8  ;;  %v1556_v11 = vld [vmem:[%s3234_s1 + $0x100] sm:$0xf]  ;;  %v2099_v12 = vld [vmem:[%s3234_s1 + $0x104] sm:$0xf0]  ;;  %v2098_v13 = vld [vmem:[%s3234_s1 + $0x104] sm:$0xf] }
  0x21   :  { %172 = vmatpush.bf16.msra.mxu1 %v1417_v24  ;;  %291 = vmatpush.bf16.msra.mxu3 %v1489_v32  ;;  %v1558_v14 = vld [vmem:[%s3234_s1 + $0x108] sm:$0xf0]  ;;  %v1557_v15 = vor.u32 %v2099_v12, %v1556_v11  ;;  %v1708_v23 = vld [vmem:[%s3236_s2 + $0x70] sm:$0xf]  ;;  %v2161_v24 = vld [vmem:[%s3236_s2 + $0x74] sm:$0xf0] }
  0x22   :  { %278 = vmatpush.bf16.msra.mxu2 %v1485_v43  ;;  %v1561_v16 = vor.u32 %v2098_v13, %v1558_v14  ;;  %v2177_v27 = vld [vmem:[%s3236_s2 + $0xf4] sm:$0xf0]  ;;  %v2160_v28 = vld [vmem:[%s3236_s2 + $0x74] sm:$0xf]  ;;  %v1710_v31 = vld [vmem:[%s3236_s2 + $0x78] sm:$0xf0] }
  0x23   :  { %160 = vmatmul.bf16.vlgmr.msra.gmra.mxu0 %v2461_v38  ;;  %v2176_v32 = vld [vmem:[%s3236_s2 + $0xf4] sm:$0xf]  ;;  %v1774_v33 = vld [vmem:[%s3236_s2 + $0xf8] sm:$0xf0]  ;;  %v1713_v34 = vor.u32 %v2160_v28, %v1710_v31  ;;  %v1700_v36 = vld [vmem:[%s3236_s2 + $0x60] sm:$0xf] }
  0x24   :  { %395 = vmatpush.bf16.msrb.mxu0 %v1613_v25  ;;  %173 = vmatmul.bf16.vlgmr.msra.gmra.mxu1 %v2461_v38  ;;  %v1709_v25 = vor.u32 %v2161_v24, %v1708_v23  ;;  %v1777_v35 = vor.u32 %v2176_v32, %v1774_v33  ;;  %v2175_v41 = vld [vmem:[%s3236_s2 + $0xe4] sm:$0xf0]  ;;  %v2158_v42 = vld [vmem:[%s3236_s2 + $0x64] sm:$0xf]  ;;  %v1702_v43 = vld [vmem:[%s3236_s2 + $0x68] sm:$0xf0] }
  0x25   :  { %408 = vmatpush.bf16.msrb.mxu1 %v1617_v26  ;;  %292 = vmatpush.bf16.msra.mxu3 %v1481_v45  ;;  %v1772_v26 = vld [vmem:[%s3236_s2 + $0xf0] sm:$0xf]  ;;  %v1705_v45 = vor.u32 %v2158_v42, %v1702_v43  ;;  %v2174_v46 = vld [vmem:[%s3236_s2 + $0xe4] sm:$0xf]  ;;  %v1766_v47 = vld [vmem:[%s3236_s2 + $0xe8] sm:$0xf0] }
  0x26   :  { %279 = vmatpush.bf16.msra.mxu2 %v1477_v52  ;;  %v1773_v30 = vor.u32 %v2177_v27, %v1772_v26  ;;  %v2157_v50 = vld [vmem:[%s3236_s2 + $0x54] sm:$0xf0]  ;;  %v1756_v51 = vld [vmem:[%s3236_s2 + $0xd0] sm:$0xf]  ;;  %v2172_v57 = vld [vmem:[%s3236_s2 + $0xd4] sm:$0xf] }
  0x27   :  { %v2173_v52 = vld [vmem:[%s3236_s2 + $0xd4] sm:$0xf0]  ;;  %v1758_v59 = vld [vmem:[%s3236_s2 + $0xd8] sm:$0xf0]  ;;  %v1684_v60 = vld [vmem:[%s3236_s2 + $0x40] sm:$0xf] }
  0x28   :  { %396 = vmatpush.bf16.msrb.mxu0 %v1605_v37  ;;  %293 = vmatmul.bf16.vlgmr.msra.gmra.mxu3 %v2461_v38  ;;  %v2159_v37 = vld [vmem:[%s3236_s2 + $0x64] sm:$0xf0]  ;;  %v1757_v58 = vor.u32 %v2173_v52, %v1756_v51  ;;  %v1761_v63 = vor.u32 %v2172_v57, %v1758_v59  ;;  %v1748_v0 = vld [vmem:[%s3236_s2 + $0xc0] sm:$0xf]  ;;  %v2154_v2 = vld [vmem:[%s3236_s2 + $0x44] sm:$0xf] }
  0x29   :  { %409 = vmatpush.bf16.msrb.mxu1 %v1609_v39  ;;  %280 = vmatmul.bf16.vlgmr.msra.gmra.mxu2 %v2461_v38  ;;  %v1701_v40 = vor.u32 %v2159_v37, %v1700_v36  ;;  %v2171_v1 = vld [vmem:[%s3236_s2 + $0xc4] sm:$0xf0]  ;;  %v2170_v5 = vld [vmem:[%s3236_s2 + $0xc4] sm:$0xf]  ;;  %v1750_v6 = vld [vmem:[%s3236_s2 + $0xc8] sm:$0xf0] }
  0x2a   :  { %756 = vmatpush.bf16.msrb.mxu2 %v1709_v25  ;;  %769 = vmatpush.bf16.msrb.mxu3 %v1773_v30  ;;  %v2647_v7 = vshrl.u32 %v20_v53, 7  ;;  %v1676_v11 = vld [vmem:[%s3236_s2 + $0x30] sm:$0xf]  ;;  %v2153_v12 = vld [vmem:[%s3236_s2 + $0x34] sm:$0xf0]  ;;  %v1753_v14 = vor.u32 %v2170_v5, %v1750_v6 }
  0x2b   :  { %v1668_v24 = vld [vmem:[%s3236_s2 + $0x20] sm:$0xf]  ;;  %v2151_v25 = vld [vmem:[%s3236_s2 + $0x24] sm:$0xf0]  ;;  %v2150_v32 = vld [vmem:[%s3236_s2 + $0x24] sm:$0xf] }
  0x2c   :  { %397 = vmatpush.bf16.msrb.mxu0 %v1597_v48  ;;  %v1692_v48 = vld [vmem:[%s3236_s2 + $0x50] sm:$0xf]  ;;  %v1732_v26 = vld [vmem:[%s3236_s2 + $0xa0] sm:$0xf]  ;;  %v2167_v31 = vld [vmem:[%s3236_s2 + $0xa4] sm:$0xf0]  ;;  %v1669_v37 = vor.u32 %v2151_v25, %v1668_v24 }
  0x2d   :  { %410 = vmatpush.bf16.msrb.mxu1 %v1601_v49  ;;  %v1769_v49 = vor.u32 %v2174_v46, %v1766_v47  ;;  %v1693_v54 = vor.u32 %v2157_v50, %v1692_v48  ;;  %v1670_v33 = vld [vmem:[%s3236_s2 + $0x28] sm:$0xf0]  ;;  %v2149_v42 = vld [vmem:[%s3236_s2 + $0x14] sm:$0xf0]  ;;  %v2148_v47 = vld [vmem:[%s3236_s2 + $0x14] sm:$0xf] }
  0x2e   :  { %757 = vmatpush.bf16.msrb.mxu2 %v1701_v40  ;;  %v1734_v36 = vld [vmem:[%s3236_s2 + $0xa8] sm:$0xf0]  ;;  %v1733_v40 = vor.u32 %v2167_v31, %v1732_v26  ;;  %v1673_v43 = vor.u32 %v2150_v32, %v1670_v33  ;;  %v2165_v46 = vld [vmem:[%s3236_s2 + $0x94] sm:$0xf0]  ;;  %v1662_v48 = vld [vmem:[%s3236_s2 + $0x18] sm:$0xf0] }
  0x2f   :  { %v1726_v50 = vld [vmem:[%s3236_s2 + $0x98] sm:$0xf0]  ;;  %v1652_v52 = vld [vmem:[%s3236_s2] sm:$0xf]  ;;  %v2147_v53 = vld [vmem:[%s3236_s2 + $0x4] sm:$0xf0] }
  0x30   :  { %398 = vmatpush.bf16.msrb.mxu0 %v1589_v55  ;;  %v2156_v55 = vld [vmem:[%s3236_s2 + $0x54] sm:$0xf]  ;;  %v2146_v57 = vld [vmem:[%s3236_s2 + $0x4] sm:$0xf]  ;;  %v1900_v5 = vld [vmem:[%s3236_s2 + $0x1f0] sm:$0xf]  ;;  %v1653_v6 = vor.u32 %v2147_v53, %v1652_v52 }
  0x31   :  { %411 = vmatpush.bf16.msrb.mxu1 %v1593_v56  ;;  %v1694_v56 = vld [vmem:[%s3236_s2 + $0x58] sm:$0xf0]  ;;  %v2143_v25 = vld [vmem:[%s3236_s2 + $0x1e4] sm:$0xf0]  ;;  %v2126_v26 = vld [vmem:[%s3236_s2 + $0x164] sm:$0xf] }
  0x32   :  { %758 = vmatpush.bf16.msrb.mxu2 %v1693_v54  ;;  %v1716_v54 = vld [vmem:[%s3236_s2 + $0x80] sm:$0xf]  ;;  %v2142_v31 = vld [vmem:[%s3236_s2 + $0x1e4] sm:$0xf]  ;;  %v1894_v32 = vld [vmem:[%s3236_s2 + $0x1e8] sm:$0xf0] }
  0x34   :  { %399 = vmatpush.bf16.msrb.mxu0 %v1581_v61  ;;  %v2155_v61 = vld [vmem:[%s3236_s2 + $0x44] sm:$0xf0] }
  0x35   :  { %412 = vmatpush.bf16.msrb.mxu1 %v1585_v62  ;;  %v1697_v62 = vor.u32 %v2156_v55, %v1694_v56  ;;  %v1685_v8 = vor.u32 %v2155_v61, %v1684_v60  ;;  %v2163_v56 = vld [vmem:[%s3236_s2 + $0x84] sm:$0xf0]  ;;  %v1665_v61 = vor.u32 %v2148_v47, %v1662_v48  ;;  %v2140_v47 = vld [vmem:[%s3236_s2 + $0x1d4] sm:$0xf]  ;;  %v1886_v48 = vld [vmem:[%s3236_s2 + $0x1d8] sm:$0xf0] }
  0x37   :  { %759 = vmatpush.bf16.msrb.mxu2 %v1685_v8  ;;  %v2145_v8 = vld [vmem:[%s3236_s2 + $0x1f4] sm:$0xf0] }
  0x38   :  { %400 = vmatpush.bf16.msrb.mxu0 %v1573_v3 }
  0x39   :  { %413 = vmatpush.bf16.msrb.mxu1 %v1577_v4  ;;  %v1686_v4 = vld [vmem:[%s3236_s2 + $0x48] sm:$0xf0] }
  0x3a   :  { %v1689_v13 = vor.u32 %v2154_v2, %v1686_v4  ;;  %v1718_v4 = vld [vmem:[%s3236_s2 + $0x88] sm:$0xf0] }
  0x3c   :  { %401 = vmatpush.bf16.msrb.mxu0 %v1565_v9 }
  0x3d   :  { %414 = vmatpush.bf16.msrb.mxu1 %v1569_v10  ;;  %v1749_v10 = vor.u32 %v2171_v1, %v1748_v0  ;;  %v1836_v0 = vld [vmem:[%s3236_s2 + $0x170] sm:$0xf]  ;;  %v2129_v1 = vld [vmem:[%s3236_s2 + $0x174] sm:$0xf0] }
  0x40   :  { %402 = vmatpush.bf16.msrb.mxu0 %v1557_v15  ;;  %v1740_v15 = vld [vmem:[%s3236_s2 + $0xb0] sm:$0xf] }
  0x41   :  { %415 = vmatpush.bf16.msrb.mxu1 %v1561_v16  ;;  %v2169_v16 = vld [vmem:[%s3236_s2 + $0xb4] sm:$0xf0] }
  0x42   :  { %v1741_v23 = vor.u32 %v2169_v16, %v1740_v15  ;;  %v1902_v15 = vld [vmem:[%s3236_s2 + $0x1f8] sm:$0xf0] }
  0x43   :  { %403 = vmatmul.bf16.vlgmr.msrb.gmra.mxu0 %v2461_v38 }
  0x44   :  { %416 = vmatmul.bf16.vlgmr.msrb.gmra.mxu1 %v2461_v38  ;;  %v1764_v38 = vld [vmem:[%s3236_s2 + $0xe0] sm:$0xf]  ;;  %782 = vmatpush.bf16.msra.mxu0 %v1713_v34 }
  0x45   :  { %795 = vmatpush.bf16.msra.mxu1 %v1777_v35  ;;  %v1765_v44 = vor.u32 %v2175_v41, %v1764_v38  ;;  %v2166_v35 = vld [vmem:[%s3236_s2 + $0xa4] sm:$0xf]  ;;  %v1660_v41 = vld [vmem:[%s3236_s2 + $0x10] sm:$0xf] }
  0x46   :  { %v1661_v51 = vor.u32 %v2149_v42, %v1660_v41  ;;  %v1884_v41 = vld [vmem:[%s3236_s2 + $0x1d0] sm:$0xf]  ;;  %v1897_v42 = vor.u32 %v2142_v31, %v1894_v32  ;;  %v2118_v31 = vld [vmem:[%s3236_s2 + $0x124] sm:$0xf]  ;;  %v1798_v32 = vld [vmem:[%s3236_s2 + $0x128] sm:$0xf0] }
  0x47   :  { %770 = vmatpush.bf16.msrb.mxu3 %v1765_v44  ;;  %v1737_v44 = vor.u32 %v2166_v35, %v1734_v36  ;;  %v2125_v35 = vld [vmem:[%s3236_s2 + $0x154] sm:$0xf0] }
  0x48   :  { %783 = vmatpush.bf16.msra.mxu0 %v1705_v45  ;;  %v1724_v45 = vld [vmem:[%s3236_s2 + $0x90] sm:$0xf] }
  0x49   :  { %796 = vmatpush.bf16.msra.mxu1 %v1769_v49  ;;  %v2164_v49 = vld [vmem:[%s3236_s2 + $0x94] sm:$0xf]  ;;  %v1725_v55 = vor.u32 %v2165_v46, %v1724_v45  ;;  %v1822_v45 = vld [vmem:[%s3236_s2 + $0x158] sm:$0xf0] }
  0x4b   :  { %771 = vmatpush.bf16.msrb.mxu3 %v1757_v58  ;;  %v1654_v58 = vld [vmem:[%s3236_s2 + $0x8] sm:$0xf0] }
  0x4c   :  { %784 = vmatpush.bf16.msra.mxu0 %v1697_v62  ;;  %v1729_v62 = vor.u32 %v2164_v49, %v1726_v50  ;;  %v1812_v49 = vld [vmem:[%s3236_s2 + $0x140] sm:$0xf]  ;;  %v2123_v50 = vld [vmem:[%s3236_s2 + $0x144] sm:$0xf0] }
  0x4d   :  { %797 = vmatpush.bf16.msra.mxu1 %v1761_v63  ;;  %v2162_v63 = vld [vmem:[%s3236_s2 + $0x84] sm:$0xf] }
  0x4f   :  { %772 = vmatpush.bf16.msrb.mxu3 %v1749_v10  ;;  %v1838_v10 = vld [vmem:[%s3236_s2 + $0x178] sm:$0xf0] }
  0x50   :  { %785 = vmatpush.bf16.msra.mxu0 %v1689_v13  ;;  %v1837_v13 = vor.u32 %v2129_v1, %v1836_v0  ;;  %v2121_v0 = vld [vmem:[%s3236_s2 + $0x134] sm:$0xf0]  ;;  %v1868_v1 = vld [vmem:[%s3236_s2 + $0x1b0] sm:$0xf] }
  0x51   :  { %798 = vmatpush.bf16.msra.mxu1 %v1753_v14  ;;  %v2144_v14 = vld [vmem:[%s3236_s2 + $0x1f4] sm:$0xf] }
  0x52   :  { %v1905_v24 = vor.u32 %v2144_v14, %v1902_v15 }
  0x53   :  { %773 = vmatpush.bf16.msrb.mxu3 %v1741_v23  ;;  %v1892_v23 = vld [vmem:[%s3236_s2 + $0x1e0] sm:$0xf] }
  0x57   :  { %774 = vmatpush.bf16.msrb.mxu3 %v1733_v40 }
  0x5b   :  { %775 = vmatpush.bf16.msrb.mxu3 %v1725_v55  ;;  %v2139_v55 = vld [vmem:[%s3236_s2 + $0x1c4] sm:$0xf0] }
  0xa0   :  { %v161_v17 = vpop.f32.mrf.mxu0 }
  0xa1   :  { %v174_v18 = vpop.f32.mrf.mxu1  ;;  %v180_v19 = vrot.slane %v161_v17, 7  ;;  %v2152_v17 = vld [vmem:[%s3236_s2 + $0x34] sm:$0xf] }
  0xa2   :  { %v181_v20 = vrot.slane %v174_v18, 7  ;;  %v1678_v18 = vld [vmem:[%s3236_s2 + $0x38] sm:$0xf0] }
  0xa3   :  { %184 = vst [vmem:[#allocation2] sm:$0x1e] %v180_v19  ;;  %v2168_v19 = vld [vmem:[%s3236_s2 + $0xb4] sm:$0xf]  ;;  %v1681_v28 = vor.u32 %v2152_v17, %v1678_v18  ;;  %v1657_v17 = vor.u32 %v2146_v57, %v1654_v58  ;;  %v1721_v18 = vor.u32 %v2162_v63, %v1718_v4  ;;  %v1889_v57 = vor.u32 %v2140_v47, %v1886_v48  ;;  %v2122_v58 = vld [vmem:[%s3236_s2 + $0x144] sm:$0xf] }
  0xa4   :  { %185 = vst [vmem:[#allocation2 + $0x8] sm:$0x1e] %v181_v20  ;;  %v1742_v20 = vld [vmem:[%s3236_s2 + $0xb8] sm:$0xf0]  ;;  %v1804_v63 = vld [vmem:[%s3236_s2 + $0x130] sm:$0xf] }
  0xa5   :  { %v1745_v30 = vor.u32 %v2168_v19, %v1742_v20  ;;  %786 = vmatpush.bf16.msra.mxu0 %v1681_v28  ;;  %v1828_v19 = vld [vmem:[%s3236_s2 + $0x160] sm:$0xf]  ;;  %v2127_v20 = vld [vmem:[%s3236_s2 + $0x164] sm:$0xf0]  ;;  %v2133_v47 = vld [vmem:[%s3236_s2 + $0x194] sm:$0xf0] }
  0xa7   :  { %799 = vmatpush.bf16.msra.mxu1 %v1745_v30  ;;  %v1829_v30 = vor.u32 %v2127_v20, %v1828_v19  ;;  %v2119_v19 = vld [vmem:[%s3236_s2 + $0x124] sm:$0xf0] }
  0xa8   :  { %v163_v21 = vpop.f32.mrf.mxu0 }
  0xa9   :  { %v176_v22 = vpop.f32.mrf.mxu1  ;;  %v26_v21 = vand.u32 1, %v2647_v7  ;;  %787 = vmatpush.bf16.msra.mxu0 %v1673_v43  ;;  %v1901_v7 = vor.u32 %v2145_v8, %v1900_v5  ;;  %v2141_v43 = vld [vmem:[%s3236_s2 + $0x1d4] sm:$0xf0]  ;;  %v2136_v8 = vld [vmem:[%s3236_s2 + $0x1b4] sm:$0xf] }
  0xaa   :  { %v1677_v22 = vor.u32 %v2153_v12, %v1676_v11  ;;  %v1717_v12 = vor.u32 %v2163_v56, %v1716_v54  ;;  %v186_v36 = vld [vmem:[#allocation2] sm:$0xf]  ;;  %v1885_v52 = vor.u32 %v2141_v43, %v1884_v41  ;;  %v2117_v43 = vld [vmem:[%s3236_s2 + $0x114] sm:$0xf0] }
  0xab   :  { %v2562_v29 = vpop.f32.mrf.mxu3  ;;  %vm2700_vm0 = vcmp.eq.s32.totalorder %v26_v21, 0  ;;  %v187_v59 = vld [vmem:[#allocation2 + $0x8] sm:$0xf]  ;;  %800 = vmatpush.bf16.msra.mxu1 %v1737_v44  ;;  %vm2778_vm1 = vcmp.eq.s32.totalorder %v26_v21, 1  ;;  %v2124_v44 = vld [vmem:[%s3236_s2 + $0x154] sm:$0xf] }
  0xac   :  { %v2582_v39 = vpop.f32.mrf.mxu2  ;;  %760 = vmatpush.bf16.msrb.mxu2 %v1677_v22  ;;  %v191_v22 = vsel %vm2700_vm0, 0.0, %v187_v59  ;;  %776 = vmatpush.bf16.msrb.mxu3 %v1717_v12  ;;  %v1825_v53 = vor.u32 %v2124_v44, %v1822_v45  ;;  %v1876_v54 = vld [vmem:[%s3236_s2 + $0x1c0] sm:$0xf]  ;;  %v1814_v59 = vld [vmem:[%s3236_s2 + $0x148] sm:$0xf0]  ;;  %v1801_v45 = vor.u32 %v2118_v31, %v1798_v32 }
  0xad   :  { %788 = vmatpush.bf16.msra.mxu0 %v1665_v61  ;;  %v295_v33 = vadd.f32 %v2562_v29, %v191_v22  ;;  %v1813_v61 = vor.u32 %v2123_v50, %v1812_v49  ;;  %v1877_v4 = vor.u32 %v2139_v55, %v1876_v54  ;;  %v1817_v5 = vor.u32 %v2122_v58, %v1814_v59  ;;  %v1854_v58 = vld [vmem:[%s3236_s2 + $0x198] sm:$0xf0]  ;;  %v2131_v32 = vld [vmem:[%s3236_s2 + $0x184] sm:$0xf0] }
  0xaf   :  { %801 = vmatpush.bf16.msra.mxu1 %v1729_v62  ;;  %v1878_v62 = vld [vmem:[%s3236_s2 + $0x1c8] sm:$0xf0] }
  0xb0   :  { %761 = vmatpush.bf16.msrb.mxu2 %v1669_v37  ;;  %993 = vmatpush.bf16.msra.mxu3 %v1901_v7  ;;  %v1893_v37 = vor.u32 %v2143_v25, %v1892_v23 }
  0xb1   :  { %789 = vmatpush.bf16.msra.mxu0 %v1657_v17  ;;  %v1805_v17 = vor.u32 %v2121_v0, %v1804_v63 }
  0xb3   :  { %v296_v3 = vpop.f32.mrf.mxu3  ;;  %802 = vmatpush.bf16.msra.mxu1 %v1721_v18  ;;  %v1796_v18 = vld [vmem:[%s3236_s2 + $0x120] sm:$0xf] }
  0xb4   :  { %v283_v9 = vpop.f32.mrf.mxu2  ;;  %762 = vmatpush.bf16.msrb.mxu2 %v1661_v51  ;;  %v190_v51 = vsel %vm2700_vm0, 0.0, %v186_v36  ;;  %994 = vmatpush.bf16.msra.mxu3 %v1893_v37 }
  0xb5   :  { %v2128_v9 = vld [vmem:[%s3236_s2 + $0x174] sm:$0xf]  ;;  %v282_v15 = vadd.f32 %v2582_v39, %v190_v51  ;;  %v1860_v39 = vld [vmem:[%s3236_s2 + $0x1a0] sm:$0xf] }
  0xb6   :  { %v1841_v21 = vor.u32 %v2128_v9, %v1838_v10 }
  0xb7   :  { %1019 = vmatpush.bf16.msrb.mxu1 %v1905_v24  ;;  %v2135_v24 = vld [vmem:[%s3236_s2 + $0x1a4] sm:$0xf0] }
  0xb8   :  { %763 = vmatpush.bf16.msrb.mxu2 %v1653_v6  ;;  %1006 = vmatpush.bf16.msrb.mxu0 %v1841_v21  ;;  %v1806_v6 = vld [vmem:[%s3236_s2 + $0x138] sm:$0xf0]  ;;  %v1861_v41 = vor.u32 %v2135_v24, %v1860_v39  ;;  %v1780_v24 = vld [vmem:[%s3236_s2 + $0x100] sm:$0xf] }
  0xb9   :  { %995 = vmatpush.bf16.msra.mxu3 %v1885_v52  ;;  %v2116_v52 = vld [vmem:[%s3236_s2 + $0x114] sm:$0xf] }
  0xbb   :  { %1020 = vmatpush.bf16.msrb.mxu1 %v1897_v42  ;;  %v1788_v42 = vld [vmem:[%s3236_s2 + $0x110] sm:$0xf] }
  0xbc   :  { %980 = vmatpush.bf16.msra.mxu2 %v1837_v13 }
  0xbd   :  { %996 = vmatpush.bf16.msra.mxu3 %v1877_v4 }
  0xbf   :  { %1021 = vmatpush.bf16.msrb.mxu1 %v1889_v57  ;;  %v2132_v57 = vld [vmem:[%s3236_s2 + $0x194] sm:$0xf] }
  0xc0   :  { %v404_v27 = vpop.f32.mrf.mxu0  ;;  %981 = vmatpush.bf16.msra.mxu2 %v1829_v30  ;;  %v1797_v30 = vor.u32 %v2119_v19, %v1796_v18 }
  0xc1   :  { %421 = vst [vmem:[#allocation3 + $0x8] sm:$0xf] %v404_v27  ;;  %v417_v34 = vpop.f32.mrf.mxu1  ;;  %v1830_v27 = vld [vmem:[%s3236_s2 + $0x168] sm:$0xf0] }
  0xc2   :  { %422 = vst [vmem:[#allocation3] sm:$0xf] %v417_v34  ;;  %v1820_v34 = vld [vmem:[%s3236_s2 + $0x150] sm:$0xf]  ;;  %v1833_v40 = vor.u32 %v2126_v26, %v1830_v27 }
  0xc3   :  { %v1821_v46 = vor.u32 %v2125_v35, %v1820_v34  ;;  %v1862_v34 = vld [vmem:[%s3236_s2 + $0x1a8] sm:$0xf0] }
  0xc4   :  { %1007 = vmatpush.bf16.msrb.mxu0 %v1833_v40 }
  0xc5   :  { %982 = vmatpush.bf16.msra.mxu2 %v1821_v46  ;;  %v1852_v46 = vld [vmem:[%s3236_s2 + $0x190] sm:$0xf] }
  0xc8   :  { %v406_v60 = vpop.f32.mrf.mxu0  ;;  %1008 = vmatpush.bf16.msrb.mxu0 %v1825_v53  ;;  %v423_v9 = vld [vmem:[#allocation3 + $0x8] sm:$0x1e] }
  0xc9   :  { %v424_v2 = vld [vmem:[#allocation3] sm:$0x1e]  ;;  %v419_v3 = vpop.f32.mrf.mxu1  ;;  %v2138_v60 = vld [vmem:[%s3236_s2 + $0x1c4] sm:$0xf]  ;;  %v429_v12 = vrot.slane %v423_v9, 1  ;;  %983 = vmatpush.bf16.msra.mxu2 %v1813_v61  ;;  %v1853_v61 = vor.u32 %v2133_v47, %v1852_v46 }
  0xca   :  { %v430_v11 = vrot.slane %v424_v2, 1  ;;  %v2137_v2 = vld [vmem:[%s3236_s2 + $0x1b4] sm:$0xf0]  ;;  %v2120_v3 = vld [vmem:[%s3236_s2 + $0x134] sm:$0xf]  ;;  %v1881_v10 = vor.u32 %v2138_v60, %v1878_v62 }
  0xcb   :  { %v1869_v7 = vor.u32 %v2137_v2, %v1868_v1  ;;  %v1809_v21 = vor.u32 %v2120_v3, %v1806_v6  ;;  %v433_v23 = vsel %vm2778_vm1, 0.0, %v429_v12  ;;  %v1790_v53 = vld [vmem:[%s3236_s2 + $0x118] sm:$0xf0]  ;;  %v1857_v3 = vor.u32 %v2132_v57, %v1854_v58  ;;  %v2989_v58 = vld [vmem:[%s3238_s4] sm:$0x3] }
  0xcc   :  { %v434_v28 = vsel %vm2778_vm1, 0.0, %v430_v11  ;;  %v1870_v11 = vld [vmem:[%s3236_s2 + $0x1b8] sm:$0xf0]  ;;  %1009 = vmatpush.bf16.msrb.mxu0 %v1817_v5  ;;  %v2907_v25 = vadd.f32 %v433_v23, %v282_v15  ;;  %1022 = vmatpush.bf16.msrb.mxu1 %v1881_v10  ;;  %v1793_v0 = vor.u32 %v2116_v52, %v1790_v53 }
  0xcd   :  { %v2820_v29 = vadd.f32 %v434_v28, %v295_v33  ;;  %v1873_v28 = vor.u32 %v2136_v8, %v1870_v11  ;;  %v2134_v33 = vld [vmem:[%s3236_s2 + $0x1a4] sm:$0xf]  ;;  %984 = vmatpush.bf16.msra.mxu2 %v1805_v17  ;;  %997 = vmatpush.bf16.msra.mxu3 %v1869_v7 }
  0xce   :  { %v438_v35 = vsel %vm437_vm2, %v2907_v25, 0.0  ;;  %v454_v37 = vmul.f32 %v2907_v25, %v2907_v25  ;;  %v1865_v51 = vor.u32 %v2134_v33, %v1862_v34  ;;  %v2114_v33 = vld [vmem:[%s3236_s2 + $0x104] sm:$0xf] }
  0xcf   :  { %v455_v56 = vmul.f32 %v2820_v29, %v2820_v29  ;;  %v445_v13 = vsel %vm437_vm2, %v2820_v29, 0.0  ;;  %v439_v44 = vrot.slane %v438_v35, 4 }
  0xd0   :  { %v446_v20 = vrot.slane %v445_v13, 4  ;;  %1010 = vmatpush.bf16.msrb.mxu0 %v1809_v21  ;;  %v456_v49 = vsel %vm437_vm2, %v454_v37, 0.0  ;;  %1023 = vmatpush.bf16.msrb.mxu1 %v1873_v28  ;;  %v2130_v37 = vld [vmem:[%s3236_s2 + $0x184] sm:$0xf] }
  0xd1   :  { %v463_v14 = vsel %vm437_vm2, %v455_v56, 0.0  ;;  %v440_v54 = vadd.f32 %v439_v44, %v438_v35  ;;  %v457_v55 = vrot.slane %v456_v49, 4  ;;  %985 = vmatpush.bf16.msra.mxu2 %v1797_v30  ;;  %v1789_v56 = vor.u32 %v2117_v43, %v1788_v42  ;;  %998 = vmatpush.bf16.msra.mxu3 %v1861_v41 }
  0xd2   :  { %v464_v22 = vrot.slane %v463_v14, 4  ;;  %v447_v26 = vadd.f32 %v446_v20, %v445_v13 }
  0xd3   :  { %v441_v62 = vrot.slane %v440_v54, 2  ;;  %v458_v63 = vadd.f32 %v457_v55, %v456_v49 }
  0xd4   :  { %v465_v27 = vadd.f32 %v464_v22, %v463_v14  ;;  %v448_v36 = vrot.slane %v447_v26, 2  ;;  %1011 = vmatpush.bf16.msrb.mxu0 %v1801_v45  ;;  %1024 = vmatpush.bf16.msrb.mxu1 %v1865_v51  ;;  %v2981_v51 = vld [vmem:[%s3237_s3] sm:$0x3] }
  0xd5   :  { %v442_v4 = vadd.f32 %v441_v62, %v440_v54  ;;  %v459_v5 = vrot.slane %v458_v63, 2  ;;  %986 = vmatpush.bf16.msra.mxu2 %v1789_v56  ;;  %999 = vmatpush.bf16.msra.mxu3 %v1853_v61 }
  0xd6   :  { %v466_v40 = vrot.slane %v465_v27, 2  ;;  %v449_v48 = vadd.f32 %v448_v36, %v447_v26  ;;  %v2115_v26 = vld [vmem:[%s3236_s2 + $0x104] sm:$0xf0]  ;;  %v1782_v36 = vld [vmem:[%s3236_s2 + $0x108] sm:$0xf0] }
  0xd7   :  { %v443_v9 = vrot.slane %v442_v4, 1  ;;  %v460_v10 = vadd.f32 %v459_v5, %v458_v63  ;;  %v1781_v31 = vor.u32 %v2115_v26, %v1780_v24  ;;  %v1785_v42 = vor.u32 %v2114_v33, %v1782_v36  ;;  %v1996_v5 = vld [vmem:[%s3236_s2 + $0x270] sm:$0xf]  ;;  %v1990_v24 = vld [vmem:[%s3236_s2 + $0x268] sm:$0xf0] }
  0xd8   :  { %v467_v50 = vadd.f32 %v466_v40, %v465_v27  ;;  %v450_v59 = vrot.slane %v449_v48, 1  ;;  %1012 = vmatpush.bf16.msrb.mxu0 %v1793_v0  ;;  %1025 = vmatpush.bf16.msrb.mxu1 %v1857_v3  ;;  %v1844_v27 = vld [vmem:[%s3236_s2 + $0x180] sm:$0xf]  ;;  %v1846_v40 = vld [vmem:[%s3236_s2 + $0x188] sm:$0xf0] }
  0xd9   :  { %v444_v12 = vadd.f32 %v443_v9, %v442_v4  ;;  %v461_v13 = vrot.slane %v460_v10, 1  ;;  %v1845_v35 = vor.u32 %v2131_v32, %v1844_v27  ;;  %987 = vmatpush.bf16.msra.mxu2 %v1781_v31  ;;  %v1849_v43 = vor.u32 %v2130_v37, %v1846_v40  ;;  %v1998_v9 = vld [vmem:[%s3236_s2 + $0x278] sm:$0xf0]  ;;  %v2206_v26 = vld [vmem:[%s3236_s2 + $0x2e4] sm:$0xf] }
  0xda   :  { %v468_v60 = vrot.slane %v467_v50, 1  ;;  %v451_v1 = vadd.f32 %v450_v59, %v449_v48  ;;  %v2054_v27 = vld [vmem:[%s3236_s2 + $0x2e8] sm:$0xf0]  ;;  %v1980_v31 = vld [vmem:[%s3236_s2 + $0x250] sm:$0xf] }
  0xdb   :  { %v452_v15 = vmul.f32 0.25, %v444_v12  ;;  %v462_v17 = vadd.f32 %v461_v13, %v460_v10  ;;  %1000 = vmatpush.bf16.msra.mxu3 %v1845_v35  ;;  %v2208_v12 = vld [vmem:[%s3236_s2 + $0x2f4] sm:$0xf]  ;;  %v2062_v13 = vld [vmem:[%s3236_s2 + $0x2f8] sm:$0xf0] }
  0xdc   :  { %v469_v2 = vadd.f32 %v468_v60, %v467_v50  ;;  %v2950_v6 = vmul.f32 0.25, %v451_v1  ;;  %1013 = vmatpush.bf16.msrb.mxu0 %v1785_v42  ;;  %1026 = vmatpush.bf16.msrb.mxu1 %v1849_v43  ;;  %v2189_v32 = vld [vmem:[%s3236_s2 + $0x254] sm:$0xf0]  ;;  %v2044_v35 = vld [vmem:[%s3236_s2 + $0x2d0] sm:$0xf] }
  0xdd   :  { %v470_v19 = vmul.f32 0.25, %v462_v17  ;;  %v472_v20 = vmul.f32 %v452_v15, %v452_v15  ;;  %v2205_v36 = vld [vmem:[%s3236_s2 + $0x2d4] sm:$0xf0]  ;;  %v2188_v37 = vld [vmem:[%s3236_s2 + $0x254] sm:$0xf]  ;;  %v1981_v43 = vor.u32 %v2189_v32, %v1980_v31 }
  0xde   :  { %v471_v8 = vmul.f32 0.25, %v469_v2  ;;  %v473_v11 = vmul.f32 %v2950_v6, %v2950_v6  ;;  %v1982_v40 = vld [vmem:[%s3236_s2 + $0x258] sm:$0xf0] }
  0xdf   :  { %v474_v22 = vsub.f32 %v470_v19, %v472_v20  ;;  %v1988_v19 = vld [vmem:[%s3236_s2 + $0x260] sm:$0xf]  ;;  %v2191_v20 = vld [vmem:[%s3236_s2 + $0x264] sm:$0xf0]  ;;  %v2046_v42 = vld [vmem:[%s3236_s2 + $0x2d8] sm:$0xf0] }
  0xe0   :  { %v475_v14 = vsub.f32 %v471_v8, %v473_v11  ;;  %v2060_v8 = vld [vmem:[%s3236_s2 + $0x2f0] sm:$0xf] }
  0xe1   :  { %v476_v7 = vadd.f32 1e-05, %v474_v22 }
  0xe2   :  { %v477_v18 = vadd.f32 1e-05, %v475_v14 }
  0xe3   :  { %vm484_vm7 = vweird.f32 %v476_v7 }
  0xe4   :  { %2210 = vrsqrt.f32 %v477_v18  ;;  %vm494_vm4 = vweird.f32 %v477_v18 }
  0xe5   :  { %2212 = vrsqrt.f32 %v476_v7 }
  0xea   :  { %v2211_v21 = vpop.eup %2210 }
  0xeb   :  { %v489_v23 = vmul.f32 %v2211_v21, %v477_v18  ;;  %v2213_v28 = vpop.eup %2212  ;;  %vm495_vm3 = vweird.f32 %v2211_v21 }
  0xec   :  { %v479_v34 = vmul.f32 %v2213_v28, %v476_v7  ;;  %vm496_vm5 = vmor %vm494_vm4, %vm495_vm3  ;;  %vm485_vm6 = vweird.f32 %v2213_v28  ;;  %v2065_v7 = vor.u32 %v2208_v12, %v2062_v13  ;;  %v2182_v12 = vld [vmem:[%s3236_s2 + $0x224] sm:$0xf]  ;;  %v1958_v13 = vld [vmem:[%s3236_s2 + $0x228] sm:$0xf0] }
  0xed   :  { %v490_v39 = vmul.f32 %v2211_v21, %v489_v23  ;;  %vm486_vm9 = vmor %vm484_vm7, %vm485_vm6  ;;  %v2207_v23 = vld [vmem:[%s3236_s2 + $0x2e4] sm:$0xf0] }
  0xee   :  { %v480_v44 = vmul.f32 %v2213_v28, %v479_v34  ;;  %v2057_v34 = vor.u32 %v2206_v26, %v2054_v27  ;;  %v2180_v26 = vld [vmem:[%s3236_s2 + $0x214] sm:$0xf]  ;;  %v1950_v27 = vld [vmem:[%s3236_s2 + $0x218] sm:$0xf0] }
  0xef   :  { %v491_v30 = vmul.f32 0.5, %v490_v39  ;;  %v2190_v39 = vld [vmem:[%s3236_s2 + $0x264] sm:$0xf] }
  0xf0   :  { %v481_v46 = vmul.f32 0.5, %v480_v44  ;;  %v1993_v33 = vor.u32 %v2190_v39, %v1990_v24  ;;  %v2045_v44 = vor.u32 %v2205_v36, %v2044_v35  ;;  %v2012_v39 = vld [vmem:[%s3236_s2 + $0x290] sm:$0xf]  ;;  %v2197_v24 = vld [vmem:[%s3236_s2 + $0x294] sm:$0xf0]  ;;  %v1953_v35 = vor.u32 %v2180_v26, %v1950_v27 }
  0xf1   :  { %v492_v41 = vsub.f32 1.5, %v491_v30  ;;  %v2013_v32 = vor.u32 %v2197_v24, %v2012_v39 }
  0xf2   :  { %v482_v48 = vsub.f32 1.5, %v481_v46  ;;  %v2187_v46 = vld [vmem:[%s3236_s2 + $0x244] sm:$0xf0] }
  0xf3   :  { %v493_v45 = vmul.f32 %v2211_v21, %v492_v41  ;;  %v2204_v41 = vld [vmem:[%s3236_s2 + $0x2d4] sm:$0xf] }
  0xf4   :  { %v483_v50 = vmul.f32 %v2213_v28, %v482_v48  ;;  %v2049_v48 = vor.u32 %v2204_v41, %v2046_v42  ;;  %v2178_v41 = vld [vmem:[%s3236_s2 + $0x204] sm:$0xf]  ;;  %v1942_v42 = vld [vmem:[%s3236_s2 + $0x208] sm:$0xf0] }
  0xf5   :  { %v497_v47 = vsel %vm496_vm5, %v2211_v21, %v493_v45  ;;  %v2052_v21 = vld [vmem:[%s3236_s2 + $0x2e0] sm:$0xf] }
  0xf6   :  { %v500_v49 = vrot.slane %v497_v47, 7  ;;  %v487_v52 = vsel %vm486_vm9, %v2213_v28, %v483_v50  ;;  %v1989_v28 = vor.u32 %v2191_v20, %v1988_v19  ;;  %v2053_v30 = vor.u32 %v2207_v23, %v2052_v21  ;;  %v1972_v45 = vld [vmem:[%s3236_s2 + $0x240] sm:$0xf]  ;;  %v2203_v50 = vld [vmem:[%s3236_s2 + $0x2c4] sm:$0xf0] }
  0xf7   :  { %v1985_v47 = vor.u32 %v2188_v37, %v1982_v40  ;;  %v1961_v21 = vor.u32 %v2182_v12, %v1958_v13  ;;  %v2004_v37 = vld [vmem:[%s3236_s2 + $0x280] sm:$0xf]  ;;  %v2195_v40 = vld [vmem:[%s3236_s2 + $0x284] sm:$0xf0] }
  0xf8   :  { %v502_v53 = vsel %vm501_vm8, %v487_v52, %v500_v49  ;;  %v2036_v49 = vld [vmem:[%s3236_s2 + $0x2c0] sm:$0xf]  ;;  %v2186_v52 = vld [vmem:[%s3236_s2 + $0x244] sm:$0xf] }
  0xf9   :  { %v504_v54 = vmul.f32 %v502_v53, %v2981_v51  ;;  %v1974_v53 = vld [vmem:[%s3236_s2 + $0x248] sm:$0xf0] }
  0xfb   :  { %v506_v55 = vperm.slane %v504_v54, 0  ;;  %v507_v56 = vperm.slane %v504_v54, 1  ;;  %v2202_v54 = vld [vmem:[%s3236_s2 + $0x2c4] sm:$0xf] }
  0xfd   :  { %v511_v57 = vmul.f32 %v507_v56, %v2950_v6  ;;  %v510_v59 = vmul.f32 %v506_v55, %v452_v15  ;;  %v518_v63 = vmul.f32 %v506_v55, %v2907_v25  ;;  %v519_v1 = vmul.f32 %v507_v56, %v2820_v29  ;;  %v2193_v6 = vld [vmem:[%s3236_s2 + $0x274] sm:$0xf0]  ;;  %v2192_v29 = vld [vmem:[%s3236_s2 + $0x274] sm:$0xf]  ;;  %v2038_v55 = vld [vmem:[%s3236_s2 + $0x2c8] sm:$0xf0] }
  0xfe   :  { %v2209_v25 = vld [vmem:[%s3236_s2 + $0x2f4] sm:$0xf0]  ;;  %v1997_v17 = vor.u32 %v2193_v6, %v1996_v5  ;;  %v2001_v22 = vor.u32 %v2192_v29, %v1998_v9  ;;  %v1973_v56 = vor.u32 %v2187_v46, %v1972_v45  ;;  %v2005_v46 = vor.u32 %v2195_v40, %v2004_v37 }
  0xff   :  { %v514_v60 = vrot.slane %v511_v57, 7  ;;  %v2061_v18 = vor.u32 %v2209_v25, %v2060_v8  ;;  %v2037_v57 = vor.u32 %v2203_v50, %v2036_v49  ;;  %v1956_v8 = vld [vmem:[%s3236_s2 + $0x220] sm:$0xf]  ;;  %v2183_v25 = vld [vmem:[%s3236_s2 + $0x224] sm:$0xf0] }
 0x100   :  { %v1957_v19 = vor.u32 %v2183_v25, %v1956_v8 }
 0x101   :  { %v515_v61 = vsel %vm501_vm8, %v510_v59, %v514_v60  ;;  %v1964_v59 = vld [vmem:[%s3236_s2 + $0x230] sm:$0xf]  ;;  %v2185_v60 = vld [vmem:[%s3236_s2 + $0x234] sm:$0xf0] }
 0x102   :  { %v517_v62 = vsub.f32 %v2989_v58, %v515_v61  ;;  %v1977_v61 = vor.u32 %v2186_v52, %v1974_v53  ;;  %v1965_v5 = vor.u32 %v2185_v60, %v1964_v59 }
 0x104   :  { %v521_v0 = vperm.slane %v517_v62, 0  ;;  %v522_v2 = vperm.slane %v517_v62, 1  ;;  %v2041_v62 = vor.u32 %v2202_v54, %v2038_v55 }
 0x106   :  { %v525_v3 = vadd.f32 %v521_v0, %v518_v63  ;;  %v526_v4 = vadd.f32 %v522_v2, %v519_v1  ;;  %v2028_v63 = vld [vmem:[%s3236_s2 + $0x2b0] sm:$0xf]  ;;  %v2201_v0 = vld [vmem:[%s3236_s2 + $0x2b4] sm:$0xf0]  ;;  %v2184_v1 = vld [vmem:[%s3236_s2 + $0x234] sm:$0xf] }
 0x107   :  { %v1966_v2 = vld [vmem:[%s3236_s2 + $0x238] sm:$0xf0]  ;;  %v2029_v6 = vor.u32 %v2201_v0, %v2028_v63 }
 0x108   :  { %v527_v10 = vmax.f32 %v525_v3, 0.0  ;;  %v528_v11 = vmax.f32 %v526_v4, 0.0  ;;  %v2200_v3 = vld [vmem:[%s3236_s2 + $0x2b4] sm:$0xf]  ;;  %v2030_v4 = vld [vmem:[%s3236_s2 + $0x2b8] sm:$0xf0]  ;;  %v1969_v29 = vor.u32 %v2184_v1, %v1966_v2 }
 0x109   :  { %v2033_v9 = vor.u32 %v2200_v3, %v2030_v4 }
 0x10a   :  { %v3019_v14 = vpack.c.bf16 %v527_v10, %v527_v10  ;;  %v3021_v15 = vpack.c.bf16 %v528_v11, %v528_v11  ;;  %v2020_v10 = vld [vmem:[%s3236_s2 + $0x2a0] sm:$0xf]  ;;  %v2199_v11 = vld [vmem:[%s3236_s2 + $0x2a4] sm:$0xf0] }
 0x10b   :  { %v2021_v20 = vor.u32 %v2199_v11, %v2020_v10 }
 0x10c   :  { %764 = vmatmul.bf16.vlgmr.msrb.gmra.mxu2 %v3019_v14  ;;  %777 = vmatmul.bf16.vlgmr.msrb.gmra.mxu3 %v3021_v15 }
 0x10d   :  { %790 = vmatmul.bf16.vlgmr.msra.gmra.mxu0 %v3019_v14  ;;  %803 = vmatmul.bf16.vlgmr.msra.gmra.mxu1 %v3021_v15 }
 0x10e   :  { %1225 = vmatpush.bf16.msrb.mxu2 %v1997_v17  ;;  %1238 = vmatpush.bf16.msrb.mxu3 %v2061_v18  ;;  %v2198_v17 = vld [vmem:[%s3236_s2 + $0x2a4] sm:$0xf]  ;;  %v2022_v18 = vld [vmem:[%s3236_s2 + $0x2a8] sm:$0xf0] }
 0x10f   :  { %1251 = vmatpush.bf16.msra.mxu0 %v2001_v22  ;;  %1264 = vmatpush.bf16.msra.mxu1 %v2065_v7  ;;  %v1948_v22 = vld [vmem:[%s3236_s2 + $0x210] sm:$0xf]  ;;  %v2181_v7 = vld [vmem:[%s3236_s2 + $0x214] sm:$0xf0]  ;;  %v2025_v23 = vor.u32 %v2198_v17, %v2022_v18 }
 0x110   :  { %v1949_v31 = vor.u32 %v2181_v7, %v1948_v22 }
 0x112   :  { %1226 = vmatpush.bf16.msrb.mxu2 %v1989_v28  ;;  %1239 = vmatpush.bf16.msrb.mxu3 %v2053_v30  ;;  %v2196_v28 = vld [vmem:[%s3236_s2 + $0x294] sm:$0xf]  ;;  %v2014_v30 = vld [vmem:[%s3236_s2 + $0x298] sm:$0xf0] }
 0x113   :  { %1252 = vmatpush.bf16.msra.mxu0 %v1993_v33  ;;  %1265 = vmatpush.bf16.msra.mxu1 %v2057_v34  ;;  %v1940_v33 = vld [vmem:[%s3236_s2 + $0x200] sm:$0xf]  ;;  %v2179_v34 = vld [vmem:[%s3236_s2 + $0x204] sm:$0xf0]  ;;  %v2017_v36 = vor.u32 %v2196_v28, %v2014_v30 }
 0x114   :  { %v1941_v45 = vor.u32 %v2179_v34, %v1940_v33 }
 0x116   :  { %1227 = vmatpush.bf16.msrb.mxu2 %v1981_v43  ;;  %1240 = vmatpush.bf16.msrb.mxu3 %v2045_v44  ;;  %v2194_v43 = vld [vmem:[%s3236_s2 + $0x284] sm:$0xf]  ;;  %v2006_v44 = vld [vmem:[%s3236_s2 + $0x288] sm:$0xf0] }
 0x117   :  { %1253 = vmatpush.bf16.msra.mxu0 %v1985_v47  ;;  %1266 = vmatpush.bf16.msra.mxu1 %v2049_v48  ;;  %v1945_v47 = vor.u32 %v2178_v41, %v1942_v42  ;;  %v2009_v48 = vor.u32 %v2194_v43, %v2006_v44 }
 0x11a   :  { %1228 = vmatpush.bf16.msrb.mxu2 %v1973_v56  ;;  %1241 = vmatpush.bf16.msrb.mxu3 %v2037_v57 }
 0x11b   :  { %1254 = vmatpush.bf16.msra.mxu0 %v1977_v61  ;;  %1267 = vmatpush.bf16.msra.mxu1 %v2041_v62 }
 0x11c   :  { %988 = vmatmul.bf16.vlgmr.msra.gmra.mxu2 %v3019_v14  ;;  %1001 = vmatmul.bf16.vlgmr.msra.gmra.mxu3 %v3021_v15 }
 0x11d   :  { %1014 = vmatmul.bf16.vlgmr.msrb.gmra.mxu0 %v3019_v14  ;;  %1027 = vmatmul.bf16.vlgmr.msrb.gmra.mxu1 %v3021_v15 }
 0x11e   :  { %1229 = vmatpush.bf16.msrb.mxu2 %v1965_v5  ;;  %1242 = vmatpush.bf16.msrb.mxu3 %v2029_v6 }
 0x11f   :  { %1255 = vmatpush.bf16.msra.mxu0 %v1969_v29  ;;  %1268 = vmatpush.bf16.msra.mxu1 %v2033_v9 }
 0x122   :  { %1230 = vmatpush.bf16.msrb.mxu2 %v1957_v19  ;;  %1243 = vmatpush.bf16.msrb.mxu3 %v2021_v20 }
 0x123   :  { %1256 = vmatpush.bf16.msra.mxu0 %v1961_v21  ;;  %1269 = vmatpush.bf16.msra.mxu1 %v2025_v23 }
 0x126   :  { %1231 = vmatpush.bf16.msrb.mxu2 %v1949_v31  ;;  %1244 = vmatpush.bf16.msrb.mxu3 %v2013_v32 }
 0x127   :  { %1257 = vmatpush.bf16.msra.mxu0 %v1953_v35  ;;  %1270 = vmatpush.bf16.msra.mxu1 %v2017_v36 }
 0x12a   :  { %1232 = vmatpush.bf16.msrb.mxu2 %v1941_v45  ;;  %1245 = vmatpush.bf16.msrb.mxu3 %v2005_v46 }
 0x12b   :  { %1258 = vmatpush.bf16.msra.mxu0 %v1945_v47  ;;  %1271 = vmatpush.bf16.msra.mxu1 %v2009_v48 }
 0x12d   :  { %1233 = vmatmul.bf16.vlgmr.msrb.gmra.mxu2 %v3019_v14  ;;  %1246 = vmatmul.bf16.vlgmr.msrb.gmra.mxu3 %v3021_v15 }
 0x12e   :  { %1259 = vmatmul.bf16.vlgmr.msra.gmra.mxu0 %v3019_v14  ;;  %1272 = vmatmul.bf16.vlgmr.msra.gmra.mxu1 %v3021_v15 }
 0x18a   :  { %v791_v49 = vpop.f32.mrf.mxu0  ;;  %v804_v50 = vpop.f32.mrf.mxu1 }
 0x18b   :  { %v805_v52 = vadd.f32 %v804_v50, %v791_v49 }
 0x18d   :  { %v811_v53 = vrot.slane %v805_v52, 7 }
 0x18f   :  { %815 = vst [vmem:[#allocation2 + $0x8] sm:$0x1e] %v811_v53  ;;  %v765_v54 = vpop.f32.mrf.mxu2  ;;  %v778_v55 = vpop.f32.mrf.mxu3 }
 0x190   :  { %v779_v56 = vadd.f32 %v778_v55, %v765_v54 }
 0x192   :  { %v810_v57 = vrot.slane %v779_v56, 7  ;;  %v793_v59 = vpop.f32.mrf.mxu0  ;;  %v806_v60 = vpop.f32.mrf.mxu1 }
 0x194   :  { %814 = vst [vmem:[#allocation2] sm:$0x1e] %v810_v57 }
 0x196   :  { %v817_v25 = vld [vmem:[#allocation2 + $0x8] sm:$0xf] }
 0x197   :  { %v767_v61 = vpop.f32.mrf.mxu2  ;;  %v780_v62 = vpop.f32.mrf.mxu3  ;;  %v819_v11 = vsel %vm2700_vm0, 0.0, %v817_v25 }
 0x19a   :  { %v1015_v63 = vpop.f32.mrf.mxu0  ;;  %v1028_v0 = vpop.f32.mrf.mxu1 }
 0x19b   :  { %v1016_v12 = vadd.f32 %v1015_v63, %v819_v11  ;;  %v816_v18 = vld [vmem:[#allocation2] sm:$0xf] }
 0x19c   :  { %v818_v7 = vsel %vm2700_vm0, 0.0, %v816_v18  ;;  %vm1384_vm0 = vcmask 1041408  }
 0x19d   :  { %v1029_v22 = vadd.f32 %v1028_v0, %v1016_v12 }
 0x19f   :  { %v989_v1 = vpop.f32.mrf.mxu2  ;;  %v1002_v14 = vpop.f32.mrf.mxu3 }
 0x1a0   :  { %v990_v21 = vadd.f32 %v989_v1, %v818_v7 }
 0x1a2   :  { %v1017_v2 = vpop.f32.mrf.mxu0  ;;  %v1030_v15 = vpop.f32.mrf.mxu1  ;;  %v1003_v32 = vadd.f32 %v1002_v14, %v990_v21 }
 0x1a7   :  { %v991_v3 = vpop.f32.mrf.mxu2  ;;  %v1004_v4 = vpop.f32.mrf.mxu3 }
 0x1ab   :  { %v1260_v5 = vpop.f32.mrf.mxu0  ;;  %v1273_v6 = vpop.f32.mrf.mxu1 }
 0x1ac   :  { %v1274_v8 = vadd.f32 %v1273_v6, %v1260_v5 }
 0x1ae   :  { %1278 = vst [vmem:[#allocation3] sm:$0xf] %v1274_v8 }
 0x1b0   :  { %v1234_v29 = vpop.f32.mrf.mxu2  ;;  %v1247_v9 = vpop.f32.mrf.mxu3 }
 0x1b1   :  { %v1248_v10 = vadd.f32 %v1247_v9, %v1234_v29 }
 0x1b3   :  { %1277 = vst [vmem:[#allocation3 + $0x8] sm:$0xf] %v1248_v10  ;;  %v1262_v13 = vpop.f32.mrf.mxu0  ;;  %v1275_v17 = vpop.f32.mrf.mxu1 }
 0x1b5   :  { %v1280_v19 = vld [vmem:[#allocation3] sm:$0x1e] }
 0x1b6   :  { %v1284_v20 = vrot.slane %v1280_v19, 1 }
 0x1b8   :  { %v1288_v23 = vsel %vm2778_vm1, 0.0, %v1284_v20  ;;  %v1236_v39 = vpop.f32.mrf.mxu2  ;;  %v1249_v24 = vpop.f32.mrf.mxu3 }
 0x1b9   :  { %v3209_v26 = vadd.f32 %v1288_v23, %v1029_v22 }
 0x1ba   :  { %v1279_v27 = vld [vmem:[#allocation3 + $0x8] sm:$0x1e] }
 0x1bb   :  { %v1298_v28 = vsel %vm437_vm2, %v3209_v26, 0.0  ;;  %v1308_v30 = vmul.f32 %v3209_v26, %v3209_v26  ;;  %v1283_v31 = vrot.slane %v1279_v27, 1 }
 0x1bc   :  { %v1299_v33 = vrot.slane %v1298_v28, 4 }
 0x1bd   :  { %v1316_v38 = vsel %vm437_vm2, %v1308_v30, 0.0  ;;  %v1287_v34 = vsel %vm2778_vm1, 0.0, %v1283_v31 }
 0x1be   :  { %v1300_v35 = vadd.f32 %v1299_v33, %v1298_v28  ;;  %v1317_v36 = vrot.slane %v1316_v38, 4  ;;  %v3218_v37 = vadd.f32 %v1287_v34, %v1003_v32 }
 0x1c0   :  { %v1301_v40 = vrot.slane %v1300_v35, 2  ;;  %v1318_v41 = vadd.f32 %v1317_v36, %v1316_v38  ;;  %v1291_v42 = vsel %vm437_vm2, %v3218_v37, 0.0  ;;  %v1307_v43 = vmul.f32 %v3218_v37, %v3218_v37 }
 0x1c1   :  { %v1292_v44 = vrot.slane %v1291_v42, 4 }
 0x1c2   :  { %v1302_v45 = vadd.f32 %v1301_v40, %v1300_v35  ;;  %v1319_v46 = vrot.slane %v1318_v41, 2  ;;  %v1309_v47 = vsel %vm437_vm2, %v1307_v43, 0.0 }
 0x1c3   :  { %v1293_v48 = vadd.f32 %v1292_v44, %v1291_v42  ;;  %v1310_v16 = vrot.slane %v1309_v47, 4 }
 0x1c4   :  { %v1303_v49 = vrot.slane %v1302_v45, 1  ;;  %v1320_v50 = vadd.f32 %v1319_v46, %v1318_v41 }
 0x1c5   :  { %v1294_v52 = vrot.slane %v1293_v48, 2  ;;  %v1311_v53 = vadd.f32 %v1310_v16, %v1309_v47 }
 0x1c6   :  { %v1304_v54 = vadd.f32 %v1303_v49, %v1302_v45  ;;  %v1321_v55 = vrot.slane %v1320_v50, 1 }
 0x1c7   :  { %v1295_v56 = vadd.f32 %v1294_v52, %v1293_v48  ;;  %v1312_v57 = vrot.slane %v1311_v53, 2 }
 0x1c8   :  { %v1306_v59 = vmul.f32 0.25, %v1304_v54  ;;  %v1322_v60 = vadd.f32 %v1321_v55, %v1320_v50 }
 0x1c9   :  { %v1296_v61 = vrot.slane %v1295_v56, 1  ;;  %v1313_v62 = vadd.f32 %v1312_v57, %v1311_v53 }
 0x1ca   :  { %v1324_v63 = vmul.f32 0.25, %v1322_v60  ;;  %v1326_v0 = vmul.f32 %v1306_v59, %v1306_v59 }
 0x1cb   :  { %v1297_v1 = vadd.f32 %v1296_v61, %v1295_v56  ;;  %v1314_v14 = vrot.slane %v1313_v62, 1 }
 0x1cc   :  { %v1328_v2 = vsub.f32 %v1324_v63, %v1326_v0 }
 0x1cd   :  { %v1305_v15 = vmul.f32 0.25, %v1297_v1  ;;  %v1315_v3 = vadd.f32 %v1314_v14, %v1313_v62 }
 0x1ce   :  { %v1330_v4 = vadd.f32 1e-05, %v1328_v2 }
 0x1cf   :  { %v1323_v5 = vmul.f32 0.25, %v1315_v3  ;;  %v1325_v6 = vmul.f32 %v1305_v15, %v1305_v15 }
 0x1d0   :  { %2214 = vrsqrt.f32 %v1330_v4  ;;  %vm1347_vm11 = vweird.f32 %v1330_v4 }
 0x1d1   :  { %v1327_v8 = vsub.f32 %v1323_v5, %v1325_v6 }
 0x1d3   :  { %v1329_v25 = vadd.f32 1e-05, %v1327_v8 }
 0x1d5   :  { %2216 = vrsqrt.f32 %v1329_v25  ;;  %vm1337_vm14 = vweird.f32 %v1329_v25 }
 0x1d6   :  { %v2215_v29 = vpop.eup %2214 }
 0x1d7   :  { %v1342_v9 = vmul.f32 %v2215_v29, %v1330_v4  ;;  %vm1348_vm10 = vweird.f32 %v2215_v29 }
 0x1d8   :  { %vm1349_vm12 = vmor %vm1347_vm11, %vm1348_vm10 }
 0x1d9   :  { %v1343_v10 = vmul.f32 %v2215_v29, %v1342_v9 }
 0x1db   :  { %v2217_v11 = vpop.eup %2216  ;;  %v1344_v12 = vmul.f32 0.5, %v1343_v10 }
 0x1dc   :  { %v1332_v13 = vmul.f32 %v2217_v11, %v1329_v25  ;;  %vm1338_vm13 = vweird.f32 %v2217_v11 }
 0x1dd   :  { %v1345_v17 = vsub.f32 1.5, %v1344_v12  ;;  %vm1339_vm15 = vmor %vm1337_vm14, %vm1338_vm13 }
 0x1de   :  { %v1333_v18 = vmul.f32 %v2217_v11, %v1332_v13 }
 0x1df   :  { %v1346_v19 = vmul.f32 %v2215_v29, %v1345_v17 }
 0x1e0   :  { %v1334_v20 = vmul.f32 0.5, %v1333_v18 }
 0x1e1   :  { %v1350_v7 = vsel %vm1349_vm12, %v2215_v29, %v1346_v19 }
 0x1e2   :  { %v1335_v22 = vsub.f32 1.5, %v1334_v20  ;;  %v1353_v23 = vrot.slane %v1350_v7, 7 }
 0x1e4   :  { %v1336_v21 = vmul.f32 %v2217_v11, %v1335_v22 }
 0x1e6   :  { %v1340_v39 = vsel %vm1339_vm15, %v2217_v11, %v1336_v21 }
 0x1e7   :  { %v1354_v24 = vsel %vm501_vm8, %v1340_v39, %v1353_v23 }
 0x1e8   :  { %v1356_v27 = vmul.f32 %v1354_v24, %v2981_v51 }
 0x1ea   :  { %v1358_v28 = vperm.slane %v1356_v27, 0  ;;  %v1359_v30 = vperm.slane %v1356_v27, 1 }
 0x1ec   :  { %v1363_v31 = vmul.f32 %v1359_v30, %v1306_v59  ;;  %v1362_v32 = vmul.f32 %v1358_v28, %v1305_v15  ;;  %v1370_v35 = vmul.f32 %v1358_v28, %v3218_v37  ;;  %v1371_v36 = vmul.f32 %v1359_v30, %v3209_v26 }
 0x1ee   :  { %v1366_v33 = vrot.slane %v1363_v31, 7 }
 0x1f0   :  { %v1367_v38 = vsel %vm501_vm8, %v1362_v32, %v1366_v33 }
 0x1f1   :  { %v1369_v34 = vsub.f32 %v2989_v58, %v1367_v38 }
 0x1f3   :  { %v1373_v40 = vperm.slane %v1369_v34, 0  ;;  %v1374_v41 = vperm.slane %v1369_v34, 1 }
 0x1f5   :  { %v1377_v42 = vadd.f32 %v1373_v40, %v1370_v35  ;;  %v1378_v43 = vadd.f32 %v1374_v41, %v1371_v36 }
 0x1f7   :  { %v1379_v44 = vmax.f32 %v1377_v42, 0.0  ;;  %v1380_v45 = vmax.f32 %v1378_v43, 0.0 }
 0x1f9   :  { %v1381_v51 = vpack.c.bf16 %v1380_v45, %v1379_v44 }
 0x1fb   :  { %v1383_v46 = vrot.slane %v1381_v51, 2 }
 0x1fd   :  { %v1387_v47 = vsel %vm1384_vm0, %v1381_v51, %v1383_v46 }
 0x1fe   :  { %1389 = vst [vmem:[%s3239_s5] sm:$0xf] %v1387_v47 }

// kernel: debugnet_forward.11
= control target key start
LH: loop header
LB: loop body
LE: loop exit
PB: predicated region body
PF: predicated region fallthrough
CT: control target
= control target key end

     0   :  { %vm518_vm0 = vcmask 1041408   ;;  %vm646_vm12 = vcmask 1040384   ;;  %vm648_vm13 = vcmask 1042434   ;;  %s4458_s1 = inlined_call_operand.vmem [shape: bf16[3,256,512], index: 1, kind: input, shape index: {}]   ;;  %s4459_s0 = inlined_call_operand.vmem [shape: bf16[2,256], index: 0, kind: input, shape index: {}]   ;;  %s4460_s2 = inlined_call_operand.vmem [shape: bf16[3,512,512], index: 2, kind: input, shape index: {}]   ;;  %s4461_s3 = inlined_call_operand.vmem [shape: f32[1,512], index: 3, kind: input, shape index: {}]   ;;  %s4462_s4 = inlined_call_operand.vmem [shape: f32[1,512], index: 4, kind: input, shape index: {}]   ;;  %s4463_s5 = inlined_call_operand.vmem [shape: bf16[2,512], index: 5, kind: output, shape index: {}]  }
   0x1   :  { %v2056_v0 = vld [vmem:[%s4458_s1 + $0x2e0] sm:$0xf]  ;;  %v2868_v1 = vld [vmem:[%s4458_s1 + $0x2ec] sm:$0xf0]  ;;  %v2866_v5 = vld [vmem:[%s4458_s1 + $0x2e4] sm:$0xf] }
   0x2   :  { %v2184_v2 = vld [vmem:[%s4458_s1 + $0x3e0] sm:$0xf]  ;;  %v2057_v3 = vor.u32 %v2868_v1, %v2056_v0  ;;  %v2900_v4 = vld [vmem:[%s4458_s1 + $0x3ec] sm:$0xf0]  ;;  %v2058_v6 = vld [vmem:[%s4458_s1 + $0x2f0] sm:$0xf0] }
   0x3   :  { %v2185_v7 = vor.u32 %v2900_v4, %v2184_v2  ;;  %v2061_v8 = vor.u32 %v2866_v5, %v2058_v6  ;;  %v2898_v9 = vld [vmem:[%s4458_s1 + $0x3e4] sm:$0xf]  ;;  %v2186_v10 = vld [vmem:[%s4458_s1 + $0x3f0] sm:$0xf0]  ;;  %v2040_v11 = vld [vmem:[%s4458_s1 + $0x2c0] sm:$0xf] }
   0x4   :  { %414 = vmatpush.bf16.msra.mxu0 %v2057_v3  ;;  %v2189_v12 = vor.u32 %v2898_v9, %v2186_v10  ;;  %v2864_v13 = vld [vmem:[%s4458_s1 + $0x2cc] sm:$0xf0]  ;;  %v2168_v14 = vld [vmem:[%s4458_s1 + $0x3c0] sm:$0xf]  ;;  %v2862_v18 = vld [vmem:[%s4458_s1 + $0x2c4] sm:$0xf] }
   0x5   :  { %v2896_v15 = vld [vmem:[%s4458_s1 + $0x3cc] sm:$0xf0]  ;;  %427 = vmatpush.bf16.msra.mxu1 %v2185_v7  ;;  %440 = vmatpush.bf16.msra.mxu2 %v2061_v8  ;;  %v2041_v16 = vor.u32 %v2864_v13, %v2040_v11  ;;  %v2042_v19 = vld [vmem:[%s4458_s1 + $0x2d0] sm:$0xf0]  ;;  %v2894_v20 = vld [vmem:[%s4458_s1 + $0x3c4] sm:$0xf] }
   0x6   :  { %v2169_v17 = vor.u32 %v2896_v15, %v2168_v14  ;;  %453 = vmatpush.bf16.msra.mxu3 %v2189_v12  ;;  %v2045_v21 = vor.u32 %v2862_v18, %v2042_v19  ;;  %v2170_v22 = vld [vmem:[%s4458_s1 + $0x3d0] sm:$0xf0]  ;;  %v2024_v23 = vld [vmem:[%s4458_s1 + $0x2a0] sm:$0xf]  ;;  %v2860_v24 = vld [vmem:[%s4458_s1 + $0x2ac] sm:$0xf0] }
   0x7   :  { %v2173_v25 = vor.u32 %v2894_v20, %v2170_v22  ;;  %v2152_v26 = vld [vmem:[%s4458_s1 + $0x3a0] sm:$0xf]  ;;  %v2892_v27 = vld [vmem:[%s4458_s1 + $0x3ac] sm:$0xf0]  ;;  %v2858_v28 = vld [vmem:[%s4458_s1 + $0x2a4] sm:$0xf]  ;;  %v2025_v29 = vor.u32 %v2860_v24, %v2024_v23 }
   0x8   :  { %415 = vmatpush.bf16.msra.mxu0 %v2041_v16  ;;  %v2026_v30 = vld [vmem:[%s4458_s1 + $0x2b0] sm:$0xf0]  ;;  %v2890_v31 = vld [vmem:[%s4458_s1 + $0x3a4] sm:$0xf]  ;;  %v2153_v33 = vor.u32 %v2892_v27, %v2152_v26  ;;  %v2008_v35 = vld [vmem:[%s4458_s1 + $0x280] sm:$0xf] }
   0x9   :  { %v2154_v32 = vld [vmem:[%s4458_s1 + $0x3b0] sm:$0xf0]  ;;  %428 = vmatpush.bf16.msra.mxu1 %v2169_v17  ;;  %441 = vmatpush.bf16.msra.mxu2 %v2045_v21  ;;  %v2029_v34 = vor.u32 %v2858_v28, %v2026_v30  ;;  %v2856_v36 = vld [vmem:[%s4458_s1 + $0x28c] sm:$0xf0]  ;;  %v2136_v37 = vld [vmem:[%s4458_s1 + $0x380] sm:$0xf] }
   0xa   :  { %454 = vmatpush.bf16.msra.mxu3 %v2173_v25  ;;  %v2157_v38 = vor.u32 %v2890_v31, %v2154_v32  ;;  %v2888_v39 = vld [vmem:[%s4458_s1 + $0x38c] sm:$0xf0]  ;;  %v2854_v40 = vld [vmem:[%s4458_s1 + $0x284] sm:$0xf]  ;;  %v2010_v41 = vld [vmem:[%s4458_s1 + $0x290] sm:$0xf0]  ;;  %v2009_v44 = vor.u32 %v2856_v36, %v2008_v35 }
   0xb   :  { %v2886_v42 = vld [vmem:[%s4458_s1 + $0x384] sm:$0xf]  ;;  %v2138_v43 = vld [vmem:[%s4458_s1 + $0x390] sm:$0xf0]  ;;  %v2137_v45 = vor.u32 %v2888_v39, %v2136_v37  ;;  %v2013_v46 = vor.u32 %v2854_v40, %v2010_v41  ;;  %v1992_v47 = vld [vmem:[%s4458_s1 + $0x260] sm:$0xf] }
   0xc   :  { %416 = vmatpush.bf16.msra.mxu0 %v2025_v29  ;;  %v2852_v48 = vld [vmem:[%s4458_s1 + $0x26c] sm:$0xf0]  ;;  %v2120_v49 = vld [vmem:[%s4458_s1 + $0x360] sm:$0xf]  ;;  %v2141_v50 = vor.u32 %v2886_v42, %v2138_v43  ;;  %v2850_v52 = vld [vmem:[%s4458_s1 + $0x264] sm:$0xf] }
   0xd   :  { %429 = vmatpush.bf16.msra.mxu1 %v2153_v33  ;;  %442 = vmatpush.bf16.msra.mxu2 %v2029_v34  ;;  %v2884_v51 = vld [vmem:[%s4458_s1 + $0x36c] sm:$0xf0]  ;;  %v1994_v53 = vld [vmem:[%s4458_s1 + $0x270] sm:$0xf0]  ;;  %v2882_v54 = vld [vmem:[%s4458_s1 + $0x364] sm:$0xf]  ;;  %v1993_v56 = vor.u32 %v2852_v48, %v1992_v47 }
   0xe   :  { %455 = vmatpush.bf16.msra.mxu3 %v2157_v38  ;;  %v2122_v55 = vld [vmem:[%s4458_s1 + $0x370] sm:$0xf0]  ;;  %v2121_v57 = vor.u32 %v2884_v51, %v2120_v49  ;;  %v1997_v58 = vor.u32 %v2850_v52, %v1994_v53  ;;  %v1976_v59 = vld [vmem:[%s4458_s1 + $0x240] sm:$0xf]  ;;  %v2848_v60 = vld [vmem:[%s4458_s1 + $0x24c] sm:$0xf0] }
   0xf   :  { %v2104_v61 = vld [vmem:[%s4458_s1 + $0x340] sm:$0xf]  ;;  %v2125_v62 = vor.u32 %v2882_v54, %v2122_v55  ;;  %v2880_v63 = vld [vmem:[%s4458_s1 + $0x34c] sm:$0xf0]  ;;  %v2846_v0 = vld [vmem:[%s4458_s1 + $0x244] sm:$0xf]  ;;  %v1977_v4 = vor.u32 %v2848_v60, %v1976_v59 }
  0x10   :  { %417 = vmatpush.bf16.msra.mxu0 %v2009_v44  ;;  %v1978_v1 = vld [vmem:[%s4458_s1 + $0x250] sm:$0xf0]  ;;  %v2878_v2 = vld [vmem:[%s4458_s1 + $0x344] sm:$0xf]  ;;  %v2105_v5 = vor.u32 %v2880_v63, %v2104_v61  ;;  %v1960_v7 = vld [vmem:[%s4458_s1 + $0x220] sm:$0xf] }
  0x11   :  { %430 = vmatpush.bf16.msra.mxu1 %v2137_v45  ;;  %443 = vmatpush.bf16.msra.mxu2 %v2013_v46  ;;  %v2106_v3 = vld [vmem:[%s4458_s1 + $0x350] sm:$0xf0]  ;;  %v1981_v6 = vor.u32 %v2846_v0, %v1978_v1  ;;  %v2844_v8 = vld [vmem:[%s4458_s1 + $0x22c] sm:$0xf0]  ;;  %v2088_v9 = vld [vmem:[%s4458_s1 + $0x320] sm:$0xf] }
  0x12   :  { %456 = vmatpush.bf16.msra.mxu3 %v2141_v50  ;;  %v2109_v10 = vor.u32 %v2878_v2, %v2106_v3  ;;  %v2876_v11 = vld [vmem:[%s4458_s1 + $0x32c] sm:$0xf0]  ;;  %v2842_v12 = vld [vmem:[%s4458_s1 + $0x224] sm:$0xf]  ;;  %v1962_v13 = vld [vmem:[%s4458_s1 + $0x230] sm:$0xf0]  ;;  %v1961_v17 = vor.u32 %v2844_v8, %v1960_v7 }
  0x13   :  { %v2874_v14 = vld [vmem:[%s4458_s1 + $0x324] sm:$0xf]  ;;  %v2090_v15 = vld [vmem:[%s4458_s1 + $0x330] sm:$0xf0]  ;;  %v1944_v16 = vld [vmem:[%s4458_s1 + $0x200] sm:$0xf]  ;;  %v2089_v21 = vor.u32 %v2876_v11, %v2088_v9  ;;  %v1965_v22 = vor.u32 %v2842_v12, %v1962_v13 }
  0x14   :  { %418 = vmatpush.bf16.msra.mxu0 %v1993_v56  ;;  %v2840_v18 = vld [vmem:[%s4458_s1 + $0x20c] sm:$0xf0]  ;;  %v2072_v19 = vld [vmem:[%s4458_s1 + $0x300] sm:$0xf]  ;;  %v2838_v23 = vld [vmem:[%s4458_s1 + $0x204] sm:$0xf]  ;;  %v2093_v26 = vor.u32 %v2874_v14, %v2090_v15 }
  0x15   :  { %431 = vmatpush.bf16.msra.mxu1 %v2121_v57  ;;  %444 = vmatpush.bf16.msra.mxu2 %v1997_v58  ;;  %v2872_v20 = vld [vmem:[%s4458_s1 + $0x30c] sm:$0xf0]  ;;  %v1946_v24 = vld [vmem:[%s4458_s1 + $0x210] sm:$0xf0]  ;;  %v22_v25 = vld [vmem:[%s4459_s0] sm:$0x3]  ;;  %v1945_v32 = vor.u32 %v2840_v18, %v1944_v16 }
  0x16   :  { %457 = vmatpush.bf16.msra.mxu3 %v2125_v62  ;;  %v2870_v27 = vld [vmem:[%s4458_s1 + $0x304] sm:$0xf]  ;;  %v2074_v28 = vld [vmem:[%s4458_s1 + $0x310] sm:$0xf0]  ;;  %89 = vst [vmem:[#allocation1] ss:$9 sm:$0xff] %v22_v25  ;;  %v2073_v36 = vor.u32 %v2872_v20, %v2072_v19  ;;  %v1949_v37 = vor.u32 %v2838_v23, %v1946_v24 }
  0x17   :  { %v2064_v29 = vld [vmem:[%s4458_s1 + $0x2e8] sm:$0xf]  ;;  %v2869_v30 = vld [vmem:[%s4458_s1 + $0x2f4] sm:$0xf0]  ;;  %v2867_v34 = vld [vmem:[%s4458_s1 + $0x2ec] sm:$0xf]  ;;  %v2077_v40 = vor.u32 %v2870_v27, %v2074_v28 }
  0x18   :  { %419 = vmatpush.bf16.msra.mxu0 %v1977_v4  ;;  %v2192_v31 = vld [vmem:[%s4458_s1 + $0x3e8] sm:$0xf]  ;;  %v2901_v33 = vld [vmem:[%s4458_s1 + $0x3f4] sm:$0xf0]  ;;  %v2066_v35 = vld [vmem:[%s4458_s1 + $0x2f8] sm:$0xf0]  ;;  %v2065_v41 = vor.u32 %v2869_v30, %v2064_v29 }
  0x19   :  { %432 = vmatpush.bf16.msra.mxu1 %v2105_v5  ;;  %445 = vmatpush.bf16.msra.mxu2 %v1981_v6  ;;  %v2899_v38 = vld [vmem:[%s4458_s1 + $0x3ec] sm:$0xf]  ;;  %v2194_v39 = vld [vmem:[%s4458_s1 + $0x3f8] sm:$0xf0]  ;;  %v2193_v42 = vor.u32 %v2901_v33, %v2192_v31  ;;  %v2069_v43 = vor.u32 %v2867_v34, %v2066_v35  ;;  %v2048_v44 = vld [vmem:[%s4458_s1 + $0x2c8] sm:$0xf] }
  0x1a   :  { %458 = vmatpush.bf16.msra.mxu3 %v2109_v10  ;;  %v2865_v45 = vld [vmem:[%s4458_s1 + $0x2d4] sm:$0xf0]  ;;  %v2176_v46 = vld [vmem:[%s4458_s1 + $0x3c8] sm:$0xf]  ;;  %v2197_v47 = vor.u32 %v2899_v38, %v2194_v39  ;;  %v2863_v49 = vld [vmem:[%s4458_s1 + $0x2cc] sm:$0xf] }
  0x1b   :  { %v2897_v48 = vld [vmem:[%s4458_s1 + $0x3d4] sm:$0xf0]  ;;  %v2050_v50 = vld [vmem:[%s4458_s1 + $0x2d8] sm:$0xf0]  ;;  %v2895_v52 = vld [vmem:[%s4458_s1 + $0x3cc] sm:$0xf]  ;;  %v2049_v55 = vor.u32 %v2865_v45, %v2048_v44 }
  0x1c   :  { %420 = vmatpush.bf16.msra.mxu0 %v1961_v17  ;;  %v2178_v53 = vld [vmem:[%s4458_s1 + $0x3d8] sm:$0xf0]  ;;  %v2177_v56 = vor.u32 %v2897_v48, %v2176_v46  ;;  %v2053_v57 = vor.u32 %v2863_v49, %v2050_v50  ;;  %v2032_v58 = vld [vmem:[%s4458_s1 + $0x2a8] sm:$0xf]  ;;  %v2861_v59 = vld [vmem:[%s4458_s1 + $0x2b4] sm:$0xf0] }
  0x1d   :  { %433 = vmatpush.bf16.msra.mxu1 %v2089_v21  ;;  %446 = vmatpush.bf16.msra.mxu2 %v1965_v22  ;;  %v3313_v51 = vld [vmem:[#allocation1] sm:$0xff]  ;;  %v3321_v54 = vld [vmem:[#allocation1 + $0x9] sm:$0xff]  ;;  %v2181_v61 = vor.u32 %v2895_v52, %v2178_v53  ;;  %v2893_v62 = vld [vmem:[%s4458_s1 + $0x3b4] sm:$0xf0]  ;;  %v2033_v3 = vor.u32 %v2861_v59, %v2032_v58 }
  0x1e   :  { %459 = vmatpush.bf16.msra.mxu3 %v2093_v26  ;;  %v2160_v60 = vld [vmem:[%s4458_s1 + $0x3a8] sm:$0xf]  ;;  %v2859_v63 = vld [vmem:[%s4458_s1 + $0x2ac] sm:$0xf]  ;;  %v2034_v0 = vld [vmem:[%s4458_s1 + $0x2b8] sm:$0xf0] }
  0x1f   :  { %v2891_v1 = vld [vmem:[%s4458_s1 + $0x3ac] sm:$0xf]  ;;  %v2162_v2 = vld [vmem:[%s4458_s1 + $0x3b8] sm:$0xf0]  ;;  %v2161_v4 = vor.u32 %v2893_v62, %v2160_v60  ;;  %v2037_v5 = vor.u32 %v2859_v63, %v2034_v0  ;;  %v2016_v6 = vld [vmem:[%s4458_s1 + $0x288] sm:$0xf] }
  0x20   :  { %421 = vmatpush.bf16.msra.mxu0 %v1945_v32  ;;  %v2857_v7 = vld [vmem:[%s4458_s1 + $0x294] sm:$0xf0]  ;;  %v2144_v8 = vld [vmem:[%s4458_s1 + $0x388] sm:$0xf]  ;;  %v2165_v9 = vor.u32 %v2891_v1, %v2162_v2  ;;  %v2855_v11 = vld [vmem:[%s4458_s1 + $0x28c] sm:$0xf] }
  0x21   :  { %434 = vmatpush.bf16.msra.mxu1 %v2073_v36  ;;  %447 = vmatpush.bf16.msra.mxu2 %v1949_v37  ;;  %v2889_v10 = vld [vmem:[%s4458_s1 + $0x394] sm:$0xf0]  ;;  %v2018_v12 = vld [vmem:[%s4458_s1 + $0x298] sm:$0xf0]  ;;  %v2887_v13 = vld [vmem:[%s4458_s1 + $0x38c] sm:$0xf]  ;;  %v2017_v15 = vor.u32 %v2857_v7, %v2016_v6 }
  0x22   :  { %460 = vmatpush.bf16.msra.mxu3 %v2077_v40  ;;  %v2146_v14 = vld [vmem:[%s4458_s1 + $0x398] sm:$0xf0]  ;;  %v2145_v16 = vor.u32 %v2889_v10, %v2144_v8  ;;  %v2021_v17 = vor.u32 %v2855_v11, %v2018_v12  ;;  %v2000_v18 = vld [vmem:[%s4458_s1 + $0x268] sm:$0xf]  ;;  %v2853_v19 = vld [vmem:[%s4458_s1 + $0x274] sm:$0xf0] }
  0x23   :  { %422 = vmatmul.bf16.vlgmr.msra.gmra.mxu0 %v3313_v51  ;;  %v2128_v20 = vld [vmem:[%s4458_s1 + $0x368] sm:$0xf]  ;;  %v2149_v21 = vor.u32 %v2887_v13, %v2146_v14  ;;  %v2885_v22 = vld [vmem:[%s4458_s1 + $0x374] sm:$0xf0]  ;;  %v2851_v23 = vld [vmem:[%s4458_s1 + $0x26c] sm:$0xf]  ;;  %v2001_v27 = vor.u32 %v2853_v19, %v2000_v18 }
  0x24   :  { %466 = vmatpush.bf16.msrb.mxu0 %v2065_v41  ;;  %435 = vmatmul.bf16.vlgmr.msra.gmra.mxu1 %v3321_v54  ;;  %v2002_v24 = vld [vmem:[%s4458_s1 + $0x278] sm:$0xf0]  ;;  %v2883_v25 = vld [vmem:[%s4458_s1 + $0x36c] sm:$0xf]  ;;  %v2129_v28 = vor.u32 %v2885_v22, %v2128_v20  ;;  %v1984_v30 = vld [vmem:[%s4458_s1 + $0x248] sm:$0xf] }
  0x25   :  { %479 = vmatpush.bf16.msrb.mxu1 %v2193_v42  ;;  %492 = vmatpush.bf16.msrb.mxu2 %v2069_v43  ;;  %v2130_v26 = vld [vmem:[%s4458_s1 + $0x378] sm:$0xf0]  ;;  %v2005_v29 = vor.u32 %v2851_v23, %v2002_v24  ;;  %v2849_v31 = vld [vmem:[%s4458_s1 + $0x254] sm:$0xf0]  ;;  %v2112_v32 = vld [vmem:[%s4458_s1 + $0x348] sm:$0xf] }
  0x26   :  { %505 = vmatpush.bf16.msrb.mxu3 %v2197_v47  ;;  %448 = vmatmul.bf16.vlgmr.msra.gmra.mxu2 %v3313_v51  ;;  %v2133_v33 = vor.u32 %v2883_v25, %v2130_v26  ;;  %v2881_v34 = vld [vmem:[%s4458_s1 + $0x354] sm:$0xf0]  ;;  %v2847_v35 = vld [vmem:[%s4458_s1 + $0x24c] sm:$0xf]  ;;  %v1986_v36 = vld [vmem:[%s4458_s1 + $0x258] sm:$0xf0]  ;;  %v1985_v39 = vor.u32 %v2849_v31, %v1984_v30 }
  0x27   :  { %461 = vmatmul.bf16.vlgmr.msra.gmra.mxu3 %v3321_v54  ;;  %v2879_v37 = vld [vmem:[%s4458_s1 + $0x34c] sm:$0xf]  ;;  %v2114_v38 = vld [vmem:[%s4458_s1 + $0x358] sm:$0xf0]  ;;  %v2113_v40 = vor.u32 %v2881_v34, %v2112_v32  ;;  %v1989_v41 = vor.u32 %v2847_v35, %v1986_v36  ;;  %v1968_v42 = vld [vmem:[%s4458_s1 + $0x228] sm:$0xf] }
  0x28   :  { %467 = vmatpush.bf16.msrb.mxu0 %v2049_v55  ;;  %v2845_v43 = vld [vmem:[%s4458_s1 + $0x234] sm:$0xf0]  ;;  %v2096_v44 = vld [vmem:[%s4458_s1 + $0x328] sm:$0xf]  ;;  %v2117_v45 = vor.u32 %v2879_v37, %v2114_v38  ;;  %v2843_v47 = vld [vmem:[%s4458_s1 + $0x22c] sm:$0xf] }
  0x29   :  { %480 = vmatpush.bf16.msrb.mxu1 %v2177_v56  ;;  %493 = vmatpush.bf16.msrb.mxu2 %v2053_v57  ;;  %v2877_v46 = vld [vmem:[%s4458_s1 + $0x334] sm:$0xf0]  ;;  %v1970_v48 = vld [vmem:[%s4458_s1 + $0x238] sm:$0xf0]  ;;  %v2875_v49 = vld [vmem:[%s4458_s1 + $0x32c] sm:$0xf]  ;;  %v1969_v52 = vor.u32 %v2845_v43, %v1968_v42 }
  0x2a   :  { %506 = vmatpush.bf16.msrb.mxu3 %v2181_v61  ;;  %v2098_v50 = vld [vmem:[%s4458_s1 + $0x338] sm:$0xf0]  ;;  %v2097_v53 = vor.u32 %v2877_v46, %v2096_v44  ;;  %v1973_v55 = vor.u32 %v2843_v47, %v1970_v48  ;;  %v1952_v56 = vld [vmem:[%s4458_s1 + $0x208] sm:$0xf]  ;;  %v2841_v57 = vld [vmem:[%s4458_s1 + $0x214] sm:$0xf0] }
  0x2b   :  { %v2080_v58 = vld [vmem:[%s4458_s1 + $0x308] sm:$0xf]  ;;  %v2101_v59 = vor.u32 %v2875_v49, %v2098_v50  ;;  %v2873_v60 = vld [vmem:[%s4458_s1 + $0x314] sm:$0xf0]  ;;  %v2839_v61 = vld [vmem:[%s4458_s1 + $0x20c] sm:$0xf]  ;;  %v1953_v1 = vor.u32 %v2841_v57, %v1952_v56 }
  0x2c   :  { %468 = vmatpush.bf16.msrb.mxu0 %v2033_v3  ;;  %v1954_v62 = vld [vmem:[%s4458_s1 + $0x218] sm:$0xf0]  ;;  %v2871_v63 = vld [vmem:[%s4458_s1 + $0x30c] sm:$0xf]  ;;  %v2081_v2 = vor.u32 %v2873_v60, %v2080_v58  ;;  %v2440_v22 = vld [vmem:[%s4460_s2 + $0x4e0] sm:$0xf] }
  0x2d   :  { %481 = vmatpush.bf16.msrb.mxu1 %v2161_v4  ;;  %494 = vmatpush.bf16.msrb.mxu2 %v2037_v5  ;;  %v2082_v0 = vld [vmem:[%s4458_s1 + $0x318] sm:$0xf0]  ;;  %v1957_v3 = vor.u32 %v2839_v61, %v1954_v62  ;;  %v2932_v23 = vld [vmem:[%s4460_s2 + $0x4ec] sm:$0xf0]  ;;  %v2568_v26 = vld [vmem:[%s4460_s2 + $0x5e0] sm:$0xf] }
  0x2e   :  { %507 = vmatpush.bf16.msrb.mxu3 %v2165_v9  ;;  %v2085_v4 = vor.u32 %v2871_v63, %v2082_v0  ;;  %v2441_v25 = vor.u32 %v2932_v23, %v2440_v22  ;;  %v2696_v32 = vld [vmem:[%s4460_s2 + $0x6e0] sm:$0xf]  ;;  %v3028_v38 = vld [vmem:[%s4460_s2 + $0x7ec] sm:$0xf0] }
  0x2f   :  { %v2824_v37 = vld [vmem:[%s4460_s2 + $0x7e0] sm:$0xf]  ;;  %v2928_v44 = vld [vmem:[%s4460_s2 + $0x4cc] sm:$0xf0] }
  0x30   :  { %469 = vmatpush.bf16.msrb.mxu0 %v2017_v15  ;;  %v2825_v42 = vor.u32 %v3028_v38, %v2824_v37  ;;  %v2424_v43 = vld [vmem:[%s4460_s2 + $0x4c0] sm:$0xf]  ;;  %v2960_v47 = vld [vmem:[%s4460_s2 + $0x5cc] sm:$0xf0] }
  0x31   :  { %482 = vmatpush.bf16.msrb.mxu1 %v2145_v16  ;;  %495 = vmatpush.bf16.msrb.mxu2 %v2021_v17  ;;  %v2552_v46 = vld [vmem:[%s4460_s2 + $0x5c0] sm:$0xf]  ;;  %v2924_v0 = vld [vmem:[%s4460_s2 + $0x4ac] sm:$0xf0] }
  0x32   :  { %508 = vmatpush.bf16.msrb.mxu3 %v2149_v21  ;;  %v2808_v58 = vld [vmem:[%s4460_s2 + $0x7c0] sm:$0xf]  ;;  %v2948_v38 = vld [vmem:[%s4460_s2 + $0x56c] sm:$0xf0] }
  0x33   :  { %v2408_v63 = vld [vmem:[%s4460_s2 + $0x4a0] sm:$0xf] }
  0x34   :  { %470 = vmatpush.bf16.msrb.mxu0 %v2001_v27  ;;  %v2964_v27 = vld [vmem:[%s4460_s2 + $0x5ec] sm:$0xf0]  ;;  %v2648_v22 = vld [vmem:[%s4460_s2 + $0x680] sm:$0xf] }
  0x35   :  { %483 = vmatpush.bf16.msrb.mxu1 %v2129_v28  ;;  %496 = vmatpush.bf16.msrb.mxu2 %v2005_v29  ;;  %v2569_v31 = vor.u32 %v2964_v27, %v2568_v26  ;;  %v2776_v26 = vld [vmem:[%s4460_s2 + $0x780] sm:$0xf] }
  0x36   :  { %509 = vmatpush.bf16.msrb.mxu3 %v2133_v33  ;;  %v2996_v33 = vld [vmem:[%s4460_s2 + $0x6ec] sm:$0xf0] }
  0x37   :  { %v2697_v36 = vor.u32 %v2996_v33, %v2696_v32  ;;  %v2376_v33 = vld [vmem:[%s4460_s2 + $0x460] sm:$0xf] }
  0x38   :  { %471 = vmatpush.bf16.msrb.mxu0 %v1985_v39 }
  0x39   :  { %484 = vmatpush.bf16.msrb.mxu1 %v2113_v40  ;;  %497 = vmatpush.bf16.msrb.mxu2 %v1989_v41 }
  0x3a   :  { %510 = vmatpush.bf16.msrb.mxu3 %v2117_v45  ;;  %v2425_v45 = vor.u32 %v2928_v44, %v2424_v43 }
  0x3c   :  { %472 = vmatpush.bf16.msrb.mxu0 %v1969_v52  ;;  %v2553_v52 = vor.u32 %v2960_v47, %v2552_v46  ;;  %v3012_v46 = vld [vmem:[%s4460_s2 + $0x76c] sm:$0xf0] }
  0x3d   :  { %485 = vmatpush.bf16.msrb.mxu1 %v2097_v53  ;;  %498 = vmatpush.bf16.msrb.mxu2 %v1973_v55  ;;  %v2680_v53 = vld [vmem:[%s4460_s2 + $0x6c0] sm:$0xf]  ;;  %v2992_v55 = vld [vmem:[%s4460_s2 + $0x6cc] sm:$0xf0] }
  0x3e   :  { %511 = vmatpush.bf16.msrb.mxu3 %v2101_v59  ;;  %v2681_v57 = vor.u32 %v2992_v55, %v2680_v53  ;;  %v3024_v59 = vld [vmem:[%s4460_s2 + $0x7cc] sm:$0xf0]  ;;  %v2488_v55 = vld [vmem:[%s4460_s2 + $0x540] sm:$0xf] }
  0x3f   :  { %v2809_v62 = vor.u32 %v3024_v59, %v2808_v58  ;;  %v2912_v53 = vld [vmem:[%s4460_s2 + $0x44c] sm:$0xf0] }
  0x40   :  { %473 = vmatpush.bf16.msrb.mxu0 %v1953_v1  ;;  %v2409_v1 = vor.u32 %v2924_v0, %v2408_v63  ;;  %v2944_v59 = vld [vmem:[%s4460_s2 + $0x54c] sm:$0xf0]  ;;  %v2744_v0 = vld [vmem:[%s4460_s2 + $0x740] sm:$0xf] }
  0x41   :  { %486 = vmatpush.bf16.msrb.mxu1 %v2081_v2  ;;  %499 = vmatpush.bf16.msrb.mxu2 %v1957_v3  ;;  %v2536_v2 = vld [vmem:[%s4460_s2 + $0x5a0] sm:$0xf]  ;;  %v2956_v3 = vld [vmem:[%s4460_s2 + $0x5ac] sm:$0xf0] }
  0x42   :  { %512 = vmatpush.bf16.msrb.mxu3 %v2085_v4  ;;  %v2664_v4 = vld [vmem:[%s4460_s2 + $0x6a0] sm:$0xf]  ;;  %v2976_v63 = vld [vmem:[%s4460_s2 + $0x64c] sm:$0xf0] }
  0x43   :  { %474 = vmatmul.bf16.vlgmr.msrb.gmra.mxu0 %v3313_v51 }
  0x44   :  { %487 = vmatmul.bf16.vlgmr.msrb.gmra.mxu1 %v3321_v54  ;;  %500 = vmatmul.bf16.vlgmr.msrb.gmra.mxu2 %v3313_v51 }
  0x45   :  { %513 = vmatmul.bf16.vlgmr.msrb.gmra.mxu3 %v3321_v54  ;;  %1472 = vmatpush.bf16.msra.mxu0 %v2441_v25  ;;  %v2984_v25 = vld [vmem:[%s4460_s2 + $0x68c] sm:$0xf0] }
  0x46   :  { %1485 = vmatpush.bf16.msra.mxu1 %v2569_v31  ;;  %1498 = vmatpush.bf16.msra.mxu2 %v2697_v36  ;;  %v3016_v31 = vld [vmem:[%s4460_s2 + $0x78c] sm:$0xf0] }
  0x47   :  { %1511 = vmatpush.bf16.msra.mxu3 %v2825_v42  ;;  %v2777_v32 = vor.u32 %v3016_v31, %v2776_v26 }
  0x49   :  { %1473 = vmatpush.bf16.msra.mxu0 %v2425_v45  ;;  %v2760_v45 = vld [vmem:[%s4460_s2 + $0x760] sm:$0xf] }
  0x4a   :  { %1486 = vmatpush.bf16.msra.mxu1 %v2553_v52  ;;  %1499 = vmatpush.bf16.msra.mxu2 %v2681_v57  ;;  %v2360_v52 = vld [vmem:[%s4460_s2 + $0x440] sm:$0xf] }
  0x4b   :  { %1512 = vmatpush.bf16.msra.mxu3 %v2809_v62  ;;  %v2361_v58 = vor.u32 %v2912_v53, %v2360_v52  ;;  %v2489_v62 = vor.u32 %v2944_v59, %v2488_v55  ;;  %v2442_v59 = vld [vmem:[%s4460_s2 + $0x4f0] sm:$0xf0] }
  0x4d   :  { %1474 = vmatpush.bf16.msra.mxu0 %v2409_v1 }
  0xa0   :  { %v423_v5 = vpop.f32.mrf.mxu0 }
  0xa1   :  { %v436_v6 = vpop.f32.mrf.mxu1 }
  0xa2   :  { %v3475_v7 = vadd.f32 %v436_v6, %v423_v5 }
  0xa4   :  { %v519_v8 = vsel %vm518_vm0, %v3475_v7, 0.0  ;;  %v551_v9 = vmul.f32 %v3475_v7, %v3475_v7 }
  0xa5   :  { %v520_v10 = vrot.slane %v519_v8, 4 }
  0xa6   :  { %v555_v11 = vsel %vm518_vm0, %v551_v9, 0.0  ;;  %v2537_v9 = vor.u32 %v2956_v3, %v2536_v2 }
  0xa7   :  { %v521_v12 = vadd.f32 %v520_v10, %v519_v8  ;;  %v556_v13 = vrot.slane %v555_v11, 4  ;;  %v2988_v10 = vld [vmem:[%s4460_s2 + $0x6ac] sm:$0xf0] }
  0xa8   :  { %v425_v15 = vpop.f32.mrf.mxu0  ;;  %1487 = vmatpush.bf16.msra.mxu1 %v2537_v9 }
  0xa9   :  { %v449_v14 = vpop.f32.mrf.mxu2  ;;  %v438_v16 = vpop.f32.mrf.mxu1  ;;  %v557_v17 = vadd.f32 %v556_v13, %v555_v11  ;;  %v522_v18 = vrot.slane %v521_v12, 2  ;;  %v2792_v11 = vld [vmem:[%s4460_s2 + $0x7a0] sm:$0xf]  ;;  %v2665_v13 = vor.u32 %v2988_v10, %v2664_v4 }
  0xaa   :  { %v462_v51 = vpop.f32.mrf.mxu3 }
  0xab   :  { %v3482_v54 = vadd.f32 %v462_v51, %v449_v14  ;;  %v558_v28 = vrot.slane %v557_v17, 2  ;;  %v523_v34 = vadd.f32 %v522_v18, %v521_v12  ;;  %v3020_v14 = vld [vmem:[%s4460_s2 + $0x7ac] sm:$0xf0]  ;;  %1500 = vmatpush.bf16.msra.mxu2 %v2665_v13 }
  0xac   :  { %v2793_v16 = vor.u32 %v3020_v14, %v2792_v11  ;;  %v2920_v18 = vld [vmem:[%s4460_s2 + $0x48c] sm:$0xf0]  ;;  %v2344_v11 = vld [vmem:[%s4460_s2 + $0x420] sm:$0xf] }
  0xad   :  { %v526_v19 = vsel %vm518_vm0, %v3482_v54, 0.0  ;;  %v552_v20 = vmul.f32 %v3482_v54, %v3482_v54  ;;  %v559_v48 = vadd.f32 %v558_v28, %v557_v17  ;;  %v524_v56 = vrot.slane %v523_v34, 1  ;;  %v2392_v17 = vld [vmem:[%s4460_s2 + $0x480] sm:$0xf] }
  0xae   :  { %v527_v21 = vrot.slane %v526_v19, 4  ;;  %1513 = vmatpush.bf16.msra.mxu3 %v2793_v16  ;;  %v2472_v16 = vld [vmem:[%s4460_s2 + $0x520] sm:$0xf] }
  0xaf   :  { %v562_v24 = vsel %vm518_vm0, %v552_v20, 0.0  ;;  %v560_v5 = vrot.slane %v559_v48, 1  ;;  %v525_v12 = vadd.f32 %v524_v56, %v523_v34  ;;  %v2520_v20 = vld [vmem:[%s4460_s2 + $0x580] sm:$0xf]  ;;  %v2916_v34 = vld [vmem:[%s4460_s2 + $0x46c] sm:$0xf0] }
  0xb0   :  { %v528_v29 = vadd.f32 %v527_v21, %v526_v19  ;;  %v563_v30 = vrot.slane %v562_v24, 4  ;;  %v2393_v19 = vor.u32 %v2920_v18, %v2392_v17  ;;  %v2952_v21 = vld [vmem:[%s4460_s2 + $0x58c] sm:$0xf0]  ;;  %v2377_v37 = vor.u32 %v2916_v34, %v2376_v33  ;;  %v2600_v18 = vld [vmem:[%s4460_s2 + $0x620] sm:$0xf] }
  0xb1   :  { %v451_v35 = vpop.f32.mrf.mxu2  ;;  %v561_v23 = vadd.f32 %v560_v5, %v559_v48  ;;  %v3584_v27 = vmul.f32 0.5, %v525_v12  ;;  %v3008_v5 = vld [vmem:[%s4460_s2 + $0x74c] sm:$0xf0]  ;;  %v2328_v33 = vld [vmem:[%s4460_s2 + $0x400] sm:$0xf] }
  0xb2   :  { %v529_v39 = vrot.slane %v528_v29, 2  ;;  %v564_v40 = vadd.f32 %v563_v30, %v562_v24  ;;  %v464_v41 = vpop.f32.mrf.mxu3  ;;  %v2521_v24 = vor.u32 %v2952_v21, %v2520_v20  ;;  %1475 = vmatpush.bf16.msra.mxu0 %v2393_v19  ;;  %v2649_v30 = vor.u32 %v2984_v25, %v2648_v22  ;;  %v2504_v35 = vld [vmem:[%s4460_s2 + $0x560] sm:$0xf]  ;;  %1514 = vmatpush.bf16.msra.mxu3 %v2777_v32  ;;  %v2908_v12 = vld [vmem:[%s4460_s2 + $0x42c] sm:$0xf0] }
  0xb3   :  { %v583_v41 = vmul.f32 0.5, %v561_v23  ;;  %v2505_v43 = vor.u32 %v2948_v38, %v2504_v35  ;;  %v587_v47 = vmul.f32 %v3584_v27, %v3584_v27  ;;  %v2745_v10 = vor.u32 %v3008_v5, %v2744_v0  ;;  %v2940_v17 = vld [vmem:[%s4460_s2 + $0x52c] sm:$0xf0]  ;;  %v2456_v38 = vld [vmem:[%s4460_s2 + $0x500] sm:$0xf] }
  0xb4   :  { %v530_v49 = vadd.f32 %v529_v39, %v528_v29  ;;  %v565_v50 = vrot.slane %v564_v40, 2  ;;  %1488 = vmatpush.bf16.msra.mxu1 %v2521_v24  ;;  %1501 = vmatpush.bf16.msra.mxu2 %v2649_v30  ;;  %v2632_v39 = vld [vmem:[%s4460_s2 + $0x660] sm:$0xf]  ;;  %v2972_v23 = vld [vmem:[%s4460_s2 + $0x62c] sm:$0xf0]  ;;  %v2473_v26 = vor.u32 %v2940_v17, %v2472_v16 }
  0xb5   :  { %v591_v1 = vsub.f32 %v583_v41, %v587_v47  ;;  %v2728_v24 = vld [vmem:[%s4460_s2 + $0x720] sm:$0xf]  ;;  %v2904_v34 = vld [vmem:[%s4460_s2 + $0x40c] sm:$0xf0] }
  0xb6   :  { %v531_v60 = vrot.slane %v530_v49, 1  ;;  %v566_v61 = vadd.f32 %v565_v50, %v564_v40  ;;  %v2980_v40 = vld [vmem:[%s4460_s2 + $0x66c] sm:$0xf0]  ;;  %1476 = vmatpush.bf16.msra.mxu0 %v2377_v37  ;;  %v2761_v50 = vor.u32 %v3012_v46, %v2760_v45 }
  0xb7   :  { %v2633_v44 = vor.u32 %v2980_v40, %v2632_v39  ;;  %v3673_v25 = vadd.f32 1e-05, %v591_v1  ;;  %v2936_v39 = vld [vmem:[%s4460_s2 + $0x50c] sm:$0xf0]  ;;  %v2962_v1 = vld [vmem:[%s4460_s2 + $0x5e4] sm:$0xf] }
  0xb8   :  { %v532_v6 = vadd.f32 %v531_v60, %v530_v49  ;;  %v567_v8 = vrot.slane %v566_v61, 1  ;;  %1489 = vmatpush.bf16.msra.mxu1 %v2505_v43  ;;  %v2616_v60 = vld [vmem:[%s4460_s2 + $0x640] sm:$0xf]  ;;  %1515 = vmatpush.bf16.msra.mxu3 %v2761_v50  ;;  %v2457_v47 = vor.u32 %v2936_v39, %v2456_v38  ;;  %v3000_v50 = vld [vmem:[%s4460_s2 + $0x70c] sm:$0xf0] }
  0xb9   :  { %1502 = vmatpush.bf16.msra.mxu2 %v2633_v44  ;;  %v2617_v4 = vor.u32 %v2976_v63, %v2616_v60  ;;  %v2584_v43 = vld [vmem:[%s4460_s2 + $0x600] sm:$0xf]  ;;  %v2968_v44 = vld [vmem:[%s4460_s2 + $0x60c] sm:$0xf0]  ;;  %v2922_v38 = vld [vmem:[%s4460_s2 + $0x4a4] sm:$0xf]  ;;  %vm605_vm7 = vweird.f32 %v3673_v25 }
  0xba   :  { %v3561_v51 = vmul.f32 0.5, %v532_v6  ;;  %v568_v15 = vadd.f32 %v567_v8, %v566_v61  ;;  %1477 = vmatpush.bf16.msra.mxu0 %v2361_v58  ;;  %v2930_v58 = vld [vmem:[%s4460_s2 + $0x4e4] sm:$0xf] }
  0xbb   :  { %v2445_v0 = vor.u32 %v2930_v58, %v2442_v59  ;;  %v2794_v59 = vld [vmem:[%s4460_s2 + $0x7b0] sm:$0xf0] }
  0xbc   :  { %v584_v28 = vmul.f32 0.5, %v568_v15  ;;  %v588_v29 = vmul.f32 %v3561_v51, %v3561_v51  ;;  %1490 = vmatpush.bf16.msra.mxu1 %v2489_v62  ;;  %v2345_v15 = vor.u32 %v2908_v12, %v2344_v11  ;;  %1516 = vmatpush.bf16.msra.mxu3 %v2745_v10  ;;  %v2698_v10 = vld [vmem:[%s4460_s2 + $0x6f0] sm:$0xf0] }
  0xbd   :  { %1503 = vmatpush.bf16.msra.mxu2 %v2617_v4 }
  0xbe   :  { %v592_v48 = vsub.f32 %v584_v28, %v588_v29  ;;  %1478 = vmatpush.bf16.msra.mxu0 %v2345_v15  ;;  %v2601_v28 = vor.u32 %v2972_v23, %v2600_v18  ;;  %v3004_v29 = vld [vmem:[%s4460_s2 + $0x72c] sm:$0xf0]  ;;  %v2926_v15 = vld [vmem:[%s4460_s2 + $0x4c4] sm:$0xf] }
  0xbf   :  { %v2729_v37 = vor.u32 %v3004_v29, %v2728_v24 }
  0xc0   :  { %v475_v36 = vpop.f32.mrf.mxu0  ;;  %v3644_v2 = vadd.f32 1e-05, %v592_v48  ;;  %1491 = vmatpush.bf16.msra.mxu1 %v2473_v26  ;;  %v2712_v48 = vld [vmem:[%s4460_s2 + $0x700] sm:$0xf]  ;;  %v2958_v26 = vld [vmem:[%s4460_s2 + $0x5c4] sm:$0xf] }
  0xc1   :  { %v488_v42 = vpop.f32.mrf.mxu1  ;;  %1504 = vmatpush.bf16.msra.mxu2 %v2601_v28  ;;  %1517 = vmatpush.bf16.msra.mxu3 %v2729_v37  ;;  %v2713_v63 = vor.u32 %v3000_v50, %v2712_v48  ;;  %v2554_v28 = vld [vmem:[%s4460_s2 + $0x5d0] sm:$0xf0] }
  0xc2   :  { %v3617_v49 = vadd.f32 %v488_v42, %v475_v36  ;;  %3030 = vrsqrt.f32 %v3644_v2  ;;  %v2329_v42 = vor.u32 %v2904_v34, %v2328_v33  ;;  %v2682_v33 = vld [vmem:[%s4460_s2 + $0x6d0] sm:$0xf0]  ;;  %vm615_vm1 = vweird.f32 %v3644_v2 }
  0xc3   :  { %3032 = vrsqrt.f32 %v3673_v25  ;;  %v2810_v37 = vld [vmem:[%s4460_s2 + $0x7d0] sm:$0xf0] }
  0xc4   :  { %v533_v56 = vsel %vm518_vm0, %v3617_v49, 0.0  ;;  %v553_v57 = vmul.f32 %v3617_v49, %v3617_v49  ;;  %1479 = vmatpush.bf16.msra.mxu0 %v2329_v42  ;;  %1492 = vmatpush.bf16.msra.mxu1 %v2457_v47  ;;  %v2538_v47 = vld [vmem:[%s4460_s2 + $0x5b0] sm:$0xf0] }
  0xc5   :  { %v534_v61 = vrot.slane %v533_v56, 4  ;;  %1518 = vmatpush.bf16.msra.mxu3 %v2713_v63 }
  0xc6   :  { %v569_v3 = vsel %vm518_vm0, %v553_v57, 0.0  ;;  %v2585_v57 = vor.u32 %v2968_v44, %v2584_v43  ;;  %v2410_v43 = vld [vmem:[%s4460_s2 + $0x4b0] sm:$0xf0] }
  0xc7   :  { %v535_v6 = vadd.f32 %v534_v61, %v533_v56  ;;  %v570_v8 = vrot.slane %v569_v3, 4  ;;  %v501_v9 = vpop.f32.mrf.mxu2 }
  0xc8   :  { %v514_v13 = vpop.f32.mrf.mxu3  ;;  %v477_v14 = vpop.f32.mrf.mxu0  ;;  %1505 = vmatpush.bf16.msra.mxu2 %v2585_v57  ;;  %1524 = vmatpush.bf16.msrb.mxu0 %v2445_v0 }
  0xc9   :  { %v536_v19 = vrot.slane %v535_v6, 2  ;;  %v571_v20 = vadd.f32 %v570_v8, %v569_v3  ;;  %v3665_v21 = vadd.f32 %v514_v13, %v501_v9  ;;  %v490_v22 = vpop.f32.mrf.mxu1  ;;  %v3714_v60 = vpop.eup %3030  ;;  %v2570_v3 = vld [vmem:[%s4460_s2 + $0x5f0] sm:$0xf0]  ;;  %v2994_v9 = vld [vmem:[%s4460_s2 + $0x6e4] sm:$0xf] }
  0xca   :  { %v2573_v8 = vor.u32 %v2962_v1, %v2570_v3  ;;  %v2701_v12 = vor.u32 %v2994_v9, %v2698_v10  ;;  %v3026_v13 = vld [vmem:[%s4460_s2 + $0x7e4] sm:$0xf]  ;;  %v2826_v14 = vld [vmem:[%s4460_s2 + $0x7f0] sm:$0xf0]  ;;  %v610_v16 = vmul.f32 %v3714_v60, %v3644_v2  ;;  %vm616_vm2 = vweird.f32 %v3714_v60 }
  0xcb   :  { %v537_v30 = vadd.f32 %v536_v19, %v535_v6  ;;  %v572_v31 = vrot.slane %v571_v20, 2  ;;  %v540_v32 = vsel %vm518_vm0, %v3665_v21, 0.0  ;;  %v554_v36 = vmul.f32 %v3665_v21, %v3665_v21  ;;  %v2982_v9 = vld [vmem:[%s4460_s2 + $0x684] sm:$0xf]  ;;  %v2650_v10 = vld [vmem:[%s4460_s2 + $0x690] sm:$0xf0]  ;;  %vm3937_vm3 = vmor %vm615_vm1, %vm616_vm2 }
  0xcc   :  { %v541_v35 = vrot.slane %v540_v32, 4  ;;  %1537 = vmatpush.bf16.msrb.mxu1 %v2573_v8  ;;  %1550 = vmatpush.bf16.msrb.mxu2 %v2701_v12  ;;  %v2829_v23 = vor.u32 %v3026_v13, %v2826_v14  ;;  %v611_v39 = vmul.f32 %v3714_v60, %v610_v16  ;;  %v2653_v14 = vor.u32 %v2982_v9, %v2650_v10  ;;  %v2914_v16 = vld [vmem:[%s4460_s2 + $0x464] sm:$0xf]  ;;  %v2330_v10 = vld [vmem:[%s4460_s2 + $0x410] sm:$0xf0] }
  0xcd   :  { %v538_v40 = vrot.slane %v537_v30, 1  ;;  %v573_v41 = vadd.f32 %v572_v31, %v571_v20  ;;  %v576_v46 = vsel %vm518_vm0, %v554_v36, 0.0  ;;  %v2426_v20 = vld [vmem:[%s4460_s2 + $0x4d0] sm:$0xf0]  ;;  %v2557_v31 = vor.u32 %v2958_v26, %v2554_v28  ;;  %v3022_v36 = vld [vmem:[%s4460_s2 + $0x7c4] sm:$0xf] }
  0xce   :  { %v542_v45 = vadd.f32 %v541_v35, %v540_v32  ;;  %v577_v55 = vrot.slane %v576_v46, 4  ;;  %v2429_v24 = vor.u32 %v2926_v15, %v2426_v20  ;;  %v2990_v32 = vld [vmem:[%s4460_s2 + $0x6c4] sm:$0xf]  ;;  %1563 = vmatpush.bf16.msrb.mxu3 %v2829_v23  ;;  %v2813_v42 = vor.u32 %v3022_v36, %v2810_v37  ;;  %v2778_v15 = vld [vmem:[%s4460_s2 + $0x790] sm:$0xf0] }
  0xcf   :  { %v539_v52 = vadd.f32 %v538_v40, %v537_v30  ;;  %v574_v53 = vrot.slane %v573_v41, 1  ;;  %v503_v56 = vpop.f32.mrf.mxu2  ;;  %v2685_v35 = vor.u32 %v2990_v32, %v2682_v33  ;;  %v3805_v63 = vmul.f32 0.5, %v611_v39  ;;  %v2946_v20 = vld [vmem:[%s4460_s2 + $0x564] sm:$0xf]  ;;  %v2762_v33 = vld [vmem:[%s4460_s2 + $0x770] sm:$0xf0] }
  0xd0   :  { %v543_v61 = vrot.slane %v542_v45, 2  ;;  %v516_v62 = vpop.f32.mrf.mxu3  ;;  %v578_v6 = vadd.f32 %v577_v55, %v576_v46  ;;  %1525 = vmatpush.bf16.msrb.mxu0 %v2429_v24  ;;  %1538 = vmatpush.bf16.msrb.mxu1 %v2557_v31  ;;  %v2954_v46 = vld [vmem:[%s4460_s2 + $0x5a4] sm:$0xf]  ;;  %v3792_v56 = vpop.eup %3032 }
  0xd1   :  { %v3722_v4 = vmul.f32 0.5, %v539_v52  ;;  %v575_v5 = vadd.f32 %v574_v53, %v573_v41  ;;  %1551 = vmatpush.bf16.msrb.mxu2 %v2685_v35  ;;  %v2541_v50 = vor.u32 %v2954_v46, %v2538_v47  ;;  %v2986_v52 = vld [vmem:[%s4460_s2 + $0x6a4] sm:$0xf]  ;;  %v2666_v53 = vld [vmem:[%s4460_s2 + $0x6b0] sm:$0xf0]  ;;  %v600_v12 = vmul.f32 %v3792_v56, %v3673_v25 }
  0xd2   :  { %v544_v11 = vadd.f32 %v543_v61, %v542_v45  ;;  %v579_v19 = vrot.slane %v578_v6, 2  ;;  %v2413_v45 = vor.u32 %v2922_v38, %v2410_v43  ;;  %v3018_v55 = vld [vmem:[%s4460_s2 + $0x7a4] sm:$0xf]  ;;  %1564 = vmatpush.bf16.msrb.mxu3 %v2813_v42  ;;  %v2669_v58 = vor.u32 %v2986_v52, %v2666_v53  ;;  %v2394_v62 = vld [vmem:[%s4460_s2 + $0x490] sm:$0xf0] }
  0xd3   :  { %v585_v17 = vmul.f32 0.5, %v575_v5  ;;  %v589_v18 = vmul.f32 %v3722_v4, %v3722_v4  ;;  %v2918_v61 = vld [vmem:[%s4460_s2 + $0x484] sm:$0xf]  ;;  %v2797_v1 = vor.u32 %v3018_v55, %v2794_v59  ;;  %v2362_v35 = vld [vmem:[%s4460_s2 + $0x450] sm:$0xf0]  ;;  %v601_v36 = vmul.f32 %v3792_v56, %v600_v12 }
  0xd4   :  { %v545_v22 = vrot.slane %v544_v11, 1  ;;  %v580_v30 = vadd.f32 %v579_v19, %v578_v6  ;;  %1526 = vmatpush.bf16.msrb.mxu0 %v2413_v45  ;;  %1539 = vmatpush.bf16.msrb.mxu1 %v2541_v50  ;;  %v2397_v3 = vor.u32 %v2918_v61, %v2394_v62  ;;  %v2950_v5 = vld [vmem:[%s4460_s2 + $0x584] sm:$0xf]  ;;  %v2522_v6 = vld [vmem:[%s4460_s2 + $0x590] sm:$0xf0]  ;;  %v613_v50 = vsub.f32 1.5, %v3805_v63 }
  0xd5   :  { %v593_v29 = vsub.f32 %v585_v17, %v589_v18  ;;  %1552 = vmatpush.bf16.msrb.mxu2 %v2669_v58  ;;  %v2525_v8 = vor.u32 %v2950_v5, %v2522_v6  ;;  %v2378_v17 = vld [vmem:[%s4460_s2 + $0x470] sm:$0xf0]  ;;  %v2978_v23 = vld [vmem:[%s4460_s2 + $0x664] sm:$0xf]  ;;  %v602_v62 = vmul.f32 0.5, %v601_v36  ;;  %vm606_vm8 = vweird.f32 %v3792_v56 }
  0xd6   :  { %v546_v34 = vadd.f32 %v545_v22, %v544_v11  ;;  %v581_v41 = vrot.slane %v580_v30, 1  ;;  %v3014_v11 = vld [vmem:[%s4460_s2 + $0x784] sm:$0xf]  ;;  %1565 = vmatpush.bf16.msrb.mxu3 %v2797_v1  ;;  %v2381_v19 = vor.u32 %v2914_v16, %v2378_v17  ;;  %v2506_v22 = vld [vmem:[%s4460_s2 + $0x570] sm:$0xf0]  ;;  %v614_v16 = vmul.f32 %v3714_v60, %v613_v50  ;;  %vm607_vm14 = vmor %vm605_vm7, %vm606_vm8 }
  0xd7   :  { %v3769_v40 = vadd.f32 1e-05, %v593_v29  ;;  %v2781_v18 = vor.u32 %v3014_v11, %v2778_v15  ;;  %v2509_v28 = vor.u32 %v2946_v20, %v2506_v22  ;;  %v2634_v29 = vld [vmem:[%s4460_s2 + $0x670] sm:$0xf0]  ;;  %v2942_v37 = vld [vmem:[%s4460_s2 + $0x544] sm:$0xf] }
  0xd8   :  { %v3774_v44 = vmul.f32 0.5, %v546_v34  ;;  %v582_v48 = vadd.f32 %v581_v41, %v580_v30  ;;  %1527 = vmatpush.bf16.msrb.mxu0 %v2397_v3  ;;  %1540 = vmatpush.bf16.msrb.mxu1 %v2525_v8  ;;  %v3010_v30 = vld [vmem:[%s4460_s2 + $0x764] sm:$0xf]  ;;  %v2637_v32 = vor.u32 %v2978_v23, %v2634_v29  ;;  %v2490_v38 = vld [vmem:[%s4460_s2 + $0x550] sm:$0xf0]  ;;  %v603_v23 = vsub.f32 1.5, %v602_v62 }
  0xd9   :  { %3034 = vrsqrt.f32 %v3769_v40  ;;  %1553 = vmatpush.bf16.msrb.mxu2 %v2653_v14  ;;  %v2910_v34 = vld [vmem:[%s4460_s2 + $0x444] sm:$0xf]  ;;  %v2765_v41 = vor.u32 %v3010_v30, %v2762_v33  ;;  %v2618_v45 = vld [vmem:[%s4460_s2 + $0x650] sm:$0xf0]  ;;  %v2493_v46 = vor.u32 %v2942_v37, %v2490_v38  ;;  %vm625_vm5 = vweird.f32 %v3769_v40  ;;  %v2560_v37 = vld [vmem:[%s4460_s2 + $0x5c8] sm:$0xf] }
  0xda   :  { %v590_v57 = vmul.f32 %v3774_v44, %v3774_v44  ;;  %v586_v0 = vmul.f32 0.5, %v582_v48  ;;  %1566 = vmatpush.bf16.msrb.mxu3 %v2781_v18  ;;  %v2365_v42 = vor.u32 %v2910_v34, %v2362_v35  ;;  %v2974_v43 = vld [vmem:[%s4460_s2 + $0x644] sm:$0xf]  ;;  %v2746_v48 = vld [vmem:[%s4460_s2 + $0x750] sm:$0xf0]  ;;  %v618_v34 = vsel %vm3937_vm3, %v3714_v60, %v614_v16 }
  0xdb   :  { %v3006_v47 = vld [vmem:[%s4460_s2 + $0x744] sm:$0xf]  ;;  %v2621_v53 = vor.u32 %v2974_v43, %v2618_v45  ;;  %v2474_v59 = vld [vmem:[%s4460_s2 + $0x530] sm:$0xf0]  ;;  %v604_v38 = vmul.f32 %v3792_v56, %v603_v23  ;;  %v2997_v16 = vld [vmem:[%s4460_s2 + $0x6f4] sm:$0xf0] }
  0xdc   :  { %v594_v13 = vsub.f32 %v586_v0, %v590_v57  ;;  %1528 = vmatpush.bf16.msrb.mxu0 %v2381_v19  ;;  %1541 = vmatpush.bf16.msrb.mxu1 %v2509_v28  ;;  %v2906_v55 = vld [vmem:[%s4460_s2 + $0x424] sm:$0xf]  ;;  %v2346_v57 = vld [vmem:[%s4460_s2 + $0x430] sm:$0xf0]  ;;  %v2749_v63 = vor.u32 %v3006_v47, %v2746_v48  ;;  %v3029_v23 = vld [vmem:[%s4460_s2 + $0x7f4] sm:$0xf0] }
  0xdd   :  { %1554 = vmatpush.bf16.msrb.mxu2 %v2637_v32  ;;  %v2938_v58 = vld [vmem:[%s4460_s2 + $0x524] sm:$0xf]  ;;  %v2349_v0 = vor.u32 %v2906_v55, %v2346_v57  ;;  %v2602_v1 = vld [vmem:[%s4460_s2 + $0x630] sm:$0xf0] }
  0xde   :  { %v3844_v26 = vadd.f32 1e-05, %v594_v13  ;;  %v2970_v61 = vld [vmem:[%s4460_s2 + $0x624] sm:$0xf]  ;;  %1567 = vmatpush.bf16.msrb.mxu3 %v2765_v41  ;;  %v2477_v6 = vor.u32 %v2938_v58, %v2474_v59  ;;  %v2730_v8 = vld [vmem:[%s4460_s2 + $0x730] sm:$0xf0] }
  0xdf   :  { %v3842_v24 = vpop.eup %3034  ;;  %v3002_v3 = vld [vmem:[%s4460_s2 + $0x724] sm:$0xf]  ;;  %v2605_v13 = vor.u32 %v2970_v61, %v2602_v1  ;;  %v2458_v15 = vld [vmem:[%s4460_s2 + $0x510] sm:$0xf0] }
  0xe0   :  { %v620_v31 = vmul.f32 %v3842_v24, %v3769_v40  ;;  %3036 = vrsqrt.f32 %v3844_v26  ;;  %1529 = vmatpush.bf16.msrb.mxu0 %v2365_v42  ;;  %1542 = vmatpush.bf16.msrb.mxu1 %v2493_v46  ;;  %v2902_v9 = vld [vmem:[%s4460_s2 + $0x404] sm:$0xf]  ;;  %v2586_v18 = vld [vmem:[%s4460_s2 + $0x610] sm:$0xf0]  ;;  %v2733_v20 = vor.u32 %v3002_v3, %v2730_v8  ;;  %vm626_vm4 = vweird.f32 %v3842_v24 }
  0xe1   :  { %1555 = vmatpush.bf16.msrb.mxu2 %v2621_v53  ;;  %v2934_v14 = vld [vmem:[%s4460_s2 + $0x504] sm:$0xf]  ;;  %v2333_v22 = vor.u32 %v2902_v9, %v2330_v10  ;;  %v2714_v29 = vld [vmem:[%s4460_s2 + $0x710] sm:$0xf0]  ;;  %vm3949_vm9 = vmor %vm625_vm5, %vm626_vm4  ;;  %vm635_vm10 = vweird.f32 %v3844_v26 }
  0xe2   :  { %v621_v39 = vmul.f32 %v3842_v24, %v620_v31  ;;  %v2966_v17 = vld [vmem:[%s4460_s2 + $0x604] sm:$0xf]  ;;  %1568 = vmatpush.bf16.msrb.mxu3 %v2749_v63  ;;  %v2461_v28 = vor.u32 %v2934_v14, %v2458_v15  ;;  %v3979_v63 = vld [vmem:[%s4462_s4] sm:$0xf] }
  0xe3   :  { %v2998_v2 = vld [vmem:[%s4460_s2 + $0x704] sm:$0xf]  ;;  %v2589_v33 = vor.u32 %v2966_v17, %v2586_v18  ;;  %v2832_v17 = vld [vmem:[%s4460_s2 + $0x7e8] sm:$0xf] }
  0xe4   :  { %v622_v52 = vmul.f32 0.5, %v621_v39  ;;  %1530 = vmatpush.bf16.msrb.mxu0 %v2349_v0  ;;  %1543 = vmatpush.bf16.msrb.mxu1 %v2477_v6  ;;  %v2717_v36 = vor.u32 %v2998_v2, %v2714_v29  ;;  %v643_v39 = vrot.slane %v618_v34, 7  ;;  %v2929_v34 = vld [vmem:[%s4460_s2 + $0x4d4] sm:$0xf0] }
  0xe5   :  { %1556 = vmatpush.bf16.msrb.mxu2 %v2605_v13 }
  0xe6   :  { %v3037_v5 = vpop.eup %3036  ;;  %v623_v11 = vsub.f32 1.5, %v622_v52  ;;  %1569 = vmatpush.bf16.msrb.mxu3 %v2733_v20 }
  0xe7   :  { %v630_v12 = vmul.f32 %v3037_v5, %v3844_v26  ;;  %vm636_vm6 = vweird.f32 %v3037_v5  ;;  %v608_v26 = vsel %vm607_vm14, %v3792_v56, %v604_v38  ;;  %v2961_v38 = vld [vmem:[%s4460_s2 + $0x5d4] sm:$0xf0] }
  0xe8   :  { %v624_v31 = vmul.f32 %v3842_v24, %v623_v11  ;;  %1531 = vmatpush.bf16.msrb.mxu0 %v2333_v22  ;;  %1544 = vmatpush.bf16.msrb.mxu1 %v2461_v28  ;;  %vm637_vm11 = vmor %vm635_vm10, %vm636_vm6  ;;  %v647_v45 = vsel %vm646_vm12, %v608_v26, %v643_v39  ;;  %v2448_v11 = vld [vmem:[%s4460_s2 + $0x4e8] sm:$0xf] }
  0xe9   :  { %v631_v19 = vmul.f32 %v3037_v5, %v630_v12  ;;  %1557 = vmatpush.bf16.msrb.mxu2 %v2589_v33  ;;  %v2432_v33 = vld [vmem:[%s4460_s2 + $0x4c8] sm:$0xf] }
  0xea   :  { %v628_v60 = vsel %vm3949_vm9, %v3842_v24, %v624_v31  ;;  %1570 = vmatpush.bf16.msrb.mxu3 %v2717_v36  ;;  %v3965_v24 = vld [vmem:[%s4461_s3] sm:$0xf]  ;;  %v2833_v36 = vor.u32 %v3029_v23, %v2832_v17  ;;  %v2816_v39 = vld [vmem:[%s4460_s2 + $0x7c8] sm:$0xf]  ;;  %v2977_v23 = vld [vmem:[%s4460_s2 + $0x654] sm:$0xf0] }
  0xeb   :  { %v632_v32 = vmul.f32 0.5, %v631_v19  ;;  %v644_v42 = vrot.slane %v628_v60, 6  ;;  %v2688_v60 = vld [vmem:[%s4460_s2 + $0x6c8] sm:$0xf] }
  0xec   :  { %v2416_v26 = vld [vmem:[%s4460_s2 + $0x4a8] sm:$0xf] }
  0xed   :  { %v633_v35 = vsub.f32 1.5, %v632_v32 }
  0xef   :  { %v634_v40 = vmul.f32 %v3037_v5, %v633_v35 }
  0xf1   :  { %v638_v41 = vsel %vm637_vm11, %v3037_v5, %v634_v40  ;;  %v2993_v40 = vld [vmem:[%s4460_s2 + $0x6d4] sm:$0xf0] }
  0xf2   :  { %v645_v43 = vrot.slane %v638_v41, 5  ;;  %v3025_v41 = vld [vmem:[%s4460_s2 + $0x7d4] sm:$0xf0] }
  0xf4   :  { %v649_v46 = vsel %vm648_vm13, %v644_v42, %v645_v43  ;;  %v2433_v42 = vor.u32 %v2929_v34, %v2432_v33  ;;  %v2561_v43 = vor.u32 %v2961_v38, %v2560_v37 }
  0xf5   :  { %v650_v47 = vsel %vm518_vm0, %v647_v45, %v649_v46  ;;  %v2925_v45 = vld [vmem:[%s4460_s2 + $0x4b4] sm:$0xf0]  ;;  %v2689_v46 = vor.u32 %v2993_v40, %v2688_v60  ;;  %v2480_v60 = vld [vmem:[%s4460_s2 + $0x528] sm:$0xf] }
  0xf6   :  { %v652_v48 = vmul.f32 %v650_v47, %v3965_v24  ;;  %v2817_v47 = vor.u32 %v3025_v41, %v2816_v39  ;;  %v2941_v40 = vld [vmem:[%s4460_s2 + $0x534] sm:$0xf0]  ;;  %v2608_v39 = vld [vmem:[%s4460_s2 + $0x628] sm:$0xf] }
  0xf7   :  { %v2973_v41 = vld [vmem:[%s4460_s2 + $0x634] sm:$0xf0] }
  0xf8   :  { %v654_v50 = vperm.slane %v652_v48, 0  ;;  %v655_v25 = vperm.slane %v652_v48, 1  ;;  %v656_v52 = vperm.slane %v652_v48, 2  ;;  %v657_v53 = vperm.slane %v652_v48, 3  ;;  %v2544_v48 = vld [vmem:[%s4460_s2 + $0x5a8] sm:$0xf] }
  0xfa   :  { %v663_v55 = vmul.f32 %v655_v25, %v3561_v51  ;;  %v664_v57 = vmul.f32 %v656_v52, %v3722_v4  ;;  %v665_v58 = vmul.f32 %v657_v53, %v3774_v44  ;;  %v662_v56 = vmul.f32 %v654_v50, %v3584_v27 }
  0xfb   :  { %v681_v44 = vmul.f32 %v657_v53, %v3665_v21  ;;  %v678_v27 = vmul.f32 %v654_v50, %v3475_v7  ;;  %v679_v3 = vmul.f32 %v655_v25, %v3482_v54  ;;  %v680_v5 = vmul.f32 %v656_v52, %v3617_v49  ;;  %v2933_v7 = vld [vmem:[%s4460_s2 + $0x4f4] sm:$0xf0]  ;;  %v2576_v54 = vld [vmem:[%s4460_s2 + $0x5e8] sm:$0xf] }
  0xfc   :  { %v670_v59 = vrot.slane %v663_v55, 7  ;;  %v671_v61 = vrot.slane %v664_v57, 6  ;;  %v672_v62 = vrot.slane %v665_v58, 5  ;;  %v2965_v49 = vld [vmem:[%s4460_s2 + $0x5f4] sm:$0xf0]  ;;  %v2449_v28 = vor.u32 %v2933_v7, %v2448_v11 }
  0xfd   :  { %v2704_v21 = vld [vmem:[%s4460_s2 + $0x6e8] sm:$0xf]  ;;  %v2577_v2 = vor.u32 %v2965_v49, %v2576_v54  ;;  %v2957_v50 = vld [vmem:[%s4460_s2 + $0x5b4] sm:$0xf0]  ;;  %v2417_v57 = vor.u32 %v2925_v45, %v2416_v26 }
  0xfe   :  { %v673_v0 = vsel %vm646_vm12, %v662_v56, %v670_v59  ;;  %v674_v1 = vsel %vm648_vm13, %v671_v61, %v672_v62  ;;  %v2705_v35 = vor.u32 %v2997_v16, %v2704_v21  ;;  %v2672_v25 = vld [vmem:[%s4460_s2 + $0x6a8] sm:$0xf]  ;;  %v2989_v52 = vld [vmem:[%s4460_s2 + $0x6b4] sm:$0xf0]  ;;  %v2545_v58 = vor.u32 %v2957_v50, %v2544_v48 }
  0xff   :  { %v675_v51 = vsel %vm518_vm0, %v673_v0, %v674_v1  ;;  %v2800_v53 = vld [vmem:[%s4460_s2 + $0x7a8] sm:$0xf]  ;;  %v3021_v55 = vld [vmem:[%s4460_s2 + $0x7b4] sm:$0xf0]  ;;  %v2673_v61 = vor.u32 %v2989_v52, %v2672_v25  ;;  %v2609_v25 = vor.u32 %v2973_v41, %v2608_v39  ;;  %v2951_v39 = vld [vmem:[%s4460_s2 + $0x58c] sm:$0xf] }
 0x100   :  { %v677_v4 = vsub.f32 %v3979_v63, %v675_v51  ;;  %v2400_v56 = vld [vmem:[%s4460_s2 + $0x488] sm:$0xf]  ;;  %v2921_v59 = vld [vmem:[%s4460_s2 + $0x494] sm:$0xf0]  ;;  %v2801_v62 = vor.u32 %v3021_v55, %v2800_v53  ;;  %v2530_v41 = vld [vmem:[%s4460_s2 + $0x598] sm:$0xf0] }
 0x101   :  { %v2528_v0 = vld [vmem:[%s4460_s2 + $0x588] sm:$0xf]  ;;  %v2953_v1 = vld [vmem:[%s4460_s2 + $0x594] sm:$0xf0] }
 0x102   :  { %v686_v6 = vperm.slane %v677_v4, 3  ;;  %v683_v8 = vperm.slane %v677_v4, 0  ;;  %v684_v9 = vperm.slane %v677_v4, 1  ;;  %v685_v10 = vperm.slane %v677_v4, 2  ;;  %v2656_v51 = vld [vmem:[%s4460_s2 + $0x688] sm:$0xf] }
 0x103   :  { %v2985_v4 = vld [vmem:[%s4460_s2 + $0x694] sm:$0xf0]  ;;  %v2512_v11 = vld [vmem:[%s4460_s2 + $0x568] sm:$0xf] }
 0x104   :  { %v694_v12 = vadd.f32 %v686_v6, %v681_v44  ;;  %v691_v13 = vadd.f32 %v683_v8, %v678_v27  ;;  %v692_v14 = vadd.f32 %v684_v9, %v679_v3  ;;  %v693_v15 = vadd.f32 %v685_v10, %v680_v5  ;;  %v2784_v44 = vld [vmem:[%s4460_s2 + $0x788] sm:$0xf]  ;;  %v3017_v27 = vld [vmem:[%s4460_s2 + $0x794] sm:$0xf0] }
 0x105   :  { %v2401_v3 = vor.u32 %v2921_v59, %v2400_v56  ;;  %v2529_v5 = vor.u32 %v2953_v1, %v2528_v0  ;;  %v2384_v6 = vld [vmem:[%s4460_s2 + $0x468] sm:$0xf]  ;;  %v2917_v8 = vld [vmem:[%s4460_s2 + $0x474] sm:$0xf0]  ;;  %v2657_v9 = vor.u32 %v2985_v4, %v2656_v51  ;;  %v2785_v10 = vor.u32 %v3017_v27, %v2784_v44  ;;  %v2931_v56 = vld [vmem:[%s4460_s2 + $0x4ec] sm:$0xf] }
 0x106   :  { %v698_v18 = vmax.f32 %v694_v12, 0.0  ;;  %v695_v19 = vmax.f32 %v691_v13, 0.0  ;;  %v696_v20 = vmax.f32 %v692_v14, 0.0  ;;  %v697_v22 = vmax.f32 %v693_v15, 0.0  ;;  %v2949_v12 = vld [vmem:[%s4460_s2 + $0x574] sm:$0xf0] }
 0x107   :  { %v2640_v13 = vld [vmem:[%s4460_s2 + $0x668] sm:$0xf]  ;;  %v2981_v14 = vld [vmem:[%s4460_s2 + $0x674] sm:$0xf0]  ;;  %v2385_v54 = vor.u32 %v2917_v8, %v2384_v6  ;;  %v2513_v49 = vor.u32 %v2949_v12, %v2512_v11  ;;  %v2450_v59 = vld [vmem:[%s4460_s2 + $0x4f8] sm:$0xf0] }
 0x108   :  { %v4013_v29 = vpack.c.bf16 %v695_v19, %v695_v19  ;;  %v4015_v30 = vpack.c.bf16 %v696_v20, %v696_v20  ;;  %v4017_v31 = vpack.c.bf16 %v697_v22, %v697_v22  ;;  %v4019_v32 = vpack.c.bf16 %v698_v18, %v698_v18  ;;  %v2768_v15 = vld [vmem:[%s4460_s2 + $0x768] sm:$0xf]  ;;  %v3013_v7 = vld [vmem:[%s4460_s2 + $0x774] sm:$0xf0]  ;;  %v2995_v0 = vld [vmem:[%s4460_s2 + $0x6ec] sm:$0xf] }
 0x109   :  { %v2368_v21 = vld [vmem:[%s4460_s2 + $0x448] sm:$0xf]  ;;  %v2913_v16 = vld [vmem:[%s4460_s2 + $0x454] sm:$0xf0]  ;;  %v2641_v17 = vor.u32 %v2981_v14, %v2640_v13  ;;  %v2769_v18 = vor.u32 %v3013_v7, %v2768_v15  ;;  %v2706_v4 = vld [vmem:[%s4460_s2 + $0x6f8] sm:$0xf0]  ;;  %v2453_v6 = vor.u32 %v2931_v56, %v2450_v59 }
 0x10a   :  { %1480 = vmatmul.bf16.vlgmr.msra.gmra.mxu0 %v4013_v29  ;;  %1493 = vmatmul.bf16.vlgmr.msra.gmra.mxu1 %v4015_v30  ;;  %v2496_v19 = vld [vmem:[%s4460_s2 + $0x548] sm:$0xf]  ;;  %v2945_v20 = vld [vmem:[%s4460_s2 + $0x554] sm:$0xf0]  ;;  %v2369_v33 = vor.u32 %v2913_v16, %v2368_v21  ;;  %v3027_v44 = vld [vmem:[%s4460_s2 + $0x7ec] sm:$0xf]  ;;  %v2709_v11 = vor.u32 %v2995_v0, %v2706_v4 }
 0x10b   :  { %1506 = vmatmul.bf16.vlgmr.msra.gmra.mxu2 %v4017_v31  ;;  %1519 = vmatmul.bf16.vlgmr.msra.gmra.mxu3 %v4019_v32  ;;  %v2624_v22 = vld [vmem:[%s4460_s2 + $0x648] sm:$0xf]  ;;  %v2497_v34 = vor.u32 %v2945_v20, %v2496_v19  ;;  %v2937_v50 = vld [vmem:[%s4460_s2 + $0x514] sm:$0xf0]  ;;  %v2834_v27 = vld [vmem:[%s4460_s2 + $0x7f8] sm:$0xf0] }
 0x10c   :  { %1576 = vmatpush.bf16.msra.mxu0 %v2449_v28  ;;  %1589 = vmatpush.bf16.msra.mxu1 %v2577_v2  ;;  %v2752_v28 = vld [vmem:[%s4460_s2 + $0x748] sm:$0xf]  ;;  %v3009_v2 = vld [vmem:[%s4460_s2 + $0x754] sm:$0xf0]  ;;  %v2625_v37 = vor.u32 %v2977_v23, %v2624_v22  ;;  %v2837_v12 = vor.u32 %v3027_v44, %v2834_v27  ;;  %v2959_v13 = vld [vmem:[%s4460_s2 + $0x5cc] sm:$0xf] }
 0x10d   :  { %1602 = vmatpush.bf16.msra.mxu2 %v2705_v35  ;;  %1615 = vmatpush.bf16.msra.mxu3 %v2833_v36  ;;  %v2352_v35 = vld [vmem:[%s4460_s2 + $0x428] sm:$0xf]  ;;  %v2909_v36 = vld [vmem:[%s4460_s2 + $0x434] sm:$0xf0]  ;;  %v2753_v38 = vor.u32 %v3009_v2, %v2752_v28  ;;  %v2562_v14 = vld [vmem:[%s4460_s2 + $0x5d8] sm:$0xf0] }
 0x10e   :  { %v2336_v26 = vld [vmem:[%s4460_s2 + $0x408] sm:$0xf]  ;;  %v2353_v45 = vor.u32 %v2909_v36, %v2352_v35  ;;  %v2969_v55 = vld [vmem:[%s4460_s2 + $0x614] sm:$0xf0]  ;;  %v2991_v15 = vld [vmem:[%s4460_s2 + $0x6cc] sm:$0xf]  ;;  %v2565_v16 = vor.u32 %v2959_v13, %v2562_v14 }
 0x10f   :  { %v2464_v48 = vld [vmem:[%s4460_s2 + $0x508] sm:$0xf]  ;;  %v2690_v7 = vld [vmem:[%s4460_s2 + $0x6d8] sm:$0xf0]  ;;  %v2955_v22 = vld [vmem:[%s4460_s2 + $0x5ac] sm:$0xf] }
 0x110   :  { %1577 = vmatpush.bf16.msra.mxu0 %v2433_v42  ;;  %1590 = vmatpush.bf16.msra.mxu1 %v2561_v43  ;;  %v2736_v42 = vld [vmem:[%s4460_s2 + $0x728] sm:$0xf]  ;;  %v3005_v43 = vld [vmem:[%s4460_s2 + $0x734] sm:$0xf0]  ;;  %v2465_v51 = vor.u32 %v2937_v50, %v2464_v48  ;;  %v2693_v19 = vor.u32 %v2991_v15, %v2690_v7  ;;  %v2546_v23 = vld [vmem:[%s4460_s2 + $0x5b8] sm:$0xf0] }
 0x111   :  { %1603 = vmatpush.bf16.msra.mxu2 %v2689_v46  ;;  %1616 = vmatpush.bf16.msra.mxu3 %v2817_v47  ;;  %v2481_v46 = vor.u32 %v2941_v40, %v2480_v60  ;;  %v2905_v47 = vld [vmem:[%s4460_s2 + $0x414] sm:$0xf0]  ;;  %v2737_v52 = vor.u32 %v3005_v43, %v2736_v42  ;;  %v2592_v53 = vld [vmem:[%s4460_s2 + $0x608] sm:$0xf]  ;;  %v2987_v28 = vld [vmem:[%s4460_s2 + $0x6ac] sm:$0xf]  ;;  %v2549_v36 = vor.u32 %v2955_v22, %v2546_v23 }
 0x112   :  { %v2337_v1 = vor.u32 %v2905_v47, %v2336_v26  ;;  %v2674_v2 = vld [vmem:[%s4460_s2 + $0x6b8] sm:$0xf0]  ;;  %v2983_v42 = vld [vmem:[%s4460_s2 + $0x68c] sm:$0xf]  ;;  %v2533_v47 = vor.u32 %v2951_v39, %v2530_v41 }
 0x113   :  { %v2677_v60 = vor.u32 %v2987_v28, %v2674_v2  ;;  %v2658_v43 = vld [vmem:[%s4460_s2 + $0x698] sm:$0xf0]  ;;  %v3015_v26 = vld [vmem:[%s4460_s2 + $0x78c] sm:$0xf] }
 0x114   :  { %1578 = vmatpush.bf16.msra.mxu0 %v2417_v57  ;;  %1591 = vmatpush.bf16.msra.mxu1 %v2545_v58  ;;  %v2720_v57 = vld [vmem:[%s4460_s2 + $0x708] sm:$0xf]  ;;  %v3001_v58 = vld [vmem:[%s4460_s2 + $0x714] sm:$0xf0]  ;;  %v2915_v48 = vld [vmem:[%s4460_s2 + $0x46c] sm:$0xf] }
 0x115   :  { %1604 = vmatpush.bf16.msra.mxu2 %v2673_v61  ;;  %1617 = vmatpush.bf16.msra.mxu3 %v2801_v62  ;;  %v2963_v61 = vld [vmem:[%s4460_s2 + $0x5ec] sm:$0xf]  ;;  %v2578_v62 = vld [vmem:[%s4460_s2 + $0x5f8] sm:$0xf0] }
 0x116   :  { %v2581_v8 = vor.u32 %v2963_v61, %v2578_v62  ;;  %v2386_v50 = vld [vmem:[%s4460_s2 + $0x478] sm:$0xf0]  ;;  %v3011_v56 = vld [vmem:[%s4460_s2 + $0x76c] sm:$0xf] }
 0x117   :  { %v2770_v59 = vld [vmem:[%s4460_s2 + $0x778] sm:$0xf0]  ;;  %v2389_v61 = vor.u32 %v2915_v48, %v2386_v50  ;;  %v2911_v0 = vld [vmem:[%s4460_s2 + $0x44c] sm:$0xf] }
 0x118   :  { %1579 = vmatpush.bf16.msra.mxu0 %v2401_v3  ;;  %1592 = vmatpush.bf16.msra.mxu1 %v2529_v5  ;;  %v2593_v3 = vor.u32 %v2969_v55, %v2592_v53  ;;  %v2721_v5 = vor.u32 %v3001_v58, %v2720_v57  ;;  %v2947_v53 = vld [vmem:[%s4460_s2 + $0x56c] sm:$0xf]  ;;  %v2514_v55 = vld [vmem:[%s4460_s2 + $0x578] sm:$0xf0]  ;;  %v2773_v4 = vor.u32 %v3011_v56, %v2770_v59 }
 0x119   :  { %1605 = vmatpush.bf16.msra.mxu2 %v2657_v9  ;;  %1618 = vmatpush.bf16.msra.mxu3 %v2785_v10  ;;  %v2927_v9 = vld [vmem:[%s4460_s2 + $0x4cc] sm:$0xf]  ;;  %v2434_v10 = vld [vmem:[%s4460_s2 + $0x4d8] sm:$0xf0]  ;;  %v2517_v62 = vor.u32 %v2947_v53, %v2514_v55 }
 0x11a   :  { %1532 = vmatmul.bf16.vlgmr.msrb.gmra.mxu0 %v4013_v29  ;;  %1545 = vmatmul.bf16.vlgmr.msrb.gmra.mxu1 %v4015_v30  ;;  %v2437_v21 = vor.u32 %v2927_v9, %v2434_v10  ;;  %v2979_v57 = vld [vmem:[%s4460_s2 + $0x66c] sm:$0xf]  ;;  %v2642_v58 = vld [vmem:[%s4460_s2 + $0x678] sm:$0xf0] }
 0x11b   :  { %1558 = vmatmul.bf16.vlgmr.msrb.gmra.mxu2 %v4017_v31  ;;  %1571 = vmatmul.bf16.vlgmr.msrb.gmra.mxu3 %v4019_v32  ;;  %v2943_v44 = vld [vmem:[%s4460_s2 + $0x54c] sm:$0xf]  ;;  %v2498_v27 = vld [vmem:[%s4460_s2 + $0x558] sm:$0xf0] }
 0x11c   :  { %1580 = vmatpush.bf16.msra.mxu0 %v2385_v54  ;;  %1593 = vmatpush.bf16.msra.mxu1 %v2513_v49  ;;  %v3023_v54 = vld [vmem:[%s4460_s2 + $0x7cc] sm:$0xf]  ;;  %v2818_v49 = vld [vmem:[%s4460_s2 + $0x7d8] sm:$0xf0]  ;;  %v2501_v10 = vor.u32 %v2943_v44, %v2498_v27 }
 0x11d   :  { %1606 = vmatpush.bf16.msra.mxu2 %v2641_v17  ;;  %1619 = vmatpush.bf16.msra.mxu3 %v2769_v18  ;;  %v2923_v17 = vld [vmem:[%s4460_s2 + $0x4ac] sm:$0xf]  ;;  %v2418_v18 = vld [vmem:[%s4460_s2 + $0x4b8] sm:$0xf0]  ;;  %v2821_v20 = vor.u32 %v3023_v54, %v2818_v49 }
 0x11e   :  { %v2421_v35 = vor.u32 %v2923_v17, %v2418_v18  ;;  %v2939_v15 = vld [vmem:[%s4460_s2 + $0x52c] sm:$0xf]  ;;  %v2482_v7 = vld [vmem:[%s4460_s2 + $0x538] sm:$0xf0] }
 0x11f   :  { %v2971_v54 = vld [vmem:[%s4460_s2 + $0x62c] sm:$0xf]  ;;  %v2610_v49 = vld [vmem:[%s4460_s2 + $0x638] sm:$0xf0]  ;;  %v2485_v18 = vor.u32 %v2939_v15, %v2482_v7 }
 0x120   :  { %1581 = vmatpush.bf16.msra.mxu0 %v2369_v33  ;;  %1594 = vmatpush.bf16.msra.mxu1 %v2497_v34  ;;  %v3019_v33 = vld [vmem:[%s4460_s2 + $0x7ac] sm:$0xf]  ;;  %v2802_v34 = vld [vmem:[%s4460_s2 + $0x7b8] sm:$0xf0]  ;;  %v2613_v22 = vor.u32 %v2971_v54, %v2610_v49 }
 0x121   :  { %1607 = vmatpush.bf16.msra.mxu2 %v2625_v37  ;;  %1620 = vmatpush.bf16.msra.mxu3 %v2753_v38  ;;  %v2919_v37 = vld [vmem:[%s4460_s2 + $0x48c] sm:$0xf]  ;;  %v2402_v38 = vld [vmem:[%s4460_s2 + $0x498] sm:$0xf0]  ;;  %v2805_v40 = vor.u32 %v3019_v33, %v2802_v34 }
 0x122   :  { %v2935_v28 = vld [vmem:[%s4460_s2 + $0x50c] sm:$0xf]  ;;  %v2466_v2 = vld [vmem:[%s4460_s2 + $0x518] sm:$0xf0] }
 0x123   :  { %v2967_v33 = vld [vmem:[%s4460_s2 + $0x60c] sm:$0xf]  ;;  %v2594_v34 = vld [vmem:[%s4460_s2 + $0x618] sm:$0xf0] }
 0x124   :  { %1582 = vmatpush.bf16.msra.mxu0 %v2353_v45  ;;  %1595 = vmatpush.bf16.msra.mxu1 %v2481_v46  ;;  %v2786_v45 = vld [vmem:[%s4460_s2 + $0x798] sm:$0xf0]  ;;  %v2405_v46 = vor.u32 %v2919_v37, %v2402_v38  ;;  %v2469_v38 = vor.u32 %v2935_v28, %v2466_v2 }
 0x125   :  { %1608 = vmatpush.bf16.msra.mxu2 %v2609_v25  ;;  %1621 = vmatpush.bf16.msra.mxu3 %v2737_v52  ;;  %v2661_v25 = vor.u32 %v2983_v42, %v2658_v43  ;;  %v2789_v52 = vor.u32 %v3015_v26, %v2786_v45 }
 0x128   :  { %1583 = vmatpush.bf16.msra.mxu0 %v2337_v1  ;;  %1596 = vmatpush.bf16.msra.mxu1 %v2465_v51  ;;  %v2370_v1 = vld [vmem:[%s4460_s2 + $0x458] sm:$0xf0]  ;;  %v2645_v51 = vor.u32 %v2979_v57, %v2642_v58 }
 0x129   :  { %1609 = vmatpush.bf16.msra.mxu2 %v2593_v3  ;;  %1622 = vmatpush.bf16.msra.mxu3 %v2721_v5  ;;  %v2975_v3 = vld [vmem:[%s4460_s2 + $0x64c] sm:$0xf]  ;;  %v2626_v5 = vld [vmem:[%s4460_s2 + $0x658] sm:$0xf0]  ;;  %v2373_v9 = vor.u32 %v2911_v0, %v2370_v1 }
 0x12a   :  { %v2629_v13 = vor.u32 %v2975_v3, %v2626_v5 }
 0x12b   :  { %1584 = vmatmul.bf16.vlgmr.msra.gmra.mxu0 %v4013_v29  ;;  %1597 = vmatmul.bf16.vlgmr.msra.gmra.mxu1 %v4015_v30 }
 0x12c   :  { %1628 = vmatpush.bf16.msrb.mxu0 %v2453_v6  ;;  %1641 = vmatpush.bf16.msrb.mxu1 %v2581_v8  ;;  %v3007_v6 = vld [vmem:[%s4460_s2 + $0x74c] sm:$0xf]  ;;  %v2754_v8 = vld [vmem:[%s4460_s2 + $0x758] sm:$0xf0] }
 0x12d   :  { %1654 = vmatpush.bf16.msrb.mxu2 %v2709_v11  ;;  %1667 = vmatpush.bf16.msrb.mxu3 %v2837_v12  ;;  %v2907_v11 = vld [vmem:[%s4460_s2 + $0x42c] sm:$0xf]  ;;  %v2354_v12 = vld [vmem:[%s4460_s2 + $0x438] sm:$0xf0]  ;;  %v2757_v14 = vor.u32 %v3007_v6, %v2754_v8 }
 0x12e   :  { %1610 = vmatmul.bf16.vlgmr.msra.gmra.mxu2 %v4017_v31  ;;  %1623 = vmatmul.bf16.vlgmr.msra.gmra.mxu3 %v4019_v32  ;;  %v2357_v17 = vor.u32 %v2907_v11, %v2354_v12 }
 0x130   :  { %1629 = vmatpush.bf16.msrb.mxu0 %v2437_v21  ;;  %1642 = vmatpush.bf16.msrb.mxu1 %v2565_v16  ;;  %v3003_v21 = vld [vmem:[%s4460_s2 + $0x72c] sm:$0xf]  ;;  %v2738_v16 = vld [vmem:[%s4460_s2 + $0x738] sm:$0xf0] }
 0x131   :  { %1655 = vmatpush.bf16.msrb.mxu2 %v2693_v19  ;;  %1668 = vmatpush.bf16.msrb.mxu3 %v2821_v20  ;;  %v2903_v19 = vld [vmem:[%s4460_s2 + $0x40c] sm:$0xf]  ;;  %v2338_v20 = vld [vmem:[%s4460_s2 + $0x418] sm:$0xf0]  ;;  %v2741_v23 = vor.u32 %v3003_v21, %v2738_v16 }
 0x132   :  { %v2341_v37 = vor.u32 %v2903_v19, %v2338_v20 }
 0x134   :  { %1630 = vmatpush.bf16.msrb.mxu0 %v2421_v35  ;;  %1643 = vmatpush.bf16.msrb.mxu1 %v2549_v36  ;;  %v2999_v35 = vld [vmem:[%s4460_s2 + $0x70c] sm:$0xf]  ;;  %v2722_v36 = vld [vmem:[%s4460_s2 + $0x718] sm:$0xf0] }
 0x135   :  { %1656 = vmatpush.bf16.msrb.mxu2 %v2677_v60  ;;  %1669 = vmatpush.bf16.msrb.mxu3 %v2805_v40  ;;  %v2597_v60 = vor.u32 %v2967_v33, %v2594_v34  ;;  %v2725_v40 = vor.u32 %v2999_v35, %v2722_v36 }
 0x138   :  { %1631 = vmatpush.bf16.msrb.mxu0 %v2405_v46  ;;  %1644 = vmatpush.bf16.msrb.mxu1 %v2533_v47 }
 0x139   :  { %1657 = vmatpush.bf16.msrb.mxu2 %v2661_v25  ;;  %1670 = vmatpush.bf16.msrb.mxu3 %v2789_v52 }
 0x13c   :  { %1632 = vmatpush.bf16.msrb.mxu0 %v2389_v61  ;;  %1645 = vmatpush.bf16.msrb.mxu1 %v2517_v62 }
 0x13d   :  { %1658 = vmatpush.bf16.msrb.mxu2 %v2645_v51  ;;  %1671 = vmatpush.bf16.msrb.mxu3 %v2773_v4 }
 0x140   :  { %1633 = vmatpush.bf16.msrb.mxu0 %v2373_v9  ;;  %1646 = vmatpush.bf16.msrb.mxu1 %v2501_v10 }
 0x141   :  { %1659 = vmatpush.bf16.msrb.mxu2 %v2629_v13  ;;  %1672 = vmatpush.bf16.msrb.mxu3 %v2757_v14 }
 0x144   :  { %1634 = vmatpush.bf16.msrb.mxu0 %v2357_v17  ;;  %1647 = vmatpush.bf16.msrb.mxu1 %v2485_v18 }
 0x145   :  { %1660 = vmatpush.bf16.msrb.mxu2 %v2613_v22  ;;  %1673 = vmatpush.bf16.msrb.mxu3 %v2741_v23 }
 0x148   :  { %1635 = vmatpush.bf16.msrb.mxu0 %v2341_v37  ;;  %1648 = vmatpush.bf16.msrb.mxu1 %v2469_v38 }
 0x149   :  { %1661 = vmatpush.bf16.msrb.mxu2 %v2597_v60  ;;  %1674 = vmatpush.bf16.msrb.mxu3 %v2725_v40 }
 0x14b   :  { %1636 = vmatmul.bf16.vlgmr.msrb.gmra.mxu0 %v4013_v29  ;;  %1649 = vmatmul.bf16.vlgmr.msrb.gmra.mxu1 %v4015_v30 }
 0x14c   :  { %1662 = vmatmul.bf16.vlgmr.msrb.gmra.mxu2 %v4017_v31  ;;  %1675 = vmatmul.bf16.vlgmr.msrb.gmra.mxu3 %v4019_v32 }
 0x187   :  { %v1481_v39 = vpop.f32.mrf.mxu0  ;;  %v1494_v41 = vpop.f32.mrf.mxu1 }
 0x188   :  { %v1495_v42 = vadd.f32 %v1494_v41, %v1481_v39 }
 0x18e   :  { %v1507_v43 = vpop.f32.mrf.mxu2  ;;  %v1520_v26 = vpop.f32.mrf.mxu3 }
 0x18f   :  { %v1508_v45 = vadd.f32 %v1507_v43, %v1495_v42  ;;  %v1483_v46 = vpop.f32.mrf.mxu0  ;;  %v1496_v47 = vpop.f32.mrf.mxu1 }
 0x191   :  { %v4397_v48 = vadd.f32 %v1520_v26, %v1508_v45 }
 0x193   :  { %v1680_v5 = vsel %vm518_vm0, %v4397_v48, 0.0  ;;  %v1712_v6 = vmul.f32 %v4397_v48, %v4397_v48 }
 0x194   :  { %v1681_v14 = vrot.slane %v1680_v5, 4 }
 0x195   :  { %v1716_v15 = vsel %vm518_vm0, %v1712_v6, 0.0 }
 0x196   :  { %v1509_v50 = vpop.f32.mrf.mxu2  ;;  %v1522_v25 = vpop.f32.mrf.mxu3  ;;  %v1682_v18 = vadd.f32 %v1681_v14, %v1680_v5  ;;  %v1717_v19 = vrot.slane %v1716_v15, 4 }
 0x197   :  { %v1533_v52 = vpop.f32.mrf.mxu0  ;;  %v1546_v29 = vpop.f32.mrf.mxu1 }
 0x198   :  { %v1547_v57 = vadd.f32 %v1546_v29, %v1533_v52  ;;  %v1683_v36 = vrot.slane %v1682_v18, 2  ;;  %v1718_v37 = vadd.f32 %v1717_v19, %v1716_v15 }
 0x19a   :  { %v1684_v41 = vadd.f32 %v1683_v36, %v1682_v18  ;;  %v1719_v42 = vrot.slane %v1718_v37, 2 }
 0x19c   :  { %v1685_v47 = vrot.slane %v1684_v41, 1  ;;  %v1720_v50 = vadd.f32 %v1719_v42, %v1718_v37 }
 0x19e   :  { %v1559_v53 = vpop.f32.mrf.mxu2  ;;  %v1572_v30 = vpop.f32.mrf.mxu3 }
 0x19f   :  { %v1535_v55 = vpop.f32.mrf.mxu0  ;;  %v1548_v31 = vpop.f32.mrf.mxu1  ;;  %v1560_v32 = vadd.f32 %v1559_v53, %v1547_v57  ;;  %v1721_v57 = vrot.slane %v1720_v50, 1 }
 0x1a0   :  { %v1686_v31 = vadd.f32 %v1685_v47, %v1684_v41 }
 0x1a1   :  { %v4399_v59 = vadd.f32 %v1572_v30, %v1560_v32 }
 0x1a3   :  { %v1687_v0 = vsel %vm518_vm0, %v4399_v59, 0.0  ;;  %v1713_v1 = vmul.f32 %v4399_v59, %v4399_v59 }
 0x1a4   :  { %v1688_v51 = vrot.slane %v1687_v0, 4 }
 0x1a5   :  { %v1723_v44 = vsel %vm518_vm0, %v1713_v1, 0.0 }
 0x1a6   :  { %v1561_v58 = vpop.f32.mrf.mxu2  ;;  %v1574_v56 = vpop.f32.mrf.mxu3  ;;  %v1689_v11 = vadd.f32 %v1688_v51, %v1687_v0  ;;  %v1724_v12 = vrot.slane %v1723_v44, 4  ;;  %v1722_v0 = vadd.f32 %v1721_v57, %v1720_v50 }
 0x1a8   :  { %v1585_v61 = vpop.f32.mrf.mxu0  ;;  %v1598_v62 = vpop.f32.mrf.mxu1  ;;  %v1690_v21 = vrot.slane %v1689_v11, 2  ;;  %v1725_v16 = vadd.f32 %v1724_v12, %v1723_v44 }
 0x1a9   :  { %v1599_v4 = vadd.f32 %v1598_v62, %v1585_v61  ;;  %v4424_v62 = vmul.f32 0.5, %v1686_v31 }
 0x1aa   :  { %v1691_v34 = vadd.f32 %v1690_v21, %v1689_v11  ;;  %v1726_v35 = vrot.slane %v1725_v16, 2 }
 0x1ac   :  { %v1692_v40 = vrot.slane %v1691_v34, 1  ;;  %v1727_v39 = vadd.f32 %v1726_v35, %v1725_v16 }
 0x1ae   :  { %v1693_v45 = vadd.f32 %v1692_v40, %v1691_v34  ;;  %v1728_v46 = vrot.slane %v1727_v39, 1 }
 0x1b0   :  { %v1587_v9 = vpop.f32.mrf.mxu0  ;;  %v1600_v10 = vpop.f32.mrf.mxu1  ;;  %v4418_v30 = vmul.f32 0.5, %v1693_v45  ;;  %v1729_v55 = vadd.f32 %v1728_v46, %v1727_v39 }
 0x1b1   :  { %v1611_v27 = vpop.f32.mrf.mxu2  ;;  %v1624_v3 = vpop.f32.mrf.mxu3  ;;  %v1744_v9 = vmul.f32 0.5, %v1722_v0  ;;  %v1748_v10 = vmul.f32 %v4424_v62, %v4424_v62 }
 0x1b2   :  { %v1612_v8 = vadd.f32 %v1611_v27, %v1599_v4  ;;  %v1745_v56 = vmul.f32 0.5, %v1729_v55  ;;  %v1749_v61 = vmul.f32 %v4418_v30, %v4418_v30 }
 0x1b4   :  { %v4410_v13 = vadd.f32 %v1624_v3, %v1612_v8  ;;  %v1753_v8 = vsub.f32 %v1745_v56, %v1749_v61 }
 0x1b6   :  { %v1694_v7 = vsel %vm518_vm0, %v4410_v13, 0.0  ;;  %v1714_v54 = vmul.f32 %v4410_v13, %v4410_v13 }
 0x1b7   :  { %v1695_v49 = vrot.slane %v1694_v7, 4 }
 0x1b8   :  { %v1730_v17 = vsel %vm518_vm0, %v1714_v54, 0.0 }
 0x1b9   :  { %v1696_v20 = vadd.f32 %v1695_v49, %v1694_v7  ;;  %v1731_v22 = vrot.slane %v1730_v17, 4  ;;  %v1613_v23 = vpop.f32.mrf.mxu2  ;;  %v1626_v28 = vpop.f32.mrf.mxu3  ;;  %v1757_v7 = vadd.f32 1e-05, %v1753_v8  ;;  %v1752_v49 = vsub.f32 %v1744_v9, %v1748_v10 }
 0x1bb   :  { %v1697_v2 = vrot.slane %v1696_v20, 2  ;;  %v1732_v33 = vadd.f32 %v1731_v22, %v1730_v17  ;;  %3038 = vrsqrt.f32 %v1757_v7  ;;  %v1756_v28 = vadd.f32 1e-05, %v1752_v49 }
 0x1bc   :  { %vm1776_vm1 = vweird.f32 %v1757_v7 }
 0x1bd   :  { %v1698_v38 = vadd.f32 %v1697_v2, %v1696_v20  ;;  %v1733_v60 = vrot.slane %v1732_v33, 2  ;;  %vm1766_vm10 = vweird.f32 %v1756_v28 }
 0x1bf   :  { %v1699_v43 = vrot.slane %v1698_v38, 1  ;;  %v1734_v26 = vadd.f32 %v1733_v60, %v1732_v33 }
 0x1c1   :  { %v1700_v25 = vadd.f32 %v1699_v43, %v1698_v38  ;;  %v1735_v52 = vrot.slane %v1734_v26, 1  ;;  %v3039_v36 = vpop.eup %3038 }
 0x1c2   :  { %v1771_v41 = vmul.f32 %v3039_v36, %v1757_v7  ;;  %vm1777_vm15 = vweird.f32 %v3039_v36 }
 0x1c3   :  { %v4420_v32 = vmul.f32 0.5, %v1700_v25  ;;  %v1736_v58 = vadd.f32 %v1735_v52, %v1734_v26  ;;  %vm1778_vm3 = vmor %vm1776_vm1, %vm1777_vm15 }
 0x1c4   :  { %v1772_v47 = vmul.f32 %v3039_v36, %v1771_v41 }
 0x1c5   :  { %v1746_v51 = vmul.f32 0.5, %v1736_v58  ;;  %v1750_v4 = vmul.f32 %v4420_v32, %v4420_v32 }
 0x1c7   :  { %v1754_v12 = vsub.f32 %v1746_v51, %v1750_v4 }
 0x1c8   :  { %v1637_v29 = vpop.f32.mrf.mxu0  ;;  %v1650_v53 = vpop.f32.mrf.mxu1 }
 0x1c9   :  { %v1651_v1 = vadd.f32 %v1650_v53, %v1637_v29  ;;  %v1758_v16 = vadd.f32 1e-05, %v1754_v12  ;;  %v1773_v29 = vmul.f32 0.5, %v1772_v47 }
 0x1cb   :  { %3040 = vrsqrt.f32 %v1758_v16  ;;  %v1774_v31 = vsub.f32 1.5, %v1773_v29  ;;  %vm1786_vm4 = vweird.f32 %v1758_v16 }
 0x1cc   :  { %3042 = vrsqrt.f32 %v1756_v28 }
 0x1cd   :  { %v1775_v0 = vmul.f32 %v3039_v36, %v1774_v31 }
 0x1cf   :  { %v1663_v44 = vpop.f32.mrf.mxu2  ;;  %v1676_v27 = vpop.f32.mrf.mxu3 }
 0x1d0   :  { %v1664_v3 = vadd.f32 %v1663_v44, %v1651_v1  ;;  %v1639_v5 = vpop.f32.mrf.mxu0  ;;  %v1652_v6 = vpop.f32.mrf.mxu1 }
 0x1d1   :  { %v3041_v60 = vpop.eup %3040 }
 0x1d2   :  { %v4430_v11 = vadd.f32 %v1676_v27, %v1664_v3  ;;  %v3043_v26 = vpop.eup %3042  ;;  %v1781_v45 = vmul.f32 %v3041_v60, %v1758_v16  ;;  %vm1787_vm2 = vweird.f32 %v3041_v60  ;;  %v1779_v27 = vsel %vm1778_vm3, %v3039_v36, %v1775_v0 }
 0x1d3   :  { %v1761_v50 = vmul.f32 %v3043_v26, %v1756_v28  ;;  %vm1767_vm6 = vweird.f32 %v3043_v26  ;;  %vm1788_vm7 = vmor %vm1786_vm4, %vm1787_vm2  ;;  %v1804_v9 = vrot.slane %v1779_v27, 7 }
 0x1d4   :  { %v1701_v14 = vsel %vm518_vm0, %v4430_v11, 0.0  ;;  %v1715_v15 = vmul.f32 %v4430_v11, %v4430_v11  ;;  %v1782_v52 = vmul.f32 %v3041_v60, %v1781_v45  ;;  %vm1768_vm11 = vmor %vm1766_vm10, %vm1767_vm6 }
 0x1d5   :  { %v1702_v54 = vrot.slane %v1701_v14, 4  ;;  %v1762_v53 = vmul.f32 %v3043_v26, %v1761_v50 }
 0x1d6   :  { %v1737_v21 = vsel %vm518_vm0, %v1715_v15, 0.0  ;;  %v1783_v55 = vmul.f32 0.5, %v1782_v52 }
 0x1d7   :  { %v1703_v17 = vadd.f32 %v1702_v54, %v1701_v14  ;;  %v1738_v18 = vrot.slane %v1737_v21, 4  ;;  %v1665_v19 = vpop.f32.mrf.mxu2  ;;  %v1678_v20 = vpop.f32.mrf.mxu3  ;;  %v1763_v58 = vmul.f32 0.5, %v1762_v53 }
 0x1d8   :  { %v1784_v56 = vsub.f32 1.5, %v1783_v55 }
 0x1d9   :  { %v1704_v22 = vrot.slane %v1703_v17, 2  ;;  %v1739_v23 = vadd.f32 %v1738_v18, %v1737_v21  ;;  %v1764_v51 = vsub.f32 1.5, %v1763_v58 }
 0x1da   :  { %v1785_v4 = vmul.f32 %v3041_v60, %v1784_v56 }
 0x1db   :  { %v1705_v2 = vadd.f32 %v1704_v22, %v1703_v17  ;;  %v1740_v33 = vrot.slane %v1739_v23, 2  ;;  %v1765_v5 = vmul.f32 %v3043_v26, %v1764_v51 }
 0x1dc   :  { %v1789_v6 = vsel %vm1788_vm7, %v3041_v60, %v1785_v4 }
 0x1dd   :  { %v1706_v34 = vrot.slane %v1705_v2, 1  ;;  %v1741_v35 = vadd.f32 %v1740_v33, %v1739_v23  ;;  %v1805_v12 = vrot.slane %v1789_v6, 6  ;;  %v1769_v15 = vsel %vm1768_vm11, %v3043_v26, %v1765_v5 }
 0x1de   :  { %v1807_v7 = vsel %vm646_vm12, %v1769_v15, %v1804_v9 }
 0x1df   :  { %v1707_v37 = vadd.f32 %v1706_v34, %v1705_v2  ;;  %v1742_v38 = vrot.slane %v1741_v35, 1 }
 0x1e1   :  { %v1711_v40 = vmul.f32 0.5, %v1707_v37  ;;  %v1743_v39 = vadd.f32 %v1742_v38, %v1741_v35 }
 0x1e3   :  { %v1747_v42 = vmul.f32 0.5, %v1743_v39  ;;  %v1751_v43 = vmul.f32 %v1711_v40, %v1711_v40 }
 0x1e5   :  { %v1755_v46 = vsub.f32 %v1747_v42, %v1751_v43 }
 0x1e7   :  { %v1759_v25 = vadd.f32 1e-05, %v1755_v46 }
 0x1e9   :  { %3044 = vrsqrt.f32 %v1759_v25  ;;  %vm1796_vm8 = vweird.f32 %v1759_v25 }
 0x1ef   :  { %v3045_v57 = vpop.eup %3044 }
 0x1f0   :  { %v1791_v61 = vmul.f32 %v3045_v57, %v1759_v25  ;;  %vm1797_vm5 = vweird.f32 %v3045_v57 }
 0x1f1   :  { %vm1798_vm9 = vmor %vm1796_vm8, %vm1797_vm5 }
 0x1f2   :  { %v1792_v1 = vmul.f32 %v3045_v57, %v1791_v61 }
 0x1f4   :  { %v1793_v44 = vmul.f32 0.5, %v1792_v1 }
 0x1f6   :  { %v1794_v3 = vsub.f32 1.5, %v1793_v44 }
 0x1f8   :  { %v1795_v8 = vmul.f32 %v3045_v57, %v1794_v3 }
 0x1fa   :  { %v1799_v10 = vsel %vm1798_vm9, %v3045_v57, %v1795_v8 }
 0x1fb   :  { %v1806_v14 = vrot.slane %v1799_v10, 5 }
 0x1fd   :  { %v1808_v54 = vsel %vm648_vm13, %v1805_v12, %v1806_v14 }
 0x1fe   :  { %v1809_v49 = vsel %vm518_vm0, %v1807_v7, %v1808_v54 }
 0x1ff   :  { %v1811_v21 = vmul.f32 %v1809_v49, %v3965_v24 }
 0x201   :  { %v1813_v16 = vperm.slane %v1811_v21, 0  ;;  %v1814_v17 = vperm.slane %v1811_v21, 1  ;;  %v1815_v18 = vperm.slane %v1811_v21, 2  ;;  %v1816_v19 = vperm.slane %v1811_v21, 3 }
 0x203   :  { %v1822_v20 = vmul.f32 %v1814_v17, %v4418_v30  ;;  %v1823_v22 = vmul.f32 %v1815_v18, %v4420_v32  ;;  %v1824_v23 = vmul.f32 %v1816_v19, %v1711_v40  ;;  %v1821_v28 = vmul.f32 %v1813_v16, %v4424_v62 }
 0x204   :  { %v1837_v38 = vmul.f32 %v1813_v16, %v4397_v48  ;;  %v1838_v30 = vmul.f32 %v1814_v17, %v4399_v59  ;;  %v1839_v32 = vmul.f32 %v1815_v18, %v4410_v13  ;;  %v1840_v60 = vmul.f32 %v1816_v19, %v4430_v11 }
 0x205   :  { %v1829_v2 = vrot.slane %v1822_v20, 7  ;;  %v1830_v33 = vrot.slane %v1823_v22, 6  ;;  %v1831_v34 = vrot.slane %v1824_v23, 5 }
 0x207   :  { %v1832_v35 = vsel %vm646_vm12, %v1821_v28, %v1829_v2  ;;  %v1833_v36 = vsel %vm648_vm13, %v1830_v33, %v1831_v34 }
 0x208   :  { %v1834_v24 = vsel %vm518_vm0, %v1832_v35, %v1833_v36 }
 0x209   :  { %v1836_v37 = vsub.f32 %v3979_v63, %v1834_v24 }
 0x20b   :  { %v1842_v62 = vperm.slane %v1836_v37, 0  ;;  %v1843_v40 = vperm.slane %v1836_v37, 1  ;;  %v1844_v39 = vperm.slane %v1836_v37, 2  ;;  %v1845_v41 = vperm.slane %v1836_v37, 3 }
 0x20d   :  { %v1850_v42 = vadd.f32 %v1842_v62, %v1837_v38  ;;  %v1851_v43 = vadd.f32 %v1843_v40, %v1838_v30  ;;  %v1852_v26 = vadd.f32 %v1844_v39, %v1839_v32  ;;  %v1853_v45 = vadd.f32 %v1845_v41, %v1840_v60 }
 0x20f   :  { %v1854_v46 = vmax.f32 %v1850_v42, 0.0  ;;  %v1855_v47 = vmax.f32 %v1851_v43, 0.0  ;;  %v1856_v50 = vmax.f32 %v1852_v26, 0.0  ;;  %v1857_v63 = vmax.f32 %v1853_v45, 0.0 }
 0x211   :  { %v1858_v25 = vpack.c.bf16 %v1855_v47, %v1854_v46  ;;  %v1859_v48 = vpack.c.bf16 %v1857_v63, %v1856_v50 }
 0x213   :  { %v1862_v52 = vrot.slane %v1858_v25, 3  ;;  %v1863_v59 = vrot.slane %v1859_v48, 6  ;;  %v1864_v29 = vrot.slane %v1859_v48, 1 }
 0x215   :  { %v1867_v13 = vsel %vm646_vm12, %v1858_v25, %v1862_v52  ;;  %v1870_v11 = vsel %vm648_vm13, %v1863_v59, %v1864_v29 }
 0x216   :  { %v1871_v53 = vsel %vm518_vm0, %v1867_v13, %v1870_v11 }
 0x217   :  { %1873 = vst [vmem:[%s4463_s5] sm:$0xf] %v1871_v53 }

// kernel: debugnet_forward.13
= control target key start
LH: loop header
LB: loop body
LE: loop exit
PB: predicated region body
PF: predicated region fallthrough
CT: control target
= control target key end

     0   :  { %s2070_s1 = inlined_call_operand.vmem [shape: bf16[3,384,128], index: 1, kind: input, shape index: {}]   ;;  %s2071_s0 = inlined_call_operand.vmem [shape: bf16[8,384], index: 0, kind: input, shape index: {}]   ;;  %s2072_s2 = inlined_call_operand.vmem [shape: bf16[3,128,128], index: 2, kind: input, shape index: {}]   ;;  %s2073_s3 = inlined_call_operand.vmem [shape: f32[1,128], index: 3, kind: input, shape index: {}]   ;;  %s2074_s4 = inlined_call_operand.vmem [shape: f32[1,128], index: 4, kind: input, shape index: {}]   ;;  %s2075_s5 = inlined_call_operand.vmem [shape: bf16[8,128], index: 5, kind: output, shape index: {}]  }
   0x1   :  { %v1627_v0 = vld [vmem:[%s2070_s1 + $0x38] sm:$0xff]  ;;  %v1626_v3 = vld [vmem:[%s2070_s1 + $0x30] sm:$0xff]  ;;  %v1625_v8 = vld [vmem:[%s2070_s1 + $0x28] sm:$0xff] }
   0x2   :  { %v1643_v1 = vld [vmem:[%s2070_s1 + $0xb8] sm:$0xff]  ;;  %292 = vmatpush.bf16.msra.mxu0 %v1627_v0  ;;  %v1642_v5 = vld [vmem:[%s2070_s1 + $0xb0] sm:$0xff]  ;;  %v1641_v9 = vld [vmem:[%s2070_s1 + $0xa8] sm:$0xff] }
   0x3   :  { %v1603_v2 = vld [vmem:[%s2070_s1 + $0xf8] sm:$0xff]  ;;  %318 = vmatpush.bf16.msra.mxu2 %v1643_v1  ;;  %v1602_v6 = vld [vmem:[%s2070_s1 + $0xf0] sm:$0xff]  ;;  %v1601_v10 = vld [vmem:[%s2070_s1 + $0xe8] sm:$0xff] }
   0x4   :  { %v1635_v4 = vld [vmem:[%s2070_s1 + $0x78] sm:$0xff]  ;;  %480 = vmatpush.bf16.msra.mxu3 %v1603_v2  ;;  %v1634_v7 = vld [vmem:[%s2070_s1 + $0x70] sm:$0xff]  ;;  %v1633_v11 = vld [vmem:[%s2070_s1 + $0x68] sm:$0xff] }
   0x5   :  { %305 = vmatpush.bf16.msra.mxu1 %v1635_v4  ;;  %v1624_v12 = vld [vmem:[%s2070_s1 + $0x20] sm:$0xff]  ;;  %v1623_v16 = vld [vmem:[%s2070_s1 + $0x18] sm:$0xff]  ;;  %v1622_v20 = vld [vmem:[%s2070_s1 + $0x10] sm:$0xff] }
   0x6   :  { %293 = vmatpush.bf16.msra.mxu0 %v1626_v3  ;;  %v1640_v13 = vld [vmem:[%s2070_s1 + $0xa0] sm:$0xff]  ;;  %v1639_v17 = vld [vmem:[%s2070_s1 + $0x98] sm:$0xff]  ;;  %v1638_v21 = vld [vmem:[%s2070_s1 + $0x90] sm:$0xff] }
   0x7   :  { %319 = vmatpush.bf16.msra.mxu2 %v1642_v5  ;;  %v1600_v14 = vld [vmem:[%s2070_s1 + $0xe0] sm:$0xff]  ;;  %v1599_v18 = vld [vmem:[%s2070_s1 + $0xd8] sm:$0xff]  ;;  %v1598_v22 = vld [vmem:[%s2070_s1 + $0xd0] sm:$0xff] }
   0x8   :  { %481 = vmatpush.bf16.msra.mxu3 %v1602_v6  ;;  %v1632_v15 = vld [vmem:[%s2070_s1 + $0x60] sm:$0xff]  ;;  %v1631_v19 = vld [vmem:[%s2070_s1 + $0x58] sm:$0xff]  ;;  %v1630_v23 = vld [vmem:[%s2070_s1 + $0x50] sm:$0xff] }
   0x9   :  { %306 = vmatpush.bf16.msra.mxu1 %v1634_v7  ;;  %v1621_v24 = vld [vmem:[%s2070_s1 + $0x8] sm:$0xff]  ;;  %v38_v27 = vld [vmem:[%s2071_s0] sm:$0xff]  ;;  %v1611_v32 = vld [vmem:[%s2070_s1 + $0x138] sm:$0xff] }
   0xa   :  { %294 = vmatpush.bf16.msra.mxu0 %v1625_v8  ;;  %v1637_v25 = vld [vmem:[%s2070_s1 + $0x88] sm:$0xff]  ;;  %v1620_v30 = vld [vmem:[%s2070_s1] sm:$0xff]  ;;  %v139_v31 = vunpack.c.l.b16 %v38_v27  ;;  %v140_v37 = vunpack.c.h.b16 %v38_v27  ;;  %v1651_v38 = vld [vmem:[%s2070_s1 + $0x1b8] sm:$0xff] }
   0xb   :  { %320 = vmatpush.bf16.msra.mxu2 %v1641_v9  ;;  %v1597_v26 = vld [vmem:[%s2070_s1 + $0xc8] sm:$0xff]  ;;  %v1636_v33 = vld [vmem:[%s2070_s1 + $0x80] sm:$0xff]  ;;  %v1659_v39 = vld [vmem:[%s2070_s1 + $0x1f8] sm:$0xff] }
   0xc   :  { %482 = vmatpush.bf16.msra.mxu3 %v1601_v10  ;;  %v1629_v28 = vld [vmem:[%s2070_s1 + $0x48] sm:$0xff]  ;;  %v1596_v35 = vld [vmem:[%s2070_s1 + $0xc0] sm:$0xff]  ;;  %v1619_v40 = vld [vmem:[%s2070_s1 + $0x178] sm:$0xff]  ;;  %v1840_v41 = vpack.c.b16 %v139_v31, %v139_v31  ;;  %v1847_v44 = vpack.c.b16 %v140_v37, %v140_v37 }
   0xd   :  { %307 = vmatpush.bf16.msra.mxu1 %v1633_v11  ;;  %v39_v29 = vld [vmem:[%s2071_s0 + $0x8] sm:$0xf]  ;;  %v1628_v36 = vld [vmem:[%s2070_s1 + $0x40] sm:$0xff]  ;;  %v1610_v42 = vld [vmem:[%s2070_s1 + $0x130] sm:$0xff] }
   0xe   :  { %295 = vmatpush.bf16.msra.mxu0 %v1624_v12  ;;  %v141_v34 = vunpack.c.l.b16 %v39_v29  ;;  %v1650_v45 = vld [vmem:[%s2070_s1 + $0x1b0] sm:$0xff]  ;;  %v1609_v48 = vld [vmem:[%s2070_s1 + $0x128] sm:$0xff]  ;;  %v1608_v52 = vld [vmem:[%s2070_s1 + $0x120] sm:$0xff] }
   0xf   :  { %321 = vmatpush.bf16.msra.mxu2 %v1640_v13  ;;  %v1658_v46 = vld [vmem:[%s2070_s1 + $0x1f0] sm:$0xff]  ;;  %v1649_v49 = vld [vmem:[%s2070_s1 + $0x1a8] sm:$0xff]  ;;  %v1648_v53 = vld [vmem:[%s2070_s1 + $0x1a0] sm:$0xff] }
  0x10   :  { %483 = vmatpush.bf16.msra.mxu3 %v1600_v14  ;;  %v1845_v43 = vpack.c.b16 %v141_v34, %v141_v34  ;;  %v1618_v47 = vld [vmem:[%s2070_s1 + $0x170] sm:$0xff]  ;;  %v1657_v50 = vld [vmem:[%s2070_s1 + $0x1e8] sm:$0xff]  ;;  %v1656_v54 = vld [vmem:[%s2070_s1 + $0x1e0] sm:$0xff] }
  0x11   :  { %308 = vmatpush.bf16.msra.mxu1 %v1632_v15  ;;  %v1617_v51 = vld [vmem:[%s2070_s1 + $0x168] sm:$0xff]  ;;  %v1616_v55 = vld [vmem:[%s2070_s1 + $0x160] sm:$0xff]  ;;  %v1607_v56 = vld [vmem:[%s2070_s1 + $0x118] sm:$0xff] }
  0x12   :  { %296 = vmatpush.bf16.msra.mxu0 %v1623_v16  ;;  %v1647_v57 = vld [vmem:[%s2070_s1 + $0x198] sm:$0xff]  ;;  %v1606_v60 = vld [vmem:[%s2070_s1 + $0x110] sm:$0xff]  ;;  %v1605_v0 = vld [vmem:[%s2070_s1 + $0x108] sm:$0xff] }
  0x13   :  { %322 = vmatpush.bf16.msra.mxu2 %v1639_v17  ;;  %v1655_v58 = vld [vmem:[%s2070_s1 + $0x1d8] sm:$0xff]  ;;  %v1646_v61 = vld [vmem:[%s2070_s1 + $0x190] sm:$0xff]  ;;  %v1645_v1 = vld [vmem:[%s2070_s1 + $0x188] sm:$0xff] }
  0x14   :  { %484 = vmatpush.bf16.msra.mxu3 %v1599_v18  ;;  %v1615_v59 = vld [vmem:[%s2070_s1 + $0x158] sm:$0xff]  ;;  %v1654_v62 = vld [vmem:[%s2070_s1 + $0x1d0] sm:$0xff]  ;;  %v1653_v2 = vld [vmem:[%s2070_s1 + $0x1c8] sm:$0xff] }
  0x15   :  { %309 = vmatpush.bf16.msra.mxu1 %v1631_v19  ;;  %v1614_v63 = vld [vmem:[%s2070_s1 + $0x150] sm:$0xff]  ;;  %v1613_v3 = vld [vmem:[%s2070_s1 + $0x148] sm:$0xff]  ;;  %v1604_v4 = vld [vmem:[%s2070_s1 + $0x100] sm:$0xff] }
  0x16   :  { %297 = vmatpush.bf16.msra.mxu0 %v1622_v20  ;;  %v1667_v5 = vld [vmem:[%s2070_s1 + $0x238] sm:$0xff]  ;;  %v1644_v6 = vld [vmem:[%s2070_s1 + $0x180] sm:$0xff]  ;;  %v1666_v9 = vld [vmem:[%s2070_s1 + $0x230] sm:$0xff] }
  0x17   :  { %323 = vmatpush.bf16.msra.mxu2 %v1638_v21  ;;  %v1652_v7 = vld [vmem:[%s2070_s1 + $0x1c0] sm:$0xff]  ;;  %v1665_v10 = vld [vmem:[%s2070_s1 + $0x228] sm:$0xff]  ;;  %v1663_v12 = vld [vmem:[%s2070_s1 + $0x218] sm:$0xff] }
  0x18   :  { %485 = vmatpush.bf16.msra.mxu3 %v1598_v22  ;;  %v1612_v8 = vld [vmem:[%s2070_s1 + $0x140] sm:$0xff]  ;;  %v1662_v13 = vld [vmem:[%s2070_s1 + $0x210] sm:$0xff]  ;;  %v1661_v14 = vld [vmem:[%s2070_s1 + $0x208] sm:$0xff] }
  0x19   :  { %310 = vmatpush.bf16.msra.mxu1 %v1630_v23  ;;  %v1664_v11 = vld [vmem:[%s2070_s1 + $0x220] sm:$0xff]  ;;  %v1675_v29 = vld [vmem:[%s2072_s2 + $0x78] sm:$0xff]  ;;  %v1682_v31 = vld [vmem:[%s2072_s2 + $0x30] sm:$0xff] }
  0x1a   :  { %298 = vmatpush.bf16.msra.mxu0 %v1621_v24  ;;  %v1660_v15 = vld [vmem:[%s2070_s1 + $0x200] sm:$0xff] }
  0x1b   :  { %324 = vmatpush.bf16.msra.mxu2 %v1637_v25 }
  0x1c   :  { %486 = vmatpush.bf16.msra.mxu3 %v1597_v26 }
  0x1d   :  { %311 = vmatpush.bf16.msra.mxu1 %v1629_v28  ;;  %v1683_v28 = vld [vmem:[%s2072_s2 + $0x38] sm:$0xff] }
  0x1e   :  { %299 = vmatpush.bf16.msra.mxu0 %v1620_v30  ;;  %v1691_v30 = vld [vmem:[%s2072_s2 + $0xb8] sm:$0xff] }
  0x1f   :  { %325 = vmatpush.bf16.msra.mxu2 %v1636_v33 }
  0x20   :  { %487 = vmatpush.bf16.msra.mxu3 %v1596_v35  ;;  %v1690_v35 = vld [vmem:[%s2072_s2 + $0xb0] sm:$0xff] }
  0x21   :  { %312 = vmatpush.bf16.msra.mxu1 %v1628_v36  ;;  %300 = vmatmul.bf16.vlgmr.msra.gmra.mxu0 %v1840_v41 }
  0x22   :  { %493 = vmatpush.bf16.msrb.mxu0 %v1611_v32  ;;  %326 = vmatmul.bf16.vlgmr.msra.gmra.mxu2 %v1845_v43  ;;  %v1674_v32 = vld [vmem:[%s2072_s2 + $0x70] sm:$0xff] }
  0x23   :  { %712 = vmatpush.bf16.msrb.mxu2 %v1651_v38  ;;  %488 = vmatmul.bf16.vlgmr.msra.gmra.mxu3 %v1840_v41  ;;  %v1681_v38 = vld [vmem:[%s2072_s2 + $0x28] sm:$0xff] }
  0x24   :  { %725 = vmatpush.bf16.msrb.mxu3 %v1659_v39  ;;  %313 = vmatmul.bf16.vlgmr.msra.gmra.mxu1 %v1847_v44  ;;  %v1673_v39 = vld [vmem:[%s2072_s2 + $0x68] sm:$0xff] }
  0x25   :  { %506 = vmatpush.bf16.msrb.mxu1 %v1619_v40  ;;  %v1689_v40 = vld [vmem:[%s2072_s2 + $0xa8] sm:$0xff] }
  0x26   :  { %494 = vmatpush.bf16.msrb.mxu0 %v1610_v42  ;;  %v1680_v42 = vld [vmem:[%s2072_s2 + $0x20] sm:$0xff] }
  0x27   :  { %713 = vmatpush.bf16.msrb.mxu2 %v1650_v45  ;;  %v1688_v45 = vld [vmem:[%s2072_s2 + $0xa0] sm:$0xff] }
  0x28   :  { %726 = vmatpush.bf16.msrb.mxu3 %v1658_v46 }
  0x29   :  { %507 = vmatpush.bf16.msrb.mxu1 %v1618_v47 }
  0x2a   :  { %495 = vmatpush.bf16.msrb.mxu0 %v1609_v48  ;;  %v1679_v48 = vld [vmem:[%s2072_s2 + $0x18] sm:$0xff] }
  0x2b   :  { %714 = vmatpush.bf16.msrb.mxu2 %v1649_v49  ;;  %v1671_v49 = vld [vmem:[%s2072_s2 + $0x58] sm:$0xff] }
  0x2c   :  { %727 = vmatpush.bf16.msrb.mxu3 %v1657_v50  ;;  %v1687_v50 = vld [vmem:[%s2072_s2 + $0x98] sm:$0xff] }
  0x2d   :  { %508 = vmatpush.bf16.msrb.mxu1 %v1617_v51 }
  0x2e   :  { %496 = vmatpush.bf16.msrb.mxu0 %v1608_v52  ;;  %v1678_v52 = vld [vmem:[%s2072_s2 + $0x10] sm:$0xff] }
  0x2f   :  { %715 = vmatpush.bf16.msrb.mxu2 %v1648_v53  ;;  %v1670_v53 = vld [vmem:[%s2072_s2 + $0x50] sm:$0xff] }
  0x30   :  { %728 = vmatpush.bf16.msrb.mxu3 %v1656_v54  ;;  %v1686_v54 = vld [vmem:[%s2072_s2 + $0x90] sm:$0xff] }
  0x31   :  { %509 = vmatpush.bf16.msrb.mxu1 %v1616_v55 }
  0x32   :  { %497 = vmatpush.bf16.msrb.mxu0 %v1607_v56 }
  0x33   :  { %716 = vmatpush.bf16.msrb.mxu2 %v1647_v57 }
  0x34   :  { %729 = vmatpush.bf16.msrb.mxu3 %v1655_v58  ;;  %v1677_v58 = vld [vmem:[%s2072_s2 + $0x8] sm:$0xff] }
  0x35   :  { %510 = vmatpush.bf16.msrb.mxu1 %v1615_v59  ;;  %v1669_v59 = vld [vmem:[%s2072_s2 + $0x48] sm:$0xff] }
  0x36   :  { %498 = vmatpush.bf16.msrb.mxu0 %v1606_v60 }
  0x37   :  { %717 = vmatpush.bf16.msrb.mxu2 %v1646_v61  ;;  %v1685_v61 = vld [vmem:[%s2072_s2 + $0x88] sm:$0xff] }
  0x38   :  { %730 = vmatpush.bf16.msrb.mxu3 %v1654_v62 }
  0x39   :  { %511 = vmatpush.bf16.msrb.mxu1 %v1614_v63 }
  0x3a   :  { %499 = vmatpush.bf16.msrb.mxu0 %v1605_v0 }
  0x3b   :  { %718 = vmatpush.bf16.msrb.mxu2 %v1645_v1  ;;  %v1676_v1 = vld [vmem:[%s2072_s2] sm:$0xff] }
  0x3c   :  { %731 = vmatpush.bf16.msrb.mxu3 %v1653_v2  ;;  %v1668_v2 = vld [vmem:[%s2072_s2 + $0x40] sm:$0xff] }
  0x3d   :  { %512 = vmatpush.bf16.msrb.mxu1 %v1613_v3  ;;  %v1684_v3 = vld [vmem:[%s2072_s2 + $0x80] sm:$0xff] }
  0x3e   :  { %500 = vmatpush.bf16.msrb.mxu0 %v1604_v4 }
  0x3f   :  { %719 = vmatpush.bf16.msrb.mxu2 %v1644_v6 }
  0x40   :  { %732 = vmatpush.bf16.msrb.mxu3 %v1652_v7 }
  0x41   :  { %501 = vmatmul.bf16.vlgmr.msrb.gmra.mxu0 %v1847_v44  ;;  %513 = vmatpush.bf16.msrb.mxu1 %v1612_v8 }
  0x42   :  { %738 = vmatpush.bf16.msra.mxu0 %v1667_v5  ;;  %720 = vmatmul.bf16.vlgmr.msrb.gmra.mxu2 %v1840_v41  ;;  %v20_v41 = vlaneseq }
  0x43   :  { %733 = vmatmul.bf16.vlgmr.msrb.gmra.mxu3 %v1847_v44  ;;  %943 = vmatpush.bf16.msra.mxu2 %v1675_v29 }
  0x44   :  { %514 = vmatmul.bf16.vlgmr.msrb.gmra.mxu1 %v1845_v43  ;;  %1021 = vmatpush.bf16.msra.mxu3 %v1691_v30  ;;  %v21_v46 = vshrl.u32 %v20_v41, 7 }
  0x45   :  { %879 = vmatpush.bf16.msra.mxu1 %v1683_v28 }
  0x46   :  { %739 = vmatpush.bf16.msra.mxu0 %v1666_v9  ;;  %v26_v51 = vand.u32 3, %v21_v46 }
  0x47   :  { %944 = vmatpush.bf16.msra.mxu2 %v1674_v32 }
  0x48   :  { %1022 = vmatpush.bf16.msra.mxu3 %v1690_v35  ;;  %vm2021_vm0 = vcmp.eq.s32.totalorder %v26_v51, 0  ;;  %vm2046_vm1 = vcmp.eq.s32.totalorder %v26_v51, 3 }
  0x49   :  { %880 = vmatpush.bf16.msra.mxu1 %v1682_v31 }
  0x4a   :  { %740 = vmatpush.bf16.msra.mxu0 %v1665_v10 }
  0x4b   :  { %945 = vmatpush.bf16.msra.mxu2 %v1673_v39 }
  0x4c   :  { %1023 = vmatpush.bf16.msra.mxu3 %v1689_v40 }
  0x4d   :  { %881 = vmatpush.bf16.msra.mxu1 %v1681_v38  ;;  %v37_v38 = vld [vmem:[%s2074_s4] sm:$0x1] }
  0x4e   :  { %741 = vmatpush.bf16.msra.mxu0 %v1664_v11 }
  0x50   :  { %1024 = vmatpush.bf16.msra.mxu3 %v1688_v45 }
  0x51   :  { %882 = vmatpush.bf16.msra.mxu1 %v1680_v42 }
  0x52   :  { %742 = vmatpush.bf16.msra.mxu0 %v1663_v12 }
  0x54   :  { %1025 = vmatpush.bf16.msra.mxu3 %v1687_v50 }
  0x55   :  { %883 = vmatpush.bf16.msra.mxu1 %v1679_v48 }
  0x56   :  { %743 = vmatpush.bf16.msra.mxu0 %v1662_v13 }
  0x58   :  { %1026 = vmatpush.bf16.msra.mxu3 %v1686_v54 }
  0x59   :  { %884 = vmatpush.bf16.msra.mxu1 %v1678_v52 }
  0x5a   :  { %744 = vmatpush.bf16.msra.mxu0 %v1661_v14 }
  0x5c   :  { %1027 = vmatpush.bf16.msra.mxu3 %v1685_v61 }
  0x5d   :  { %885 = vmatpush.bf16.msra.mxu1 %v1677_v58 }
  0x5e   :  { %745 = vmatpush.bf16.msra.mxu0 %v1660_v15 }
  0x60   :  { %1028 = vmatpush.bf16.msra.mxu3 %v1684_v3 }
  0x61   :  { %746 = vmatmul.bf16.vlgmr.msra.gmra.mxu0 %v1845_v43  ;;  %v1672_v43 = vld [vmem:[%s2072_s2 + $0x60] sm:$0xff]  ;;  %886 = vmatpush.bf16.msra.mxu1 %v1676_v1 }
  0x62   :  { %946 = vmatpush.bf16.msra.mxu2 %v1672_v43 }
  0x66   :  { %947 = vmatpush.bf16.msra.mxu2 %v1671_v49 }
  0x6a   :  { %948 = vmatpush.bf16.msra.mxu2 %v1670_v53 }
  0x6e   :  { %949 = vmatpush.bf16.msra.mxu2 %v1669_v59 }
  0x72   :  { %950 = vmatpush.bf16.msra.mxu2 %v1668_v2 }
  0x9e   :  { %v301_v16 = vpop.f32.mrf.mxu0 }
  0xa1   :  { %v314_v17 = vpop.f32.mrf.mxu1 }
  0xa2   :  { %v315_v18 = vadd.f32 %v314_v17, %v301_v16 }
  0xa5   :  { %v327_v19 = vpop.f32.mrf.mxu2 }
  0xa6   :  { %v303_v20 = vpop.f32.mrf.mxu0  ;;  %v328_v21 = vadd.f32 %v327_v19, %v315_v18  ;;  %v489_v22 = vpop.f32.mrf.mxu3 }
  0xa8   :  { %331 = vst [vmem:[#allocation2 + $0x1] sm:$0xff] %v328_v21 }
  0xa9   :  { %v316_v23 = vpop.f32.mrf.mxu1 }
  0xad   :  { %v329_v24 = vpop.f32.mrf.mxu2 }
  0xae   :  { %v491_v25 = vpop.f32.mrf.mxu3 }
  0xaf   :  { %v332_v56 = vld [vmem:[#allocation2] sm:$0xff] }
  0xb0   :  { %v335_v60 = vsel %vm2021_vm0, 0.0, %v332_v56 }
  0xb1   :  { %v490_v0 = vadd.f32 %v489_v22, %v335_v60 }
  0xbe   :  { %v1963_v26 = vpop.f32.mrf.mxu0 }
  0xbf   :  { %v503_v4 = vadd.f32 %v1963_v26, %v490_v0 }
  0xc1   :  { %v1965_v27 = vpop.f32.mrf.mxu1 }
  0xc2   :  { %v516_v7 = vadd.f32 %v1965_v27, %v503_v4 }
  0xc5   :  { %v721_v34 = vpop.f32.mrf.mxu2 }
  0xc6   :  { %v504_v33 = vpop.f32.mrf.mxu0  ;;  %v734_v36 = vpop.f32.mrf.mxu3 }
  0xc7   :  { %v735_v57 = vadd.f32 %v734_v36, %v721_v34  ;;  %v2056_v34 = vld [vmem:[%s2073_s3] sm:$0x1] }
  0xc9   :  { %v517_v37 = vpop.f32.mrf.mxu1 }
  0xcd   :  { %v723_v44 = vpop.f32.mrf.mxu2 }
  0xce   :  { %v736_v47 = vpop.f32.mrf.mxu3 }
  0xde   :  { %v747_v62 = vpop.f32.mrf.mxu0 }
  0xdf   :  { %v748_v63 = vadd.f32 %v747_v62, %v735_v57 }
  0xe1   :  { %751 = vst [vmem:[#allocation3] sm:$0xff] %v748_v63 }
  0xe6   :  { %v749_v6 = vpop.f32.mrf.mxu0 }
  0xe8   :  { %v752_v8 = vld [vmem:[#allocation3 + $0x1] sm:$0xff] }
  0xe9   :  { %v755_v9 = vsel %vm2046_vm1, 0.0, %v752_v8 }
  0xea   :  { %v756_v10 = vadd.f32 %v755_v9, %v516_v7 }
  0xec   :  { %v757_v11 = vrot.slane %v756_v10, 4  ;;  %v764_v12 = vmul.f32 %v756_v10, %v756_v10 }
  0xee   :  { %v758_v13 = vadd.f32 %v757_v11, %v756_v10  ;;  %v765_v14 = vrot.slane %v764_v12, 4 }
  0xf0   :  { %v759_v15 = vrot.slane %v758_v13, 2  ;;  %v766_v16 = vadd.f32 %v765_v14, %v764_v12 }
  0xf2   :  { %v760_v17 = vadd.f32 %v759_v15, %v758_v13  ;;  %v767_v18 = vrot.slane %v766_v16, 2 }
  0xf4   :  { %v761_v19 = vrot.slane %v760_v17, 1  ;;  %v768_v20 = vadd.f32 %v767_v18, %v766_v16 }
  0xf6   :  { %v762_v21 = vadd.f32 %v761_v19, %v760_v17  ;;  %v769_v22 = vrot.slane %v768_v20, 1 }
  0xf8   :  { %v763_v23 = vmul.f32 0.125, %v762_v21  ;;  %v770_v24 = vadd.f32 %v769_v22, %v768_v20 }
  0xfa   :  { %v771_v25 = vmul.f32 0.125, %v770_v24  ;;  %v772_v26 = vmul.f32 %v763_v23, %v763_v23 }
  0xfc   :  { %v773_v27 = vsub.f32 %v771_v25, %v772_v26 }
  0xfe   :  { %v774_v28 = vadd.f32 1e-05, %v773_v27 }
 0x100   :  { %1692 = vrsqrt.f32 %v774_v28  ;;  %vm781_vm3 = vweird.f32 %v774_v28 }
 0x106   :  { %v1693_v29 = vpop.eup %1692 }
 0x107   :  { %v776_v30 = vmul.f32 %v1693_v29, %v774_v28  ;;  %vm782_vm2 = vweird.f32 %v1693_v29 }
 0x108   :  { %vm783_vm4 = vmor %vm781_vm3, %vm782_vm2 }
 0x109   :  { %v777_v31 = vmul.f32 %v1693_v29, %v776_v30 }
 0x10b   :  { %v778_v32 = vmul.f32 0.5, %v777_v31 }
 0x10d   :  { %v779_v33 = vsub.f32 1.5, %v778_v32 }
 0x10f   :  { %v780_v35 = vmul.f32 %v1693_v29, %v779_v33 }
 0x111   :  { %v784_v36 = vsel %vm783_vm4, %v1693_v29, %v780_v35 }
 0x112   :  { %v785_v37 = vmul.f32 %v784_v36, %v2056_v34 }
 0x114   :  { %v786_v39 = vmul.f32 %v785_v37, %v763_v23  ;;  %v789_v40 = vperm.slane %v785_v37, 0 }
 0x116   :  { %v787_v41 = vsub.f32 %v37_v38, %v786_v39  ;;  %v791_v42 = vmul.f32 %v789_v40, %v756_v10 }
 0x118   :  { %v793_v43 = vperm.slane %v787_v41, 0 }
 0x11a   :  { %v795_v44 = vadd.f32 %v793_v43, %v791_v42 }
 0x11c   :  { %v796_v45 = vmax.f32 %v795_v44, 0.0 }
 0x11e   :  { %v797_v46 = vpack.c.bf16 %v796_v45, %v796_v45 }
 0x120   :  { %887 = vmatmul.bf16.vlgmr.msra.gmra.mxu1 %v797_v46  ;;  %951 = vmatmul.bf16.vlgmr.msra.gmra.mxu2 %v797_v46 }
 0x121   :  { %1029 = vmatmul.bf16.vlgmr.msra.gmra.mxu3 %v797_v46 }
 0x19d   :  { %v888_v47 = vpop.f32.mrf.mxu1 }
 0x19e   :  { %892 = vst [vmem:[#allocation2 + $0x1] sm:$0xff] %v888_v47 }
 0x1a3   :  { %v952_v48 = vpop.f32.mrf.mxu2 }
 0x1a4   :  { %v1030_v49 = vpop.f32.mrf.mxu3 }
 0x1a5   :  { %1034 = vst [vmem:[#allocation3] sm:$0xff] %v1030_v49  ;;  %v890_v50 = vpop.f32.mrf.mxu1  ;;  %v893_v51 = vld [vmem:[#allocation2] sm:$0xff] }
 0x1a6   :  { %v894_v52 = vsel %vm2021_vm0, 0.0, %v893_v51 }
 0x1a7   :  { %v953_v54 = vadd.f32 %v952_v48, %v894_v52 }
 0x1ab   :  { %v954_v53 = vpop.f32.mrf.mxu2 }
 0x1ac   :  { %v1035_v56 = vld [vmem:[#allocation3 + $0x1] sm:$0xff]  ;;  %v1032_v57 = vpop.f32.mrf.mxu3 }
 0x1ad   :  { %v1036_v58 = vsel %vm2046_vm1, 0.0, %v1035_v56 }
 0x1ae   :  { %v1037_v59 = vadd.f32 %v1036_v58, %v953_v54 }
 0x1b0   :  { %v1038_v60 = vrot.slane %v1037_v59, 4  ;;  %v1045_v61 = vmul.f32 %v1037_v59, %v1037_v59 }
 0x1b2   :  { %v1039_v62 = vadd.f32 %v1038_v60, %v1037_v59  ;;  %v1046_v63 = vrot.slane %v1045_v61, 4 }
 0x1b4   :  { %v1040_v0 = vrot.slane %v1039_v62, 2  ;;  %v1047_v1 = vadd.f32 %v1046_v63, %v1045_v61 }
 0x1b6   :  { %v1041_v2 = vadd.f32 %v1040_v0, %v1039_v62  ;;  %v1048_v3 = vrot.slane %v1047_v1, 2 }
 0x1b8   :  { %v1042_v4 = vrot.slane %v1041_v2, 1  ;;  %v1049_v6 = vadd.f32 %v1048_v3, %v1047_v1 }
 0x1ba   :  { %v1043_v55 = vadd.f32 %v1042_v4, %v1041_v2  ;;  %v1050_v7 = vrot.slane %v1049_v6, 1 }
 0x1bc   :  { %v1044_v8 = vmul.f32 0.125, %v1043_v55  ;;  %v1051_v9 = vadd.f32 %v1050_v7, %v1049_v6 }
 0x1be   :  { %v1052_v10 = vmul.f32 0.125, %v1051_v9  ;;  %v1053_v11 = vmul.f32 %v1044_v8, %v1044_v8 }
 0x1c0   :  { %v1054_v12 = vsub.f32 %v1052_v10, %v1053_v11 }
 0x1c2   :  { %v1055_v5 = vadd.f32 1e-05, %v1054_v12 }
 0x1c4   :  { %1694 = vrsqrt.f32 %v1055_v5  ;;  %vm1062_vm6 = vweird.f32 %v1055_v5 }
 0x1ca   :  { %v1695_v13 = vpop.eup %1694 }
 0x1cb   :  { %v1057_v14 = vmul.f32 %v1695_v13, %v1055_v5  ;;  %vm1063_vm5 = vweird.f32 %v1695_v13 }
 0x1cc   :  { %vm1064_vm7 = vmor %vm1062_vm6, %vm1063_vm5 }
 0x1cd   :  { %v1058_v15 = vmul.f32 %v1695_v13, %v1057_v14 }
 0x1cf   :  { %v1059_v16 = vmul.f32 0.5, %v1058_v15 }
 0x1d1   :  { %v1060_v17 = vsub.f32 1.5, %v1059_v16 }
 0x1d3   :  { %v1061_v18 = vmul.f32 %v1695_v13, %v1060_v17 }
 0x1d5   :  { %v1065_v19 = vsel %vm1064_vm7, %v1695_v13, %v1061_v18 }
 0x1d6   :  { %v1066_v20 = vmul.f32 %v1065_v19, %v2056_v34 }
 0x1d8   :  { %v1067_v21 = vmul.f32 %v1066_v20, %v1044_v8  ;;  %v1070_v22 = vperm.slane %v1066_v20, 0 }
 0x1da   :  { %v1068_v23 = vsub.f32 %v37_v38, %v1067_v21  ;;  %v1072_v24 = vmul.f32 %v1070_v22, %v1037_v59 }
 0x1dc   :  { %v1074_v25 = vperm.slane %v1068_v23, 0 }
 0x1de   :  { %v1076_v26 = vadd.f32 %v1074_v25, %v1072_v24 }
 0x1e0   :  { %v1077_v27 = vmax.f32 %v1076_v26, 0.0 }
 0x1e2   :  { %v1078_v28 = vpack.c.bf16 %v1077_v27, %v1077_v27 }
 0x1e4   :  { %1079 = vst [vmem:[%s2075_s5] sm:$0xf] %v1078_v28 }

// kernel: debugnet_forward.15
= control target key start
LH: loop header
LB: loop body
LE: loop exit
PB: predicated region body
PF: predicated region fallthrough
CT: control target
= control target key end

     0   :  { %vm58_vm0 = vcmask 523264   ;;  %vm76_vm1 = vcmask 31744   ;;  %s154_s1 = inlined_call_operand.vmem [shape: bf16[64,4], index: 1, kind: input, shape index: {}]   ;;  %s155_s2 = inlined_call_operand.vmem [shape: f32[1,4], index: 2, kind: input, shape index: {}]   ;;  %s156_s0 = inlined_call_operand.vmem [shape: bf16[16,64], index: 0, kind: input, shape index: {}]   ;;  %s157_s3 = inlined_call_operand.vmem [shape: f32[16,4], index: 3, kind: output, shape index: {}]  }
   0x1   :  { %v108_v0 = vld [vmem:[%s154_s1 + $0x18] sm:$0xff]  ;;  %v107_v1 = vld [vmem:[%s154_s1 + $0x10] sm:$0xff]  ;;  %v106_v2 = vld [vmem:[%s154_s1 + $0x8] sm:$0xff] }
   0x2   :  { %66 = vmatpush.bf16.msra.mxu0 %v108_v0  ;;  %v105_v3 = vld [vmem:[%s154_s1] sm:$0xff] }
   0x3   :  { %v104_v4 = vld [vmem:[%s156_s0] sm:$0xff] }
   0x4   :  { %v109_v5 = vld [vmem:[%s155_s2] ss:$0 sm:$0xff] }
   0x6   :  { %67 = vmatpush.bf16.msra.mxu0 %v107_v1 }
   0xa   :  { %68 = vmatpush.bf16.msra.mxu0 %v106_v2 }
   0xe   :  { %69 = vmatpush.bf16.msra.mxu0 %v105_v3 }
  0x11   :  { %103 = vmatmul.msk.bf16.vlgmr.msra.gmra.mxu0 %vm58_vm0, %v104_v4 }
  0x8e   :  { %v71_v6 = vpop.f32.mrf.mxu0 }
  0x8f   :  { %v72_v7 = vadd.f32 %v109_v5, %v71_v6 }
  0x91   :  { %77 = vst.msk [vmem:[%s157_s3] sm:$0xff] %vm76_vm1, %v72_v7 }
  0x96   :  { %v73_v8 = vpop.f32.mrf.mxu0 }
  0x97   :  { %v74_v9 = vadd.f32 %v109_v5, %v73_v8 }
  0x99   :  { %78 = vst.msk [vmem:[%s157_s3 + $0x8] sm:$0xff] %vm76_vm1, %v74_v9 }

// kernel: debugnet_forward.12
= control target key start
LH: loop header
LB: loop body
LE: loop exit
PB: predicated region body
PF: predicated region fallthrough
CT: control target
= control target key end

     0   :  { %vm2315_vm2 = vcmask 1043456   ;;  %vm2379_vm8 = vcmask 1040384   ;;  %s7998_s1 = inlined_call_operand.vmem [shape: bf16[3,768,256], index: 1, kind: input, shape index: {}]   ;;  %s7999_s0 = inlined_call_operand.vmem [shape: bf16[4,768], index: 0, kind: input, shape index: {}]   ;;  %s8000_s2 = inlined_call_operand.vmem [shape: bf16[3,256,256], index: 2, kind: input, shape index: {}]   ;;  %s8001_s3 = inlined_call_operand.vmem [shape: f32[1,256], index: 3, kind: input, shape index: {}]   ;;  %s8002_s4 = inlined_call_operand.vmem [shape: f32[1,256], index: 4, kind: input, shape index: {}]   ;;  %s8003_s5 = inlined_call_operand.vmem [shape: bf16[4,256], index: 5, kind: output, shape index: {}]  }
   0x1   :  { %v3426_v0 = vld [vmem:[%s7998_s1 + $0x70] sm:$0xf]  ;;  %v5175_v1 = vld [vmem:[%s7998_s1 + $0x74] sm:$0xf0]  ;;  %v3418_v11 = vld [vmem:[%s7998_s1 + $0x60] sm:$0xf] }
   0x2   :  { %v3490_v2 = vld [vmem:[%s7998_s1 + $0xf0] sm:$0xf]  ;;  %v3427_v3 = vor.u32 %v5175_v1, %v3426_v0  ;;  %v5191_v4 = vld [vmem:[%s7998_s1 + $0xf4] sm:$0xf0]  ;;  %v5173_v13 = vld [vmem:[%s7998_s1 + $0x64] sm:$0xf0] }
   0x3   :  { %v3554_v5 = vld [vmem:[%s7998_s1 + $0x170] sm:$0xf]  ;;  %v5207_v6 = vld [vmem:[%s7998_s1 + $0x174] sm:$0xf0]  ;;  %v3491_v7 = vor.u32 %v5191_v4, %v3490_v2  ;;  %v3482_v14 = vld [vmem:[%s7998_s1 + $0xe0] sm:$0xf]  ;;  %v3419_v16 = vor.u32 %v5173_v13, %v3418_v11 }
   0x4   :  { %v3555_v8 = vor.u32 %v5207_v6, %v3554_v5  ;;  %v3618_v9 = vld [vmem:[%s7998_s1 + $0x1f0] sm:$0xf]  ;;  %v5223_v10 = vld [vmem:[%s7998_s1 + $0x1f4] sm:$0xf0]  ;;  %730 = vmatpush.bf16.msra.mxu0 %v3427_v3  ;;  %v5189_v15 = vld [vmem:[%s7998_s1 + $0xe4] sm:$0xf0] }
   0x5   :  { %v3619_v12 = vor.u32 %v5223_v10, %v3618_v9  ;;  %743 = vmatpush.bf16.msra.mxu1 %v3491_v7  ;;  %v3483_v17 = vor.u32 %v5189_v15, %v3482_v14  ;;  %v3546_v18 = vld [vmem:[%s7998_s1 + $0x160] sm:$0xf]  ;;  %v5205_v19 = vld [vmem:[%s7998_s1 + $0x164] sm:$0xf0]  ;;  %v3410_v23 = vld [vmem:[%s7998_s1 + $0x50] sm:$0xf] }
   0x6   :  { %756 = vmatpush.bf16.msra.mxu2 %v3555_v8  ;;  %v3610_v20 = vld [vmem:[%s7998_s1 + $0x1e0] sm:$0xf]  ;;  %v3547_v21 = vor.u32 %v5205_v19, %v3546_v18  ;;  %v5221_v22 = vld [vmem:[%s7998_s1 + $0x1e4] sm:$0xf0]  ;;  %v5171_v24 = vld [vmem:[%s7998_s1 + $0x54] sm:$0xf0] }
   0x7   :  { %769 = vmatpush.bf16.msra.mxu3 %v3619_v12  ;;  %v3611_v25 = vor.u32 %v5221_v22, %v3610_v20  ;;  %v3474_v26 = vld [vmem:[%s7998_s1 + $0xd0] sm:$0xf]  ;;  %v5187_v27 = vld [vmem:[%s7998_s1 + $0xd4] sm:$0xf0]  ;;  %v3411_v29 = vor.u32 %v5171_v24, %v3410_v23  ;;  %v3402_v35 = vld [vmem:[%s7998_s1 + $0x40] sm:$0xf] }
   0x8   :  { %v3538_v28 = vld [vmem:[%s7998_s1 + $0x150] sm:$0xf]  ;;  %731 = vmatpush.bf16.msra.mxu0 %v3419_v16  ;;  %v5203_v30 = vld [vmem:[%s7998_s1 + $0x154] sm:$0xf0]  ;;  %v3475_v33 = vor.u32 %v5187_v27, %v3474_v26  ;;  %v5169_v36 = vld [vmem:[%s7998_s1 + $0x44] sm:$0xf0] }
   0x9   :  { %v3602_v31 = vld [vmem:[%s7998_s1 + $0x1d0] sm:$0xf]  ;;  %v5219_v32 = vld [vmem:[%s7998_s1 + $0x1d4] sm:$0xf0]  ;;  %744 = vmatpush.bf16.msra.mxu1 %v3483_v17  ;;  %v3539_v34 = vor.u32 %v5203_v30, %v3538_v28  ;;  %v3466_v37 = vld [vmem:[%s7998_s1 + $0xc0] sm:$0xf]  ;;  %v3403_v44 = vor.u32 %v5169_v36, %v3402_v35 }
   0xa   :  { %757 = vmatpush.bf16.msra.mxu2 %v3547_v21  ;;  %v3603_v38 = vor.u32 %v5219_v32, %v3602_v31  ;;  %v5185_v39 = vld [vmem:[%s7998_s1 + $0xc4] sm:$0xf0]  ;;  %v3530_v40 = vld [vmem:[%s7998_s1 + $0x140] sm:$0xf]  ;;  %v3394_v47 = vld [vmem:[%s7998_s1 + $0x30] sm:$0xf] }
   0xb   :  { %770 = vmatpush.bf16.msra.mxu3 %v3611_v25  ;;  %v5201_v41 = vld [vmem:[%s7998_s1 + $0x144] sm:$0xf0]  ;;  %v3594_v42 = vld [vmem:[%s7998_s1 + $0x1c0] sm:$0xf]  ;;  %v3467_v45 = vor.u32 %v5185_v39, %v3466_v37  ;;  %v5167_v48 = vld [vmem:[%s7998_s1 + $0x34] sm:$0xf0] }
   0xc   :  { %v5217_v43 = vld [vmem:[%s7998_s1 + $0x1c4] sm:$0xf0]  ;;  %732 = vmatpush.bf16.msra.mxu0 %v3411_v29  ;;  %v3531_v46 = vor.u32 %v5201_v41, %v3530_v40  ;;  %v3458_v49 = vld [vmem:[%s7998_s1 + $0xb0] sm:$0xf]  ;;  %v5183_v51 = vld [vmem:[%s7998_s1 + $0xb4] sm:$0xf0]  ;;  %v3395_v56 = vor.u32 %v5167_v48, %v3394_v47 }
   0xd   :  { %745 = vmatpush.bf16.msra.mxu1 %v3475_v33  ;;  %v3595_v50 = vor.u32 %v5217_v43, %v3594_v42  ;;  %v3522_v52 = vld [vmem:[%s7998_s1 + $0x130] sm:$0xf]  ;;  %v5199_v53 = vld [vmem:[%s7998_s1 + $0x134] sm:$0xf0]  ;;  %v3459_v57 = vor.u32 %v5183_v51, %v3458_v49  ;;  %v3386_v59 = vld [vmem:[%s7998_s1 + $0x20] sm:$0xf] }
   0xe   :  { %758 = vmatpush.bf16.msra.mxu2 %v3539_v34  ;;  %v3586_v54 = vld [vmem:[%s7998_s1 + $0x1b0] sm:$0xf]  ;;  %v5215_v55 = vld [vmem:[%s7998_s1 + $0x1b4] sm:$0xf0]  ;;  %v3523_v58 = vor.u32 %v5199_v53, %v3522_v52  ;;  %v5165_v60 = vld [vmem:[%s7998_s1 + $0x24] sm:$0xf0] }
   0xf   :  { %771 = vmatpush.bf16.msra.mxu3 %v3603_v38  ;;  %v3450_v61 = vld [vmem:[%s7998_s1 + $0xa0] sm:$0xf]  ;;  %v3587_v62 = vor.u32 %v5215_v55, %v3586_v54  ;;  %v5181_v63 = vld [vmem:[%s7998_s1 + $0xa4] sm:$0xf0]  ;;  %v3387_v4 = vor.u32 %v5165_v60, %v3386_v59  ;;  %v3378_v7 = vld [vmem:[%s7998_s1 + $0x10] sm:$0xf] }
  0x10   :  { %733 = vmatpush.bf16.msra.mxu0 %v3403_v44  ;;  %v3514_v0 = vld [vmem:[%s7998_s1 + $0x120] sm:$0xf]  ;;  %v5197_v1 = vld [vmem:[%s7998_s1 + $0x124] sm:$0xf0]  ;;  %v3451_v5 = vor.u32 %v5181_v63, %v3450_v61  ;;  %v5163_v8 = vld [vmem:[%s7998_s1 + $0x14] sm:$0xf0] }
  0x11   :  { %746 = vmatpush.bf16.msra.mxu1 %v3467_v45  ;;  %v3578_v2 = vld [vmem:[%s7998_s1 + $0x1a0] sm:$0xf]  ;;  %v5213_v3 = vld [vmem:[%s7998_s1 + $0x1a4] sm:$0xf0]  ;;  %v3515_v6 = vor.u32 %v5197_v1, %v3514_v0  ;;  %v3442_v9 = vld [vmem:[%s7998_s1 + $0x90] sm:$0xf]  ;;  %v3379_v16 = vor.u32 %v5163_v8, %v3378_v7 }
  0x12   :  { %759 = vmatpush.bf16.msra.mxu2 %v3531_v46  ;;  %v3579_v10 = vor.u32 %v5213_v3, %v3578_v2  ;;  %v5179_v11 = vld [vmem:[%s7998_s1 + $0x94] sm:$0xf0]  ;;  %v3506_v12 = vld [vmem:[%s7998_s1 + $0x110] sm:$0xf]  ;;  %v3370_v17 = vld [vmem:[%s7998_s1] sm:$0xf] }
  0x13   :  { %772 = vmatpush.bf16.msra.mxu3 %v3595_v50  ;;  %v5195_v13 = vld [vmem:[%s7998_s1 + $0x114] sm:$0xf0]  ;;  %v3570_v14 = vld [vmem:[%s7998_s1 + $0x190] sm:$0xf]  ;;  %v5161_v18 = vld [vmem:[%s7998_s1 + $0x4] sm:$0xf0]  ;;  %v3443_v19 = vor.u32 %v5179_v11, %v3442_v9 }
  0x14   :  { %734 = vmatpush.bf16.msra.mxu0 %v3395_v56  ;;  %v5211_v15 = vld [vmem:[%s7998_s1 + $0x194] sm:$0xf0]  ;;  %v3507_v20 = vor.u32 %v5195_v13, %v3506_v12  ;;  %v3434_v21 = vld [vmem:[%s7998_s1 + $0x80] sm:$0xf]  ;;  %v5177_v22 = vld [vmem:[%s7998_s1 + $0x84] sm:$0xf0]  ;;  %v3371_v31 = vor.u32 %v5161_v18, %v3370_v17 }
  0x15   :  { %747 = vmatpush.bf16.msra.mxu1 %v3459_v57  ;;  %v3498_v23 = vld [vmem:[%s7998_s1 + $0x100] sm:$0xf]  ;;  %v3571_v24 = vor.u32 %v5211_v15, %v3570_v14  ;;  %v5193_v25 = vld [vmem:[%s7998_s1 + $0x104] sm:$0xf0]  ;;  %v3682_v28 = vld [vmem:[%s7998_s1 + $0x270] sm:$0xf]  ;;  %v3435_v35 = vor.u32 %v5177_v22, %v3434_v21 }
  0x16   :  { %760 = vmatpush.bf16.msra.mxu2 %v3523_v58  ;;  %v3562_v26 = vld [vmem:[%s7998_s1 + $0x180] sm:$0xf]  ;;  %v5209_v27 = vld [vmem:[%s7998_s1 + $0x184] sm:$0xf0]  ;;  %v5239_v29 = vld [vmem:[%s7998_s1 + $0x274] sm:$0xf0]  ;;  %v3499_v36 = vor.u32 %v5193_v25, %v3498_v23 }
  0x17   :  { %773 = vmatpush.bf16.msra.mxu3 %v3587_v62  ;;  %v3746_v30 = vld [vmem:[%s7998_s1 + $0x2f0] sm:$0xf]  ;;  %v5255_v32 = vld [vmem:[%s7998_s1 + $0x2f4] sm:$0xf0]  ;;  %v5174_v33 = vld [vmem:[%s7998_s1 + $0x74] sm:$0xf]  ;;  %v3563_v39 = vor.u32 %v5209_v27, %v3562_v26  ;;  %v3683_v40 = vor.u32 %v5239_v29, %v3682_v28 }
  0x18   :  { %735 = vmatpush.bf16.msra.mxu0 %v3387_v4  ;;  %v3428_v34 = vld [vmem:[%s7998_s1 + $0x78] sm:$0xf0]  ;;  %v5190_v37 = vld [vmem:[%s7998_s1 + $0xf4] sm:$0xf]  ;;  %v3747_v41 = vor.u32 %v5255_v32, %v3746_v30  ;;  %v3674_v43 = vld [vmem:[%s7998_s1 + $0x260] sm:$0xf] }
  0x19   :  { %748 = vmatpush.bf16.msra.mxu1 %v3451_v5  ;;  %v3492_v38 = vld [vmem:[%s7998_s1 + $0xf8] sm:$0xf0]  ;;  %v3431_v42 = vor.u32 %v5174_v33, %v3428_v34  ;;  %v5237_v44 = vld [vmem:[%s7998_s1 + $0x264] sm:$0xf0]  ;;  %v3738_v45 = vld [vmem:[%s7998_s1 + $0x2e0] sm:$0xf] }
  0x1a   :  { %761 = vmatpush.bf16.msra.mxu2 %v3515_v6  ;;  %v3495_v46 = vor.u32 %v5190_v37, %v3492_v38  ;;  %v5253_v47 = vld [vmem:[%s7998_s1 + $0x2e4] sm:$0xf0]  ;;  %v5172_v48 = vld [vmem:[%s7998_s1 + $0x64] sm:$0xf]  ;;  %v3420_v49 = vld [vmem:[%s7998_s1 + $0x68] sm:$0xf0]  ;;  %v3675_v52 = vor.u32 %v5237_v44, %v3674_v43 }
  0x1b   :  { %774 = vmatpush.bf16.msra.mxu3 %v3579_v10  ;;  %v5188_v50 = vld [vmem:[%s7998_s1 + $0xe4] sm:$0xf]  ;;  %v3484_v51 = vld [vmem:[%s7998_s1 + $0xe8] sm:$0xf0]  ;;  %v3739_v53 = vor.u32 %v5253_v47, %v3738_v45  ;;  %v3423_v54 = vor.u32 %v5172_v48, %v3420_v49  ;;  %v3666_v55 = vld [vmem:[%s7998_s1 + $0x250] sm:$0xf] }
  0x1c   :  { %736 = vmatpush.bf16.msra.mxu0 %v3379_v16  ;;  %v5235_v56 = vld [vmem:[%s7998_s1 + $0x254] sm:$0xf0]  ;;  %v3730_v57 = vld [vmem:[%s7998_s1 + $0x2d0] sm:$0xf]  ;;  %v3487_v58 = vor.u32 %v5188_v50, %v3484_v51  ;;  %v5170_v60 = vld [vmem:[%s7998_s1 + $0x54] sm:$0xf] }
  0x1d   :  { %749 = vmatpush.bf16.msra.mxu1 %v3443_v19  ;;  %v5251_v59 = vld [vmem:[%s7998_s1 + $0x2d4] sm:$0xf0]  ;;  %v3412_v61 = vld [vmem:[%s7998_s1 + $0x58] sm:$0xf0]  ;;  %v5186_v62 = vld [vmem:[%s7998_s1 + $0xd4] sm:$0xf]  ;;  %v3667_v0 = vor.u32 %v5235_v56, %v3666_v55 }
  0x1e   :  { %762 = vmatpush.bf16.msra.mxu2 %v3507_v20  ;;  %v3476_v63 = vld [vmem:[%s7998_s1 + $0xd8] sm:$0xf0]  ;;  %v3658_v1 = vld [vmem:[%s7998_s1 + $0x240] sm:$0xf]  ;;  %v3731_v3 = vor.u32 %v5251_v59, %v3730_v57  ;;  %v3415_v4 = vor.u32 %v5170_v60, %v3412_v61  ;;  %v5233_v5 = vld [vmem:[%s7998_s1 + $0x244] sm:$0xf0] }
  0x1f   :  { %775 = vmatpush.bf16.msra.mxu3 %v3571_v24  ;;  %v5756_v2 = vld [vmem:[%s7999_s0] sm:$0xff]  ;;  %v3479_v7 = vor.u32 %v5186_v62, %v3476_v63  ;;  %v5249_v8 = vld [vmem:[%s7998_s1 + $0x2c4] sm:$0xf0]  ;;  %v3404_v10 = vld [vmem:[%s7998_s1 + $0x48] sm:$0xf0]  ;;  %v3659_v13 = vor.u32 %v5233_v5, %v3658_v1 }
  0x20   :  { %737 = vmatpush.bf16.msra.mxu0 %v3371_v31  ;;  %v3722_v6 = vld [vmem:[%s7998_s1 + $0x2c0] sm:$0xf]  ;;  %234 = vst [vmem:[#allocation1] ss:$4 sm:$0xff] %v5756_v2  ;;  %v5168_v9 = vld [vmem:[%s7998_s1 + $0x44] sm:$0xf] }
  0x21   :  { %750 = vmatpush.bf16.msra.mxu1 %v3435_v35  ;;  %v5184_v11 = vld [vmem:[%s7998_s1 + $0xc4] sm:$0xf]  ;;  %v3468_v12 = vld [vmem:[%s7998_s1 + $0xc8] sm:$0xf0]  ;;  %v3650_v14 = vld [vmem:[%s7998_s1 + $0x230] sm:$0xf]  ;;  %v3723_v15 = vor.u32 %v5249_v8, %v3722_v6  ;;  %v3407_v16 = vor.u32 %v5168_v9, %v3404_v10 }
  0x22   :  { %763 = vmatpush.bf16.msra.mxu2 %v3499_v36  ;;  %v5231_v17 = vld [vmem:[%s7998_s1 + $0x234] sm:$0xf0]  ;;  %v3714_v18 = vld [vmem:[%s7998_s1 + $0x2b0] sm:$0xf]  ;;  %v3471_v20 = vor.u32 %v5184_v11, %v3468_v12  ;;  %v5166_v21 = vld [vmem:[%s7998_s1 + $0x34] sm:$0xf] }
  0x23   :  { %776 = vmatpush.bf16.msra.mxu3 %v3563_v39  ;;  %v5247_v19 = vld [vmem:[%s7998_s1 + $0x2b4] sm:$0xf0]  ;;  %v3396_v22 = vld [vmem:[%s7998_s1 + $0x38] sm:$0xf0]  ;;  %v5182_v23 = vld [vmem:[%s7998_s1 + $0xb4] sm:$0xf]  ;;  %v3651_v27 = vor.u32 %v5231_v17, %v3650_v14 }
  0x24   :  { %782 = vmatpush.bf16.msrb.mxu0 %v3683_v40  ;;  %v3460_v24 = vld [vmem:[%s7998_s1 + $0xb8] sm:$0xf0]  ;;  %v3642_v25 = vld [vmem:[%s7998_s1 + $0x220] sm:$0xf]  ;;  %v5229_v26 = vld [vmem:[%s7998_s1 + $0x224] sm:$0xf0]  ;;  %v3715_v32 = vor.u32 %v5247_v19, %v3714_v18  ;;  %v3399_v33 = vor.u32 %v5166_v21, %v3396_v22 }
  0x25   :  { %795 = vmatpush.bf16.msrb.mxu1 %v3747_v41  ;;  %v3706_v28 = vld [vmem:[%s7998_s1 + $0x2a0] sm:$0xf]  ;;  %v5245_v29 = vld [vmem:[%s7998_s1 + $0x2a4] sm:$0xf0]  ;;  %v3463_v36 = vor.u32 %v5182_v23, %v3460_v24  ;;  %v5164_v37 = vld [vmem:[%s7998_s1 + $0x24] sm:$0xf]  ;;  %v3643_v41 = vor.u32 %v5229_v26, %v3642_v25 }
  0x26   :  { %808 = vmatpush.bf16.msrb.mxu2 %v3431_v42  ;;  %v3388_v38 = vld [vmem:[%s7998_s1 + $0x28] sm:$0xf0]  ;;  %v5180_v39 = vld [vmem:[%s7998_s1 + $0xa4] sm:$0xf]  ;;  %v3634_v42 = vld [vmem:[%s7998_s1 + $0x210] sm:$0xf]  ;;  %v3707_v43 = vor.u32 %v5245_v29, %v3706_v28 }
  0x27   :  { %821 = vmatpush.bf16.msrb.mxu3 %v3495_v46  ;;  %v5816_v30 = vld.sshfl [vmem:[#allocation1] sm:$0xff pattern:$0x73625140]  ;;  %v5818_v31 = vld.sshfl [vmem:[#allocation1 + $0x10] sm:$0xff pattern:$0x73625140]  ;;  %v3391_v44 = vor.u32 %v5164_v37, %v3388_v38 }
  0x28   :  { %783 = vmatpush.bf16.msrb.mxu0 %v3675_v52  ;;  %v5820_v34 = vld.sshfl [vmem:[#allocation1 + $0x8] sm:$0xff pattern:$0x73625140]  ;;  %v5822_v35 = vld.sshfl [vmem:[#allocation1 + $0x18] sm:$0xff pattern:$0x73625140]  ;;  %764 = vmatmul.bf16.vlgmr.msra.gmra.mxu2 %v5818_v31 }
  0x29   :  { %796 = vmatpush.bf16.msrb.mxu1 %v3739_v53  ;;  %738 = vmatmul.bf16.vlgmr.msra.gmra.mxu0 %v5816_v30  ;;  %900 = vst [vmem:[#allocation1] ss:$4 sm:$0xff] %v5756_v2  ;;  %v3452_v40 = vld [vmem:[%s7998_s1 + $0xa8] sm:$0xf0]  ;;  %v5227_v45 = vld [vmem:[%s7998_s1 + $0x214] sm:$0xf0] }
  0x2a   :  { %809 = vmatpush.bf16.msrb.mxu2 %v3423_v54  ;;  %751 = vmatmul.bf16.vlgmr.msra.gmra.mxu1 %v5820_v34  ;;  %v3698_v46 = vld [vmem:[%s7998_s1 + $0x290] sm:$0xf]  ;;  %v5243_v47 = vld [vmem:[%s7998_s1 + $0x294] sm:$0xf0]  ;;  %v3455_v48 = vor.u32 %v5180_v39, %v3452_v40  ;;  %v5162_v49 = vld [vmem:[%s7998_s1 + $0x14] sm:$0xf]  ;;  %v3635_v54 = vor.u32 %v5227_v45, %v3634_v42 }
  0x2b   :  { %822 = vmatpush.bf16.msrb.mxu3 %v3487_v58  ;;  %v3380_v50 = vld [vmem:[%s7998_s1 + $0x18] sm:$0xf0]  ;;  %v5862_v51 = vld [vmem:[%s7999_s0 + $0x8] sm:$0xf]  ;;  %v5178_v52 = vld [vmem:[%s7998_s1 + $0x94] sm:$0xf]  ;;  %v3699_v57 = vor.u32 %v5243_v47, %v3698_v46 }
  0x2c   :  { %784 = vmatpush.bf16.msrb.mxu0 %v3667_v0  ;;  %777 = vmatmul.bf16.vlgmr.msra.gmra.mxu3 %v5822_v35  ;;  %v3444_v53 = vld [vmem:[%s7998_s1 + $0x98] sm:$0xf0]  ;;  %237 = vst [vmem:[#allocation1 + $0x20] ss:$4 sm:$0xff] %v5862_v51  ;;  %v3626_v55 = vld [vmem:[%s7998_s1 + $0x200] sm:$0xf]  ;;  %v3383_v58 = vor.u32 %v5162_v49, %v3380_v50 }
  0x2d   :  { %797 = vmatpush.bf16.msrb.mxu1 %v3731_v3  ;;  %v5225_v56 = vld [vmem:[%s7998_s1 + $0x204] sm:$0xf0]  ;;  %v3690_v59 = vld [vmem:[%s7998_s1 + $0x280] sm:$0xf]  ;;  %v5160_v61 = vld [vmem:[%s7998_s1 + $0x4] sm:$0xf]  ;;  %v3447_v62 = vor.u32 %v5178_v52, %v3444_v53 }
  0x2e   :  { %810 = vmatpush.bf16.msrb.mxu2 %v3415_v4  ;;  %v5241_v60 = vld [vmem:[%s7998_s1 + $0x284] sm:$0xf0]  ;;  %v3372_v63 = vld [vmem:[%s7998_s1 + $0x8] sm:$0xf0]  ;;  %v5176_v0 = vld [vmem:[%s7998_s1 + $0x84] sm:$0xf]  ;;  %v3627_v6 = vor.u32 %v5225_v56, %v3626_v55 }
  0x2f   :  { %823 = vmatpush.bf16.msrb.mxu3 %v3479_v7  ;;  %v3436_v1 = vld [vmem:[%s7998_s1 + $0x88] sm:$0xf0]  ;;  %v5206_v3 = vld [vmem:[%s7998_s1 + $0x174] sm:$0xf]  ;;  %v3556_v4 = vld [vmem:[%s7998_s1 + $0x178] sm:$0xf0]  ;;  %v3691_v10 = vor.u32 %v5241_v60, %v3690_v59  ;;  %v3375_v11 = vor.u32 %v5160_v61, %v3372_v63 }
  0x30   :  { %785 = vmatpush.bf16.msrb.mxu0 %v3659_v13  ;;  %v5222_v5 = vld [vmem:[%s7998_s1 + $0x1f4] sm:$0xf]  ;;  %v3620_v7 = vld [vmem:[%s7998_s1 + $0x1f8] sm:$0xf0]  ;;  %v5204_v14 = vld [vmem:[%s7998_s1 + $0x164] sm:$0xf] }
  0x31   :  { %798 = vmatpush.bf16.msrb.mxu1 %v3723_v15  ;;  %v5238_v8 = vld [vmem:[%s7998_s1 + $0x274] sm:$0xf]  ;;  %v3684_v9 = vld [vmem:[%s7998_s1 + $0x278] sm:$0xf0]  ;;  %v3439_v15 = vor.u32 %v5176_v0, %v3436_v1  ;;  %v3623_v19 = vor.u32 %v5222_v5, %v3620_v7  ;;  %v3548_v21 = vld [vmem:[%s7998_s1 + $0x168] sm:$0xf0] }
  0x32   :  { %811 = vmatpush.bf16.msrb.mxu2 %v3407_v16  ;;  %v5254_v12 = vld [vmem:[%s7998_s1 + $0x2f4] sm:$0xf]  ;;  %v3748_v13 = vld [vmem:[%s7998_s1 + $0x2f8] sm:$0xf0]  ;;  %v3559_v16 = vor.u32 %v5206_v3, %v3556_v4  ;;  %v5220_v22 = vld [vmem:[%s7998_s1 + $0x1e4] sm:$0xf]  ;;  %v3551_v29 = vor.u32 %v5204_v14, %v3548_v21 }
  0x33   :  { %824 = vmatpush.bf16.msrb.mxu3 %v3471_v20  ;;  %v5922_v17 = vld.sshfl [vmem:[#allocation1 + $0x20] sm:$0xff pattern:$0x73625140]  ;;  %v5924_v18 = vld.sshfl [vmem:[#allocation1 + $0x28] sm:$0xff pattern:$0x73625140]  ;;  %v3687_v20 = vor.u32 %v5238_v8, %v3684_v9  ;;  %v3751_v23 = vor.u32 %v5254_v12, %v3748_v13 }
  0x34   :  { %786 = vmatpush.bf16.msrb.mxu0 %v3651_v27  ;;  %902 = vst [vmem:[#allocation1 + $0x20] ss:$4 sm:$0xff] %v5862_v51  ;;  %v3612_v24 = vld [vmem:[%s7998_s1 + $0x1e8] sm:$0xf0]  ;;  %v5236_v25 = vld [vmem:[%s7998_s1 + $0x264] sm:$0xf] }
  0x35   :  { %799 = vmatpush.bf16.msrb.mxu1 %v3715_v32  ;;  %v3676_v26 = vld [vmem:[%s7998_s1 + $0x268] sm:$0xf0]  ;;  %v5252_v27 = vld [vmem:[%s7998_s1 + $0x2e4] sm:$0xf]  ;;  %v3615_v32 = vor.u32 %v5220_v22, %v3612_v24  ;;  %v3540_v37 = vld [vmem:[%s7998_s1 + $0x158] sm:$0xf0] }
  0x36   :  { %812 = vmatpush.bf16.msrb.mxu2 %v3399_v33  ;;  %v3740_v28 = vld [vmem:[%s7998_s1 + $0x2e8] sm:$0xf0]  ;;  %v3679_v33 = vor.u32 %v5236_v25, %v3676_v26  ;;  %v5218_v38 = vld [vmem:[%s7998_s1 + $0x1d4] sm:$0xf]  ;;  %v3604_v40 = vld [vmem:[%s7998_s1 + $0x1d8] sm:$0xf0] }
  0x37   :  { %825 = vmatpush.bf16.msrb.mxu3 %v3463_v36  ;;  %v5202_v36 = vld [vmem:[%s7998_s1 + $0x154] sm:$0xf]  ;;  %v3743_v39 = vor.u32 %v5252_v27, %v3740_v28  ;;  %v3668_v42 = vld [vmem:[%s7998_s1 + $0x258] sm:$0xf0]  ;;  %v3607_v46 = vor.u32 %v5218_v38, %v3604_v40  ;;  %v3532_v49 = vld [vmem:[%s7998_s1 + $0x148] sm:$0xf0] }
  0x38   :  { %787 = vmatpush.bf16.msrb.mxu0 %v3643_v41  ;;  %v5234_v41 = vld [vmem:[%s7998_s1 + $0x254] sm:$0xf]  ;;  %v3543_v45 = vor.u32 %v5202_v36, %v3540_v37  ;;  %v5232_v52 = vld [vmem:[%s7998_s1 + $0x244] sm:$0xf]  ;;  %v3660_v53 = vld [vmem:[%s7998_s1 + $0x248] sm:$0xf0] }
  0x39   :  { %800 = vmatpush.bf16.msrb.mxu1 %v3707_v43  ;;  %v5250_v43 = vld [vmem:[%s7998_s1 + $0x2d4] sm:$0xf]  ;;  %v3671_v47 = vor.u32 %v5234_v41, %v3668_v42  ;;  %v3724_v55 = vld [vmem:[%s7998_s1 + $0x2c8] sm:$0xf0]  ;;  %v3524_v60 = vld [vmem:[%s7998_s1 + $0x138] sm:$0xf0] }
  0x3a   :  { %813 = vmatpush.bf16.msrb.mxu2 %v3391_v44  ;;  %v3732_v44 = vld [vmem:[%s7998_s1 + $0x2d8] sm:$0xf0]  ;;  %v5198_v59 = vld [vmem:[%s7998_s1 + $0x134] sm:$0xf]  ;;  %v5196_v8 = vld [vmem:[%s7998_s1 + $0x124] sm:$0xf] }
  0x3b   :  { %826 = vmatpush.bf16.msrb.mxu3 %v3455_v48  ;;  %v5200_v48 = vld [vmem:[%s7998_s1 + $0x144] sm:$0xf]  ;;  %v3735_v50 = vor.u32 %v5250_v43, %v3732_v44  ;;  %v5214_v61 = vld [vmem:[%s7998_s1 + $0x1b4] sm:$0xf]  ;;  %v3588_v63 = vld [vmem:[%s7998_s1 + $0x1b8] sm:$0xf0]  ;;  %v3527_v5 = vor.u32 %v5198_v59, %v3524_v60 }
  0x3c   :  { %788 = vmatpush.bf16.msrb.mxu0 %v3635_v54  ;;  %v5248_v54 = vld [vmem:[%s7998_s1 + $0x2c4] sm:$0xf]  ;;  %v3535_v56 = vor.u32 %v5200_v48, %v3532_v49  ;;  %v5230_v0 = vld [vmem:[%s7998_s1 + $0x234] sm:$0xf]  ;;  %v3652_v1 = vld [vmem:[%s7998_s1 + $0x238] sm:$0xf0] }
  0x3d   :  { %801 = vmatpush.bf16.msrb.mxu1 %v3699_v57  ;;  %v5246_v3 = vld [vmem:[%s7998_s1 + $0x2b4] sm:$0xf]  ;;  %v3716_v4 = vld [vmem:[%s7998_s1 + $0x2b8] sm:$0xf0]  ;;  %v3655_v7 = vor.u32 %v5230_v0, %v3652_v1  ;;  %v3516_v9 = vld [vmem:[%s7998_s1 + $0x128] sm:$0xf0] }
  0x3e   :  { %814 = vmatpush.bf16.msrb.mxu2 %v3383_v58  ;;  %v3663_v58 = vor.u32 %v5232_v52, %v3660_v53  ;;  %v3580_v12 = vld [vmem:[%s7998_s1 + $0x1a8] sm:$0xf0]  ;;  %v5228_v13 = vld [vmem:[%s7998_s1 + $0x224] sm:$0xf]  ;;  %v5194_v22 = vld [vmem:[%s7998_s1 + $0x114] sm:$0xf] }
  0x3f   :  { %827 = vmatpush.bf16.msrb.mxu3 %v3447_v62  ;;  %v3727_v62 = vor.u32 %v5248_v54, %v3724_v55  ;;  %v3644_v14 = vld [vmem:[%s7998_s1 + $0x228] sm:$0xf0]  ;;  %v5210_v24 = vld [vmem:[%s7998_s1 + $0x194] sm:$0xf]  ;;  %v3572_v26 = vld [vmem:[%s7998_s1 + $0x198] sm:$0xf0] }
  0x40   :  { %789 = vmatpush.bf16.msrb.mxu0 %v3627_v6  ;;  %v3591_v6 = vor.u32 %v5214_v61, %v3588_v63  ;;  %v3647_v21 = vor.u32 %v5228_v13, %v3644_v14  ;;  %v5226_v27 = vld [vmem:[%s7998_s1 + $0x214] sm:$0xf]  ;;  %v3636_v28 = vld [vmem:[%s7998_s1 + $0x218] sm:$0xf0]  ;;  %v5192_v36 = vld [vmem:[%s7998_s1 + $0x104] sm:$0xf]  ;;  %v3575_v38 = vor.u32 %v5210_v24, %v3572_v26 }
  0x41   :  { %802 = vmatpush.bf16.msrb.mxu1 %v3691_v10  ;;  %v5212_v10 = vld [vmem:[%s7998_s1 + $0x1a4] sm:$0xf]  ;;  %v3500_v37 = vld [vmem:[%s7998_s1 + $0x108] sm:$0xf0]  ;;  %v5079_v48 = vld [vmem:[%s7998_s1 + $0x374] sm:$0xf0] }
  0x42   :  { %815 = vmatpush.bf16.msrb.mxu2 %v3375_v11  ;;  %v3719_v11 = vor.u32 %v5246_v3, %v3716_v4  ;;  %v5208_v40 = vld [vmem:[%s7998_s1 + $0x184] sm:$0xf]  ;;  %v3564_v41 = vld [vmem:[%s7998_s1 + $0x188] sm:$0xf0]  ;;  %v3874_v49 = vld [vmem:[%s7998_s1 + $0x3f0] sm:$0xf] }
  0x43   :  { %828 = vmatpush.bf16.msrb.mxu3 %v3439_v15  ;;  %790 = vmatmul.bf16.vlgmr.msrb.gmra.mxu0 %v5922_v17  ;;  %v5244_v15 = vld [vmem:[%s7998_s1 + $0x2a4] sm:$0xf]  ;;  %v3628_v44 = vld [vmem:[%s7998_s1 + $0x208] sm:$0xf0]  ;;  %v5111_v52 = vld [vmem:[%s7998_s1 + $0x474] sm:$0xf0]  ;;  %v3567_v53 = vor.u32 %v5208_v40, %v3564_v41 }
  0x44   :  { %834 = vmatpush.bf16.msra.mxu0 %v3559_v16  ;;  %803 = vmatmul.bf16.vlgmr.msrb.gmra.mxu1 %v5924_v18  ;;  %v3708_v16 = vld [vmem:[%s7998_s1 + $0x2a8] sm:$0xf0]  ;;  %v5224_v42 = vld [vmem:[%s7998_s1 + $0x204] sm:$0xf]  ;;  %v4002_v55 = vld [vmem:[%s7998_s1 + $0x4f0] sm:$0xf] }
  0x45   :  { %847 = vmatpush.bf16.msra.mxu1 %v3623_v19  ;;  %816 = vmatmul.bf16.vlgmr.msrb.gmra.mxu2 %v5816_v30  ;;  %v5216_v30 = vld [vmem:[%s7998_s1 + $0x1c4] sm:$0xf]  ;;  %v3519_v19 = vor.u32 %v5196_v8, %v3516_v9  ;;  %v3711_v25 = vor.u32 %v5244_v15, %v3708_v16  ;;  %v3631_v54 = vor.u32 %v5224_v42, %v3628_v44  ;;  %v3802_v59 = vld [vmem:[%s7998_s1 + $0x360] sm:$0xf]  ;;  %v5093_v0 = vld [vmem:[%s7998_s1 + $0x3e4] sm:$0xf0] }
  0x46   :  { %860 = vmatpush.bf16.msra.mxu2 %v3687_v20  ;;  %829 = vmatmul.bf16.vlgmr.msrb.gmra.mxu3 %v5820_v34  ;;  %v3596_v34 = vld [vmem:[%s7998_s1 + $0x1c8] sm:$0xf0]  ;;  %v3583_v20 = vor.u32 %v5212_v10, %v3580_v12  ;;  %v3866_v63 = vld [vmem:[%s7998_s1 + $0x3e0] sm:$0xf]  ;;  %v5109_v4 = vld [vmem:[%s7998_s1 + $0x464] sm:$0xf0] }
  0x47   :  { %873 = vmatpush.bf16.msra.mxu3 %v3751_v23  ;;  %v3599_v57 = vor.u32 %v5216_v30, %v3596_v34  ;;  %v3508_v23 = vld [vmem:[%s7998_s1 + $0x118] sm:$0xf0]  ;;  %v3503_v30 = vor.u32 %v5192_v36, %v3500_v37  ;;  %v3938_v34 = vld [vmem:[%s7998_s1 + $0x470] sm:$0xf]  ;;  %v3930_v3 = vld [vmem:[%s7998_s1 + $0x460] sm:$0xf]  ;;  %v3867_v14 = vor.u32 %v5093_v0, %v3866_v63 }
  0x48   :  { %835 = vmatpush.bf16.msra.mxu0 %v3551_v29  ;;  %v5242_v29 = vld [vmem:[%s7998_s1 + $0x294] sm:$0xf]  ;;  %v3939_v61 = vor.u32 %v5111_v52, %v3938_v34  ;;  %v5075_v8 = vld [vmem:[%s7998_s1 + $0x354] sm:$0xf0]  ;;  %v3858_v10 = vld [vmem:[%s7998_s1 + $0x3d0] sm:$0xf]  ;;  %v3931_v15 = vor.u32 %v5109_v4, %v3930_v3 }
  0x49   :  { %848 = vmatpush.bf16.msra.mxu1 %v3615_v32  ;;  %v3700_v32 = vld [vmem:[%s7998_s1 + $0x298] sm:$0xf0]  ;;  %v6156_v12 = vld.sshfl [vmem:[#allocation1] sm:$0xff pattern:$0x73625140] }
  0x4a   :  { %861 = vmatpush.bf16.msra.mxu2 %v3679_v33  ;;  %v3511_v33 = vor.u32 %v5194_v22, %v3508_v23  ;;  %v3703_v43 = vor.u32 %v5242_v29, %v3700_v32  ;;  %v6158_v13 = vld.sshfl [vmem:[#allocation1 + $0x10] sm:$0xff pattern:$0x73625140]  ;;  %v6160_v16 = vld.sshfl [vmem:[#allocation1 + $0x8] sm:$0xff pattern:$0x73625140] }
  0x4b   :  { %874 = vmatpush.bf16.msra.mxu3 %v3743_v39  ;;  %v3639_v39 = vor.u32 %v5226_v27, %v3636_v28  ;;  %v5107_v22 = vld [vmem:[%s7998_s1 + $0x454] sm:$0xf0]  ;;  %v3986_v23 = vld [vmem:[%s7998_s1 + $0x4d0] sm:$0xf]  ;;  %v3850_v26 = vld [vmem:[%s7998_s1 + $0x3c0] sm:$0xf] }
  0x4c   :  { %836 = vmatpush.bf16.msra.mxu0 %v3543_v45  ;;  %v5240_v45 = vld [vmem:[%s7998_s1 + $0x284] sm:$0xf]  ;;  %v3914_v28 = vld [vmem:[%s7998_s1 + $0x440] sm:$0xf]  ;;  %v5105_v29 = vld [vmem:[%s7998_s1 + $0x444] sm:$0xf0] }
  0x4d   :  { %849 = vmatpush.bf16.msra.mxu1 %v3607_v46  ;;  %v3692_v46 = vld [vmem:[%s7998_s1 + $0x288] sm:$0xf0]  ;;  %v3978_v32 = vld [vmem:[%s7998_s1 + $0x4c0] sm:$0xf]  ;;  %v5071_v40 = vld [vmem:[%s7998_s1 + $0x334] sm:$0xf0] }
  0x4e   :  { %862 = vmatpush.bf16.msra.mxu2 %v3671_v47  ;;  %v3810_v47 = vld [vmem:[%s7998_s1 + $0x370] sm:$0xf]  ;;  %v5069_v34 = vld [vmem:[%s7998_s1 + $0x324] sm:$0xf0]  ;;  %v3834_v52 = vld [vmem:[%s7998_s1 + $0x3a0] sm:$0xf] }
  0x4f   :  { %875 = vmatpush.bf16.msra.mxu3 %v3735_v50  ;;  %v5095_v50 = vld [vmem:[%s7998_s1 + $0x3f4] sm:$0xf0]  ;;  %v3842_v41 = vld [vmem:[%s7998_s1 + $0x3b0] sm:$0xf] }
  0x50   :  { %837 = vmatpush.bf16.msra.mxu0 %v3535_v56  ;;  %v5127_v56 = vld [vmem:[%s7998_s1 + $0x4f4] sm:$0xf0]  ;;  %v3875_v60 = vor.u32 %v5095_v50, %v3874_v49  ;;  %v3906_v44 = vld [vmem:[%s7998_s1 + $0x430] sm:$0xf]  ;;  %v3770_v50 = vld [vmem:[%s7998_s1 + $0x320] sm:$0xf] }
  0x51   :  { %850 = vmatpush.bf16.msra.mxu1 %v3599_v57  ;;  %v3695_v57 = vor.u32 %v5240_v45, %v3692_v46  ;;  %v4003_v1 = vor.u32 %v5127_v56, %v4002_v55  ;;  %v5103_v45 = vld [vmem:[%s7998_s1 + $0x434] sm:$0xf0]  ;;  %v3970_v46 = vld [vmem:[%s7998_s1 + $0x4b0] sm:$0xf]  ;;  %v3898_v55 = vld [vmem:[%s7998_s1 + $0x420] sm:$0xf] }
  0x52   :  { %863 = vmatpush.bf16.msra.mxu2 %v3663_v58  ;;  %v3811_v58 = vor.u32 %v5079_v48, %v3810_v47  ;;  %v5119_v47 = vld [vmem:[%s7998_s1 + $0x4b4] sm:$0xf0]  ;;  %v5101_v56 = vld [vmem:[%s7998_s1 + $0x424] sm:$0xf0]  ;;  %v3826_v0 = vld [vmem:[%s7998_s1 + $0x390] sm:$0xf] }
  0x53   :  { %876 = vmatpush.bf16.msra.mxu3 %v3727_v62  ;;  %v5077_v62 = vld [vmem:[%s7998_s1 + $0x364] sm:$0xf0]  ;;  %v5067_v63 = vld [vmem:[%s7998_s1 + $0x314] sm:$0xf0]  ;;  %v3890_v4 = vld [vmem:[%s7998_s1 + $0x410] sm:$0xf] }
  0x54   :  { %838 = vmatpush.bf16.msra.mxu0 %v3527_v5  ;;  %v3994_v5 = vld [vmem:[%s7998_s1 + $0x4e0] sm:$0xf]  ;;  %v3803_v9 = vor.u32 %v5077_v62, %v3802_v59  ;;  %v3771_v59 = vor.u32 %v5069_v34, %v3770_v50  ;;  %v3762_v62 = vld [vmem:[%s7998_s1 + $0x310] sm:$0xf]  ;;  %v5083_v3 = vld [vmem:[%s7998_s1 + $0x394] sm:$0xf0] }
  0x55   :  { %851 = vmatpush.bf16.msra.mxu1 %v3591_v6  ;;  %v5125_v6 = vld [vmem:[%s7998_s1 + $0x4e4] sm:$0xf0]  ;;  %v5139_v50 = vld [vmem:[%s7998_s1 + $0x554] sm:$0xf0]  ;;  %v4114_v34 = vld [vmem:[%s7998_s1 + $0x5d0] sm:$0xf] }
  0x56   :  { %864 = vmatpush.bf16.msra.mxu2 %v3655_v7  ;;  %v3794_v7 = vld [vmem:[%s7998_s1 + $0x350] sm:$0xf] }
  0x57   :  { %877 = vmatpush.bf16.msra.mxu3 %v3719_v11  ;;  %v5091_v11 = vld [vmem:[%s7998_s1 + $0x3d4] sm:$0xf0]  ;;  %v3795_v24 = vor.u32 %v5075_v8, %v3794_v7  ;;  %v3763_v8 = vor.u32 %v5067_v63, %v3762_v62 }
  0x58   :  { %839 = vmatpush.bf16.msra.mxu0 %v3519_v19  ;;  %v6162_v19 = vld.sshfl [vmem:[#allocation1 + $0x18] sm:$0xff pattern:$0x73625140] }
  0x59   :  { %852 = vmatpush.bf16.msra.mxu1 %v3583_v20  ;;  %v3995_v20 = vor.u32 %v5125_v6, %v3994_v5  ;;  %1648 = vst [vmem:[#allocation1] ss:$4 sm:$0xff] %v5756_v2  ;;  %v5099_v5 = vld [vmem:[%s7998_s1 + $0x414] sm:$0xf0]  ;;  %v3954_v6 = vld [vmem:[%s7998_s1 + $0x490] sm:$0xf] }
  0x5a   :  { %865 = vmatpush.bf16.msra.mxu2 %v3647_v21  ;;  %v3922_v21 = vld [vmem:[%s7998_s1 + $0x450] sm:$0xf]  ;;  %v5115_v7 = vld [vmem:[%s7998_s1 + $0x494] sm:$0xf0] }
  0x5b   :  { %878 = vmatpush.bf16.msra.mxu3 %v3711_v25  ;;  %v3859_v25 = vor.u32 %v5091_v11, %v3858_v10  ;;  %v3923_v2 = vor.u32 %v5107_v22, %v3922_v21  ;;  %v5065_v10 = vld [vmem:[%s7998_s1 + $0x304] sm:$0xf0]  ;;  %v3827_v11 = vor.u32 %v5083_v3, %v3826_v0  ;;  %v3882_v21 = vld [vmem:[%s7998_s1 + $0x400] sm:$0xf]  ;;  %v3955_v22 = vor.u32 %v5115_v7, %v3954_v6  ;;  %v5072_v6 = vld [vmem:[%s7998_s1 + $0x344] sm:$0xf] }
  0x5c   :  { %840 = vmatpush.bf16.msra.mxu0 %v3511_v33  ;;  %v5121_v33 = vld [vmem:[%s7998_s1 + $0x4c4] sm:$0xf0]  ;;  %v4042_v0 = vld [vmem:[%s7998_s1 + $0x540] sm:$0xf]  ;;  %v3788_v7 = vld [vmem:[%s7998_s1 + $0x348] sm:$0xf0] }
  0x5d   :  { %853 = vmatpush.bf16.msra.mxu1 %v3575_v38  ;;  %v3915_v38 = vor.u32 %v5105_v29, %v3914_v28  ;;  %v3979_v42 = vor.u32 %v5121_v33, %v3978_v32  ;;  %v5094_v32 = vld [vmem:[%s7998_s1 + $0x3f4] sm:$0xf]  ;;  %v3876_v33 = vld [vmem:[%s7998_s1 + $0x3f8] sm:$0xf0]  ;;  %v4106_v3 = vld [vmem:[%s7998_s1 + $0x5c0] sm:$0xf] }
  0x5e   :  { %866 = vmatpush.bf16.msra.mxu2 %v3639_v39  ;;  %v3778_v39 = vld [vmem:[%s7998_s1 + $0x330] sm:$0xf] }
  0x5f   :  { %879 = vmatpush.bf16.msra.mxu3 %v3703_v43  ;;  %v5087_v43 = vld [vmem:[%s7998_s1 + $0x3b4] sm:$0xf0]  ;;  %v3779_v48 = vor.u32 %v5071_v40, %v3778_v39  ;;  %v4058_v40 = vld [vmem:[%s7998_s1 + $0x560] sm:$0xf] }
  0x60   :  { %841 = vmatpush.bf16.msra.mxu0 %v3503_v30  ;;  %v3843_v49 = vor.u32 %v5087_v43, %v3842_v41  ;;  %v3907_v30 = vor.u32 %v5103_v45, %v3906_v44  ;;  %v5141_v41 = vld [vmem:[%s7998_s1 + $0x564] sm:$0xf0]  ;;  %v3879_v43 = vor.u32 %v5094_v32, %v3876_v33  ;;  %v5076_v45 = vld [vmem:[%s7998_s1 + $0x364] sm:$0xf] }
  0x61   :  { %854 = vmatpush.bf16.msra.mxu1 %v3567_v53  ;;  %v3971_v53 = vor.u32 %v5119_v47, %v3970_v46  ;;  %v5157_v44 = vld [vmem:[%s7998_s1 + $0x5e4] sm:$0xf0]  ;;  %v3804_v46 = vld [vmem:[%s7998_s1 + $0x368] sm:$0xf0]  ;;  %v5092_v47 = vld [vmem:[%s7998_s1 + $0x3e4] sm:$0xf] }
  0x62   :  { %867 = vmatpush.bf16.msra.mxu2 %v3631_v54  ;;  %v5085_v54 = vld [vmem:[%s7998_s1 + $0x3a4] sm:$0xf0]  ;;  %v5068_v33 = vld [vmem:[%s7998_s1 + $0x324] sm:$0xf] }
  0x63   :  { %880 = vmatpush.bf16.msra.mxu3 %v3695_v57  ;;  %842 = vmatmul.bf16.vlgmr.msra.gmra.mxu0 %v5818_v31  ;;  %v3786_v31 = vld [vmem:[%s7998_s1 + $0x340] sm:$0xf]  ;;  %v5149_v32 = vld [vmem:[%s7998_s1 + $0x5a4] sm:$0xf0] }
  0x64   :  { %1395 = vmatpush.bf16.msrb.mxu0 %v3811_v58  ;;  %855 = vmatmul.bf16.vlgmr.msra.gmra.mxu1 %v5822_v35  ;;  %v5089_v35 = vld [vmem:[%s7998_s1 + $0x3c4] sm:$0xf0]  ;;  %v3962_v57 = vld [vmem:[%s7998_s1 + $0x4a0] sm:$0xf] }
  0x65   :  { %1408 = vmatpush.bf16.msrb.mxu1 %v3875_v60  ;;  %868 = vmatmul.bf16.vlgmr.msra.gmra.mxu2 %v5922_v17  ;;  %v5123_v17 = vld [vmem:[%s7998_s1 + $0x4d4] sm:$0xf0]  ;;  %v3851_v37 = vor.u32 %v5089_v35, %v3850_v26  ;;  %v5117_v58 = vld [vmem:[%s7998_s1 + $0x4a4] sm:$0xf0]  ;;  %v3835_v60 = vor.u32 %v5085_v54, %v3834_v52  ;;  %v3812_v35 = vld [vmem:[%s7998_s1 + $0x378] sm:$0xf0]  ;;  %v3807_v54 = vor.u32 %v5076_v45, %v3804_v46 }
  0x66   :  { %1421 = vmatpush.bf16.msrb.mxu2 %v3939_v61  ;;  %881 = vmatmul.bf16.vlgmr.msra.gmra.mxu3 %v5924_v18  ;;  %v5073_v18 = vld [vmem:[%s7998_s1 + $0x344] sm:$0xf0]  ;;  %v3987_v27 = vor.u32 %v5123_v17, %v3986_v23  ;;  %v3899_v61 = vor.u32 %v5101_v56, %v3898_v55  ;;  %v3946_v17 = vld [vmem:[%s7998_s1 + $0x480] sm:$0xf]  ;;  %v5159_v26 = vld [vmem:[%s7998_s1 + $0x5f4] sm:$0xf0] }
  0x67   :  { %1434 = vmatpush.bf16.msrb.mxu3 %v4003_v1  ;;  %v3787_v36 = vor.u32 %v5073_v18, %v3786_v31  ;;  %v3963_v1 = vor.u32 %v5117_v58, %v3962_v57  ;;  %v5097_v23 = vld [vmem:[%s7998_s1 + $0x404] sm:$0xf0]  ;;  %v4130_v31 = vld [vmem:[%s7998_s1 + $0x5f0] sm:$0xf]  ;;  %v5155_v52 = vld [vmem:[%s7998_s1 + $0x5d4] sm:$0xf0] }
  0x68   :  { %1396 = vmatpush.bf16.msrb.mxu0 %v3803_v9  ;;  %v3754_v9 = vld [vmem:[%s7998_s1 + $0x300] sm:$0xf]  ;;  %v3883_v29 = vor.u32 %v5097_v23, %v3882_v21  ;;  %v6363_v56 = vld.sshfl [vmem:[#allocation1 + $0x28] sm:$0xff pattern:$0x73625140]  ;;  %v4115_v63 = vor.u32 %v5155_v52, %v4114_v34 }
  0x69   :  { %1409 = vmatpush.bf16.msrb.mxu1 %v3867_v14  ;;  %v3891_v14 = vor.u32 %v5099_v5, %v3890_v4  ;;  %v3755_v18 = vor.u32 %v5065_v10, %v3754_v9  ;;  %v6361_v55 = vld.sshfl [vmem:[#allocation1 + $0x20] sm:$0xff pattern:$0x73625140]  ;;  %v5074_v58 = vld [vmem:[%s7998_s1 + $0x354] sm:$0xf] }
  0x6a   :  { %1422 = vmatpush.bf16.msrb.mxu2 %v3931_v15  ;;  %v3818_v15 = vld [vmem:[%s7998_s1 + $0x380] sm:$0xf]  ;;  %1650 = vst [vmem:[#allocation1 + $0x20] ss:$4 sm:$0xff] %v5862_v51  ;;  %v5153_v5 = vld [vmem:[%s7998_s1 + $0x5c4] sm:$0xf0] }
  0x6b   :  { %1435 = vmatpush.bf16.msrb.mxu3 %v3995_v20  ;;  %v5081_v20 = vld [vmem:[%s7998_s1 + $0x384] sm:$0xf0]  ;;  %v3852_v9 = vld [vmem:[%s7998_s1 + $0x3c8] sm:$0xf0]  ;;  %v4098_v21 = vld [vmem:[%s7998_s1 + $0x5b0] sm:$0xf] }
  0x6c   :  { %1397 = vmatpush.bf16.msrb.mxu0 %v3795_v24  ;;  %v5113_v24 = vld [vmem:[%s7998_s1 + $0x484] sm:$0xf0]  ;;  %v3819_v28 = vor.u32 %v5081_v20, %v3818_v15  ;;  %v4034_v15 = vld [vmem:[%s7998_s1 + $0x530] sm:$0xf]  ;;  %v5135_v20 = vld [vmem:[%s7998_s1 + $0x534] sm:$0xf0] }
  0x6d   :  { %1410 = vmatpush.bf16.msrb.mxu1 %v3859_v25  ;;  %v4066_v25 = vld [vmem:[%s7998_s1 + $0x570] sm:$0xf]  ;;  %v5151_v23 = vld [vmem:[%s7998_s1 + $0x5b4] sm:$0xf0]  ;;  %v4010_v34 = vld [vmem:[%s7998_s1 + $0x500] sm:$0xf] }
  0x6e   :  { %1423 = vmatpush.bf16.msrb.mxu2 %v3923_v2  ;;  %v5143_v2 = vld [vmem:[%s7998_s1 + $0x574] sm:$0xf0]  ;;  %v5129_v52 = vld [vmem:[%s7998_s1 + $0x504] sm:$0xf0] }
  0x6f   :  { %1436 = vmatpush.bf16.msrb.mxu3 %v3987_v27  ;;  %v5078_v27 = vld [vmem:[%s7998_s1 + $0x374] sm:$0xf]  ;;  %v5147_v46 = vld [vmem:[%s7998_s1 + $0x594] sm:$0xf0] }
  0x70   :  { %1398 = vmatpush.bf16.msrb.mxu0 %v3787_v36  ;;  %v3947_v36 = vor.u32 %v5113_v24, %v3946_v17  ;;  %v3815_v39 = vor.u32 %v5078_v27, %v3812_v35  ;;  %v5070_v17 = vld [vmem:[%s7998_s1 + $0x334] sm:$0xf]  ;;  %v3780_v24 = vld [vmem:[%s7998_s1 + $0x338] sm:$0xf0]  ;;  %v4026_v27 = vld [vmem:[%s7998_s1 + $0x520] sm:$0xf] }
  0x71   :  { %1411 = vmatpush.bf16.msrb.mxu1 %v3851_v37  ;;  %v4067_v37 = vor.u32 %v5143_v2, %v4066_v25  ;;  %v5086_v25 = vld [vmem:[%s7998_s1 + $0x3b4] sm:$0xf]  ;;  %v3844_v2 = vld [vmem:[%s7998_s1 + $0x3b8] sm:$0xf0]  ;;  %v5133_v35 = vld [vmem:[%s7998_s1 + $0x524] sm:$0xf0] }
  0x72   :  { %1424 = vmatpush.bf16.msrb.mxu2 %v3915_v38  ;;  %v4131_v38 = vor.u32 %v5159_v26, %v4130_v31  ;;  %v4035_v31 = vor.u32 %v5135_v20, %v4034_v15  ;;  %v3783_v26 = vor.u32 %v5070_v17, %v3780_v24  ;;  %v3996_v24 = vld [vmem:[%s7998_s1 + $0x4e8] sm:$0xf0] }
  0x73   :  { %1437 = vmatpush.bf16.msrb.mxu3 %v3979_v42  ;;  %v4122_v42 = vld [vmem:[%s7998_s1 + $0x5e0] sm:$0xf] }
  0x74   :  { %1399 = vmatpush.bf16.msrb.mxu0 %v3779_v48  ;;  %v3868_v48 = vld [vmem:[%s7998_s1 + $0x3e8] sm:$0xf0] }
  0x75   :  { %1412 = vmatpush.bf16.msrb.mxu1 %v3843_v49  ;;  %v4050_v49 = vld [vmem:[%s7998_s1 + $0x550] sm:$0xf]  ;;  %v3871_v57 = vor.u32 %v5092_v47, %v3868_v48  ;;  %v5066_v47 = vld [vmem:[%s7998_s1 + $0x314] sm:$0xf]  ;;  %v3764_v48 = vld [vmem:[%s7998_s1 + $0x318] sm:$0xf0] }
  0x76   :  { %1425 = vmatpush.bf16.msrb.mxu2 %v3907_v30  ;;  %v4059_v30 = vor.u32 %v5141_v41, %v4058_v40  ;;  %v4051_v62 = vor.u32 %v5139_v50, %v4050_v49  ;;  %v5082_v49 = vld [vmem:[%s7998_s1 + $0x394] sm:$0xf] }
  0x77   :  { %1438 = vmatpush.bf16.msrb.mxu3 %v3971_v53  ;;  %v4123_v53 = vor.u32 %v5157_v44, %v4122_v42  ;;  %v4018_v42 = vld [vmem:[%s7998_s1 + $0x510] sm:$0xf] }
  0x78   :  { %1400 = vmatpush.bf16.msrb.mxu0 %v3771_v59  ;;  %v3796_v59 = vld [vmem:[%s7998_s1 + $0x358] sm:$0xf0]  ;;  %v4082_v44 = vld [vmem:[%s7998_s1 + $0x590] sm:$0xf] }
  0x79   :  { %1413 = vmatpush.bf16.msrb.mxu1 %v3835_v60  ;;  %v5090_v60 = vld [vmem:[%s7998_s1 + $0x3d4] sm:$0xf]  ;;  %v3799_v51 = vor.u32 %v5074_v58, %v3796_v59  ;;  %v5145_v58 = vld [vmem:[%s7998_s1 + $0x584] sm:$0xf0]  ;;  %v5064_v59 = vld [vmem:[%s7998_s1 + $0x304] sm:$0xf] }
  0x7a   :  { %1426 = vmatpush.bf16.msrb.mxu2 %v3899_v61  ;;  %v3860_v61 = vld [vmem:[%s7998_s1 + $0x3d8] sm:$0xf0] }
  0x7b   :  { %1439 = vmatpush.bf16.msrb.mxu3 %v3963_v1  ;;  %v5137_v1 = vld [vmem:[%s7998_s1 + $0x544] sm:$0xf0]  ;;  %v3863_v4 = vor.u32 %v5090_v60, %v3860_v61  ;;  %v3756_v61 = vld [vmem:[%s7998_s1 + $0x308] sm:$0xf0] }
  0x7c   :  { %1401 = vmatpush.bf16.msrb.mxu0 %v3763_v8  ;;  %v5088_v8 = vld [vmem:[%s7998_s1 + $0x3c4] sm:$0xf]  ;;  %v4043_v10 = vor.u32 %v5137_v1, %v4042_v0  ;;  %v3940_v0 = vld [vmem:[%s7998_s1 + $0x478] sm:$0xf0]  ;;  %v5126_v1 = vld [vmem:[%s7998_s1 + $0x4f4] sm:$0xf] }
  0x7d   :  { %1414 = vmatpush.bf16.msrb.mxu1 %v3827_v11  ;;  %v4107_v11 = vor.u32 %v5153_v5, %v4106_v3  ;;  %v4011_v3 = vor.u32 %v5129_v52, %v4010_v34  ;;  %v5142_v5 = vld [vmem:[%s7998_s1 + $0x574] sm:$0xf] }
  0x7e   :  { %1427 = vmatpush.bf16.msrb.mxu2 %v3891_v14  ;;  %v3791_v14 = vor.u32 %v5072_v6, %v3788_v7  ;;  %v4068_v6 = vld [vmem:[%s7998_s1 + $0x578] sm:$0xf0] }
  0x7f   :  { %1440 = vmatpush.bf16.msrb.mxu3 %v3955_v22  ;;  %v3855_v22 = vor.u32 %v5088_v8, %v3852_v9  ;;  %v3759_v8 = vor.u32 %v5064_v59, %v3756_v61  ;;  %v5158_v9 = vld [vmem:[%s7998_s1 + $0x5f4] sm:$0xf]  ;;  %v4071_v20 = vor.u32 %v5142_v5, %v4068_v6  ;;  %v3972_v59 = vld [vmem:[%s7998_s1 + $0x4b8] sm:$0xf0]  ;;  %v5116_v5 = vld [vmem:[%s7998_s1 + $0x4a4] sm:$0xf] }
  0x80   :  { %1402 = vmatpush.bf16.msrb.mxu0 %v3755_v18  ;;  %v4099_v18 = vor.u32 %v5151_v23, %v4098_v21  ;;  %v5108_v21 = vld [vmem:[%s7998_s1 + $0x464] sm:$0xf]  ;;  %v4036_v61 = vld [vmem:[%s7998_s1 + $0x538] sm:$0xf0] }
  0x81   :  { %1415 = vmatpush.bf16.msrb.mxu1 %v3819_v28  ;;  %v4090_v28 = vld [vmem:[%s7998_s1 + $0x5a0] sm:$0xf]  ;;  %v5124_v23 = vld [vmem:[%s7998_s1 + $0x4e4] sm:$0xf] }
  0x82   :  { %1428 = vmatpush.bf16.msrb.mxu2 %v3883_v29  ;;  %v3847_v29 = vor.u32 %v5086_v25, %v3844_v2  ;;  %v4091_v40 = vor.u32 %v5149_v32, %v4090_v28  ;;  %v5140_v25 = vld [vmem:[%s7998_s1 + $0x564] sm:$0xf]  ;;  %v4060_v2 = vld [vmem:[%s7998_s1 + $0x568] sm:$0xf0]  ;;  %v5106_v28 = vld [vmem:[%s7998_s1 + $0x454] sm:$0xf] }
  0x83   :  { %1441 = vmatpush.bf16.msrb.mxu3 %v3947_v36  ;;  %1403 = vmatmul.bf16.vlgmr.msrb.gmra.mxu0 %v6156_v12  ;;  %v3772_v36 = vld [vmem:[%s7998_s1 + $0x328] sm:$0xf0]  ;;  %v5122_v32 = vld [vmem:[%s7998_s1 + $0x4d4] sm:$0xf] }
  0x84   :  { %1447 = vmatpush.bf16.msra.mxu0 %v4067_v37  ;;  %1416 = vmatmul.bf16.vlgmr.msrb.gmra.mxu1 %v6160_v16  ;;  %v5084_v37 = vld [vmem:[%s7998_s1 + $0x3a4] sm:$0xf]  ;;  %v3775_v41 = vor.u32 %v5068_v33, %v3772_v36  ;;  %v3988_v36 = vld [vmem:[%s7998_s1 + $0x4d8] sm:$0xf0] }
  0x85   :  { %1460 = vmatpush.bf16.msra.mxu1 %v4131_v38  ;;  %1429 = vmatmul.bf16.vlgmr.msrb.gmra.mxu2 %v6158_v13  ;;  %v3836_v38 = vld [vmem:[%s7998_s1 + $0x3a8] sm:$0xf0] }
  0x86   :  { %1473 = vmatpush.bf16.msra.mxu2 %v3815_v39  ;;  %1442 = vmatmul.bf16.vlgmr.msrb.gmra.mxu3 %v6162_v19  ;;  %v4027_v39 = vor.u32 %v5133_v35, %v4026_v27  ;;  %v3839_v45 = vor.u32 %v5084_v37, %v3836_v38  ;;  %v3999_v27 = vor.u32 %v5124_v23, %v3996_v24  ;;  %v5138_v37 = vld [vmem:[%s7998_s1 + $0x554] sm:$0xf]  ;;  %v4052_v38 = vld [vmem:[%s7998_s1 + $0x558] sm:$0xf0] }
  0x87   :  { %1486 = vmatpush.bf16.msra.mxu3 %v3879_v43  ;;  %v5131_v43 = vld [vmem:[%s7998_s1 + $0x514] sm:$0xf0]  ;;  %v4063_v35 = vor.u32 %v5140_v25, %v4060_v2  ;;  %v5114_v23 = vld [vmem:[%s7998_s1 + $0x494] sm:$0xf]  ;;  %v3956_v24 = vld [vmem:[%s7998_s1 + $0x498] sm:$0xf0] }
  0x88   :  { %1448 = vmatpush.bf16.msra.mxu0 %v4059_v30  ;;  %v3828_v30 = vld [vmem:[%s7998_s1 + $0x398] sm:$0xf0]  ;;  %v4019_v50 = vor.u32 %v5131_v43, %v4018_v42  ;;  %v3991_v42 = vor.u32 %v5122_v32, %v3988_v36  ;;  %v4055_v43 = vor.u32 %v5138_v37, %v4052_v38  ;;  %v5130_v25 = vld [vmem:[%s7998_s1 + $0x514] sm:$0xf]  ;;  %v3959_v32 = vor.u32 %v5114_v23, %v3956_v24  ;;  %v5112_v36 = vld [vmem:[%s7998_s1 + $0x484] sm:$0xf] }
  0x89   :  { %1461 = vmatpush.bf16.msra.mxu1 %v4123_v53  ;;  %v4083_v53 = vor.u32 %v5147_v46, %v4082_v44  ;;  %v3831_v60 = vor.u32 %v5082_v49, %v3828_v30  ;;  %v3916_v44 = vld [vmem:[%s7998_s1 + $0x448] sm:$0xf0]  ;;  %v5152_v49 = vld [vmem:[%s7998_s1 + $0x5c4] sm:$0xf]  ;;  %v4020_v2 = vld [vmem:[%s7998_s1 + $0x518] sm:$0xf0] }
  0x8a   :  { %1474 = vmatpush.bf16.msra.mxu2 %v3807_v54  ;;  %v3767_v54 = vor.u32 %v5066_v47, %v3764_v48  ;;  %v3980_v46 = vld [vmem:[%s7998_s1 + $0x4c8] sm:$0xf0]  ;;  %v5136_v47 = vld [vmem:[%s7998_s1 + $0x544] sm:$0xf]  ;;  %v5299_v23 = vld [vmem:[%s7998_s1 + $0x754] sm:$0xf0] }
  0x8b   :  { %1487 = vmatpush.bf16.msra.mxu3 %v3871_v57  ;;  %v4074_v57 = vld [vmem:[%s7998_s1 + $0x580] sm:$0xf]  ;;  %v4044_v48 = vld [vmem:[%s7998_s1 + $0x548] sm:$0xf0]  ;;  %v5128_v38 = vld [vmem:[%s7998_s1 + $0x504] sm:$0xf] }
  0x8c   :  { %1449 = vmatpush.bf16.msra.mxu0 %v4051_v62  ;;  %v5080_v62 = vld [vmem:[%s7998_s1 + $0x384] sm:$0xf]  ;;  %v4075_v7 = vor.u32 %v5145_v58, %v4074_v57  ;;  %v4108_v30 = vld [vmem:[%s7998_s1 + $0x5c8] sm:$0xf0]  ;;  %v4047_v52 = vor.u32 %v5136_v47, %v4044_v48  ;;  %v5118_v57 = vld [vmem:[%s7998_s1 + $0x4b4] sm:$0xf] }
  0x8d   :  { %1462 = vmatpush.bf16.msra.mxu1 %v4115_v63  ;;  %v3820_v63 = vld [vmem:[%s7998_s1 + $0x388] sm:$0xf0]  ;;  %v4111_v58 = vor.u32 %v5152_v49, %v4108_v30  ;;  %v5303_v47 = vld [vmem:[%s7998_s1 + $0x774] sm:$0xf0]  ;;  %v4482_v30 = vld [vmem:[%s7998_s1 + $0x7f0] sm:$0xf] }
  0x8e   :  { %1475 = vmatpush.bf16.msra.mxu2 %v3799_v51  ;;  %v5110_v51 = vld [vmem:[%s7998_s1 + $0x474] sm:$0xf]  ;;  %v3948_v37 = vld [vmem:[%s7998_s1 + $0x488] sm:$0xf0] }
  0x8f   :  { %1488 = vmatpush.bf16.msra.mxu3 %v3863_v4  ;;  %v4004_v4 = vld [vmem:[%s7998_s1 + $0x4f8] sm:$0xf0]  ;;  %v3951_v48 = vor.u32 %v5112_v36, %v3948_v37 }
  0x90   :  { %1450 = vmatpush.bf16.msra.mxu0 %v4043_v10  ;;  %v4132_v10 = vld [vmem:[%s7998_s1 + $0x5f8] sm:$0xf0]  ;;  %v4007_v15 = vor.u32 %v5126_v1, %v4004_v4  ;;  %v3900_v4 = vld [vmem:[%s7998_s1 + $0x428] sm:$0xf0] }
  0x91   :  { %1463 = vmatpush.bf16.msra.mxu1 %v4107_v11  ;;  %v3823_v11 = vor.u32 %v5080_v62, %v3820_v63  ;;  %v4135_v17 = vor.u32 %v5158_v9, %v4132_v10  ;;  %v5150_v62 = vld [vmem:[%s7998_s1 + $0x5b4] sm:$0xf]  ;;  %v4100_v63 = vld [vmem:[%s7998_s1 + $0x5b8] sm:$0xf0]  ;;  %v4028_v9 = vld [vmem:[%s7998_s1 + $0x528] sm:$0xf0] }
  0x92   :  { %1476 = vmatpush.bf16.msra.mxu2 %v3791_v14  ;;  %v3943_v14 = vor.u32 %v5110_v51, %v3940_v0  ;;  %v3975_v0 = vor.u32 %v5118_v57, %v3972_v59  ;;  %v4103_v6 = vor.u32 %v5150_v62, %v4100_v63  ;;  %v5148_v10 = vld [vmem:[%s7998_s1 + $0x5a4] sm:$0xf]  ;;  %v4282_v59 = vld [vmem:[%s7998_s1 + $0x660] sm:$0xf] }
  0x93   :  { %1489 = vmatpush.bf16.msra.mxu3 %v3855_v22  ;;  %v3932_v22 = vld [vmem:[%s7998_s1 + $0x468] sm:$0xf0] }
  0x94   :  { %1451 = vmatpush.bf16.msra.mxu0 %v4035_v31  ;;  %v5156_v31 = vld [vmem:[%s7998_s1 + $0x5e4] sm:$0xf] }
  0x95   :  { %1464 = vmatpush.bf16.msra.mxu1 %v4099_v18  ;;  %v4124_v18 = vld [vmem:[%s7998_s1 + $0x5e8] sm:$0xf0] }
  0x96   :  { %1477 = vmatpush.bf16.msra.mxu2 %v3783_v26  ;;  %v3935_v26 = vor.u32 %v5108_v21, %v3932_v22  ;;  %v4127_v33 = vor.u32 %v5156_v31, %v4124_v18  ;;  %v5098_v21 = vld [vmem:[%s7998_s1 + $0x414] sm:$0xf]  ;;  %v3892_v22 = vld [vmem:[%s7998_s1 + $0x418] sm:$0xf0] }
  0x97   :  { %1490 = vmatpush.bf16.msra.mxu3 %v3847_v29  ;;  %v3924_v29 = vld [vmem:[%s7998_s1 + $0x458] sm:$0xf0]  ;;  %v5146_v31 = vld [vmem:[%s7998_s1 + $0x594] sm:$0xf] }
  0x98   :  { %1452 = vmatpush.bf16.msra.mxu0 %v4027_v39  ;;  %v5154_v39 = vld [vmem:[%s7998_s1 + $0x5d4] sm:$0xf]  ;;  %v4084_v18 = vld [vmem:[%s7998_s1 + $0x598] sm:$0xf0] }
  0x99   :  { %1465 = vmatpush.bf16.msra.mxu1 %v4091_v40  ;;  %v4116_v40 = vld [vmem:[%s7998_s1 + $0x5d8] sm:$0xf0] }
  0x9a   :  { %1478 = vmatpush.bf16.msra.mxu2 %v3775_v41  ;;  %v3927_v41 = vor.u32 %v5106_v28, %v3924_v29  ;;  %v3884_v28 = vld [vmem:[%s7998_s1 + $0x408] sm:$0xf0] }
  0x9b   :  { %1491 = vmatpush.bf16.msra.mxu3 %v3839_v45  ;;  %v5120_v45 = vld [vmem:[%s7998_s1 + $0x4c4] sm:$0xf] }
  0x9c   :  { %1453 = vmatpush.bf16.msra.mxu0 %v4019_v50  ;;  %v3983_v34 = vor.u32 %v5120_v45, %v3980_v46  ;;  %v4418_v46 = vld [vmem:[%s7998_s1 + $0x770] sm:$0xf] }
  0x9d   :  { %1466 = vmatpush.bf16.msra.mxu1 %v4083_v53  ;;  %v5102_v53 = vld [vmem:[%s7998_s1 + $0x434] sm:$0xf] }
  0x9e   :  { %1479 = vmatpush.bf16.msra.mxu2 %v3767_v54  ;;  %v3908_v54 = vld [vmem:[%s7998_s1 + $0x438] sm:$0xf0] }
  0x9f   :  { %1492 = vmatpush.bf16.msra.mxu3 %v3831_v60  ;;  %v5134_v60 = vld [vmem:[%s7998_s1 + $0x534] sm:$0xf]  ;;  %v3911_v51 = vor.u32 %v5102_v53, %v3908_v54 }
  0xa0   :  { %1454 = vmatpush.bf16.msra.mxu0 %v4011_v3  ;;  %v4039_v1 = vor.u32 %v5134_v60, %v4036_v61  ;;  %v5100_v3 = vld [vmem:[%s7998_s1 + $0x424] sm:$0xf]  ;;  %v5269_v60 = vld [vmem:[%s7998_s1 + $0x664] sm:$0xf0]  ;;  %v4346_v61 = vld [vmem:[%s7998_s1 + $0x6e0] sm:$0xf] }
  0xa1   :  { %1467 = vmatpush.bf16.msra.mxu1 %v4075_v7  ;;  %v3964_v7 = vld [vmem:[%s7998_s1 + $0x4a8] sm:$0xf0] }
  0xa2   :  { %1480 = vmatpush.bf16.msra.mxu2 %v3759_v8  ;;  %v5132_v8 = vld [vmem:[%s7998_s1 + $0x524] sm:$0xf] }
  0xa3   :  { %1493 = vmatpush.bf16.msra.mxu3 %v3823_v11  ;;  %1455 = vmatmul.bf16.vlgmr.msra.gmra.mxu0 %v6361_v55  ;;  %v4092_v11 = vld [vmem:[%s7998_s1 + $0x5a8] sm:$0xf0] }
  0xa4   :  { %1499 = vmatpush.bf16.msrb.mxu0 %v3943_v14  ;;  %1468 = vmatmul.bf16.vlgmr.msra.gmra.mxu1 %v6363_v56  ;;  %v3903_v14 = vor.u32 %v5100_v3, %v3900_v4  ;;  %v5301_v3 = vld [vmem:[%s7998_s1 + $0x764] sm:$0xf0] }
  0xa5   :  { %1512 = vmatpush.bf16.msrb.mxu1 %v4007_v15  ;;  %1481 = vmatmul.bf16.vlgmr.msra.gmra.mxu2 %v6156_v12  ;;  %v5104_v12 = vld [vmem:[%s7998_s1 + $0x444] sm:$0xf]  ;;  %v3967_v15 = vor.u32 %v5116_v5, %v3964_v7  ;;  %v4474_v5 = vld [vmem:[%s7998_s1 + $0x7e0] sm:$0xf]  ;;  %v4283_v7 = vor.u32 %v5269_v60, %v4282_v59 }
  0xa6   :  { %1525 = vmatpush.bf16.msrb.mxu2 %v4071_v20  ;;  %1494 = vmatmul.bf16.vlgmr.msra.gmra.mxu3 %v6160_v16  ;;  %v4119_v16 = vor.u32 %v5154_v39, %v4116_v40  ;;  %v3919_v50 = vor.u32 %v5104_v12, %v3916_v44  ;;  %v4031_v20 = vor.u32 %v5132_v8, %v4028_v9  ;;  %v4012_v40 = vld [vmem:[%s7998_s1 + $0x508] sm:$0xf0]  ;;  %v5271_v12 = vld [vmem:[%s7998_s1 + $0x674] sm:$0xf0]  ;;  %v4354_v44 = vld [vmem:[%s7998_s1 + $0x6f0] sm:$0xf] }
  0xa7   :  { %1538 = vmatpush.bf16.msrb.mxu3 %v4135_v17  ;;  %v4095_v17 = vor.u32 %v5148_v10, %v4092_v11  ;;  %v752_v29 = vpop.f32.mrf.mxu1  ;;  %v4087_v39 = vor.u32 %v5146_v31, %v4084_v18  ;;  %v4015_v49 = vor.u32 %v5128_v38, %v4012_v40  ;;  %v4274_v11 = vld [vmem:[%s7998_s1 + $0x650] sm:$0xf]  ;;  %v5265_v18 = vld [vmem:[%s7998_s1 + $0x644] sm:$0xf0]  ;;  %v4378_v60 = vld [vmem:[%s7998_s1 + $0x720] sm:$0xf] }
  0xa8   :  { %1500 = vmatpush.bf16.msrb.mxu0 %v3935_v26  ;;  %v739_v26 = vpop.f32.mrf.mxu0 }
  0xa9   :  { %1513 = vmatpush.bf16.msrb.mxu1 %v3999_v27  ;;  %v3895_v27 = vor.u32 %v5098_v21, %v3892_v22  ;;  %v753_v53 = vadd.f32 %v752_v29, %v739_v26  ;;  %v5283_v21 = vld [vmem:[%s7998_s1 + $0x6d4] sm:$0xf0]  ;;  %v4402_v22 = vld [vmem:[%s7998_s1 + $0x750] sm:$0xf]  ;;  %v5297_v29 = vld [vmem:[%s7998_s1 + $0x744] sm:$0xf0] }
  0xaa   :  { %1526 = vmatpush.bf16.msrb.mxu2 %v4063_v35  ;;  %v5096_v35 = vld [vmem:[%s7998_s1 + $0x404] sm:$0xf] }
  0xab   :  { %1539 = vmatpush.bf16.msrb.mxu3 %v4127_v33  ;;  %v4023_v33 = vor.u32 %v5130_v25, %v4020_v2  ;;  %v3887_v45 = vor.u32 %v5096_v35, %v3884_v28  ;;  %v765_v54 = vpop.f32.mrf.mxu2  ;;  %v5281_v35 = vld [vmem:[%s7998_s1 + $0x6c4] sm:$0xf0]  ;;  %v4394_v28 = vld [vmem:[%s7998_s1 + $0x740] sm:$0xf] }
  0xac   :  { %1501 = vmatpush.bf16.msrb.mxu0 %v3927_v41  ;;  %v5144_v41 = vld [vmem:[%s7998_s1 + $0x584] sm:$0xf]  ;;  %v766_v8 = vadd.f32 %v765_v54, %v753_v53  ;;  %v5261_v54 = vld [vmem:[%s7998_s1 + $0x624] sm:$0xf0] }
  0xad   :  { %1514 = vmatpush.bf16.msrb.mxu1 %v3991_v42  ;;  %v4076_v42 = vld [vmem:[%s7998_s1 + $0x588] sm:$0xf0] }
  0xae   :  { %1527 = vmatpush.bf16.msrb.mxu2 %v4055_v43  ;;  %v4290_v43 = vld [vmem:[%s7998_s1 + $0x670] sm:$0xf] }
  0xaf   :  { %1540 = vmatpush.bf16.msrb.mxu3 %v4119_v16  ;;  %v5287_v16 = vld [vmem:[%s7998_s1 + $0x6f4] sm:$0xf0]  ;;  %v778_v63 = vpop.f32.mrf.mxu3  ;;  %v754_v4 = vpop.f32.mrf.mxu1 }
  0xb0   :  { %1502 = vmatpush.bf16.msrb.mxu0 %v3919_v50  ;;  %v5319_v50 = vld [vmem:[%s7998_s1 + $0x7f4] sm:$0xf0]  ;;  %v4355_v57 = vor.u32 %v5287_v16, %v4354_v44  ;;  %v741_v62 = vpop.f32.mrf.mxu0  ;;  %v779_v25 = vadd.f32 %v778_v63, %v766_v8  ;;  %v4386_v16 = vld [vmem:[%s7998_s1 + $0x730] sm:$0xf]  ;;  %v4442_v63 = vld [vmem:[%s7998_s1 + $0x7a0] sm:$0xf] }
  0xb1   :  { %1515 = vmatpush.bf16.msrb.mxu1 %v3983_v34  ;;  %v4079_v34 = vor.u32 %v5144_v41, %v4076_v42  ;;  %v4395_v41 = vor.u32 %v5297_v29, %v4394_v28  ;;  %v4258_v42 = vld [vmem:[%s7998_s1 + $0x630] sm:$0xf]  ;;  %v5259_v8 = vld [vmem:[%s7998_s1 + $0x614] sm:$0xf0] }
  0xb2   :  { %1528 = vmatpush.bf16.msrb.mxu2 %v4047_v52  ;;  %v4291_v52 = vor.u32 %v5271_v12, %v4290_v43  ;;  %v5263_v43 = vld [vmem:[%s7998_s1 + $0x634] sm:$0xf0]  ;;  %v4322_v12 = vld [vmem:[%s7998_s1 + $0x6b0] sm:$0xf] }
  0xb3   :  { %1541 = vmatpush.bf16.msrb.mxu3 %v4111_v58  ;;  %v4419_v58 = vor.u32 %v5303_v47, %v4418_v46  ;;  %v767_v2 = vpop.f32.mrf.mxu2  ;;  %v5295_v46 = vld [vmem:[%s7998_s1 + $0x734] sm:$0xf0]  ;;  %v4610_v28 = vld [vmem:[%s7998_s1 + $0x8f0] sm:$0xf] }
  0xb4   :  { %1503 = vmatpush.bf16.msrb.mxu0 %v3911_v51  ;;  %v4483_v51 = vor.u32 %v5319_v50, %v4482_v30  ;;  %v4259_v30 = vor.u32 %v5263_v43, %v4258_v42  ;;  %v4387_v53 = vor.u32 %v5295_v46, %v4386_v16  ;;  %v5273_v2 = vld [vmem:[%s7998_s1 + $0x684] sm:$0xf0]  ;;  %v4602_v46 = vld [vmem:[%s7998_s1 + $0x8e0] sm:$0xf] }
  0xb5   :  { %1516 = vmatpush.bf16.msrb.mxu1 %v3975_v0  ;;  %v5285_v0 = vld [vmem:[%s7998_s1 + $0x6e4] sm:$0xf0] }
  0xb6   :  { %1529 = vmatpush.bf16.msrb.mxu2 %v4039_v1  ;;  %v4410_v1 = vld [vmem:[%s7998_s1 + $0x760] sm:$0xf]  ;;  %v4347_v9 = vor.u32 %v5285_v0, %v4346_v61  ;;  %v5293_v61 = vld [vmem:[%s7998_s1 + $0x724] sm:$0xf0] }
  0xb7   :  { %1542 = vmatpush.bf16.msrb.mxu3 %v4103_v6  ;;  %v5317_v6 = vld [vmem:[%s7998_s1 + $0x7e4] sm:$0xf0]  ;;  %v4411_v10 = vor.u32 %v5301_v3, %v4410_v1  ;;  %v780_v26 = vpop.f32.mrf.mxu3 }
  0xb8   :  { %1504 = vmatpush.bf16.msrb.mxu0 %v3903_v14  ;;  %v5267_v14 = vld [vmem:[%s7998_s1 + $0x654] sm:$0xf0] }
  0xb9   :  { %1517 = vmatpush.bf16.msrb.mxu1 %v3967_v15  ;;  %v4338_v15 = vld [vmem:[%s7998_s1 + $0x6d0] sm:$0xf]  ;;  %v4275_v24 = vor.u32 %v5267_v14, %v4274_v11  ;;  %v5275_v11 = vld [vmem:[%s7998_s1 + $0x694] sm:$0xf0] }
  0xba   :  { %1530 = vmatpush.bf16.msrb.mxu2 %v4031_v20  ;;  %v4475_v20 = vor.u32 %v5317_v6, %v4474_v5  ;;  %v4339_v31 = vor.u32 %v5283_v21, %v4338_v15  ;;  %v4379_v6 = vor.u32 %v5293_v61, %v4378_v60  ;;  %v4370_v14 = vld [vmem:[%s7998_s1 + $0x710] sm:$0xf]  ;;  %v5291_v15 = vld [vmem:[%s7998_s1 + $0x714] sm:$0xf0] }
  0xbb   :  { %1543 = vmatpush.bf16.msrb.mxu3 %v4095_v17  ;;  %v5315_v17 = vld [vmem:[%s7998_s1 + $0x7d4] sm:$0xf0] }
  0xbc   :  { %1505 = vmatpush.bf16.msrb.mxu0 %v3895_v27  ;;  %v5307_v21 = vld [vmem:[%s7998_s1 + $0x794] sm:$0xf0] }
  0xbd   :  { %1518 = vmatpush.bf16.msrb.mxu1 %v3959_v32  ;;  %v4458_v32 = vld [vmem:[%s7998_s1 + $0x7c0] sm:$0xf] }
  0xbe   :  { %1531 = vmatpush.bf16.msrb.mxu2 %v4023_v33  ;;  %v5313_v33 = vld [vmem:[%s7998_s1 + $0x7c4] sm:$0xf0] }
  0xbf   :  { %1544 = vmatpush.bf16.msrb.mxu3 %v4087_v39  ;;  %v4459_v44 = vor.u32 %v5313_v33, %v4458_v32  ;;  %v5351_v33 = vld [vmem:[%s7998_s1 + $0x8f4] sm:$0xf0] }
  0xc0   :  { %1506 = vmatpush.bf16.msrb.mxu0 %v3887_v45  ;;  %v791_v36 = vpop.f32.mrf.mxu0  ;;  %v5279_v45 = vld [vmem:[%s7998_s1 + $0x6b4] sm:$0xf0] }
  0xc1   :  { %1519 = vmatpush.bf16.msrb.mxu1 %v3951_v48  ;;  %v792_v38 = vadd.f32 %v791_v36, %v779_v25  ;;  %v804_v39 = vpop.f32.mrf.mxu1  ;;  %v4450_v48 = vld [vmem:[%s7998_s1 + $0x7b0] sm:$0xf]  ;;  %v4298_v25 = vld [vmem:[%s7998_s1 + $0x680] sm:$0xf]  ;;  %v5270_v36 = vld [vmem:[%s7998_s1 + $0x674] sm:$0xf] }
  0xc2   :  { %1532 = vmatpush.bf16.msrb.mxu2 %v4015_v49  ;;  %v5311_v49 = vld [vmem:[%s7998_s1 + $0x7b4] sm:$0xf0] }
  0xc3   :  { %1545 = vmatpush.bf16.msrb.mxu3 %v4079_v34  ;;  %1507 = vmatmul.bf16.vlgmr.msrb.gmra.mxu0 %v6158_v13  ;;  %v4466_v13 = vld [vmem:[%s7998_s1 + $0x7d0] sm:$0xf]  ;;  %v805_v47 = vadd.f32 %v804_v39, %v792_v38  ;;  %v4250_v34 = vld [vmem:[%s7998_s1 + $0x620] sm:$0xf]  ;;  %v4451_v59 = vor.u32 %v5311_v49, %v4450_v48  ;;  %v4299_v38 = vor.u32 %v5273_v2, %v4298_v25  ;;  %v5268_v48 = vld [vmem:[%s7998_s1 + $0x664] sm:$0xf] }
  0xc4   :  { %2143 = vmatpush.bf16.msra.mxu0 %v4291_v52  ;;  %1520 = vmatmul.bf16.vlgmr.msrb.gmra.mxu1 %v6162_v19  ;;  %v4266_v19 = vld [vmem:[%s7998_s1 + $0x640] sm:$0xf]  ;;  %v4467_v27 = vor.u32 %v5315_v17, %v4466_v13  ;;  %v4323_v52 = vor.u32 %v5279_v45, %v4322_v12  ;;  %v4251_v3 = vor.u32 %v5261_v54, %v4250_v34  ;;  %v5257_v13 = vld [vmem:[%s7998_s1 + $0x604] sm:$0xf0]  ;;  %v4348_v34 = vld [vmem:[%s7998_s1 + $0x6e8] sm:$0xf0] }
  0xc5   :  { %2156 = vmatpush.bf16.msra.mxu1 %v4355_v57  ;;  %1533 = vmatmul.bf16.vlgmr.msrb.gmra.mxu2 %v6361_v55  ;;  %v4403_v55 = vor.u32 %v5299_v23, %v4402_v22  ;;  %v4267_v37 = vor.u32 %v5265_v18, %v4266_v19  ;;  %v888_v50 = vrot.slane %v805_v47, 7  ;;  %v4314_v57 = vld [vmem:[%s7998_s1 + $0x6a0] sm:$0xf]  ;;  %v5289_v19 = vld [vmem:[%s7998_s1 + $0x704] sm:$0xf0]  ;;  %v4611_v45 = vor.u32 %v5351_v33, %v4610_v28 }
  0xc6   :  { %2169 = vmatpush.bf16.msra.mxu2 %v4419_v58  ;;  %1546 = vmatmul.bf16.vlgmr.msrb.gmra.mxu3 %v6363_v56  ;;  %v4330_v56 = vld [vmem:[%s7998_s1 + $0x6c0] sm:$0xf]  ;;  %v5277_v58 = vld [vmem:[%s7998_s1 + $0x6a4] sm:$0xf0]  ;;  %v4260_v28 = vld [vmem:[%s7998_s1 + $0x638] sm:$0xf0] }
  0xc7   :  { %2182 = vmatpush.bf16.msra.mxu3 %v4483_v51  ;;  %v4331_v40 = vor.u32 %v5281_v35, %v4330_v56  ;;  %892 = vst [vmem:[#allocation2] sm:$0x1e] %v888_v50  ;;  %v5309_v51 = vld [vmem:[%s7998_s1 + $0x7a4] sm:$0xf0]  ;;  %v4315_v5 = vor.u32 %v5277_v58, %v4314_v57  ;;  %v4234_v23 = vld [vmem:[%s7998_s1 + $0x600] sm:$0xf] }
  0xc8   :  { %2144 = vmatpush.bf16.msra.mxu0 %v4283_v7  ;;  %v6840_v62 = vpop.f32.mrf.mxu2  ;;  %v793_v1 = vpop.f32.mrf.mxu0  ;;  %v4242_v7 = vld [vmem:[%s7998_s1 + $0x610] sm:$0xf]  ;;  %v4426_v18 = vld [vmem:[%s7998_s1 + $0x780] sm:$0xf]  ;;  %v5305_v56 = vld [vmem:[%s7998_s1 + $0x784] sm:$0xf0]  ;;  %v4235_v32 = vor.u32 %v5257_v13, %v4234_v23 }
  0xc9   :  { %2157 = vmatpush.bf16.msra.mxu1 %v4347_v9  ;;  %v6848_v0 = vpop.f32.mrf.mxu3  ;;  %v806_v4 = vpop.f32.mrf.mxu1  ;;  %v4306_v9 = vld [vmem:[%s7998_s1 + $0x690] sm:$0xf]  ;;  %v4243_v22 = vor.u32 %v5259_v8, %v4242_v7  ;;  %v5335_v35 = vld [vmem:[%s7998_s1 + $0x874] sm:$0xf0]  ;;  %v4427_v42 = vor.u32 %v5305_v56, %v4426_v18  ;;  %v4538_v12 = vld [vmem:[%s7998_s1 + $0x860] sm:$0xf] }
  0xca   :  { %2170 = vmatpush.bf16.msra.mxu2 %v4411_v10  ;;  %v4443_v10 = vor.u32 %v5309_v51, %v4442_v63  ;;  %v4307_v17 = vor.u32 %v5275_v11, %v4306_v9  ;;  %v5349_v47 = vld [vmem:[%s7998_s1 + $0x8e4] sm:$0xf0]  ;;  %v5284_v50 = vld [vmem:[%s7998_s1 + $0x6e4] sm:$0xf]  ;;  %v4594_v63 = vld [vmem:[%s7998_s1 + $0x8d0] sm:$0xf]  ;;  %v831_v9 = vadd.f32 %v6848_v0, %v6840_v62 }
  0xcb   :  { %2183 = vmatpush.bf16.msra.mxu3 %v4475_v20  ;;  %v4434_v20 = vld [vmem:[%s7998_s1 + $0x790] sm:$0xf]  ;;  %v6952_v54 = vld.sshfl [vmem:[#allocation1] sm:$0xff pattern:$0x73625140]  ;;  %v4603_v60 = vor.u32 %v5349_v47, %v4602_v46  ;;  %v4351_v1 = vor.u32 %v5284_v50, %v4348_v34 }
  0xcc   :  { %2145 = vmatpush.bf16.msra.mxu0 %v4275_v24  ;;  %v4371_v24 = vor.u32 %v5291_v15, %v4370_v14  ;;  %v6954_v58 = vld.sshfl [vmem:[#allocation1 + $0x8] sm:$0xff pattern:$0x73625140]  ;;  %v6961_v51 = vld.sshfl [vmem:[#allocation1 + $0x18] sm:$0xff pattern:$0x73625140] }
  0xcd   :  { %2158 = vmatpush.bf16.msra.mxu1 %v4339_v31  ;;  %v4362_v31 = vld [vmem:[%s7998_s1 + $0x700] sm:$0xf]  ;;  %v5266_v4 = vld [vmem:[%s7998_s1 + $0x654] sm:$0xf]  ;;  %v4340_v7 = vld [vmem:[%s7998_s1 + $0x6d8] sm:$0xf0] }
  0xce   :  { %2171 = vmatpush.bf16.msra.mxu2 %v4403_v55  ;;  %v4435_v55 = vor.u32 %v5307_v21, %v4434_v20  ;;  %v4363_v39 = vor.u32 %v5289_v19, %v4362_v31  ;;  %v4522_v14 = vld [vmem:[%s7998_s1 + $0x840] sm:$0xf]  ;;  %v5329_v15 = vld [vmem:[%s7998_s1 + $0x844] sm:$0xf0]  ;;  %v5264_v0 = vld [vmem:[%s7998_s1 + $0x644] sm:$0xf] }
  0xcf   :  { %2184 = vmatpush.bf16.msra.mxu3 %v4467_v27  ;;  %v4546_v27 = vld [vmem:[%s7998_s1 + $0x870] sm:$0xf]  ;;  %v4586_v20 = vld [vmem:[%s7998_s1 + $0x8c0] sm:$0xf]  ;;  %v5345_v62 = vld [vmem:[%s7998_s1 + $0x8c4] sm:$0xf0] }
  0xd0   :  { %2146 = vmatpush.bf16.msra.mxu0 %v4267_v37  ;;  %v819_v26 = vpop.f32.mrf.mxu2  ;;  %v4292_v37 = vld [vmem:[%s7998_s1 + $0x678] sm:$0xf0]  ;;  %v4547_v43 = vor.u32 %v5335_v35, %v4546_v27  ;;  %v5280_v23 = vld [vmem:[%s7998_s1 + $0x6c4] sm:$0xf]  ;;  %v4332_v13 = vld [vmem:[%s7998_s1 + $0x6c8] sm:$0xf0]  ;;  %v4587_v25 = vor.u32 %v5345_v62, %v4586_v20 }
  0xd1   :  { %2159 = vmatpush.bf16.msra.mxu1 %v4331_v40  ;;  %v832_v29 = vpop.f32.mrf.mxu3  ;;  %v5286_v40 = vld [vmem:[%s7998_s1 + $0x6f4] sm:$0xf]  ;;  %v4295_v16 = vor.u32 %v5270_v36, %v4292_v37  ;;  %v4514_v31 = vld [vmem:[%s7998_s1 + $0x830] sm:$0xf]  ;;  %v4335_v26 = vor.u32 %v5280_v23, %v4332_v13  ;;  %v5343_v27 = vld [vmem:[%s7998_s1 + $0x8b4] sm:$0xf0] }
  0xd2   :  { %2172 = vmatpush.bf16.msra.mxu2 %v4395_v41  ;;  %v4356_v41 = vld [vmem:[%s7998_s1 + $0x6f8] sm:$0xf0]  ;;  %v4578_v19 = vld [vmem:[%s7998_s1 + $0x8b0] sm:$0xf]  ;;  %v5262_v35 = vld [vmem:[%s7998_s1 + $0x634] sm:$0xf] }
  0xd3   :  { %2185 = vmatpush.bf16.msra.mxu3 %v4459_v44  ;;  %v5333_v44 = vld [vmem:[%s7998_s1 + $0x864] sm:$0xf0]  ;;  %v4359_v49 = vor.u32 %v5286_v40, %v4356_v41  ;;  %v5278_v29 = vld [vmem:[%s7998_s1 + $0x6b4] sm:$0xf]  ;;  %v4579_v37 = vor.u32 %v5343_v27, %v4578_v19  ;;  %v4570_v41 = vld [vmem:[%s7998_s1 + $0x8a0] sm:$0xf] }
  0xd4   :  { %2147 = vmatpush.bf16.msra.mxu0 %v4259_v30  ;;  %v4284_v30 = vld [vmem:[%s7998_s1 + $0x668] sm:$0xf0]  ;;  %v4539_v57 = vor.u32 %v5333_v44, %v4538_v12  ;;  %v5325_v40 = vld [vmem:[%s7998_s1 + $0x824] sm:$0xf0]  ;;  %v5260_v44 = vld [vmem:[%s7998_s1 + $0x624] sm:$0xf] }
  0xd5   :  { %2160 = vmatpush.bf16.msra.mxu1 %v4323_v52  ;;  %v4530_v52 = vld [vmem:[%s7998_s1 + $0x850] sm:$0xf]  ;;  %v4287_v61 = vor.u32 %v5268_v48, %v4284_v30  ;;  %v5341_v12 = vld [vmem:[%s7998_s1 + $0x8a4] sm:$0xf0]  ;;  %v5276_v47 = vld [vmem:[%s7998_s1 + $0x6a4] sm:$0xf] }
  0xd6   :  { %2173 = vmatpush.bf16.msra.mxu2 %v4387_v53  ;;  %v5331_v53 = vld [vmem:[%s7998_s1 + $0x854] sm:$0xf0]  ;;  %v4316_v48 = vld [vmem:[%s7998_s1 + $0x6a8] sm:$0xf0]  ;;  %v4498_v50 = vld [vmem:[%s7998_s1 + $0x810] sm:$0xf] }
  0xd7   :  { %2186 = vmatpush.bf16.msra.mxu3 %v4451_v59  ;;  %v6956_v59 = vld.sshfl [vmem:[#allocation1 + $0x10] sm:$0xff pattern:$0x73625140]  ;;  %v4531_v8 = vor.u32 %v5331_v53, %v4530_v52  ;;  %v4571_v52 = vor.u32 %v5341_v12, %v4570_v41  ;;  %v5337_v20 = vld [vmem:[%s7998_s1 + $0x884] sm:$0xf0] }
  0xd8   :  { %2148 = vmatpush.bf16.msra.mxu0 %v4251_v3  ;;  %v5347_v3 = vld [vmem:[%s7998_s1 + $0x8d4] sm:$0xf0]  ;;  %v5272_v23 = vld [vmem:[%s7998_s1 + $0x684] sm:$0xf]  ;;  %v4300_v13 = vld [vmem:[%s7998_s1 + $0x688] sm:$0xf0] }
  0xd9   :  { %2161 = vmatpush.bf16.msra.mxu1 %v4315_v5  ;;  %v4276_v5 = vld [vmem:[%s7998_s1 + $0x658] sm:$0xf0]  ;;  %v5316_v41 = vld [vmem:[%s7998_s1 + $0x7e4] sm:$0xf] }
  0xda   :  { %2174 = vmatpush.bf16.msra.mxu2 %v4379_v6  ;;  %v5282_v6 = vld [vmem:[%s7998_s1 + $0x6d4] sm:$0xf]  ;;  %v4279_v11 = vor.u32 %v5266_v4, %v4276_v5  ;;  %v4244_v5 = vld [vmem:[%s7998_s1 + $0x618] sm:$0xf0]  ;;  %v5332_v12 = vld [vmem:[%s7998_s1 + $0x864] sm:$0xf] }
  0xdb   :  { %2187 = vmatpush.bf16.msra.mxu3 %v4443_v10  ;;  %v4595_v10 = vor.u32 %v5347_v3, %v4594_v63  ;;  %v4343_v21 = vor.u32 %v5282_v6, %v4340_v7  ;;  %v5258_v4 = vld [vmem:[%s7998_s1 + $0x614] sm:$0xf]  ;;  %v4308_v7 = vld [vmem:[%s7998_s1 + $0x698] sm:$0xf0] }
  0xdc   :  { %2149 = vmatpush.bf16.msra.mxu0 %v4243_v22  ;;  %v4268_v22 = vld [vmem:[%s7998_s1 + $0x648] sm:$0xf0]  ;;  %v5274_v6 = vld [vmem:[%s7998_s1 + $0x694] sm:$0xf]  ;;  %v4484_v19 = vld [vmem:[%s7998_s1 + $0x7f8] sm:$0xf0] }
  0xdd   :  { %2162 = vmatpush.bf16.msra.mxu1 %v4307_v17  ;;  %v4523_v17 = vor.u32 %v5329_v15, %v4522_v14  ;;  %v4271_v2 = vor.u32 %v5264_v0, %v4268_v22  ;;  %v4247_v14 = vor.u32 %v5258_v4, %v4244_v5  ;;  %v4554_v15 = vld [vmem:[%s7998_s1 + $0x880] sm:$0xf]  ;;  %v4311_v0 = vor.u32 %v5274_v6, %v4308_v7  ;;  %v4236_v22 = vld [vmem:[%s7998_s1 + $0x608] sm:$0xf0]  ;;  %v894_v5 = vld [vmem:[#allocation2] sm:$0xf] }
  0xde   :  { %2175 = vmatpush.bf16.msra.mxu2 %v4371_v24  ;;  %v5296_v7 = vld [vmem:[%s7998_s1 + $0x744] sm:$0xf] }
  0xdf   :  { %2188 = vmatpush.bf16.msra.mxu3 %v4435_v55  ;;  %v5327_v55 = vld [vmem:[%s7998_s1 + $0x834] sm:$0xf0] }
  0xe0   :  { %2150 = vmatpush.bf16.msra.mxu0 %v4235_v32  ;;  %v843_v24 = vpop.f32.mrf.mxu0  ;;  %v4324_v32 = vld [vmem:[%s7998_s1 + $0x6b8] sm:$0xf0]  ;;  %v4515_v36 = vor.u32 %v5327_v55, %v4514_v31  ;;  %v5318_v31 = vld [vmem:[%s7998_s1 + $0x7f4] sm:$0xf] }
  0xe1   :  { %2163 = vmatpush.bf16.msra.mxu1 %v4299_v38  ;;  %v844_v18 = vadd.f32 %v843_v24, %v831_v9  ;;  %v856_v56 = vpop.f32.mrf.mxu1  ;;  %v4263_v38 = vor.u32 %v5262_v35, %v4260_v28  ;;  %v4490_v9 = vld [vmem:[%s7998_s1 + $0x800] sm:$0xf]  ;;  %v20_v24 = vlaneseq  ;;  %v5350_v35 = vld [vmem:[%s7998_s1 + $0x8f4] sm:$0xf]  ;;  %v4612_v28 = vld [vmem:[%s7998_s1 + $0x8f8] sm:$0xf0] }
  0xe2   :  { %2176 = vmatpush.bf16.msra.mxu2 %v4363_v39  ;;  %v4506_v39 = vld [vmem:[%s7998_s1 + $0x820] sm:$0xf] }
  0xe3   :  { %2189 = vmatpush.bf16.msra.mxu3 %v4427_v42  ;;  %2151 = vmatmul.bf16.vlgmr.msra.gmra.mxu0 %v6952_v54  ;;  %v857_v33 = vadd.f32 %v856_v56, %v844_v18  ;;  %v5334_v18 = vld [vmem:[%s7998_s1 + $0x874] sm:$0xf]  ;;  %v4548_v56 = vld [vmem:[%s7998_s1 + $0x878] sm:$0xf0] }
  0xe4   :  { %2195 = vmatpush.bf16.msrb.mxu0 %v4547_v43  ;;  %2164 = vmatmul.bf16.vlgmr.msra.gmra.mxu1 %v6954_v58  ;;  %v4327_v43 = vor.u32 %v5278_v29, %v4324_v32  ;;  %v4303_v29 = vor.u32 %v5272_v23, %v4300_v13 }
  0xe5   :  { %2208 = vmatpush.bf16.msrb.mxu1 %v4611_v45  ;;  %2177 = vmatmul.bf16.vlgmr.msra.gmra.mxu2 %v6956_v59  ;;  %v4252_v45 = vld [vmem:[%s7998_s1 + $0x628] sm:$0xf0] }
  0xe6   :  { %2221 = vmatpush.bf16.msrb.mxu2 %v4295_v16  ;;  %2190 = vmatmul.bf16.vlgmr.msra.gmra.mxu3 %v6961_v51  ;;  %v4255_v53 = vor.u32 %v5260_v44, %v4252_v45  ;;  %v4540_v44 = vld [vmem:[%s7998_s1 + $0x868] sm:$0xf0]  ;;  %v5348_v45 = vld [vmem:[%s7998_s1 + $0x8e4] sm:$0xf] }
  0xe7   :  { %2234 = vmatpush.bf16.msrb.mxu3 %v4359_v49  ;;  %v4507_v49 = vor.u32 %v5325_v40, %v4506_v39  ;;  %v5300_v39 = vld [vmem:[%s7998_s1 + $0x764] sm:$0xf]  ;;  %v4412_v40 = vld [vmem:[%s7998_s1 + $0x768] sm:$0xf0] }
  0xe8   :  { %2196 = vmatpush.bf16.msrb.mxu0 %v4539_v57  ;;  %v869_v42 = vpop.f32.mrf.mxu2  ;;  %v845_v34 = vpop.f32.mrf.mxu0  ;;  %v5323_v57 = vld [vmem:[%s7998_s1 + $0x814] sm:$0xf0] }
  0xe9   :  { %2209 = vmatpush.bf16.msrb.mxu1 %v4603_v60  ;;  %v870_v16 = vadd.f32 %v869_v42, %v857_v33  ;;  %v882_v46 = vpop.f32.mrf.mxu3  ;;  %v4562_v60 = vld [vmem:[%s7998_s1 + $0x890] sm:$0xf]  ;;  %v858_v63 = vpop.f32.mrf.mxu1  ;;  %v7128_v33 = vshrl.u32 %v20_v24, 7  ;;  %v4615_v42 = vor.u32 %v5350_v35, %v4612_v28  ;;  %v4404_v34 = vld [vmem:[%s7998_s1 + $0x758] sm:$0xf0] }
  0xea   :  { %2222 = vmatpush.bf16.msrb.mxu2 %v4287_v61  ;;  %v5339_v61 = vld [vmem:[%s7998_s1 + $0x894] sm:$0xf0]  ;;  %v5346_v63 = vld [vmem:[%s7998_s1 + $0x8d4] sm:$0xf] }
  0xeb   :  { %2235 = vmatpush.bf16.msrb.mxu3 %v4351_v1  ;;  %v883_v30 = vadd.f32 %v882_v46, %v870_v16  ;;  %v4319_v1 = vor.u32 %v5276_v47, %v4316_v48  ;;  %v4604_v16 = vld [vmem:[%s7998_s1 + $0x8e8] sm:$0xf0]  ;;  %v4415_v47 = vor.u32 %v5300_v39, %v4412_v40  ;;  %v26_v48 = vand.u32 1, %v7128_v33  ;;  %v5294_v24 = vld [vmem:[%s7998_s1 + $0x734] sm:$0xf] }
  0xec   :  { %2197 = vmatpush.bf16.msrb.mxu0 %v4531_v8  ;;  %v4499_v8 = vor.u32 %v5323_v57, %v4498_v50  ;;  %v7156_v46 = vld.sshfl [vmem:[#allocation1 + $0x28] sm:$0xff pattern:$0x73625140]  ;;  %v5298_v50 = vld [vmem:[%s7998_s1 + $0x754] sm:$0xf] }
  0xed   :  { %2210 = vmatpush.bf16.msrb.mxu1 %v4595_v10  ;;  %v889_v3 = vrot.slane %v883_v30, 7  ;;  %v5321_v10 = vld [vmem:[%s7998_s1 + $0x804] sm:$0xf0]  ;;  %v4543_v30 = vor.u32 %v5332_v12, %v4540_v44  ;;  %v4468_v57 = vld [vmem:[%s7998_s1 + $0x7d8] sm:$0xf0]  ;;  %vm7189_vm0 = vcmp.eq.s32.totalorder %v26_v48, 0 }
  0xee   :  { %2223 = vmatpush.bf16.msrb.mxu2 %v4279_v11  ;;  %v4563_v11 = vor.u32 %v5339_v61, %v4562_v60  ;;  %v4491_v55 = vor.u32 %v5321_v10, %v4490_v9  ;;  %v5330_v60 = vld [vmem:[%s7998_s1 + $0x854] sm:$0xf]  ;;  %v4532_v61 = vld [vmem:[%s7998_s1 + $0x858] sm:$0xf0]  ;;  %v4460_v10 = vld [vmem:[%s7998_s1 + $0x7c8] sm:$0xf0] }
  0xef   :  { %2236 = vmatpush.bf16.msrb.mxu3 %v4343_v21  ;;  %893 = vst [vmem:[#allocation2 + $0x8] sm:$0x1e] %v889_v3  ;;  %v5256_v21 = vld [vmem:[%s7998_s1 + $0x604] sm:$0xf]  ;;  %v4407_v3 = vor.u32 %v5298_v50, %v4404_v34  ;;  %v4535_v6 = vor.u32 %v5330_v60, %v4532_v61  ;;  %v5306_v60 = vld [vmem:[%s7998_s1 + $0x794] sm:$0xf] }
  0xf0   :  { %2198 = vmatpush.bf16.msrb.mxu0 %v4523_v17  ;;  %v871_v62 = vpop.f32.mrf.mxu2  ;;  %v4239_v27 = vor.u32 %v5256_v21, %v4236_v22  ;;  %v5344_v21 = vld [vmem:[%s7998_s1 + $0x8c4] sm:$0xf]  ;;  %vm7330_vm1 = vcmp.eq.s32.totalorder %v26_v48, 1  ;;  %v5415_v33 = vld [vmem:[%s8000_s2 + $0xf4] sm:$0xf0] }
  0xf1   :  { %2211 = vmatpush.bf16.msrb.mxu1 %v4587_v25  ;;  %v884_v17 = vpop.f32.mrf.mxu3  ;;  %v5302_v25 = vld [vmem:[%s7998_s1 + $0x774] sm:$0xf]  ;;  %v4588_v62 = vld [vmem:[%s7998_s1 + $0x8c8] sm:$0xf0] }
  0xf2   :  { %2224 = vmatpush.bf16.msrb.mxu2 %v4271_v2  ;;  %v4420_v2 = vld [vmem:[%s7998_s1 + $0x778] sm:$0xf0]  ;;  %v5398_v48 = vld [vmem:[%s8000_s2 + $0x74] sm:$0xf] }
  0xf3   :  { %2237 = vmatpush.bf16.msrb.mxu3 %v4335_v26  ;;  %v4555_v26 = vor.u32 %v5337_v20, %v4554_v15  ;;  %v4423_v32 = vor.u32 %v5302_v25, %v4420_v2  ;;  %v898_v15 = vsel %vm7189_vm0, 0.0, %v894_v5  ;;  %v4388_v25 = vld [vmem:[%s7998_s1 + $0x738] sm:$0xf0]  ;;  %v5310_v2 = vld [vmem:[%s7998_s1 + $0x7b4] sm:$0xf] }
  0xf4   :  { %2199 = vmatpush.bf16.msrb.mxu0 %v4515_v36  ;;  %v4487_v36 = vor.u32 %v5318_v31, %v4484_v19  ;;  %v4591_v31 = vor.u32 %v5344_v21, %v4588_v62  ;;  %v4452_v19 = vld [vmem:[%s7998_s1 + $0x7b8] sm:$0xf0]  ;;  %v4391_v35 = vor.u32 %v5294_v24, %v4388_v25  ;;  %v5338_v5 = vld [vmem:[%s7998_s1 + $0x894] sm:$0xf]  ;;  %v5336_v62 = vld [vmem:[%s7998_s1 + $0x884] sm:$0xf] }
  0xf5   :  { %2212 = vmatpush.bf16.msrb.mxu1 %v4579_v37  ;;  %v4551_v37 = vor.u32 %v5334_v18, %v4548_v56  ;;  %v5326_v18 = vld [vmem:[%s7998_s1 + $0x834] sm:$0xf]  ;;  %v4516_v56 = vld [vmem:[%s7998_s1 + $0x838] sm:$0xf0]  ;;  %v4455_v28 = vor.u32 %v5310_v2, %v4452_v19 }
  0xf6   :  { %2225 = vmatpush.bf16.msrb.mxu2 %v4263_v38  ;;  %v7130_v38 = vld.sshfl [vmem:[#allocation1 + $0x20] sm:$0xff pattern:$0x73625140]  ;;  %v895_v19 = vld [vmem:[#allocation2 + $0x8] sm:$0xf] }
  0xf7   :  { %2238 = vmatpush.bf16.msrb.mxu3 %v4327_v43  ;;  %v4476_v43 = vld [vmem:[%s7998_s1 + $0x7e8] sm:$0xf0] }
  0xf8   :  { %2200 = vmatpush.bf16.msrb.mxu0 %v4507_v49  ;;  %v4479_v49 = vor.u32 %v5316_v41, %v4476_v43  ;;  %v4444_v41 = vld [vmem:[%s7998_s1 + $0x7a8] sm:$0xf0] }
  0xf9   :  { %2213 = vmatpush.bf16.msrb.mxu1 %v4571_v52  ;;  %v5314_v52 = vld [vmem:[%s7998_s1 + $0x7d4] sm:$0xf]  ;;  %v4508_v43 = vld [vmem:[%s7998_s1 + $0x828] sm:$0xf0] }
  0xfa   :  { %2226 = vmatpush.bf16.msrb.mxu2 %v4255_v53  ;;  %v4607_v53 = vor.u32 %v5348_v45, %v4604_v16  ;;  %v5340_v45 = vld [vmem:[%s7998_s1 + $0x8a4] sm:$0xf]  ;;  %v4572_v16 = vld [vmem:[%s7998_s1 + $0x8a8] sm:$0xf0] }
  0xfb   :  { %2239 = vmatpush.bf16.msrb.mxu3 %v4319_v1  ;;  %v4596_v1 = vld [vmem:[%s7998_s1 + $0x8d8] sm:$0xf0]  ;;  %v4575_v61 = vor.u32 %v5340_v45, %v4572_v16 }
  0xfc   :  { %2201 = vmatpush.bf16.msrb.mxu0 %v4499_v8  ;;  %v4396_v8 = vld [vmem:[%s7998_s1 + $0x748] sm:$0xf0]  ;;  %v4599_v9 = vor.u32 %v5346_v63, %v4596_v1  ;;  %v4436_v63 = vld [vmem:[%s7998_s1 + $0x798] sm:$0xf0]  ;;  %v5322_v1 = vld [vmem:[%s7998_s1 + $0x814] sm:$0xf] }
  0xfd   :  { %2214 = vmatpush.bf16.msrb.mxu1 %v4563_v11  ;;  %v5328_v11 = vld [vmem:[%s7998_s1 + $0x844] sm:$0xf]  ;;  %v4399_v22 = vor.u32 %v5296_v7, %v4396_v8  ;;  %v4439_v7 = vor.u32 %v5306_v60, %v4436_v63 }
  0xfe   :  { %2227 = vmatpush.bf16.msrb.mxu2 %v4247_v14  ;;  %v4524_v14 = vld [vmem:[%s7998_s1 + $0x848] sm:$0xf0] }
  0xff   :  { %2240 = vmatpush.bf16.msrb.mxu3 %v4311_v0  ;;  %v4527_v17 = vor.u32 %v5328_v11, %v4524_v14  ;;  %v4428_v14 = vld [vmem:[%s7998_s1 + $0x788] sm:$0xf0] }
 0x100   :  { %2202 = vmatpush.bf16.msrb.mxu0 %v4491_v55  ;;  %v1404_v20 = vpop.f32.mrf.mxu0 }
 0x101   :  { %2215 = vmatpush.bf16.msrb.mxu1 %v4555_v26  ;;  %v1405_v0 = vadd.f32 %v1404_v20, %v898_v15  ;;  %v1417_v23 = vpop.f32.mrf.mxu1  ;;  %v5342_v26 = vld [vmem:[%s7998_s1 + $0x8b4] sm:$0xf]  ;;  %v5320_v15 = vld [vmem:[%s7998_s1 + $0x804] sm:$0xf]  ;;  %v4492_v20 = vld [vmem:[%s7998_s1 + $0x808] sm:$0xf0] }
 0x102   :  { %2228 = vmatpush.bf16.msrb.mxu2 %v4239_v27  ;;  %v4580_v27 = vld [vmem:[%s7998_s1 + $0x8b8] sm:$0xf0] }
 0x103   :  { %2241 = vmatpush.bf16.msrb.mxu3 %v4303_v29  ;;  %2203 = vmatmul.bf16.vlgmr.msrb.gmra.mxu0 %v7130_v38  ;;  %v1418_v55 = vadd.f32 %v1417_v23, %v1405_v0  ;;  %v4519_v29 = vor.u32 %v5326_v18, %v4516_v56  ;;  %v4583_v39 = vor.u32 %v5342_v26, %v4580_v27  ;;  %v4556_v0 = vld [vmem:[%s7998_s1 + $0x888] sm:$0xf0]  ;;  %v899_v18 = vsel %vm7189_vm0, 0.0, %v895_v19 }
 0x104   :  { %2247 = vmatpush.bf16.msra.mxu0 %v4423_v32  ;;  %2216 = vmatmul.bf16.vlgmr.msrb.gmra.mxu1 %v7156_v46  ;;  %v5292_v32 = vld [vmem:[%s7998_s1 + $0x724] sm:$0xf]  ;;  %v4559_v24 = vor.u32 %v5336_v62, %v4556_v0  ;;  %v4708_v62 = vld [vmem:[%s8000_s2 + $0x78] sm:$0xf0] }
 0x105   :  { %2260 = vmatpush.bf16.msra.mxu1 %v4487_v36  ;;  %2229 = vmatmul.bf16.vlgmr.msrb.gmra.mxu2 %v6952_v54  ;;  %v4471_v54 = vor.u32 %v5314_v52, %v4468_v57  ;;  %v4380_v36 = vld [vmem:[%s7998_s1 + $0x728] sm:$0xf0]  ;;  %v4372_v57 = vld [vmem:[%s7998_s1 + $0x718] sm:$0xf0] }
 0x106   :  { %2273 = vmatpush.bf16.msra.mxu2 %v4551_v37  ;;  %2242 = vmatmul.bf16.vlgmr.msrb.gmra.mxu3 %v6954_v58  ;;  %v5312_v58 = vld [vmem:[%s7998_s1 + $0x7c4] sm:$0xf] }
 0x107   :  { %2286 = vmatpush.bf16.msra.mxu3 %v4615_v42  ;;  %v4463_v13 = vor.u32 %v5312_v58, %v4460_v10  ;;  %v5308_v37 = vld [vmem:[%s7998_s1 + $0x7a4] sm:$0xf] }
 0x108   :  { %2248 = vmatpush.bf16.msra.mxu0 %v4415_v47  ;;  %v1430_v40 = vpop.f32.mrf.mxu2  ;;  %v5324_v42 = vld [vmem:[%s7998_s1 + $0x824] sm:$0xf]  ;;  %v1406_v47 = vpop.f32.mrf.mxu0  ;;  %v4447_v34 = vor.u32 %v5308_v37, %v4444_v41 }
 0x109   :  { %2261 = vmatpush.bf16.msra.mxu1 %v4479_v49  ;;  %v1431_v12 = vadd.f32 %v1430_v40, %v1418_v55  ;;  %v1443_v44 = vpop.f32.mrf.mxu3  ;;  %v4383_v49 = vor.u32 %v5292_v32, %v4380_v36  ;;  %v4511_v52 = vor.u32 %v5324_v42, %v4508_v43  ;;  %v5288_v58 = vld [vmem:[%s7998_s1 + $0x704] sm:$0xf] }
 0x10a   :  { %2274 = vmatpush.bf16.msra.mxu2 %v4543_v30  ;;  %v1419_v30 = vpop.f32.mrf.mxu1  ;;  %v5304_v10 = vld [vmem:[%s7998_s1 + $0x784] sm:$0xf] }
 0x10b   :  { %2287 = vmatpush.bf16.msra.mxu3 %v4607_v53  ;;  %v1444_v50 = vadd.f32 %v1443_v44, %v1431_v12  ;;  %v5290_v53 = vld [vmem:[%s7998_s1 + $0x714] sm:$0xf] }
 0x10c   :  { %2249 = vmatpush.bf16.msra.mxu0 %v4407_v3  ;;  %v4500_v3 = vld [vmem:[%s7998_s1 + $0x818] sm:$0xf0] }
 0x10d   :  { %2262 = vmatpush.bf16.msra.mxu1 %v4471_v54  ;;  %v4564_v54 = vld [vmem:[%s7998_s1 + $0x898] sm:$0xf0]  ;;  %v4503_v8 = vor.u32 %v5322_v1, %v4500_v3 }
 0x10e   :  { %2275 = vmatpush.bf16.msra.mxu2 %v4535_v6  ;;  %v4375_v6 = vor.u32 %v5290_v53, %v4372_v57  ;;  %v4567_v11 = vor.u32 %v5338_v5, %v4564_v54 }
 0x10f   :  { %2288 = vmatpush.bf16.msra.mxu3 %v4599_v9  ;;  %v4364_v9 = vld [vmem:[%s7998_s1 + $0x708] sm:$0xf0] }
 0x110   :  { %2250 = vmatpush.bf16.msra.mxu0 %v4399_v22  ;;  %v1432_v21 = vpop.f32.mrf.mxu2  ;;  %v4367_v23 = vor.u32 %v5288_v58, %v4364_v9 }
 0x111   :  { %2263 = vmatpush.bf16.msra.mxu1 %v4463_v13  ;;  %v1445_v22 = vpop.f32.mrf.mxu3  ;;  %v4431_v13 = vor.u32 %v5304_v10, %v4428_v14  ;;  %v4706_v14 = vld [vmem:[%s8000_s2 + $0x70] sm:$0xf] }
 0x112   :  { %2276 = vmatpush.bf16.msra.mxu2 %v4527_v17  ;;  %v4495_v17 = vor.u32 %v5320_v15, %v4492_v20  ;;  %v5399_v15 = vld [vmem:[%s8000_s2 + $0x74] sm:$0xf0]  ;;  %v4770_v20 = vld [vmem:[%s8000_s2 + $0xf0] sm:$0xf]  ;;  %v4711_v22 = vor.u32 %v5398_v48, %v4708_v62 }
 0x113   :  { %2289 = vmatpush.bf16.msra.mxu3 %v4591_v31  ;;  %v4707_v21 = vor.u32 %v5399_v15, %v4706_v14  ;;  %v4771_v0 = vor.u32 %v5415_v33, %v4770_v20  ;;  %v5406_v15 = vld [vmem:[%s8000_s2 + $0xb4] sm:$0xf]  ;;  %v4740_v20 = vld [vmem:[%s8000_s2 + $0xb8] sm:$0xf0] }
 0x114   :  { %2251 = vmatpush.bf16.msra.mxu0 %v4391_v35 }
 0x115   :  { %2264 = vmatpush.bf16.msra.mxu1 %v4455_v28 }
 0x116   :  { %2277 = vmatpush.bf16.msra.mxu2 %v4519_v29 }
 0x117   :  { %2290 = vmatpush.bf16.msra.mxu3 %v4583_v39 }
 0x118   :  { %2252 = vmatpush.bf16.msra.mxu0 %v4383_v49 }
 0x119   :  { %2265 = vmatpush.bf16.msra.mxu1 %v4447_v34 }
 0x11a   :  { %2278 = vmatpush.bf16.msra.mxu2 %v4511_v52 }
 0x11b   :  { %2291 = vmatpush.bf16.msra.mxu3 %v4575_v61 }
 0x11c   :  { %2253 = vmatpush.bf16.msra.mxu0 %v4375_v6 }
 0x11d   :  { %2266 = vmatpush.bf16.msra.mxu1 %v4439_v7 }
 0x11e   :  { %2279 = vmatpush.bf16.msra.mxu2 %v4503_v8 }
 0x11f   :  { %2292 = vmatpush.bf16.msra.mxu3 %v4567_v11 }
 0x120   :  { %2254 = vmatpush.bf16.msra.mxu0 %v4367_v23  ;;  %v1456_v25 = vpop.f32.mrf.mxu0  ;;  %v5414_v23 = vld [vmem:[%s8000_s2 + $0xf4] sm:$0xf] }
 0x121   :  { %2267 = vmatpush.bf16.msra.mxu1 %v4431_v13  ;;  %v1457_v2 = vadd.f32 %v1456_v25, %v1444_v50  ;;  %v1469_v31 = vpop.f32.mrf.mxu1  ;;  %v4772_v13 = vld [vmem:[%s8000_s2 + $0xf8] sm:$0xf0]  ;;  %v5397_v25 = vld [vmem:[%s8000_s2 + $0x64] sm:$0xf0] }
 0x122   :  { %2280 = vmatpush.bf16.msra.mxu2 %v4495_v17  ;;  %v4698_v17 = vld [vmem:[%s8000_s2 + $0x60] sm:$0xf] }
 0x123   :  { %2293 = vmatpush.bf16.msra.mxu3 %v4559_v24  ;;  %2255 = vmatmul.bf16.vlgmr.msra.gmra.mxu0 %v6956_v59  ;;  %v7319_v55 = vadd.f32 %v1469_v31, %v1457_v2  ;;  %v4775_v24 = vor.u32 %v5414_v23, %v4772_v13  ;;  %v4762_v2 = vld [vmem:[%s8000_s2 + $0xe0] sm:$0xf]  ;;  %v5413_v31 = vld [vmem:[%s8000_s2 + $0xe4] sm:$0xf0]  ;;  %v4699_v19 = vor.u32 %v5397_v25, %v4698_v17 }
 0x124   :  { %2268 = vmatmul.bf16.vlgmr.msra.gmra.mxu1 %v6961_v51  ;;  %2634 = vmatpush.bf16.msrb.mxu0 %v4707_v21  ;;  %v4666_v17 = vld [vmem:[%s8000_s2 + $0x20] sm:$0xf] }
 0x125   :  { %2281 = vmatmul.bf16.vlgmr.msra.gmra.mxu2 %v7130_v38  ;;  %2647 = vmatpush.bf16.msrb.mxu1 %v4771_v0  ;;  %v4730_v25 = vld [vmem:[%s8000_s2 + $0xa0] sm:$0xf] }
 0x126   :  { %2294 = vmatmul.bf16.vlgmr.msra.gmra.mxu3 %v7156_v46  ;;  %2660 = vmatpush.bf16.msrb.mxu2 %v4711_v22 }
 0x127   :  { %2673 = vmatpush.bf16.msrb.mxu3 %v4775_v24  ;;  %v5389_v24 = vld [vmem:[%s8000_s2 + $0x24] sm:$0xf0] }
 0x128   :  { %v1482_v56 = vpop.f32.mrf.mxu2  ;;  %v1458_v35 = vpop.f32.mrf.mxu0  ;;  %2635 = vmatpush.bf16.msrb.mxu0 %v4699_v19  ;;  %v5388_v19 = vld [vmem:[%s8000_s2 + $0x24] sm:$0xf] }
 0x129   :  { %v1483_v26 = vadd.f32 %v1482_v56, %v899_v18  ;;  %v1495_v27 = vpop.f32.mrf.mxu3  ;;  %v1471_v59 = vpop.f32.mrf.mxu1  ;;  %v4763_v18 = vor.u32 %v5413_v31, %v4762_v2  ;;  %v5396_v56 = vld [vmem:[%s8000_s2 + $0x64] sm:$0xf]  ;;  %v4743_v2 = vor.u32 %v5406_v15, %v4740_v20  ;;  %v5405_v31 = vld [vmem:[%s8000_s2 + $0xa4] sm:$0xf0] }
 0x12a   :  { %v4764_v59 = vld [vmem:[%s8000_s2 + $0xe8] sm:$0xf0] }
 0x12b   :  { %v1496_v28 = vadd.f32 %v1495_v27, %v1483_v26  ;;  %v4700_v26 = vld [vmem:[%s8000_s2 + $0x68] sm:$0xf0]  ;;  %v5412_v27 = vld [vmem:[%s8000_s2 + $0xe4] sm:$0xf]  ;;  %2648 = vmatpush.bf16.msrb.mxu1 %v4763_v18 }
 0x12c   :  { %v4703_v35 = vor.u32 %v5396_v56, %v4700_v26  ;;  %v4668_v18 = vld [vmem:[%s8000_s2 + $0x28] sm:$0xf0]  ;;  %v5404_v56 = vld [vmem:[%s8000_s2 + $0xa4] sm:$0xf] }
 0x12d   :  { %v4732_v26 = vld [vmem:[%s8000_s2 + $0xa8] sm:$0xf0] }
 0x12e   :  { %2661 = vmatpush.bf16.msrb.mxu2 %v4703_v35 }
 0x130   :  { %v1484_v51 = vpop.f32.mrf.mxu2 }
 0x131   :  { %v1497_v29 = vpop.f32.mrf.mxu3  ;;  %v5395_v51 = vld [vmem:[%s8000_s2 + $0x54] sm:$0xf0] }
 0x132   :  { %v4767_v29 = vor.u32 %v5412_v27, %v4764_v59  ;;  %v4667_v27 = vor.u32 %v5389_v24, %v4666_v17  ;;  %v4731_v59 = vor.u32 %v5405_v31, %v4730_v25  ;;  %v5381_v17 = vld [vmem:[%s8000_s2 + $0x1e4] sm:$0xf0]  ;;  %v5364_v24 = vld [vmem:[%s8000_s2 + $0x164] sm:$0xf]  ;;  %v4828_v25 = vld [vmem:[%s8000_s2 + $0x168] sm:$0xf0] }
 0x133   :  { %v4892_v31 = vld [vmem:[%s8000_s2 + $0x1e8] sm:$0xf0] }
 0x134   :  { %2674 = vmatpush.bf16.msrb.mxu3 %v4767_v29  ;;  %v5387_v29 = vld [vmem:[%s8000_s2 + $0x14] sm:$0xf0] }
 0x140   :  { %v1508_v38 = vpop.f32.mrf.mxu0 }
 0x141   :  { %v1509_v32 = vadd.f32 %v1508_v38, %v1496_v28  ;;  %v1521_v46 = vpop.f32.mrf.mxu1  ;;  %v4690_v28 = vld [vmem:[%s8000_s2 + $0x50] sm:$0xf] }
 0x142   :  { %v4754_v38 = vld [vmem:[%s8000_s2 + $0xd0] sm:$0xf] }
 0x143   :  { %v1522_v36 = vadd.f32 %v1521_v46, %v1509_v32  ;;  %v5411_v32 = vld [vmem:[%s8000_s2 + $0xd4] sm:$0xf0]  ;;  %v5394_v46 = vld [vmem:[%s8000_s2 + $0x54] sm:$0xf] }
 0x148   :  { %v1534_v37 = vpop.f32.mrf.mxu2  ;;  %v1510_v41 = vpop.f32.mrf.mxu0 }
 0x149   :  { %v1535_v39 = vadd.f32 %v1534_v37, %v1522_v36  ;;  %v1547_v40 = vpop.f32.mrf.mxu3  ;;  %v1523_v42 = vpop.f32.mrf.mxu1  ;;  %v5410_v41 = vld [vmem:[%s8000_s2 + $0xd4] sm:$0xf] }
 0x14a   :  { %v4756_v42 = vld [vmem:[%s8000_s2 + $0xd8] sm:$0xf0] }
 0x14b   :  { %v7323_v43 = vadd.f32 %v1547_v40, %v1535_v39  ;;  %v4691_v39 = vor.u32 %v5395_v51, %v4690_v28  ;;  %v4692_v40 = vld [vmem:[%s8000_s2 + $0x58] sm:$0xf0]  ;;  %v4671_v28 = vor.u32 %v5388_v19, %v4668_v18  ;;  %v4658_v51 = vld [vmem:[%s8000_s2 + $0x10] sm:$0xf] }
 0x14c   :  { %v4818_v18 = vld [vmem:[%s8000_s2 + $0x150] sm:$0xf] }
 0x14d   :  { %2636 = vmatpush.bf16.msrb.mxu0 %v4691_v39 }
 0x150   :  { %v1536_v12 = vpop.f32.mrf.mxu2 }
 0x151   :  { %v1549_v44 = vpop.f32.mrf.mxu3 }
 0x152   :  { %v4755_v44 = vor.u32 %v5411_v32, %v4754_v38  ;;  %v4722_v38 = vld [vmem:[%s8000_s2 + $0x90] sm:$0xf]  ;;  %v4735_v32 = vor.u32 %v5404_v56, %v4732_v26  ;;  %v4831_v26 = vor.u32 %v5364_v24, %v4828_v25  ;;  %v4858_v24 = vld [vmem:[%s8000_s2 + $0x1a0] sm:$0xf]  ;;  %v5373_v25 = vld [vmem:[%s8000_s2 + $0x1a4] sm:$0xf0] }
 0x154   :  { %2649 = vmatpush.bf16.msrb.mxu1 %v4755_v44  ;;  %v4659_v44 = vor.u32 %v5387_v29, %v4658_v51  ;;  %v5379_v29 = vld [vmem:[%s8000_s2 + $0x1d4] sm:$0xf0] }
 0x160   :  { %v2152_v45 = vpop.f32.mrf.mxu0 }
 0x161   :  { %v2165_v16 = vpop.f32.mrf.mxu1 }
 0x162   :  { %v2166_v53 = vadd.f32 %v2165_v16, %v2152_v45  ;;  %v4695_v45 = vor.u32 %v5394_v46, %v4692_v40  ;;  %v4682_v16 = vld [vmem:[%s8000_s2 + $0x40] sm:$0xf]  ;;  %v5403_v46 = vld [vmem:[%s8000_s2 + $0x94] sm:$0xf0]  ;;  %v5402_v40 = vld [vmem:[%s8000_s2 + $0x94] sm:$0xf] }
 0x164   :  { %2662 = vmatpush.bf16.msrb.mxu2 %v4695_v45  ;;  %v4650_v45 = vld [vmem:[%s8000_s2] sm:$0xf] }
 0x168   :  { %v2178_v47 = vpop.f32.mrf.mxu2  ;;  %v2154_v49 = vpop.f32.mrf.mxu0 }
 0x169   :  { %v2191_v30 = vpop.f32.mrf.mxu3  ;;  %v2167_v50 = vpop.f32.mrf.mxu1  ;;  %v2179_v57 = vadd.f32 %v2178_v47, %v2166_v53  ;;  %v5393_v47 = vld [vmem:[%s8000_s2 + $0x44] sm:$0xf0]  ;;  %v4746_v49 = vld [vmem:[%s8000_s2 + $0xc0] sm:$0xf]  ;;  %v4684_v53 = vld [vmem:[%s8000_s2 + $0x48] sm:$0xf0] }
 0x16a   :  { %v4759_v50 = vor.u32 %v5410_v41, %v4756_v42  ;;  %v4724_v41 = vld [vmem:[%s8000_s2 + $0x98] sm:$0xf0] }
 0x16b   :  { %v2192_v60 = vadd.f32 %v2191_v30, %v2179_v57  ;;  %v5408_v57 = vld [vmem:[%s8000_s2 + $0xc4] sm:$0xf] }
 0x16c   :  { %2675 = vmatpush.bf16.msrb.mxu3 %v4759_v50  ;;  %v5401_v50 = vld [vmem:[%s8000_s2 + $0x84] sm:$0xf0] }
 0x170   :  { %v2180_v34 = vpop.f32.mrf.mxu2 }
 0x171   :  { %v2193_v52 = vpop.f32.mrf.mxu3  ;;  %v5409_v34 = vld [vmem:[%s8000_s2 + $0xc4] sm:$0xf0] }
 0x172   :  { %v5392_v52 = vld [vmem:[%s8000_s2 + $0x44] sm:$0xf] }
 0x180   :  { %v2204_v61 = vpop.f32.mrf.mxu0 }
 0x181   :  { %v2205_v63 = vadd.f32 %v2204_v61, %v2192_v60  ;;  %v2217_v1 = vpop.f32.mrf.mxu1  ;;  %v4748_v60 = vld [vmem:[%s8000_s2 + $0xc8] sm:$0xf0]  ;;  %v4683_v61 = vor.u32 %v5393_v47, %v4682_v16  ;;  %v5385_v16 = vld [vmem:[%s8000_s2 + $0x4] sm:$0xf0]  ;;  %v4714_v47 = vld [vmem:[%s8000_s2 + $0x80] sm:$0xf] }
 0x183   :  { %v2218_v3 = vadd.f32 %v2217_v1, %v2205_v63  ;;  %v4747_v1 = vor.u32 %v5409_v34, %v4746_v49  ;;  %2637 = vmatpush.bf16.msrb.mxu0 %v4683_v61  ;;  %v4723_v49 = vor.u32 %v5403_v46, %v4722_v38  ;;  %v5384_v34 = vld [vmem:[%s8000_s2 + $0x4] sm:$0xf]  ;;  %v4834_v61 = vld [vmem:[%s8000_s2 + $0x170] sm:$0xf]  ;;  %v5362_v38 = vld [vmem:[%s8000_s2 + $0x154] sm:$0xf] }
 0x184   :  { %v5378_v46 = vld [vmem:[%s8000_s2 + $0x1d4] sm:$0xf] }
 0x185   :  { %2299 = vst [vmem:[#allocation3 + $0x8] sm:$0xf] %v2218_v3  ;;  %v4687_v3 = vor.u32 %v5392_v52, %v4684_v53  ;;  %2650 = vmatpush.bf16.msrb.mxu1 %v4747_v1  ;;  %v4652_v52 = vld [vmem:[%s8000_s2 + $0x8] sm:$0xf0]  ;;  %v4727_v53 = vor.u32 %v5402_v40, %v4724_v41  ;;  %v5367_v1 = vld [vmem:[%s8000_s2 + $0x174] sm:$0xf0] }
 0x186   :  { %v4835_v20 = vor.u32 %v5367_v1, %v4834_v61  ;;  %v4866_v61 = vld [vmem:[%s8000_s2 + $0x1b0] sm:$0xf] }
 0x187   :  { %2663 = vmatpush.bf16.msrb.mxu2 %v4687_v3  ;;  %v4898_v3 = vld [vmem:[%s8000_s2 + $0x1f0] sm:$0xf] }
 0x188   :  { %v2230_v5 = vpop.f32.mrf.mxu2  ;;  %v2206_v6 = vpop.f32.mrf.mxu0 }
 0x189   :  { %v2243_v54 = vpop.f32.mrf.mxu3  ;;  %v2219_v7 = vpop.f32.mrf.mxu1  ;;  %v4738_v6 = vld [vmem:[%s8000_s2 + $0xb0] sm:$0xf] }
 0x18a   :  { %v2244_v36 = vadd.f32 %v2243_v54, %v2230_v5  ;;  %v4674_v5 = vld [vmem:[%s8000_s2 + $0x30] sm:$0xf]  ;;  %v5391_v54 = vld [vmem:[%s8000_s2 + $0x34] sm:$0xf0] }
 0x18b   :  { %v4675_v62 = vor.u32 %v5391_v54, %v4674_v5  ;;  %v4651_v5 = vor.u32 %v5385_v16, %v4650_v45  ;;  %v5383_v54 = vld [vmem:[%s8000_s2 + $0x1f4] sm:$0xf0] }
 0x18c   :  { %v7325_v9 = vld [vmem:[#allocation3 + $0x8] sm:$0x1e] }
 0x18d   :  { %v2307_v10 = vrot.slane %v7325_v9, 1  ;;  %v5390_v9 = vld [vmem:[%s8000_s2 + $0x34] sm:$0xf]  ;;  %2638 = vmatpush.bf16.msrb.mxu0 %v4675_v62  ;;  %v5365_v62 = vld [vmem:[%s8000_s2 + $0x164] sm:$0xf0] }
 0x18f   :  { %v2311_v63 = vsel %vm7330_vm1, 0.0, %v2307_v10  ;;  %v4676_v10 = vld [vmem:[%s8000_s2 + $0x38] sm:$0xf0] }
 0x190   :  { %v2232_v8 = vpop.f32.mrf.mxu2  ;;  %v7457_v0 = vadd.f32 %v2311_v63, %v7319_v55  ;;  %v4679_v13 = vor.u32 %v5390_v9, %v4676_v10  ;;  %v4655_v9 = vor.u32 %v5384_v34, %v4652_v52  ;;  %v5382_v10 = vld [vmem:[%s8000_s2 + $0x1f4] sm:$0xf]  ;;  %v4876_v34 = vld [vmem:[%s8000_s2 + $0x1c8] sm:$0xf0]  ;;  %v4802_v52 = vld [vmem:[%s8000_s2 + $0x130] sm:$0xf] }
 0x191   :  { %v2245_v58 = vpop.f32.mrf.mxu3  ;;  %v4751_v8 = vor.u32 %v5408_v57, %v4748_v60  ;;  %2639 = vmatpush.bf16.msrb.mxu0 %v4667_v27  ;;  %v5400_v57 = vld [vmem:[%s8000_s2 + $0x84] sm:$0xf]  ;;  %v4716_v60 = vld [vmem:[%s8000_s2 + $0x88] sm:$0xf0]  ;;  %v5363_v27 = vld [vmem:[%s8000_s2 + $0x154] sm:$0xf0] }
 0x192   :  { %v5407_v58 = vld [vmem:[%s8000_s2 + $0xb4] sm:$0xf0]  ;;  %v2316_v35 = vsel %vm2315_vm2, %v7457_v0, 0.0  ;;  %2664 = vmatpush.bf16.msrb.mxu2 %v4679_v13  ;;  %v4719_v15 = vor.u32 %v5400_v57, %v4716_v60 }
 0x193   :  { %v4739_v23 = vor.u32 %v5407_v58, %v4738_v6  ;;  %2676 = vmatpush.bf16.msrb.mxu3 %v4751_v8  ;;  %v2317_v42 = vrot.slane %v2316_v35, 4  ;;  %v5366_v6 = vld [vmem:[%s8000_s2 + $0x174] sm:$0xf]  ;;  %v4715_v58 = vor.u32 %v5401_v50, %v4714_v47  ;;  %v5376_v50 = vld [vmem:[%s8000_s2 + $0x1c4] sm:$0xf] }
 0x194   :  { %v5359_v60 = vld [vmem:[%s8000_s2 + $0x134] sm:$0xf0] }
 0x195   :  { %2651 = vmatpush.bf16.msrb.mxu1 %v4739_v23  ;;  %2640 = vmatpush.bf16.msrb.mxu0 %v4659_v44  ;;  %v2318_v23 = vadd.f32 %v2317_v42, %v2316_v35  ;;  %v4882_v35 = vld [vmem:[%s8000_s2 + $0x1d0] sm:$0xf]  ;;  %v5361_v42 = vld [vmem:[%s8000_s2 + $0x144] sm:$0xf0] }
 0x196   :  { %2665 = vmatpush.bf16.msrb.mxu2 %v4671_v28  ;;  %v4883_v40 = vor.u32 %v5379_v29, %v4882_v35  ;;  %v5377_v44 = vld [vmem:[%s8000_s2 + $0x1c4] sm:$0xf0] }
 0x197   :  { %2677 = vmatpush.bf16.msrb.mxu3 %v4743_v2  ;;  %v5380_v2 = vld [vmem:[%s8000_s2 + $0x1e4] sm:$0xf] }
 0x198   :  { %v4895_v51 = vor.u32 %v5380_v2, %v4892_v31  ;;  %v5356_v31 = vld [vmem:[%s8000_s2 + $0x124] sm:$0xf] }
 0x199   :  { %2652 = vmatpush.bf16.msrb.mxu1 %v4731_v59  ;;  %2641 = vmatpush.bf16.msrb.mxu0 %v4651_v5  ;;  %v2319_v59 = vrot.slane %v2318_v23, 2 }
 0x19b   :  { %2678 = vmatpush.bf16.msrb.mxu3 %v4735_v32  ;;  %v4820_v32 = vld [vmem:[%s8000_s2 + $0x158] sm:$0xf0]  ;;  %v2320_v45 = vadd.f32 %v2319_v59, %v2318_v23 }
 0x19c   :  { %v4823_v41 = vor.u32 %v5362_v38, %v4820_v32 }
 0x19d   :  { %2653 = vmatpush.bf16.msrb.mxu1 %v4723_v49  ;;  %2858 = vmatpush.bf16.msra.mxu0 %v4835_v20  ;;  %v5360_v49 = vld [vmem:[%s8000_s2 + $0x144] sm:$0xf]  ;;  %v2321_v5 = vrot.slane %v2320_v45, 1 }
 0x19f   :  { %2679 = vmatpush.bf16.msrb.mxu3 %v4727_v53 }
 0x1a0   :  { %v2256_v37 = vpop.f32.mrf.mxu0 }
 0x1a1   :  { %v2269_v12 = vpop.f32.mrf.mxu1  ;;  %v2257_v30 = vadd.f32 %v2256_v37, %v2244_v36  ;;  %v5386_v36 = vld [vmem:[%s8000_s2 + $0x14] sm:$0xf]  ;;  %v4660_v37 = vld [vmem:[%s8000_s2 + $0x18] sm:$0xf0]  ;;  %2654 = vmatpush.bf16.msrb.mxu1 %v4715_v58 }
 0x1a3   :  { %v2270_v7 = vadd.f32 %v2269_v12, %v2257_v30  ;;  %v4663_v30 = vor.u32 %v5386_v36, %v4660_v37  ;;  %2680 = vmatpush.bf16.msrb.mxu3 %v4719_v15  ;;  %v4819_v36 = vor.u32 %v5363_v27, %v4818_v18  ;;  %v4810_v37 = vld [vmem:[%s8000_s2 + $0x140] sm:$0xf]  ;;  %v4868_v15 = vld [vmem:[%s8000_s2 + $0x1b8] sm:$0xf0]  ;;  %v4860_v27 = vld [vmem:[%s8000_s2 + $0x1a8] sm:$0xf0] }
 0x1a4   :  { %v4811_v53 = vor.u32 %v5361_v42, %v4810_v37  ;;  %v4850_v37 = vld [vmem:[%s8000_s2 + $0x190] sm:$0xf]  ;;  %v5354_v42 = vld [vmem:[%s8000_s2 + $0x114] sm:$0xf] }
 0x1a5   :  { %2666 = vmatpush.bf16.msrb.mxu2 %v4663_v30  ;;  %v4812_v30 = vld [vmem:[%s8000_s2 + $0x148] sm:$0xf0] }
 0x1a6   :  { %v4815_v1 = vor.u32 %v5360_v49, %v4812_v30 }
 0x1a8   :  { %v2282_v14 = vpop.f32.mrf.mxu2  ;;  %v2258_v48 = vpop.f32.mrf.mxu0 }
 0x1a9   :  { %v2283_v21 = vadd.f32 %v2282_v14, %v2270_v7  ;;  %v2295_v33 = vpop.f32.mrf.mxu3  ;;  %v2271_v22 = vpop.f32.mrf.mxu1  ;;  %v4836_v7 = vld [vmem:[%s8000_s2 + $0x178] sm:$0xf0]  ;;  %v4826_v48 = vld [vmem:[%s8000_s2 + $0x160] sm:$0xf]  ;;  %2667 = vmatpush.bf16.msrb.mxu2 %v4655_v9 }
 0x1aa   :  { %v4900_v14 = vld [vmem:[%s8000_s2 + $0x1f8] sm:$0xf0]  ;;  %v4890_v22 = vld [vmem:[%s8000_s2 + $0x1e0] sm:$0xf]  ;;  %v4827_v19 = vor.u32 %v5365_v62, %v4826_v48  ;;  %v2322_v48 = vadd.f32 %v2321_v5, %v2320_v45 }
 0x1ab   :  { %v2296_v55 = vadd.f32 %v2295_v33, %v2283_v21  ;;  %v4899_v21 = vor.u32 %v5383_v54, %v4898_v3  ;;  %v4839_v33 = vor.u32 %v5366_v6, %v4836_v7  ;;  %v4903_v13 = vor.u32 %v5382_v10, %v4900_v14  ;;  %v5358_v3 = vld [vmem:[%s8000_s2 + $0x134] sm:$0xf] }
 0x1ac   :  { %v4891_v56 = vor.u32 %v5381_v17, %v4890_v22  ;;  %2859 = vmatpush.bf16.msra.mxu0 %v4827_v19  ;;  %v4879_v7 = vor.u32 %v5376_v50, %v4876_v34  ;;  %v5374_v14 = vld [vmem:[%s8000_s2 + $0x1b4] sm:$0xf]  ;;  %v5357_v17 = vld [vmem:[%s8000_s2 + $0x124] sm:$0xf0]  ;;  %v4796_v19 = vld [vmem:[%s8000_s2 + $0x128] sm:$0xf0] }
 0x1ad   :  { %2300 = vst [vmem:[#allocation3] sm:$0xf] %v2296_v55  ;;  %2871 = vmatpush.bf16.msra.mxu1 %v4899_v21  ;;  %2884 = vmatpush.bf16.msra.mxu2 %v4839_v33  ;;  %v4803_v21 = vor.u32 %v5359_v60, %v4802_v52  ;;  %v4794_v33 = vld [vmem:[%s8000_s2 + $0x120] sm:$0xf]  ;;  %v4871_v2 = vor.u32 %v5374_v14, %v4868_v15  ;;  %v7693_v38 = vmul.f32 0.25, %v2322_v48 }
 0x1ae   :  { %2897 = vmatpush.bf16.msra.mxu3 %v4903_v13  ;;  %v4795_v59 = vor.u32 %v5357_v17, %v4794_v33  ;;  %v4778_v33 = vld [vmem:[%s8000_s2 + $0x100] sm:$0xf]  ;;  %v5353_v48 = vld [vmem:[%s8000_s2 + $0x104] sm:$0xf0] }
 0x1af   :  { %v2350_v52 = vmul.f32 %v7693_v38, %v7693_v38 }
 0x1b0   :  { %v2284_v39 = vpop.f32.mrf.mxu2  ;;  %2860 = vmatpush.bf16.msra.mxu0 %v4819_v36  ;;  %v5355_v36 = vld [vmem:[%s8000_s2 + $0x114] sm:$0xf0] }
 0x1b1   :  { %v2297_v12 = vpop.f32.mrf.mxu3  ;;  %v2332_v39 = vmul.f32 %v7457_v0, %v7457_v0  ;;  %2872 = vmatpush.bf16.msra.mxu1 %v4891_v56  ;;  %2885 = vmatpush.bf16.msra.mxu2 %v4831_v26  ;;  %v5372_v26 = vld [vmem:[%s8000_s2 + $0x1a4] sm:$0xf] }
 0x1b2   :  { %v4874_v12 = vld [vmem:[%s8000_s2 + $0x1c0] sm:$0xf]  ;;  %2898 = vmatpush.bf16.msra.mxu3 %v4895_v51  ;;  %v4786_v51 = vld [vmem:[%s8000_s2 + $0x110] sm:$0xf] }
 0x1b3   :  { %v4875_v57 = vor.u32 %v5377_v44, %v4874_v12  ;;  %v2334_v6 = vsel %vm2315_vm2, %v2332_v39, 0.0  ;;  %v5371_v39 = vld [vmem:[%s8000_s2 + $0x194] sm:$0xf0]  ;;  %v4788_v12 = vld [vmem:[%s8000_s2 + $0x118] sm:$0xf0]  ;;  %v4787_v30 = vor.u32 %v5355_v36, %v4786_v51 }
 0x1b4   :  { %v2302_v63 = vld [vmem:[#allocation3] sm:$0x1e]  ;;  %v2335_v9 = vrot.slane %v2334_v6, 4  ;;  %2861 = vmatpush.bf16.msra.mxu0 %v4811_v53  ;;  %v4851_v53 = vor.u32 %v5371_v39, %v4850_v37 }
 0x1b5   :  { %v2308_v8 = vrot.slane %v2302_v63, 1  ;;  %v5375_v63 = vld [vmem:[%s8000_s2 + $0x1b4] sm:$0xf0]  ;;  %2873 = vmatpush.bf16.msra.mxu1 %v4883_v40  ;;  %2886 = vmatpush.bf16.msra.mxu2 %v4823_v41  ;;  %v4863_v41 = vor.u32 %v5372_v26, %v4860_v27 }
 0x1b6   :  { %v2336_v22 = vadd.f32 %v2335_v9, %v2334_v6  ;;  %v4867_v23 = vor.u32 %v5375_v63, %v4866_v61 }
 0x1b7   :  { %v2312_v55 = vsel %vm7330_vm1, 0.0, %v2308_v8  ;;  %v4804_v8 = vld [vmem:[%s8000_s2 + $0x138] sm:$0xf0] }
 0x1b8   :  { %v7593_v28 = vadd.f32 %v2312_v55, %v7323_v43  ;;  %v4884_v43 = vld [vmem:[%s8000_s2 + $0x1d8] sm:$0xf0]  ;;  %v4807_v13 = vor.u32 %v5358_v3, %v4804_v8  ;;  %v2337_v56 = vrot.slane %v2336_v22, 2  ;;  %2862 = vmatpush.bf16.msra.mxu0 %v4803_v21 }
 0x1b9   :  { %v4887_v47 = vor.u32 %v5378_v46, %v4884_v43  ;;  %2874 = vmatpush.bf16.msra.mxu1 %v4875_v57  ;;  %2887 = vmatpush.bf16.msra.mxu2 %v4815_v1  ;;  %v4859_v46 = vor.u32 %v5373_v25, %v4858_v24  ;;  %v4799_v43 = vor.u32 %v5356_v31, %v4796_v19  ;;  %v4844_v19 = vld [vmem:[%s8000_s2 + $0x188] sm:$0xf0] }
 0x1ba   :  { %v2333_v16 = vmul.f32 %v7593_v28, %v7593_v28  ;;  %v2323_v54 = vsel %vm2315_vm2, %v7593_v28, 0.0  ;;  %v2338_v32 = vadd.f32 %v2337_v56, %v2336_v22  ;;  %v4791_v57 = vor.u32 %v5354_v42, %v4788_v12  ;;  %v4842_v22 = vld [vmem:[%s8000_s2 + $0x180] sm:$0xf] }
 0x1bb   :  { %2899 = vmatpush.bf16.msra.mxu3 %v4887_v47  ;;  %v2324_v58 = vrot.slane %v2323_v54, 4  ;;  %v4852_v47 = vld [vmem:[%s8000_s2 + $0x198] sm:$0xf0]  ;;  %v7755_v42 = vld [vmem:[%s8002_s4] sm:$0x3] }
 0x1bc   :  { %v2341_v10 = vsel %vm2315_vm2, %v2333_v16, 0.0  ;;  %v2339_v45 = vrot.slane %v2338_v32, 1  ;;  %v5370_v16 = vld [vmem:[%s8000_s2 + $0x194] sm:$0xf]  ;;  %2863 = vmatpush.bf16.msra.mxu0 %v4795_v59  ;;  %v7745_v59 = vld [vmem:[%s8001_s3] sm:$0x3] }
 0x1bd   :  { %v2342_v20 = vrot.slane %v2341_v10, 4  ;;  %v2325_v62 = vadd.f32 %v2324_v58, %v2323_v54  ;;  %2875 = vmatpush.bf16.msra.mxu1 %v4867_v23  ;;  %2888 = vmatpush.bf16.msra.mxu2 %v4807_v13  ;;  %v4855_v61 = vor.u32 %v5370_v16, %v4852_v47  ;;  %v5369_v23 = vld [vmem:[%s8000_s2 + $0x184] sm:$0xf0]  ;;  %v5352_v13 = vld [vmem:[%s8000_s2 + $0x104] sm:$0xf] }
 0x1be   :  { %v2340_v34 = vadd.f32 %v2339_v45, %v2338_v32  ;;  %v4843_v25 = vor.u32 %v5369_v23, %v4842_v22 }
 0x1bf   :  { %v2343_v55 = vadd.f32 %v2342_v20, %v2341_v10  ;;  %2900 = vmatpush.bf16.msra.mxu3 %v4879_v7  ;;  %v2326_v18 = vrot.slane %v2325_v62, 2 }
 0x1c0   :  { %v2348_v1 = vmul.f32 0.25, %v2340_v34  ;;  %2864 = vmatpush.bf16.msra.mxu0 %v4787_v30  ;;  %v5430_v34 = vld [vmem:[%s8000_s2 + $0x274] sm:$0xf] }
 0x1c1   :  { %v2344_v35 = vrot.slane %v2343_v55, 2  ;;  %v2327_v29 = vadd.f32 %v2326_v18, %v2325_v62  ;;  %2876 = vmatpush.bf16.msra.mxu1 %v4859_v46  ;;  %2889 = vmatpush.bf16.msra.mxu2 %v4799_v43  ;;  %v4779_v62 = vor.u32 %v5353_v48, %v4778_v33  ;;  %v4978_v48 = vld [vmem:[%s8000_s2 + $0x250] sm:$0xf] }
 0x1c2   :  { %v2352_v54 = vsub.f32 %v2348_v1, %v2350_v52  ;;  %v4996_v52 = vld [vmem:[%s8000_s2 + $0x278] sm:$0xf0] }
 0x1c3   :  { %v2345_v40 = vadd.f32 %v2344_v35, %v2343_v55  ;;  %2901 = vmatpush.bf16.msra.mxu3 %v4871_v2  ;;  %v2328_v44 = vrot.slane %v2327_v29, 1  ;;  %v4780_v55 = vld [vmem:[%s8000_s2 + $0x108] sm:$0xf0]  ;;  %v5368_v2 = vld [vmem:[%s8000_s2 + $0x184] sm:$0xf] }
 0x1c4   :  { %v2354_v7 = vadd.f32 1e-05, %v2352_v54  ;;  %2865 = vmatpush.bf16.msra.mxu0 %v4779_v62  ;;  %v4783_v31 = vor.u32 %v5352_v13, %v4780_v55  ;;  %v4847_v56 = vor.u32 %v5368_v2, %v4844_v19  ;;  %v4986_v54 = vld [vmem:[%s8000_s2 + $0x260] sm:$0xf]  ;;  %v5427_v62 = vld [vmem:[%s8000_s2 + $0x254] sm:$0xf0] }
 0x1c5   :  { %v2346_v49 = vrot.slane %v2345_v40, 1  ;;  %v2329_v50 = vadd.f32 %v2328_v44, %v2327_v29  ;;  %2877 = vmatpush.bf16.msra.mxu1 %v4851_v53  ;;  %2890 = vmatpush.bf16.msra.mxu2 %v4791_v57  ;;  %v5042_v13 = vld [vmem:[%s8000_s2 + $0x2d0] sm:$0xf]  ;;  %v5442_v55 = vld [vmem:[%s8000_s2 + $0x2d4] sm:$0xf] }
 0x1c6   :  { %5448 = vrsqrt.f32 %v2354_v7  ;;  %vm2362_vm7 = vweird.f32 %v2354_v7  ;;  %v5044_v2 = vld [vmem:[%s8000_s2 + $0x2d8] sm:$0xf0] }
 0x1c7   :  { %v2347_v60 = vadd.f32 %v2346_v49, %v2345_v40  ;;  %2902 = vmatpush.bf16.msra.mxu3 %v4863_v41  ;;  %v2331_v63 = vmul.f32 0.25, %v2329_v50  ;;  %v5447_v50 = vld [vmem:[%s8000_s2 + $0x2f4] sm:$0xf0] }
 0x1c9   :  { %v2349_v3 = vmul.f32 0.25, %v2347_v60  ;;  %v2351_v5 = vmul.f32 %v2331_v63, %v2331_v63  ;;  %2878 = vmatpush.bf16.msra.mxu1 %v4843_v25  ;;  %2891 = vmatpush.bf16.msra.mxu2 %v4783_v31  ;;  %v5446_v60 = vld [vmem:[%s8000_s2 + $0x2f4] sm:$0xf]  ;;  %v4980_v25 = vld [vmem:[%s8000_s2 + $0x258] sm:$0xf0]  ;;  %v4979_v31 = vor.u32 %v5427_v62, %v4978_v48 }
 0x1cb   :  { %2903 = vmatpush.bf16.msra.mxu3 %v4855_v61  ;;  %v2353_v6 = vsub.f32 %v2349_v3, %v2351_v5  ;;  %v5060_v61 = vld [vmem:[%s8000_s2 + $0x2f8] sm:$0xf0] }
 0x1cc   :  { %v5449_v58 = vpop.eup %5448 }
 0x1cd   :  { %v2355_v8 = vadd.f32 1e-05, %v2353_v6  ;;  %v2357_v9 = vmul.f32 %v5449_v58, %v2354_v7  ;;  %vm2363_vm4 = vweird.f32 %v5449_v58  ;;  %v5429_v6 = vld [vmem:[%s8000_s2 + $0x264] sm:$0xf0]  ;;  %v4999_v7 = vor.u32 %v5430_v34, %v4996_v52 }
 0x1ce   :  { %vm2364_vm9 = vmor %vm2362_vm7, %vm2363_vm4 }
 0x1cf   :  { %5450 = vrsqrt.f32 %v2355_v8  ;;  %v2358_v14 = vmul.f32 %v5449_v58, %v2357_v9  ;;  %vm2372_vm5 = vweird.f32 %v2355_v8  ;;  %2904 = vmatpush.bf16.msra.mxu3 %v4847_v56  ;;  %v5445_v9 = vld [vmem:[%s8000_s2 + $0x2e4] sm:$0xf0] }
 0x1d0   :  { %v5425_v56 = vld [vmem:[%s8000_s2 + $0x244] sm:$0xf0] }
 0x1d1   :  { %v2359_v20 = vmul.f32 0.5, %v2358_v14  ;;  %v4988_v14 = vld [vmem:[%s8000_s2 + $0x268] sm:$0xf0] }
 0x1d3   :  { %v2360_v17 = vsub.f32 1.5, %v2359_v20  ;;  %v5052_v20 = vld [vmem:[%s8000_s2 + $0x2e8] sm:$0xf0] }
 0x1d5   :  { %v5451_v10 = vpop.eup %5450  ;;  %v2361_v26 = vmul.f32 %v5449_v58, %v2360_v17  ;;  %v5443_v17 = vld [vmem:[%s8000_s2 + $0x2d4] sm:$0xf0] }
 0x1d6   :  { %v2367_v15 = vmul.f32 %v5451_v10, %v2355_v8  ;;  %vm2373_vm3 = vweird.f32 %v5451_v10  ;;  %v5063_v8 = vor.u32 %v5446_v60, %v5060_v61  ;;  %v5043_v19 = vor.u32 %v5443_v17, %v5042_v13  ;;  %v5420_v60 = vld [vmem:[%s8000_s2 + $0x224] sm:$0xf]  ;;  %v4956_v61 = vld [vmem:[%s8000_s2 + $0x228] sm:$0xf0] }
 0x1d7   :  { %vm2374_vm6 = vmor %vm2372_vm5, %vm2373_vm3  ;;  %v2365_v29 = vsel %vm2364_vm9, %v5449_v58, %v2361_v26  ;;  %v5050_v58 = vld [vmem:[%s8000_s2 + $0x2e0] sm:$0xf] }
 0x1d8   :  { %v2368_v21 = vmul.f32 %v5451_v10, %v2367_v15  ;;  %v5444_v15 = vld [vmem:[%s8000_s2 + $0x2e4] sm:$0xf]  ;;  %v5051_v33 = vor.u32 %v5445_v9, %v5050_v58  ;;  %v4959_v58 = vor.u32 %v5420_v60, %v4956_v61 }
 0x1d9   :  { %v5055_v23 = vor.u32 %v5444_v15, %v5052_v20  ;;  %v5418_v15 = vld [vmem:[%s8000_s2 + $0x214] sm:$0xf]  ;;  %v4948_v20 = vld [vmem:[%s8000_s2 + $0x218] sm:$0xf0] }
 0x1da   :  { %v2369_v24 = vmul.f32 0.5, %v2368_v21  ;;  %v4987_v21 = vor.u32 %v5429_v6, %v4986_v54  ;;  %v4951_v13 = vor.u32 %v5418_v15, %v4948_v20 }
 0x1dc   :  { %v2370_v18 = vsub.f32 1.5, %v2369_v24  ;;  %v5426_v24 = vld [vmem:[%s8000_s2 + $0x254] sm:$0xf] }
 0x1dd   :  { %v4983_v26 = vor.u32 %v5426_v24, %v4980_v25  ;;  %v5002_v24 = vld [vmem:[%s8000_s2 + $0x280] sm:$0xf]  ;;  %v5433_v25 = vld [vmem:[%s8000_s2 + $0x284] sm:$0xf0] }
 0x1de   :  { %v2371_v27 = vmul.f32 %v5451_v10, %v2370_v18  ;;  %v4970_v18 = vld [vmem:[%s8000_s2 + $0x240] sm:$0xf] }
 0x1e0   :  { %v2375_v35 = vsel %vm2374_vm6, %v5451_v10, %v2371_v27  ;;  %v5428_v10 = vld [vmem:[%s8000_s2 + $0x264] sm:$0xf]  ;;  %v5047_v27 = vor.u32 %v5442_v55, %v5044_v2  ;;  %v4940_v2 = vld [vmem:[%s8000_s2 + $0x208] sm:$0xf0] }
 0x1e1   :  { %v2378_v51 = vrot.slane %v2375_v35, 7  ;;  %v4991_v22 = vor.u32 %v5428_v10, %v4988_v14  ;;  %v5034_v35 = vld [vmem:[%s8000_s2 + $0x2c0] sm:$0xf]  ;;  %v5010_v10 = vld [vmem:[%s8000_s2 + $0x290] sm:$0xf] }
 0x1e2   :  { %v5435_v14 = vld [vmem:[%s8000_s2 + $0x294] sm:$0xf0]  ;;  %v5416_v55 = vld [vmem:[%s8000_s2 + $0x204] sm:$0xf] }
 0x1e3   :  { %v2380_v32 = vsel %vm2379_vm8, %v2365_v29, %v2378_v51  ;;  %v5441_v51 = vld [vmem:[%s8000_s2 + $0x2c4] sm:$0xf0]  ;;  %v5424_v29 = vld [vmem:[%s8000_s2 + $0x244] sm:$0xf]  ;;  %v5011_v62 = vor.u32 %v5435_v14, %v5010_v10 }
 0x1e4   :  { %v2382_v46 = vmul.f32 %v2380_v32, %v7745_v59  ;;  %v4972_v32 = vld [vmem:[%s8000_s2 + $0x248] sm:$0xf0] }
 0x1e6   :  { %v2384_v43 = vperm.slane %v2382_v46, 0  ;;  %v2385_v36 = vperm.slane %v2382_v46, 1  ;;  %v5440_v46 = vld [vmem:[%s8000_s2 + $0x2c4] sm:$0xf] }
 0x1e8   :  { %v2388_v37 = vmul.f32 %v2384_v43, %v7693_v38  ;;  %v2389_v39 = vmul.f32 %v2385_v36, %v2331_v63  ;;  %v2396_v40 = vmul.f32 %v2384_v43, %v7457_v0  ;;  %v2397_v41 = vmul.f32 %v2385_v36, %v7593_v28  ;;  %v4994_v0 = vld [vmem:[%s8000_s2 + $0x270] sm:$0xf]  ;;  %v5431_v28 = vld [vmem:[%s8000_s2 + $0x274] sm:$0xf0]  ;;  %v5036_v43 = vld [vmem:[%s8000_s2 + $0x2c8] sm:$0xf0] }
 0x1e9   :  { %v5058_v38 = vld [vmem:[%s8000_s2 + $0x2f0] sm:$0xf]  ;;  %v4995_v3 = vor.u32 %v5431_v28, %v4994_v0  ;;  %v4971_v36 = vor.u32 %v5425_v56, %v4970_v18  ;;  %v5003_v56 = vor.u32 %v5433_v25, %v5002_v24 }
 0x1ea   :  { %v2392_v12 = vrot.slane %v2389_v39, 7  ;;  %v5059_v5 = vor.u32 %v5447_v50, %v5058_v38  ;;  %v4962_v39 = vld [vmem:[%s8000_s2 + $0x230] sm:$0xf]  ;;  %v4954_v38 = vld [vmem:[%s8000_s2 + $0x220] sm:$0xf] }
 0x1eb   :  { %v5421_v50 = vld [vmem:[%s8000_s2 + $0x224] sm:$0xf0] }
 0x1ec   :  { %v2393_v44 = vsel %vm2379_vm8, %v2388_v37, %v2392_v12  ;;  %v5035_v37 = vor.u32 %v5441_v51, %v5034_v35  ;;  %v5039_v12 = vor.u32 %v5440_v46, %v5036_v43  ;;  %v4955_v54 = vor.u32 %v5421_v50, %v4954_v38 }
 0x1ed   :  { %v2395_v45 = vsub.f32 %v7755_v42, %v2393_v44  ;;  %v5026_v44 = vld [vmem:[%s8000_s2 + $0x2b0] sm:$0xf] }
 0x1ef   :  { %v2399_v16 = vperm.slane %v2395_v45, 0  ;;  %v2400_v47 = vperm.slane %v2395_v45, 1  ;;  %v5439_v45 = vld [vmem:[%s8000_s2 + $0x2b4] sm:$0xf0] }
 0x1f0   :  { %v5027_v28 = vor.u32 %v5439_v45, %v5026_v44 }
 0x1f1   :  { %v2403_v49 = vadd.f32 %v2399_v16, %v2396_v40  ;;  %v2404_v30 = vadd.f32 %v2400_v47, %v2397_v41  ;;  %v5423_v40 = vld [vmem:[%s8000_s2 + $0x234] sm:$0xf0]  ;;  %v4975_v41 = vor.u32 %v5424_v29, %v4972_v32  ;;  %v5422_v16 = vld [vmem:[%s8000_s2 + $0x234] sm:$0xf]  ;;  %v4964_v47 = vld [vmem:[%s8000_s2 + $0x238] sm:$0xf0] }
 0x1f2   :  { %v4963_v0 = vor.u32 %v5423_v40, %v4962_v39  ;;  %v4967_v34 = vor.u32 %v5422_v16, %v4964_v47 }
 0x1f3   :  { %v2405_v53 = vmax.f32 %v2403_v49, 0.0  ;;  %v2406_v57 = vmax.f32 %v2404_v30, 0.0  ;;  %v5438_v49 = vld [vmem:[%s8000_s2 + $0x2b4] sm:$0xf]  ;;  %v5028_v30 = vld [vmem:[%s8000_s2 + $0x2b8] sm:$0xf0] }
 0x1f4   :  { %v5031_v52 = vor.u32 %v5438_v49, %v5028_v30 }
 0x1f5   :  { %v7783_v63 = vpack.c.bf16 %v2405_v53, %v2405_v53  ;;  %v7785_v1 = vpack.c.bf16 %v2406_v57, %v2406_v57  ;;  %v5018_v53 = vld [vmem:[%s8000_s2 + $0x2a0] sm:$0xf]  ;;  %v5437_v57 = vld [vmem:[%s8000_s2 + $0x2a4] sm:$0xf0] }
 0x1f6   :  { %v5019_v6 = vor.u32 %v5437_v57, %v5018_v53 }
 0x1f7   :  { %2642 = vmatmul.bf16.vlgmr.msrb.gmra.mxu0 %v7783_v63  ;;  %2655 = vmatmul.bf16.vlgmr.msrb.gmra.mxu1 %v7785_v1 }
 0x1f8   :  { %2668 = vmatmul.bf16.vlgmr.msrb.gmra.mxu2 %v7783_v63  ;;  %2681 = vmatmul.bf16.vlgmr.msrb.gmra.mxu3 %v7785_v1 }
 0x1f9   :  { %3103 = vmatpush.bf16.msrb.mxu0 %v4995_v3  ;;  %3116 = vmatpush.bf16.msrb.mxu1 %v5059_v5  ;;  %v5436_v3 = vld [vmem:[%s8000_s2 + $0x2a4] sm:$0xf]  ;;  %v5020_v5 = vld [vmem:[%s8000_s2 + $0x2a8] sm:$0xf0] }
 0x1fa   :  { %3129 = vmatpush.bf16.msrb.mxu2 %v4999_v7  ;;  %3142 = vmatpush.bf16.msrb.mxu3 %v5063_v8  ;;  %v4946_v7 = vld [vmem:[%s8000_s2 + $0x210] sm:$0xf]  ;;  %v5419_v8 = vld [vmem:[%s8000_s2 + $0x214] sm:$0xf0]  ;;  %v5023_v9 = vor.u32 %v5436_v3, %v5020_v5 }
 0x1fb   :  { %v4947_v48 = vor.u32 %v5419_v8, %v4946_v7 }
 0x1fd   :  { %3104 = vmatpush.bf16.msrb.mxu0 %v4987_v21  ;;  %3117 = vmatpush.bf16.msrb.mxu1 %v5051_v33  ;;  %v5434_v21 = vld [vmem:[%s8000_s2 + $0x294] sm:$0xf]  ;;  %v5012_v33 = vld [vmem:[%s8000_s2 + $0x298] sm:$0xf0] }
 0x1fe   :  { %3130 = vmatpush.bf16.msrb.mxu2 %v4991_v22  ;;  %3143 = vmatpush.bf16.msrb.mxu3 %v5055_v23  ;;  %v4938_v22 = vld [vmem:[%s8000_s2 + $0x200] sm:$0xf]  ;;  %v5417_v23 = vld [vmem:[%s8000_s2 + $0x204] sm:$0xf0]  ;;  %v5015_v17 = vor.u32 %v5434_v21, %v5012_v33 }
 0x1ff   :  { %v4939_v18 = vor.u32 %v5417_v23, %v4938_v22 }
 0x201   :  { %3105 = vmatpush.bf16.msrb.mxu0 %v4979_v31  ;;  %3118 = vmatpush.bf16.msrb.mxu1 %v5043_v19  ;;  %v5432_v31 = vld [vmem:[%s8000_s2 + $0x284] sm:$0xf]  ;;  %v5004_v19 = vld [vmem:[%s8000_s2 + $0x288] sm:$0xf0] }
 0x202   :  { %3131 = vmatpush.bf16.msrb.mxu2 %v4983_v26  ;;  %3144 = vmatpush.bf16.msrb.mxu3 %v5047_v27  ;;  %v4943_v26 = vor.u32 %v5416_v55, %v4940_v2  ;;  %v5007_v27 = vor.u32 %v5432_v31, %v5004_v19 }
 0x205   :  { %3106 = vmatpush.bf16.msrb.mxu0 %v4971_v36  ;;  %3119 = vmatpush.bf16.msrb.mxu1 %v5035_v37 }
 0x206   :  { %3132 = vmatpush.bf16.msrb.mxu2 %v4975_v41  ;;  %3145 = vmatpush.bf16.msrb.mxu3 %v5039_v12 }
 0x207   :  { %2866 = vmatmul.bf16.vlgmr.msra.gmra.mxu0 %v7783_v63  ;;  %2879 = vmatmul.bf16.vlgmr.msra.gmra.mxu1 %v7785_v1 }
 0x208   :  { %2892 = vmatmul.bf16.vlgmr.msra.gmra.mxu2 %v7783_v63  ;;  %2905 = vmatmul.bf16.vlgmr.msra.gmra.mxu3 %v7785_v1 }
 0x209   :  { %3107 = vmatpush.bf16.msrb.mxu0 %v4963_v0  ;;  %3120 = vmatpush.bf16.msrb.mxu1 %v5027_v28 }
 0x20a   :  { %3133 = vmatpush.bf16.msrb.mxu2 %v4967_v34  ;;  %3146 = vmatpush.bf16.msrb.mxu3 %v5031_v52 }
 0x20d   :  { %3108 = vmatpush.bf16.msrb.mxu0 %v4955_v54  ;;  %3121 = vmatpush.bf16.msrb.mxu1 %v5019_v6 }
 0x20e   :  { %3134 = vmatpush.bf16.msrb.mxu2 %v4959_v58  ;;  %3147 = vmatpush.bf16.msrb.mxu3 %v5023_v9 }
 0x211   :  { %3109 = vmatpush.bf16.msrb.mxu0 %v4947_v48  ;;  %3122 = vmatpush.bf16.msrb.mxu1 %v5011_v62 }
 0x212   :  { %3135 = vmatpush.bf16.msrb.mxu2 %v4951_v13  ;;  %3148 = vmatpush.bf16.msrb.mxu3 %v5015_v17 }
 0x215   :  { %3110 = vmatpush.bf16.msrb.mxu0 %v4939_v18  ;;  %3123 = vmatpush.bf16.msrb.mxu1 %v5003_v56 }
 0x216   :  { %3136 = vmatpush.bf16.msrb.mxu2 %v4943_v26  ;;  %3149 = vmatpush.bf16.msrb.mxu3 %v5007_v27 }
 0x218   :  { %3111 = vmatmul.bf16.vlgmr.msrb.gmra.mxu0 %v7783_v63  ;;  %3124 = vmatmul.bf16.vlgmr.msrb.gmra.mxu1 %v7785_v1 }
 0x219   :  { %3137 = vmatmul.bf16.vlgmr.msrb.gmra.mxu2 %v7783_v63  ;;  %3150 = vmatmul.bf16.vlgmr.msrb.gmra.mxu3 %v7785_v1 }
 0x274   :  { %v2643_v35 = vpop.f32.mrf.mxu0  ;;  %v2656_v51 = vpop.f32.mrf.mxu1 }
 0x275   :  { %v2657_v29 = vadd.f32 %v2656_v51, %v2643_v35 }
 0x277   :  { %v2688_v32 = vrot.slane %v2657_v29, 7 }
 0x279   :  { %2692 = vst [vmem:[#allocation2] sm:$0x1e] %v2688_v32 }
 0x27b   :  { %v2669_v46 = vpop.f32.mrf.mxu2  ;;  %v2682_v43 = vpop.f32.mrf.mxu3 }
 0x27c   :  { %v2683_v36 = vadd.f32 %v2682_v43, %v2669_v46  ;;  %v2645_v37 = vpop.f32.mrf.mxu0  ;;  %v2658_v39 = vpop.f32.mrf.mxu1 }
 0x27e   :  { %v2689_v40 = vrot.slane %v2683_v36, 7 }
 0x280   :  { %2693 = vst [vmem:[#allocation2 + $0x8] sm:$0x1e] %v2689_v40  ;;  %v2694_v50 = vld [vmem:[#allocation2] sm:$0xf] }
 0x281   :  { %v2696_v34 = vsel %vm7189_vm0, 0.0, %v2694_v50 }
 0x283   :  { %v2671_v41 = vpop.f32.mrf.mxu2  ;;  %v2684_v12 = vpop.f32.mrf.mxu3 }
 0x284   :  { %v2867_v44 = vpop.f32.mrf.mxu0  ;;  %v2880_v45 = vpop.f32.mrf.mxu1 }
 0x285   :  { %v2868_v57 = vadd.f32 %v2867_v44, %v2696_v34 }
 0x287   :  { %v2695_v54 = vld [vmem:[#allocation2 + $0x8] sm:$0xf]  ;;  %v2881_v7 = vadd.f32 %v2880_v45, %v2868_v57 }
 0x288   :  { %v2697_v58 = vsel %vm7189_vm0, 0.0, %v2695_v54  ;;  %vm3262_vm0 = vcmask 1041408  }
 0x28b   :  { %v2893_v16 = vpop.f32.mrf.mxu2  ;;  %v2906_v63 = vpop.f32.mrf.mxu3 }
 0x28c   :  { %v2869_v47 = vpop.f32.mrf.mxu0  ;;  %v2882_v1 = vpop.f32.mrf.mxu1  ;;  %v2894_v10 = vadd.f32 %v2893_v16, %v2697_v58 }
 0x28e   :  { %v2907_v23 = vadd.f32 %v2906_v63, %v2894_v10 }
 0x293   :  { %v2895_v49 = vpop.f32.mrf.mxu2  ;;  %v2908_v30 = vpop.f32.mrf.mxu3 }
 0x295   :  { %v3112_v0 = vpop.f32.mrf.mxu0  ;;  %v3125_v28 = vpop.f32.mrf.mxu1 }
 0x296   :  { %v3126_v38 = vadd.f32 %v3125_v28, %v3112_v0 }
 0x298   :  { %3155 = vst [vmem:[#allocation3 + $0x8] sm:$0xf] %v3126_v38 }
 0x29c   :  { %v3138_v52 = vpop.f32.mrf.mxu2  ;;  %v3151_v53 = vpop.f32.mrf.mxu3 }
 0x29d   :  { %v3152_v60 = vadd.f32 %v3151_v53, %v3138_v52  ;;  %v3114_v61 = vpop.f32.mrf.mxu0  ;;  %v3127_v3 = vpop.f32.mrf.mxu1 }
 0x29f   :  { %v3157_v5 = vld [vmem:[#allocation3 + $0x8] sm:$0x1e]  ;;  %3156 = vst [vmem:[#allocation3] sm:$0xf] %v3152_v60 }
 0x2a0   :  { %v3161_v6 = vrot.slane %v3157_v5, 1 }
 0x2a2   :  { %v3165_v8 = vsel %vm7330_vm1, 0.0, %v3161_v6 }
 0x2a3   :  { %v7973_v9 = vadd.f32 %v3165_v8, %v2881_v7 }
 0x2a4   :  { %v3140_v14 = vpop.f32.mrf.mxu2  ;;  %v3153_v15 = vpop.f32.mrf.mxu3 }
 0x2a5   :  { %v3169_v20 = vsel %vm2315_vm2, %v7973_v9, 0.0  ;;  %v3185_v21 = vmul.f32 %v7973_v9, %v7973_v9 }
 0x2a6   :  { %v3170_v33 = vrot.slane %v3169_v20, 4  ;;  %v3158_v48 = vld [vmem:[#allocation3] sm:$0x1e] }
 0x2a7   :  { %v3187_v62 = vsel %vm2315_vm2, %v3185_v21, 0.0  ;;  %v3162_v22 = vrot.slane %v3158_v48, 1 }
 0x2a8   :  { %v3171_v13 = vadd.f32 %v3170_v33, %v3169_v20  ;;  %v3188_v4 = vrot.slane %v3187_v62, 4 }
 0x2a9   :  { %v3166_v17 = vsel %vm7330_vm1, 0.0, %v3162_v22 }
 0x2aa   :  { %v3172_v24 = vrot.slane %v3171_v13, 2  ;;  %v3189_v25 = vadd.f32 %v3188_v4, %v3187_v62  ;;  %v7982_v55 = vadd.f32 %v3166_v17, %v2907_v23 }
 0x2ac   :  { %v3173_v2 = vadd.f32 %v3172_v24, %v3171_v13  ;;  %v3190_v31 = vrot.slane %v3189_v25, 2  ;;  %v3176_v19 = vsel %vm2315_vm2, %v7982_v55, 0.0  ;;  %v3186_v18 = vmul.f32 %v7982_v55, %v7982_v55 }
 0x2ad   :  { %v3177_v56 = vrot.slane %v3176_v19, 4 }
 0x2ae   :  { %v3174_v26 = vrot.slane %v3173_v2, 1  ;;  %v3191_v27 = vadd.f32 %v3190_v31, %v3189_v25  ;;  %v3194_v35 = vsel %vm2315_vm2, %v3186_v18, 0.0 }
 0x2af   :  { %v3178_v51 = vadd.f32 %v3177_v56, %v3176_v19  ;;  %v3195_v11 = vrot.slane %v3194_v35, 4 }
 0x2b0   :  { %v3175_v29 = vadd.f32 %v3174_v26, %v3173_v2  ;;  %v3192_v32 = vrot.slane %v3191_v27, 1 }
 0x2b1   :  { %v3179_v46 = vrot.slane %v3178_v51, 2  ;;  %v3196_v43 = vadd.f32 %v3195_v11, %v3194_v35 }
 0x2b2   :  { %v3183_v36 = vmul.f32 0.25, %v3175_v29  ;;  %v3193_v37 = vadd.f32 %v3192_v32, %v3191_v27 }
 0x2b3   :  { %v3180_v39 = vadd.f32 %v3179_v46, %v3178_v51  ;;  %v3197_v40 = vrot.slane %v3196_v43, 2 }
 0x2b4   :  { %v3201_v41 = vmul.f32 0.25, %v3193_v37  ;;  %v3203_v12 = vmul.f32 %v3183_v36, %v3183_v36 }
 0x2b5   :  { %v3181_v44 = vrot.slane %v3180_v39, 1  ;;  %v3198_v45 = vadd.f32 %v3197_v40, %v3196_v43 }
 0x2b6   :  { %v3205_v16 = vsub.f32 %v3201_v41, %v3203_v12 }
 0x2b7   :  { %v3182_v63 = vadd.f32 %v3181_v44, %v3180_v39  ;;  %v3199_v47 = vrot.slane %v3198_v45, 1 }
 0x2b8   :  { %v3207_v1 = vadd.f32 1e-05, %v3205_v16 }
 0x2b9   :  { %v3184_v49 = vmul.f32 0.25, %v3182_v63  ;;  %v3200_v30 = vadd.f32 %v3199_v47, %v3198_v45 }
 0x2ba   :  { %5452 = vrsqrt.f32 %v3207_v1  ;;  %vm3215_vm14 = vweird.f32 %v3207_v1 }
 0x2bb   :  { %v3202_v0 = vmul.f32 0.25, %v3200_v30  ;;  %v3204_v28 = vmul.f32 %v3184_v49, %v3184_v49 }
 0x2bd   :  { %v3206_v38 = vsub.f32 %v3202_v0, %v3204_v28 }
 0x2bf   :  { %v3208_v50 = vadd.f32 1e-05, %v3206_v38 }
 0x2c0   :  { %v5453_v34 = vpop.eup %5452 }
 0x2c1   :  { %v3210_v52 = vmul.f32 %v5453_v34, %v3207_v1  ;;  %5454 = vrsqrt.f32 %v3208_v50  ;;  %vm3216_vm11 = vweird.f32 %v5453_v34  ;;  %vm3225_vm12 = vweird.f32 %v3208_v50 }
 0x2c2   :  { %vm3217_vm15 = vmor %vm3215_vm14, %vm3216_vm11 }
 0x2c3   :  { %v3211_v53 = vmul.f32 %v5453_v34, %v3210_v52 }
 0x2c5   :  { %v3212_v60 = vmul.f32 0.5, %v3211_v53 }
 0x2c7   :  { %v5455_v57 = vpop.eup %5454  ;;  %v3213_v5 = vsub.f32 1.5, %v3212_v60 }
 0x2c8   :  { %v3220_v61 = vmul.f32 %v5455_v57, %v3208_v50  ;;  %vm3226_vm10 = vweird.f32 %v5455_v57 }
 0x2c9   :  { %v3214_v7 = vmul.f32 %v5453_v34, %v3213_v5  ;;  %vm3227_vm13 = vmor %vm3225_vm12, %vm3226_vm10 }
 0x2ca   :  { %v3221_v3 = vmul.f32 %v5455_v57, %v3220_v61 }
 0x2cb   :  { %v3218_v14 = vsel %vm3217_vm15, %v5453_v34, %v3214_v7 }
 0x2cc   :  { %v3222_v54 = vmul.f32 0.5, %v3221_v3 }
 0x2ce   :  { %v3223_v6 = vsub.f32 1.5, %v3222_v54 }
 0x2d0   :  { %v3224_v8 = vmul.f32 %v5455_v57, %v3223_v6 }
 0x2d2   :  { %v3228_v58 = vsel %vm3227_vm13, %v5455_v57, %v3224_v8 }
 0x2d3   :  { %v3231_v10 = vrot.slane %v3228_v58, 7 }
 0x2d5   :  { %v3232_v15 = vsel %vm2379_vm8, %v3218_v14, %v3231_v10 }
 0x2d6   :  { %v3234_v20 = vmul.f32 %v3232_v15, %v7745_v59 }
 0x2d8   :  { %v3236_v21 = vperm.slane %v3234_v20, 0  ;;  %v3237_v33 = vperm.slane %v3234_v20, 1 }
 0x2da   :  { %v3241_v48 = vmul.f32 %v3237_v33, %v3184_v49  ;;  %v3240_v62 = vmul.f32 %v3236_v21, %v3183_v36  ;;  %v3248_v4 = vmul.f32 %v3236_v21, %v7973_v9  ;;  %v3249_v17 = vmul.f32 %v3237_v33, %v7982_v55 }
 0x2dc   :  { %v3244_v22 = vrot.slane %v3241_v48, 7 }
 0x2de   :  { %v3245_v23 = vsel %vm2379_vm8, %v3240_v62, %v3244_v22 }
 0x2df   :  { %v3247_v13 = vsub.f32 %v7755_v42, %v3245_v23 }
 0x2e1   :  { %v3251_v24 = vperm.slane %v3247_v13, 0  ;;  %v3252_v25 = vperm.slane %v3247_v13, 1 }
 0x2e3   :  { %v3255_v2 = vadd.f32 %v3251_v24, %v3248_v4  ;;  %v3256_v31 = vadd.f32 %v3252_v25, %v3249_v17 }
 0x2e5   :  { %v3257_v19 = vmax.f32 %v3255_v2, 0.0  ;;  %v3258_v18 = vmax.f32 %v3256_v31, 0.0 }
 0x2e7   :  { %v3259_v59 = vpack.c.bf16 %v3258_v18, %v3257_v19 }
 0x2e9   :  { %v3261_v56 = vrot.slane %v3259_v59, 2 }
 0x2eb   :  { %v3265_v26 = vsel %vm3262_vm0, %v3259_v59, %v3261_v56 }
 0x2ec   :  { %3267 = vst [vmem:[%s8003_s5] sm:$0xf] %v3265_v26 }

// kernel: debugnet_forward.14
= control target key start
LH: loop header
LB: loop body
LE: loop exit
PB: predicated region body
PF: predicated region fallthrough
CT: control target
= control target key end

     0   :  { %vm186_vm0 = vcmask 523264   ;;  %v21_v60 = vlaneseq  ;;  %vm725_vm11 = vcmask 519168   ;;  %s1316_s1 = inlined_call_operand.vmem [shape: bf16[3,192,64], index: 1, kind: input, shape index: {}]   ;;  %s1317_s0 = inlined_call_operand.vmem [shape: bf16[16,192], index: 0, kind: input, shape index: {}]   ;;  %s1318_s2 = inlined_call_operand.vmem [shape: bf16[3,64,64], index: 2, kind: input, shape index: {}]   ;;  %s1319_s3 = inlined_call_operand.vmem [shape: f32[1,64], index: 3, kind: input, shape index: {}]   ;;  %s1320_s4 = inlined_call_operand.vmem [shape: f32[1,64], index: 4, kind: input, shape index: {}]   ;;  %s1321_s5 = inlined_call_operand.vmem [shape: bf16[16,64], index: 5, kind: output, shape index: {}]  }
   0x1   :  { %v1023_v0 = vld [vmem:[%s1316_s1 + $0x38] sm:$0xff]  ;;  %v1022_v3 = vld [vmem:[%s1316_s1 + $0x30] sm:$0xff]  ;;  %v1021_v8 = vld [vmem:[%s1316_s1 + $0x28] sm:$0xff] }
   0x2   :  { %v1027_v1 = vld [vmem:[%s1316_s1 + $0x58] sm:$0xff]  ;;  %190 = vmatpush.bf16.msra.mxu0 %v1023_v0  ;;  %v1026_v4 = vld [vmem:[%s1316_s1 + $0x50] sm:$0xff]  ;;  %v1025_v9 = vld [vmem:[%s1316_s1 + $0x48] sm:$0xff]  ;;  %v22_v0 = vshrl.u32 %v21_v60, 7 }
   0x3   :  { %v1015_v2 = vld [vmem:[%s1316_s1 + $0xb8] sm:$0xff]  ;;  %208 = vmatpush.bf16.msra.mxu1 %v1027_v1  ;;  %v1014_v6 = vld [vmem:[%s1316_s1 + $0xb0] sm:$0xff]  ;;  %v1013_v10 = vld [vmem:[%s1316_s1 + $0xa8] sm:$0xff] }
   0x4   :  { %v1011_v5 = vld [vmem:[%s1316_s1 + $0x98] sm:$0xff]  ;;  %318 = vmatpush.bf16.msra.mxu3 %v1015_v2  ;;  %v1010_v7 = vld [vmem:[%s1316_s1 + $0x90] sm:$0xff]  ;;  %v1009_v11 = vld [vmem:[%s1316_s1 + $0x88] sm:$0xff]  ;;  %v23_v2 = vadd.s32 8, %v22_v0 }
   0x5   :  { %300 = vmatpush.bf16.msra.mxu2 %v1011_v5  ;;  %v1020_v12 = vld [vmem:[%s1316_s1 + $0x20] sm:$0xff]  ;;  %v1035_v15 = vld [vmem:[%s1316_s1 + $0xf8] sm:$0xff]  ;;  %v760_v17 = vld [vmem:[%s1317_s0 + $0x8] sm:$0xf0]  ;;  %v28_v5 = vand.u32 7, %v22_v0 }
   0x6   :  { %191 = vmatpush.bf16.msra.mxu0 %v1022_v3  ;;  %v1024_v13 = vld [vmem:[%s1316_s1 + $0x40] sm:$0xff]  ;;  %v1039_v18 = vld [vmem:[%s1316_s1 + $0x118] sm:$0xff]  ;;  %v1034_v22 = vld [vmem:[%s1316_s1 + $0xf0] sm:$0xff] }
   0x7   :  { %209 = vmatpush.bf16.msra.mxu1 %v1026_v4  ;;  %v1012_v14 = vld [vmem:[%s1316_s1 + $0xa0] sm:$0xff]  ;;  %v1019_v21 = vld [vmem:[%s1316_s1 + $0x18] sm:$0xff]  ;;  %v1038_v23 = vld [vmem:[%s1316_s1 + $0x110] sm:$0xff]  ;;  %vm1248_vm1 = vcmp.eq.s32.totalorder %v28_v5, 0  ;;  %vm1261_vm3 = vcmp.eq.s32.totalorder %v28_v5, 7 }
   0x8   :  { %319 = vmatpush.bf16.msra.mxu3 %v1014_v6  ;;  %v1002_v16 = vld [vmem:[%s1317_s0 + $0x4] sm:$0xf]  ;;  %v1007_v24 = vld [vmem:[%s1316_s1 + $0x78] sm:$0xff]  ;;  %v1018_v25 = vld [vmem:[%s1316_s1 + $0x10] sm:$0xff]  ;;  %v35_v6 = vand.u32 7, %v23_v2 }
   0x9   :  { %301 = vmatpush.bf16.msra.mxu2 %v1010_v7  ;;  %v1008_v19 = vld [vmem:[%s1316_s1 + $0x80] sm:$0xff]  ;;  %v763_v20 = vor.u32 %v1002_v16, %v760_v17  ;;  %v1033_v26 = vld [vmem:[%s1316_s1 + $0xe8] sm:$0xff]  ;;  %v1006_v28 = vld [vmem:[%s1316_s1 + $0x70] sm:$0xff] }
   0xa   :  { %192 = vmatpush.bf16.msra.mxu0 %v1021_v8  ;;  %v1037_v27 = vld [vmem:[%s1316_s1 + $0x108] sm:$0xff]  ;;  %v1032_v30 = vld [vmem:[%s1316_s1 + $0xe0] sm:$0xff]  ;;  %v1031_v36 = vld [vmem:[%s1316_s1 + $0xd8] sm:$0xff]  ;;  %vm1252_vm2 = vcmp.eq.s32.totalorder %v35_v6, 0  ;;  %vm1265_vm4 = vcmp.eq.s32.totalorder %v35_v6, 7 }
   0xb   :  { %210 = vmatpush.bf16.msra.mxu1 %v1025_v9  ;;  %v1017_v29 = vld [vmem:[%s1316_s1 + $0x8] sm:$0xff]  ;;  %v1036_v31 = vld [vmem:[%s1316_s1 + $0x100] sm:$0xff]  ;;  %v1030_v39 = vld [vmem:[%s1316_s1 + $0xd0] sm:$0xff] }
   0xc   :  { %320 = vmatpush.bf16.msra.mxu3 %v1013_v10  ;;  %v1005_v32 = vld [vmem:[%s1316_s1 + $0x68] sm:$0xff]  ;;  %v1016_v33 = vld [vmem:[%s1316_s1] sm:$0xff]  ;;  %v1051_v43 = vld [vmem:[%s1318_s2 + $0x58] sm:$0xff] }
   0xd   :  { %302 = vmatpush.bf16.msra.mxu2 %v1009_v11  ;;  %v758_v34 = vld [vmem:[%s1317_s0] sm:$0xf]  ;;  %v1003_v35 = vld [vmem:[%s1317_s0 + $0x4] sm:$0xf0]  ;;  %v1047_v44 = vld [vmem:[%s1318_s2 + $0x18] sm:$0xff] }
   0xe   :  { %193 = vmatpush.bf16.msra.mxu0 %v1020_v12  ;;  %v1004_v37 = vld [vmem:[%s1316_s1 + $0x60] sm:$0xff]  ;;  %v759_v38 = vor.u32 %v1003_v35, %v758_v34  ;;  %v1029_v40 = vld [vmem:[%s1316_s1 + $0xc8] sm:$0xff]  ;;  %v1043_v45 = vld [vmem:[%s1318_s2 + $0x38] sm:$0xff] }
   0xf   :  { %211 = vmatpush.bf16.msra.mxu1 %v1024_v13  ;;  %v1028_v41 = vld [vmem:[%s1316_s1 + $0xc0] sm:$0xff]  ;;  %v1050_v46 = vld [vmem:[%s1318_s2 + $0x50] sm:$0xff]  ;;  %v1049_v50 = vld [vmem:[%s1318_s2 + $0x48] sm:$0xff] }
  0x10   :  { %321 = vmatpush.bf16.msra.mxu3 %v1012_v14  ;;  %v1046_v47 = vld [vmem:[%s1318_s2 + $0x10] sm:$0xff]  ;;  %v1045_v51 = vld [vmem:[%s1318_s2 + $0x8] sm:$0xff]  ;;  %v1048_v56 = vld [vmem:[%s1318_s2 + $0x40] sm:$0xff] }
  0x11   :  { %303 = vmatpush.bf16.msra.mxu2 %v1008_v19  ;;  %v1042_v49 = vld [vmem:[%s1318_s2 + $0x30] sm:$0xff]  ;;  %v1041_v52 = vld [vmem:[%s1318_s2 + $0x28] sm:$0xff]  ;;  %v1044_v57 = vld [vmem:[%s1318_s2] sm:$0xff] }
  0x12   :  { %812 = vmatmul.msk.bf16.vlgmr.msra.gmra.mxu1 %vm186_vm0, %v763_v20  ;;  %194 = vmatpush.bf16.msra.mxu0 %v1019_v21  ;;  %v1040_v58 = vld [vmem:[%s1318_s2 + $0x20] sm:$0xff] }
  0x13   :  { %425 = vmatpush.bf16.msrb.mxu1 %v1035_v15  ;;  %861 = vmatmul.msk.bf16.vlgmr.msra.gmra.mxu3 %vm186_vm0, %v763_v20 }
  0x14   :  { %443 = vmatpush.bf16.msrb.mxu3 %v1039_v18 }
  0x15   :  { %304 = vmatpush.bf16.msra.mxu2 %v1007_v24 }
  0x16   :  { %195 = vmatpush.bf16.msra.mxu0 %v1018_v25 }
  0x17   :  { %426 = vmatpush.bf16.msrb.mxu1 %v1034_v22 }
  0x18   :  { %444 = vmatpush.bf16.msrb.mxu3 %v1038_v23 }
  0x19   :  { %305 = vmatpush.bf16.msra.mxu2 %v1006_v28 }
  0x1a   :  { %196 = vmatpush.bf16.msra.mxu0 %v1017_v29 }
  0x1b   :  { %427 = vmatpush.bf16.msrb.mxu1 %v1033_v26 }
  0x1c   :  { %445 = vmatpush.bf16.msrb.mxu3 %v1037_v27 }
  0x1d   :  { %306 = vmatpush.bf16.msra.mxu2 %v1005_v32 }
  0x1e   :  { %197 = vmatpush.bf16.msra.mxu0 %v1016_v33 }
  0x1f   :  { %428 = vmatpush.bf16.msrb.mxu1 %v1032_v30 }
  0x20   :  { %446 = vmatpush.bf16.msrb.mxu3 %v1036_v31 }
  0x21   :  { %307 = vmatpush.bf16.msra.mxu2 %v1004_v37  ;;  %198 = vmatmul.bf16.vlgmr.msra.gmra.mxu0 %v759_v38 }
  0x22   :  { %564 = vmatpush.bf16.msrb.mxu0 %v1047_v44 }
  0x23   :  { %429 = vmatpush.bf16.msrb.mxu1 %v1031_v36  ;;  %934 = vmatmul.msk.bf16.vlgmr.msrb.gmra.mxu3 %vm186_vm0, %v763_v20 }
  0x24   :  { %308 = vmatmul.bf16.vlgmr.msra.gmra.mxu2 %v759_v38  ;;  %655 = vmatpush.bf16.msra.mxu3 %v1051_v43 }
  0x25   :  { %608 = vmatpush.bf16.msrb.mxu2 %v1043_v45 }
  0x26   :  { %565 = vmatpush.bf16.msrb.mxu0 %v1046_v47 }
  0x27   :  { %430 = vmatpush.bf16.msrb.mxu1 %v1030_v39 }
  0x28   :  { %656 = vmatpush.bf16.msra.mxu3 %v1050_v46 }
  0x29   :  { %609 = vmatpush.bf16.msrb.mxu2 %v1042_v49 }
  0x2a   :  { %566 = vmatpush.bf16.msrb.mxu0 %v1045_v51 }
  0x2b   :  { %431 = vmatpush.bf16.msrb.mxu1 %v1029_v40 }
  0x2c   :  { %657 = vmatpush.bf16.msra.mxu3 %v1049_v50 }
  0x2d   :  { %610 = vmatpush.bf16.msrb.mxu2 %v1041_v52 }
  0x2e   :  { %567 = vmatpush.bf16.msrb.mxu0 %v1044_v57 }
  0x2f   :  { %432 = vmatpush.bf16.msrb.mxu1 %v1028_v41 }
  0x30   :  { %658 = vmatpush.bf16.msra.mxu3 %v1048_v56 }
  0x31   :  { %611 = vmatpush.bf16.msrb.mxu2 %v1040_v58 }
  0x32   :  { %433 = vmatmul.bf16.vlgmr.msrb.gmra.mxu1 %v759_v38 }
  0x8f   :  { %v213_v48 = vpop.f32.mrf.mxu1 }
  0x96   :  { %v323_v42 = vpop.f32.mrf.mxu3 }
  0x97   :  { %v215_v59 = vpop.f32.mrf.mxu1 }
  0x9e   :  { %v199_v53 = vpop.f32.mrf.mxu0  ;;  %v325_v54 = vpop.f32.mrf.mxu3 }
  0x9f   :  { %v214_v55 = vadd.f32 %v213_v48, %v199_v53 }
  0xa1   :  { %218 = vst.msk [vmem:[#allocation2 + $0x1] sm:$0xff] %vm186_vm0, %v214_v55 }
  0xa6   :  { %v201_v61 = vpop.f32.mrf.mxu0  ;;  %v448_v63 = vpop.f32.mrf.mxu3 }
  0xa7   :  { %v216_v62 = vadd.f32 %v215_v59, %v201_v61  ;;  %v309_v3 = vpop.f32.mrf.mxu2  ;;  %v1280_v59 = vld [vmem:[%s1319_s3] sm:$0x1] }
  0xa8   :  { %v220_v8 = vld [vmem:[#allocation2] sm:$0xff] }
  0xa9   :  { %219 = vst.msk [vmem:[#allocation2 + $0x9] sm:$0xff] %vm186_vm0, %v216_v62  ;;  %v226_v14 = vsel %vm1248_vm1, 0.0, %v220_v8 }
  0xaa   :  { %v310_v17 = vadd.f32 %v309_v3, %v226_v14 }
  0xac   :  { %v324_v21 = vadd.f32 %v323_v42, %v310_v17 }
  0xae   :  { %v450_v9 = vpop.f32.mrf.mxu3 }
  0xaf   :  { %v434_v1 = vpop.f32.mrf.mxu1  ;;  %v311_v16 = vpop.f32.mrf.mxu2 }
  0xb0   :  { %v449_v4 = vadd.f32 %v448_v63, %v434_v1  ;;  %v221_v11 = vld [vmem:[#allocation2 + $0x8] sm:$0xff]  ;;  %v1286_v63 = vld [vmem:[%s1320_s4] sm:$0x1] }
  0xb1   :  { %v227_v15 = vsel %vm1252_vm2, 0.0, %v221_v11 }
  0xb2   :  { %453 = vst.msk [vmem:[#allocation3] sm:$0xff] %vm186_vm0, %v449_v4  ;;  %v312_v18 = vadd.f32 %v311_v16, %v227_v15 }
  0xb4   :  { %v326_v22 = vadd.f32 %v325_v54, %v312_v18 }
  0xb7   :  { %v436_v12 = vpop.f32.mrf.mxu1 }
  0xb8   :  { %v451_v13 = vadd.f32 %v450_v9, %v436_v12 }
  0xba   :  { %454 = vst.msk [vmem:[#allocation3 + $0x8] sm:$0xff] %vm186_vm0, %v451_v13 }
  0xc1   :  { %v455_v23 = vld [vmem:[#allocation3 + $0x1] sm:$0xff]  ;;  %v456_v24 = vld [vmem:[#allocation3 + $0x9] sm:$0xff] }
  0xc2   :  { %v461_v25 = vsel %vm1261_vm3, 0.0, %v455_v23  ;;  %v462_v26 = vsel %vm1265_vm4, 0.0, %v456_v24 }
  0xc3   :  { %v463_v27 = vadd.f32 %v461_v25, %v324_v21  ;;  %v464_v28 = vadd.f32 %v462_v26, %v326_v22 }
  0xc5   :  { %v465_v29 = vsel %vm186_vm0, %v463_v27, 0.0  ;;  %v466_v30 = vsel %vm186_vm0, %v464_v28, 0.0  ;;  %v475_v31 = vmul.f32 %v463_v27, %v463_v27  ;;  %v476_v32 = vmul.f32 %v464_v28, %v464_v28 }
  0xc6   :  { %v467_v33 = vadd.f32 %v466_v30, %v465_v29 }
  0xc7   :  { %v477_v34 = vsel %vm186_vm0, %v475_v31, 0.0  ;;  %v478_v35 = vsel %vm186_vm0, %v476_v32, 0.0 }
  0xc8   :  { %v468_v36 = vrot.slane %v467_v33, 4  ;;  %v479_v37 = vadd.f32 %v478_v35, %v477_v34 }
  0xca   :  { %v469_v38 = vadd.f32 %v468_v36, %v467_v33  ;;  %v480_v39 = vrot.slane %v479_v37, 4 }
  0xcc   :  { %v470_v40 = vrot.slane %v469_v38, 2  ;;  %v481_v41 = vadd.f32 %v480_v39, %v479_v37 }
  0xce   :  { %v471_v42 = vadd.f32 %v470_v40, %v469_v38  ;;  %v482_v43 = vrot.slane %v481_v41, 2 }
  0xd0   :  { %v472_v44 = vrot.slane %v471_v42, 1  ;;  %v483_v45 = vadd.f32 %v482_v43, %v481_v41 }
  0xd2   :  { %v473_v46 = vadd.f32 %v472_v44, %v471_v42  ;;  %v484_v47 = vrot.slane %v483_v45, 1 }
  0xd4   :  { %v474_v48 = vmul.f32 0.0625, %v473_v46  ;;  %v485_v49 = vadd.f32 %v484_v47, %v483_v45 }
  0xd6   :  { %v486_v50 = vmul.f32 0.0625, %v485_v49  ;;  %v487_v51 = vmul.f32 %v474_v48, %v474_v48 }
  0xd8   :  { %v488_v52 = vsub.f32 %v486_v50, %v487_v51 }
  0xda   :  { %v489_v53 = vadd.f32 1e-05, %v488_v52 }
  0xdc   :  { %1052 = vrsqrt.f32 %v489_v53  ;;  %vm496_vm6 = vweird.f32 %v489_v53 }
  0xe2   :  { %v1053_v54 = vpop.eup %1052 }
  0xe3   :  { %v491_v55 = vmul.f32 %v1053_v54, %v489_v53  ;;  %vm497_vm5 = vweird.f32 %v1053_v54 }
  0xe4   :  { %vm498_vm7 = vmor %vm496_vm6, %vm497_vm5 }
  0xe5   :  { %v492_v56 = vmul.f32 %v1053_v54, %v491_v55 }
  0xe7   :  { %v493_v57 = vmul.f32 0.5, %v492_v56 }
  0xe9   :  { %v494_v58 = vsub.f32 1.5, %v493_v57 }
  0xeb   :  { %v495_v60 = vmul.f32 %v1053_v54, %v494_v58 }
  0xed   :  { %v499_v61 = vsel %vm498_vm7, %v1053_v54, %v495_v60 }
  0xee   :  { %v500_v62 = vmul.f32 %v499_v61, %v1280_v59 }
  0xf0   :  { %v501_v0 = vmul.f32 %v500_v62, %v474_v48  ;;  %v504_v1 = vperm.slane %v500_v62, 0 }
  0xf2   :  { %v502_v2 = vsub.f32 %v1286_v63, %v501_v0  ;;  %v506_v3 = vmul.f32 %v504_v1, %v463_v27  ;;  %v507_v4 = vmul.f32 %v504_v1, %v464_v28 }
  0xf4   :  { %v509_v5 = vperm.slane %v502_v2, 0 }
  0xf6   :  { %v511_v6 = vadd.f32 %v509_v5, %v506_v3  ;;  %v512_v8 = vadd.f32 %v509_v5, %v507_v4 }
  0xf8   :  { %v513_v9 = vmax.f32 %v511_v6, 0.0  ;;  %v514_v11 = vmax.f32 %v512_v8, 0.0 }
  0xfa   :  { %v515_v12 = vpack.c.bf16 %v514_v11, %v513_v9 }
  0xfc   :  { %959 = vmatmul.msk.bf16.vlgmr.msrb.gmra.mxu0 %vm186_vm0, %v515_v12  ;;  %976 = vmatmul.msk.bf16.vlgmr.msrb.gmra.mxu2 %vm186_vm0, %v515_v12 }
  0xfd   :  { %1001 = vmatmul.msk.bf16.vlgmr.msra.gmra.mxu3 %vm186_vm0, %v515_v12 }
 0x179   :  { %v569_v13 = vpop.f32.mrf.mxu0 }
 0x17a   :  { %574 = vst.msk [vmem:[#allocation2 + $0x1] sm:$0xff] %vm186_vm0, %v569_v13 }
 0x17f   :  { %v613_v16 = vpop.f32.mrf.mxu2 }
 0x180   :  { %v660_v14 = vpop.f32.mrf.mxu3 }
 0x181   :  { %665 = vst.msk [vmem:[#allocation3] sm:$0xff] %vm186_vm0, %v660_v14  ;;  %v571_v15 = vpop.f32.mrf.mxu0  ;;  %v576_v18 = vld [vmem:[#allocation2] sm:$0xff] }
 0x182   :  { %575 = vst.msk [vmem:[#allocation2 + $0x9] sm:$0xff] %vm186_vm0, %v571_v15  ;;  %v578_v22 = vsel %vm1248_vm1, 0.0, %v576_v18 }
 0x183   :  { %v614_v25 = vadd.f32 %v613_v16, %v578_v22 }
 0x187   :  { %v615_v24 = vpop.f32.mrf.mxu2 }
 0x188   :  { %v662_v17 = vpop.f32.mrf.mxu3 }
 0x189   :  { %666 = vst.msk [vmem:[#allocation3 + $0x8] sm:$0xff] %vm186_vm0, %v662_v17  ;;  %v577_v21 = vld [vmem:[#allocation2 + $0x8] sm:$0xff] }
 0x18a   :  { %v579_v23 = vsel %vm1252_vm2, 0.0, %v577_v21 }
 0x18b   :  { %v616_v26 = vadd.f32 %v615_v24, %v579_v23 }
 0x190   :  { %v667_v27 = vld [vmem:[#allocation3 + $0x1] sm:$0xff]  ;;  %v668_v28 = vld [vmem:[#allocation3 + $0x9] sm:$0xff] }
 0x191   :  { %v669_v29 = vsel %vm1261_vm3, 0.0, %v667_v27  ;;  %v670_v30 = vsel %vm1265_vm4, 0.0, %v668_v28 }
 0x192   :  { %v671_v31 = vadd.f32 %v669_v29, %v614_v25  ;;  %v672_v32 = vadd.f32 %v670_v30, %v616_v26 }
 0x194   :  { %v673_v33 = vsel %vm186_vm0, %v671_v31, 0.0  ;;  %v674_v7 = vsel %vm186_vm0, %v672_v32, 0.0  ;;  %v683_v34 = vmul.f32 %v671_v31, %v671_v31  ;;  %v684_v10 = vmul.f32 %v672_v32, %v672_v32 }
 0x195   :  { %v675_v35 = vadd.f32 %v674_v7, %v673_v33 }
 0x196   :  { %v685_v36 = vsel %vm186_vm0, %v683_v34, 0.0  ;;  %v686_v37 = vsel %vm186_vm0, %v684_v10, 0.0 }
 0x197   :  { %v676_v38 = vrot.slane %v675_v35, 4  ;;  %v687_v39 = vadd.f32 %v686_v37, %v685_v36 }
 0x199   :  { %v677_v19 = vadd.f32 %v676_v38, %v675_v35  ;;  %v688_v40 = vrot.slane %v687_v39, 4 }
 0x19b   :  { %v678_v41 = vrot.slane %v677_v19, 2  ;;  %v689_v20 = vadd.f32 %v688_v40, %v687_v39 }
 0x19d   :  { %v679_v42 = vadd.f32 %v678_v41, %v677_v19  ;;  %v690_v43 = vrot.slane %v689_v20, 2 }
 0x19f   :  { %v680_v44 = vrot.slane %v679_v42, 1  ;;  %v691_v45 = vadd.f32 %v690_v43, %v689_v20 }
 0x1a1   :  { %v681_v46 = vadd.f32 %v680_v44, %v679_v42  ;;  %v692_v47 = vrot.slane %v691_v45, 1 }
 0x1a3   :  { %v682_v48 = vmul.f32 0.0625, %v681_v46  ;;  %v693_v49 = vadd.f32 %v692_v47, %v691_v45 }
 0x1a5   :  { %v694_v50 = vmul.f32 0.0625, %v693_v49  ;;  %v695_v51 = vmul.f32 %v682_v48, %v682_v48 }
 0x1a7   :  { %v696_v52 = vsub.f32 %v694_v50, %v695_v51 }
 0x1a9   :  { %v697_v53 = vadd.f32 1e-05, %v696_v52 }
 0x1ab   :  { %1054 = vrsqrt.f32 %v697_v53  ;;  %vm704_vm9 = vweird.f32 %v697_v53 }
 0x1b1   :  { %v1055_v54 = vpop.eup %1054 }
 0x1b2   :  { %v699_v55 = vmul.f32 %v1055_v54, %v697_v53  ;;  %vm705_vm8 = vweird.f32 %v1055_v54 }
 0x1b3   :  { %vm706_vm10 = vmor %vm704_vm9, %vm705_vm8 }
 0x1b4   :  { %v700_v56 = vmul.f32 %v1055_v54, %v699_v55 }
 0x1b6   :  { %v701_v57 = vmul.f32 0.5, %v700_v56 }
 0x1b8   :  { %v702_v58 = vsub.f32 1.5, %v701_v57 }
 0x1ba   :  { %v703_v60 = vmul.f32 %v1055_v54, %v702_v58 }
 0x1bc   :  { %v707_v61 = vsel %vm706_vm10, %v1055_v54, %v703_v60 }
 0x1bd   :  { %v708_v62 = vmul.f32 %v707_v61, %v1280_v59 }
 0x1bf   :  { %v709_v0 = vmul.f32 %v708_v62, %v682_v48  ;;  %v712_v1 = vperm.slane %v708_v62, 0 }
 0x1c1   :  { %v710_v2 = vsub.f32 %v1286_v63, %v709_v0  ;;  %v714_v3 = vmul.f32 %v712_v1, %v671_v31  ;;  %v715_v4 = vmul.f32 %v712_v1, %v672_v32 }
 0x1c3   :  { %v717_v5 = vperm.slane %v710_v2, 0 }
 0x1c5   :  { %v719_v6 = vadd.f32 %v717_v5, %v714_v3  ;;  %v720_v8 = vadd.f32 %v717_v5, %v715_v4 }
 0x1c7   :  { %v721_v9 = vmax.f32 %v719_v6, 0.0  ;;  %v722_v11 = vmax.f32 %v720_v8, 0.0 }
 0x1c9   :  { %v723_v12 = vpack.c.bf16 %v721_v9, %v721_v9  ;;  %v724_v13 = vpack.c.bf16 %v722_v11, %v722_v11 }
 0x1cb   :  { %726 = vst.msk [vmem:[%s1321_s5] sm:$0xf] %vm725_vm11, %v723_v12 }
 0x1cc   :  { %727 = vst.msk [vmem:[%s1321_s5 + $0x4] sm:$0xf] %vm725_vm11, %v724_v13 }

</bundles_post_ra>
